<compile_context>
chip_gen: v5e
topology: v5e:2x2
jax: 0.10.0
libtpu: 0.0.40
codegen_flags: <defaults>
</compile_context>

<pallas_src>
import jax
import jax.numpy as jnp
from jax.experimental import pallas as pl
from jax.experimental.pallas import tpu as pltpu


# ----------------------------------------------------------------------------
# Weight-layout glue (torch OIHW -> im2col slabs, zero-padded to lane widths)
# ----------------------------------------------------------------------------
def _w3x3_slab(w, cin_pad, cout_pad):
    """(O, I, 3, 3) -> (9*cin_pad, cout_pad); row = (ky*3+kx)*cin_pad + i."""
    O, I = w.shape[0], w.shape[1]
    w = jnp.transpose(w, (2, 3, 1, 0))                       # (3, 3, I, O)
    w = jnp.pad(w, ((0, 0), (0, 0), (0, cin_pad - I), (0, cout_pad - O)))
    return w.reshape(9 * cin_pad, cout_pad)


def _w3x3_stack_slab(w, cin_pad, cout_pad):
    """(L, O, I, 3, 3) -> (L, 9*cin_pad, cout_pad)."""
    Lw, O, I = w.shape[0], w.shape[1], w.shape[2]
    w = jnp.transpose(w, (0, 3, 4, 2, 1))                    # (L, 3, 3, I, O)
    w = jnp.pad(w, ((0, 0), (0, 0), (0, 0),
                    (0, cin_pad - I), (0, cout_pad - O)))
    return w.reshape(Lw, 9 * cin_pad, cout_pad)


def _w1x1_pad(w, cin_pad, cout_pad):
    """(O, I, 1, 1) -> (cin_pad, cout_pad)."""
    O, I = w.shape[0], w.shape[1]
    w = jnp.transpose(w[:, :, 0, 0], (1, 0))                 # (I, O)
    return jnp.pad(w, ((0, cin_pad - I), (0, cout_pad - O)))


# ----------------------------------------------------------------------------
# Fused KPCN kernel
# ----------------------------------------------------------------------------
def _make_kpcn_call(N, H, W, C, K2, K2P, L):
    assert H % 8 == 0 and W % 8 == 0, "toy/real sizes are multiples of 8"
    ROW_H = 8                     # image rows per MXU tile
    ROWS = ROW_H * W              # flat rows per tile (128 at W=16)
    n_chunks = H // ROW_H

    def kernel(x_ref, w_ref, w3_ref, w4_ref, o_ref, xpad_ref, col_ref):
        l = pl.program_id(1)
        last = pl.num_programs(1) - 1

        # Layer 0 of each image: zero the halo once and drop the (channel-
        # padded) image into the interior of the persistent padded scratch.
        @pl.when(l == 0)
        def _():
            xpad_ref[...] = jnp.zeros_like(xpad_ref)
            xpad_ref[1:1 + H, 1:1 + W, :] = x_ref[0]

        # im2col snapshot of all 9 taps of the current activation.
        # Tap (1,1) -> columns [4C:5C] is the unshifted interior, reused below
        # as the residual input.
        for dy in range(3):
            for dx in range(3):
                tap = dy * 3 + dx
                col_ref[:, tap * C:(tap + 1) * C] = (
                    xpad_ref[dy:dy + H, dx:dx + W, :].reshape(H * W, C))

        has_res = l >= 2          # residual blocks only
        has_relu = l != 1         # conv2 has no activation
        w_l = w_ref[0]            # (9*C, C)

        lane = jax.lax.broadcasted_iota(jnp.int32, (1, K2P), 1)
        valid = lane < K2         # mask for padded head channels

        for c in range(n_chunks):
            r0, r1 = c * ROWS, (c + 1) * ROWS
            # one deep-K MXU matmul per row tile: (ROWS, 9C) x (9C, C)
            acc = jnp.dot(col_ref[r0:r1, :], w_l,
                          preferred_element_type=jnp.float32)
            res = col_ref[r0:r1, 4 * C:5 * C]
            out = jnp.where(has_res, acc + res, acc)
            out = jnp.where(has_relu, jnp.maximum(out, 0.0), out)

            # write back into the padded-scratch interior for the next layer
            h0 = 1 + c * ROW_H
            xpad_ref[h0:h0 + ROW_H, 1:1 + W, :] = out.reshape(ROW_H, W, C)

            # fused head on the final layer's output (still live in vregs)
            @pl.when(l == last)
            def _():
                h = jnp.maximum(
                    jnp.dot(out, w3_ref[...],
                            preferred_element_type=jnp.float32), 0.0)
                z = jnp.dot(h, w4_ref[...],
                            preferred_element_type=jnp.float32)
                z = jnp.where(valid, z, -1e30)          # mask padded logits
                z = z - jnp.max(z, axis=-1, keepdims=True)
                e = jnp.exp(z)
                o_ref[0, r0:r1, :] = e / jnp.sum(e, axis=-1, keepdims=True)

    return pl.pallas_call(
        kernel,
        grid_spec=pltpu.PrefetchScalarGridSpec(
            num_scalar_prefetch=0,
            grid=(N, L),
            in_specs=[
                # image: fetched once per n (constant block across layer axis)
                pl.BlockSpec((1, H, W, C), lambda n, l: (n, 0, 0, 0)),
                # per-layer im2col weight slab, streamed along the layer axis
                pl.BlockSpec((1, 9 * C, C), lambda n, l: (l, 0, 0)),
                # head weights: constant block -> VMEM-resident
                pl.BlockSpec((C, K2P), lambda n, l: (0, 0)),
                pl.BlockSpec((K2P, K2P), lambda n, l: (0, 0)),
            ],
            out_specs=pl.BlockSpec((1, H * W, K2P), lambda n, l: (n, 0, 0)),
            scratch_shapes=[
                pltpu.VMEM((H + 2, W + 2, C), jnp.float32),   # padded act
                pltpu.VMEM((H * W, 9 * C), jnp.float32),      # im2col buffer
            ],
        ),
        out_shape=jax.ShapeDtypeStruct((N, H * W, K2P), jnp.float32),
        compiler_params=pltpu.CompilerParams(
            dimension_semantics=("parallel", "arbitrary")),
    )


# ----------------------------------------------------------------------------
# KPCN forward (Pallas)
# ----------------------------------------------------------------------------
@jax.jit
def kpcn_forward(x_nchw, params):
    N, Cin, H, W = x_nchw.shape
    C = 128                                     # hidden channels, 100 -> 128
    K2 = params["conv3"].shape[0]               # 441
    K2P = ((K2 + 127) // 128) * 128             # 512
    L = 2 + params["res"].shape[0]              # conv1, conv2, 24 res blocks

    # NCHW -> NHWC, zero-pad input channels to the padded hidden width
    x = jnp.transpose(x_nchw, (0, 2, 3, 1))
    x = jnp.pad(x, ((0, 0), (0, 0), (0, 0), (0, C - Cin)))

    # one (L, 9*C, C) trunk-weight stack; padded channels are exact zeros
    w_trunk = jnp.concatenate(
        [_w3x3_slab(params["conv1"], C, C)[None],
         _w3x3_slab(params["conv2"], C, C)[None],
         _w3x3_stack_slab(params["res"], C, C)], axis=0)
    w3p = _w1x1_pad(params["conv3"], C, K2P)            # (C, K2P)
    w4p = _w1x1_pad(params["conv4"], K2P, K2P)          # (K2P, K2P)

    out = _make_kpcn_call(N, H, W, C, K2, K2P, L)(x, w_trunk, w3p, w4p)
    out = out.reshape(N, H, W, K2P)[:, :, :, :K2]       # drop channel padding
    return jnp.transpose(out, (0, 3, 1, 2))             # back to NCHW


# ----------------------------------------------------------------------------
# Pure-JAX reference (mirrors the PyTorch module, NCHW / OIHW)
# ----------------------------------------------------------------------------
def kpcn_reference(x_nchw, params):
    dn = ("NCHW", "OIHW", "NCHW")

    def conv(x, w, p):
        return jax.lax.conv_general_dilated(
            x, w, window_strides=(1, 1), padding=[(p, p), (p, p)],
            dimension_numbers=dn)

    x = jnp.maximum(conv(x_nchw, params["conv1"], 1), 0.0)
    x = conv(x, params["conv2"], 1)
    for i in range(params["res"].shape[0]):
        x = jnp.maximum(conv(x, params["res"][i], 1) + x, 0.0)
    x = jnp.maximum(conv(x, params["conv3"], 0), 0.0)
    x = conv(x, params["conv4"], 0)
    return jax.nn.softmax(x, axis=1)


# ----------------------------------------------------------------------------
if __name__ == "__main__":
    N, CIN, H, W = 2, 4, 16, 16
    KSIZE = 21                       # module default -> 441 output channels
    K2 = KSIZE * KSIZE

    key = jax.random.PRNGKey(0)
    k_x, k1, k2, k3, k4, k5 = jax.random.split(key, 6)

    def init(k, shape, fan_in, scale=1.0):
        return (scale * (2.0 / fan_in) ** 0.5
                * jax.random.normal(k, shape, jnp.float32))

    # Deterministic synthetic weights (torch conv layout: O, I, kh, kw; bias=False)
    params = {
        "conv1": init(k1, (100, CIN, 3, 3), CIN * 9),
        "conv2": init(k2, (100, 100, 3, 3), 900, 0.3),
        "res":   init(k3, (24, 100, 100, 3, 3), 900, 0.3),
        "conv3": init(k4, (K2, 100, 1, 1), 100),
        "conv4": init(k5, (K2, K2, 1, 1), K2),
    }

    x = jax.random.normal(k_x, (N, CIN, H, W), jnp.float32)

    out = jax.block_until_ready(kpcn_forward(x, params))
    assert out.shape == (N, K2, H, W), out.shape

    ref = jax.block_until_ready(kpcn_reference(x, params))
    err = float(jnp.max(jnp.abs(out - ref)))
    assert err < 2e-3, f"max abs diff vs reference: {err}"

    print("KERNEL_OK")
</pallas_src>

<mosaic_0001>
module attributes {stable_mosaic.version = 11 : i64} {
  func.func @kernel(%arg0: i32, %arg1: i32, %arg2: memref<1x16x16x128xf32, #tpu.memory_space<vmem>>, %arg3: memref<1x1152x128xf32, #tpu.memory_space<vmem>>, %arg4: memref<128x512xf32, #tpu.memory_space<vmem>>, %arg5: memref<512x512xf32, #tpu.memory_space<vmem>>, %arg6: memref<1x256x512xf32, #tpu.memory_space<vmem>>, %arg7: memref<18x18x128xf32, #tpu.memory_space<vmem>>, %arg8: memref<256x1152xf32, #tpu.memory_space<vmem>>) attributes {dimension_semantics = [#tpu.dimension_semantics<parallel>, #tpu.dimension_semantics<arbitrary>], iteration_bounds = array<i64: 2, 26>, scalar_prefetch = 0 : i64, scratch_operands = 2 : i64, tpu.core_type = #tpu.core_type<tc>, window_params = [{transform_indices = @transform_0, window_bounds = array<i64: 1, 16, 16, 128>}, {transform_indices = @transform_1, window_bounds = array<i64: 1, 1152, 128>}, {pipeline_mode = #tpu.pipeline_mode<synchronous>, transform_indices = @transform_2, window_bounds = array<i64: 128, 512>}, {pipeline_mode = #tpu.pipeline_mode<synchronous>, transform_indices = @transform_3, window_bounds = array<i64: 512, 512>}, {transform_indices = @transform_4, window_bounds = array<i64: 1, 256, 512>}]} {
    %c0_i32 = arith.constant 0 : i32
    %0 = arith.cmpi eq, %arg1, %c0_i32 : i32
    %1 = arith.extui %0 : i1 to i32
    %c0_i32_0 = arith.constant 0 : i32
    %2 = arith.cmpi ne, %1, %c0_i32_0 : i32
    scf.if %2 {
      %cst_57 = arith.constant 0.000000e+00 : f32
      %63 = vector.broadcast %cst_57 : f32 to vector<18x18x128xf32>
      %c0_58 = arith.constant 0 : index
      %c0_59 = arith.constant 0 : index
      %c0_60 = arith.constant 0 : index
      %64 = vector.load %arg7[%c0_58, %c0_59, %c0_60] : memref<18x18x128xf32, #tpu.memory_space<vmem>>, vector<18x18x128xf32>
      tpu.vector_store %arg7[%c0_58, %c0_59, %c0_60], %63 {strides = array<i32>} : memref<18x18x128xf32, #tpu.memory_space<vmem>>, vector<18x18x128xf32>,
      %c0_61 = arith.constant 0 : index
      %c0_62 = arith.constant 0 : index
      %c0_63 = arith.constant 0 : index
      %c0_64 = arith.constant 0 : index
      %65 = vector.load %arg2[%c0_61, %c0_62, %c0_63, %c0_64] : memref<1x16x16x128xf32, #tpu.memory_space<vmem>>, vector<1x16x16x128xf32>
      %66 = vector.shape_cast %65 : vector<1x16x16x128xf32> to vector<16x16x128xf32>
      %c1_65 = arith.constant 1 : index
      %c1_66 = arith.constant 1 : index
      %c0_67 = arith.constant 0 : index
      %67 = vector.load %arg7[%c1_65, %c1_66, %c0_67] : memref<18x18x128xf32, #tpu.memory_space<vmem>>, vector<16x16x128xf32>
      tpu.vector_store %arg7[%c1_65, %c1_66, %c0_67], %66 {strides = array<i32>} : memref<18x18x128xf32, #tpu.memory_space<vmem>>, vector<16x16x128xf32>,
    } else {
    }
    %c0 = arith.constant 0 : index
    %c0_1 = arith.constant 0 : index
    %c0_2 = arith.constant 0 : index
    %3 = vector.load %arg7[%c0, %c0_1, %c0_2] : memref<18x18x128xf32, #tpu.memory_space<vmem>>, vector<16x16x128xf32>
    %4 = vector.shape_cast %3 : vector<16x16x128xf32> to vector<256x128xf32>
    %c0_3 = arith.constant 0 : index
    %c0_4 = arith.constant 0 : index
    %5 = vector.load %arg8[%c0_3, %c0_4] : memref<256x1152xf32, #tpu.memory_space<vmem>>, vector<256x128xf32>
    tpu.vector_store %arg8[%c0_3, %c0_4], %4 {strides = array<i32>} : memref<256x1152xf32, #tpu.memory_space<vmem>>, vector<256x128xf32>,
    %c0_5 = arith.constant 0 : index
    %c1 = arith.constant 1 : index
    %c0_6 = arith.constant 0 : index
    %6 = vector.load %arg7[%c0_5, %c1, %c0_6] : memref<18x18x128xf32, #tpu.memory_space<vmem>>, vector<16x16x128xf32>
    %7 = vector.shape_cast %6 : vector<16x16x128xf32> to vector<256x128xf32>
    %c0_7 = arith.constant 0 : index
    %c128 = arith.constant 128 : index
    %8 = vector.load %arg8[%c0_7, %c128] : memref<256x1152xf32, #tpu.memory_space<vmem>>, vector<256x128xf32>
    tpu.vector_store %arg8[%c0_7, %c128], %7 {strides = array<i32>} : memref<256x1152xf32, #tpu.memory_space<vmem>>, vector<256x128xf32>,
    %c0_8 = arith.constant 0 : index
    %c2 = arith.constant 2 : index
    %c0_9 = arith.constant 0 : index
    %9 = vector.load %arg7[%c0_8, %c2, %c0_9] : memref<18x18x128xf32, #tpu.memory_space<vmem>>, vector<16x16x128xf32>
    %10 = vector.shape_cast %9 : vector<16x16x128xf32> to vector<256x128xf32>
    %c0_10 = arith.constant 0 : index
    %c256 = arith.constant 256 : index
    %11 = vector.load %arg8[%c0_10, %c256] : memref<256x1152xf32, #tpu.memory_space<vmem>>, vector<256x128xf32>
    tpu.vector_store %arg8[%c0_10, %c256], %10 {strides = array<i32>} : memref<256x1152xf32, #tpu.memory_space<vmem>>, vector<256x128xf32>,
    %c1_11 = arith.constant 1 : index
    %c0_12 = arith.constant 0 : index
    %c0_13 = arith.constant 0 : index
    %12 = vector.load %arg7[%c1_11, %c0_12, %c0_13] : memref<18x18x128xf32, #tpu.memory_space<vmem>>, vector<16x16x128xf32>
    %13 = vector.shape_cast %12 : vector<16x16x128xf32> to vector<256x128xf32>
    %c0_14 = arith.constant 0 : index
    %c384 = arith.constant 384 : index
    %14 = vector.load %arg8[%c0_14, %c384] : memref<256x1152xf32, #tpu.memory_space<vmem>>, vector<256x128xf32>
    tpu.vector_store %arg8[%c0_14, %c384], %13 {strides = array<i32>} : memref<256x1152xf32, #tpu.memory_space<vmem>>, vector<256x128xf32>,
    %c1_15 = arith.constant 1 : index
    %c1_16 = arith.constant 1 : index
    %c0_17 = arith.constant 0 : index
    %15 = vector.load %arg7[%c1_15, %c1_16, %c0_17] : memref<18x18x128xf32, #tpu.memory_space<vmem>>, vector<16x16x128xf32>
    %16 = vector.shape_cast %15 : vector<16x16x128xf32> to vector<256x128xf32>
    %c0_18 = arith.constant 0 : index
    %c512 = arith.constant 512 : index
    %17 = vector.load %arg8[%c0_18, %c512] : memref<256x1152xf32, #tpu.memory_space<vmem>>, vector<256x128xf32>
    tpu.vector_store %arg8[%c0_18, %c512], %16 {strides = array<i32>} : memref<256x1152xf32, #tpu.memory_space<vmem>>, vector<256x128xf32>,
    %c1_19 = arith.constant 1 : index
    %c2_20 = arith.constant 2 : index
    %c0_21 = arith.constant 0 : index
    %18 = vector.load %arg7[%c1_19, %c2_20, %c0_21] : memref<18x18x128xf32, #tpu.memory_space<vmem>>, vector<16x16x128xf32>
    %19 = vector.shape_cast %18 : vector<16x16x128xf32> to vector<256x128xf32>
    %c0_22 = arith.constant 0 : index
    %c640 = arith.constant 640 : index
    %20 = vector.load %arg8[%c0_22, %c640] : memref<256x1152xf32, #tpu.memory_space<vmem>>, vector<256x128xf32>
    tpu.vector_store %arg8[%c0_22, %c640], %19 {strides = array<i32>} : memref<256x1152xf32, #tpu.memory_space<vmem>>, vector<256x128xf32>,
    %c2_23 = arith.constant 2 : index
    %c0_24 = arith.constant 0 : index
    %c0_25 = arith.constant 0 : index
    %21 = vector.load %arg7[%c2_23, %c0_24, %c0_25] : memref<18x18x128xf32, #tpu.memory_space<vmem>>, vector<16x16x128xf32>
    %22 = vector.shape_cast %21 : vector<16x16x128xf32> to vector<256x128xf32>
    %c0_26 = arith.constant 0 : index
    %c768 = arith.constant 768 : index
    %23 = vector.load %arg8[%c0_26, %c768] : memref<256x1152xf32, #tpu.memory_space<vmem>>, vector<256x128xf32>
    tpu.vector_store %arg8[%c0_26, %c768], %22 {strides = array<i32>} : memref<256x1152xf32, #tpu.memory_space<vmem>>, vector<256x128xf32>,
    %c2_27 = arith.constant 2 : index
    %c1_28 = arith.constant 1 : index
    %c0_29 = arith.constant 0 : index
    %24 = vector.load %arg7[%c2_27, %c1_28, %c0_29] : memref<18x18x128xf32, #tpu.memory_space<vmem>>, vector<16x16x128xf32>
    %25 = vector.shape_cast %24 : vector<16x16x128xf32> to vector<256x128xf32>
    %c0_30 = arith.constant 0 : index
    %c896 = arith.constant 896 : index
    %26 = vector.load %arg8[%c0_30, %c896] : memref<256x1152xf32, #tpu.memory_space<vmem>>, vector<256x128xf32>
    tpu.vector_store %arg8[%c0_30, %c896], %25 {strides = array<i32>} : memref<256x1152xf32, #tpu.memory_space<vmem>>, vector<256x128xf32>,
    %c2_31 = arith.constant 2 : index
    %c2_32 = arith.constant 2 : index
    %c0_33 = arith.constant 0 : index
    %27 = vector.load %arg7[%c2_31, %c2_32, %c0_33] : memref<18x18x128xf32, #tpu.memory_space<vmem>>, vector<16x16x128xf32>
    %28 = vector.shape_cast %27 : vector<16x16x128xf32> to vector<256x128xf32>
    %c0_34 = arith.constant 0 : index
    %c1024 = arith.constant 1024 : index
    %29 = vector.load %arg8[%c0_34, %c1024] : memref<256x1152xf32, #tpu.memory_space<vmem>>, vector<256x128xf32>
    tpu.vector_store %arg8[%c0_34, %c1024], %28 {strides = array<i32>} : memref<256x1152xf32, #tpu.memory_space<vmem>>, vector<256x128xf32>,
    %c2_i32 = arith.constant 2 : i32
    %30 = arith.cmpi sge, %arg1, %c2_i32 : i32
    %c1_i32 = arith.constant 1 : i32
    %31 = arith.cmpi ne, %arg1, %c1_i32 : i32
    %c0_35 = arith.constant 0 : index
    %c0_36 = arith.constant 0 : index
    %c0_37 = arith.constant 0 : index
    %32 = vector.load %arg3[%c0_35, %c0_36, %c0_37] : memref<1x1152x128xf32, #tpu.memory_space<vmem>>, vector<1x1152x128xf32>
    %33 = vector.shape_cast %32 : vector<1x1152x128xf32> to vector<1152x128xf32>
    %34 = tpu.iota {dimensions = array<i32: 1>} : vector<1x512xi32>
    %c441_i32 = arith.constant 441 : i32
    %35 = vector.broadcast %c441_i32 : i32 to vector<1x512xi32>
    %36 = arith.cmpi slt, %34, %35 : vector<1x512xi32>
    %c0_38 = arith.constant 0 : index
    %c0_39 = arith.constant 0 : index
    %37 = vector.load %arg8[%c0_38, %c0_39] : memref<256x1152xf32, #tpu.memory_space<vmem>>, vector<128x1152xf32>
    %cst = arith.constant dense<0.000000e+00> : vector<128x128xf32>
    %38 = tpu.matmul %37, %33, %cst {dimension_numbers = #tpu.dot_dimension_numbers<[1], [0], [0], [1], [0, 0, 1, 1], [], []>} : vector<128x1152xf32>, vector<1152x128xf32>, vector<128x128xf32> -> vector<128x128xf32>
    %c0_40 = arith.constant 0 : index
    %c512_41 = arith.constant 512 : index
    %39 = vector.load %arg8[%c0_40, %c512_41] : memref<256x1152xf32, #tpu.memory_space<vmem>>, vector<128x128xf32>
    %40 = arith.addf %38, %39 : vector<128x128xf32>
    %41 = arith.select %30, %40, %38 : vector<128x128xf32>
    %cst_42 = arith.constant 0.000000e+00 : f32
    %42 = vector.broadcast %cst_42 : f32 to vector<128x128xf32>
    %43 = arith.maximumf %41, %42 : vector<128x128xf32>
    %44 = arith.select %31, %43, %41 : vector<128x128xf32>
    %45 = vector.shape_cast %44 : vector<128x128xf32> to vector<8x16x128xf32>
    %c1_43 = arith.constant 1 : index
    %c1_44 = arith.constant 1 : index
    %c0_45 = arith.constant 0 : index
    %46 = vector.load %arg7[%c1_43, %c1_44, %c0_45] : memref<18x18x128xf32, #tpu.memory_space<vmem>>, vector<8x16x128xf32>
    tpu.vector_store %arg7[%c1_43, %c1_44, %c0_45], %45 {strides = array<i32>} : memref<18x18x128xf32, #tpu.memory_space<vmem>>, vector<8x16x128xf32>,
    %c25_i32 = arith.constant 25 : i32
    %47 = arith.cmpi eq, %arg1, %c25_i32 : i32
    %48 = arith.extui %47 : i1 to i32
    %c0_i32_46 = arith.constant 0 : i32
    %49 = arith.cmpi ne, %48, %c0_i32_46 : i32
    scf.if %49 {
      %c0_57 = arith.constant 0 : index
      %c0_58 = arith.constant 0 : index
      %63 = vector.load %arg4[%c0_57, %c0_58] : memref<128x512xf32, #tpu.memory_space<vmem>>, vector<128x512xf32>
      %cst_59 = arith.constant dense<0.000000e+00> : vector<128x512xf32>
      %64 = tpu.matmul %44, %63, %cst_59 {dimension_numbers = #tpu.dot_dimension_numbers<[1], [0], [0], [1], [0, 0, 1, 1], [], []>} : vector<128x128xf32>, vector<128x512xf32>, vector<128x512xf32> -> vector<128x512xf32>
      %cst_60 = arith.constant 0.000000e+00 : f32
      %65 = vector.broadcast %cst_60 : f32 to vector<128x512xf32>
      %66 = arith.maximumf %64, %65 : vector<128x512xf32>
      %c0_61 = arith.constant 0 : index
      %c0_62 = arith.constant 0 : index
      %67 = vector.load %arg5[%c0_61, %c0_62] : memref<512x512xf32, #tpu.memory_space<vmem>>, vector<512x512xf32>
      %cst_63 = arith.constant dense<0.000000e+00> : vector<128x512xf32>
      %68 = tpu.matmul %66, %67, %cst_63 {dimension_numbers = #tpu.dot_dimension_numbers<[1], [0], [0], [1], [0, 0, 1, 1], [], []>} : vector<128x512xf32>, vector<512x512xf32>, vector<128x512xf32> -> vector<128x512xf32>
      %cst_64 = arith.constant -1.000000e+30 : f32
      %69 = vector.shape_cast %36 : vector<1x512xi1> to vector<1x512xi1>
      %70 = vector.broadcast %69 : vector<1x512xi1> to vector<128x512xi1>
      %71 = vector.broadcast %cst_64 : f32 to vector<128x512xf32>
      %72 = arith.select %70, %68, %71 : vector<128x512xi1>, vector<128x512xf32>
      %cst_65 = arith.constant dense<0xFF800000> : vector<128xf32>
      %73 = vector.multi_reduction <maximumf>, %72, %cst_65 [1] : vector<128x512xf32> to vector<128xf32>
      %74 = vector.shape_cast %73 : vector<128xf32> to vector<128x1xf32>
      %75 = vector.broadcast %74 : vector<128x1xf32> to vector<128x512xf32>
      %76 = arith.subf %72, %75 : vector<128x512xf32>
      %77 = math.exp %76 : vector<128x512xf32>
      %cst_66 = arith.constant dense<0.000000e+00> : vector<128xf32>
      %78 = vector.multi_reduction <add>, %77, %cst_66 [1] : vector<128x512xf32> to vector<128xf32>
      %79 = vector.shape_cast %78 : vector<128xf32> to vector<128x1xf32>
      %80 = vector.broadcast %79 : vector<128x1xf32> to vector<128x512xf32>
      %81 = arith.divf %77, %80 : vector<128x512xf32>
      %c0_67 = arith.constant 0 : index
      %c0_68 = arith.constant 0 : index
      %c0_69 = arith.constant 0 : index
      %82 = vector.load %arg6[%c0_67, %c0_68, %c0_69] : memref<1x256x512xf32, #tpu.memory_space<vmem>>, vector<1x128x512xf32>
      %83 = vector.shape_cast %82 : vector<1x128x512xf32> to vector<128x512xf32>
      %84 = vector.shape_cast %81 : vector<128x512xf32> to vector<1x128x512xf32>
      tpu.vector_store %arg6[%c0_67, %c0_68, %c0_69], %84 {strides = array<i32>} : memref<1x256x512xf32, #tpu.memory_space<vmem>>, vector<1x128x512xf32>,
    } else {
    }
    %c128_47 = arith.constant 128 : index
    %c0_48 = arith.constant 0 : index
    %50 = vector.load %arg8[%c128_47, %c0_48] : memref<256x1152xf32, #tpu.memory_space<vmem>>, vector<128x1152xf32>
    %cst_49 = arith.constant dense<0.000000e+00> : vector<128x128xf32>
    %51 = tpu.matmul %50, %33, %cst_49 {dimension_numbers = #tpu.dot_dimension_numbers<[1], [0], [0], [1], [0, 0, 1, 1], [], []>} : vector<128x1152xf32>, vector<1152x128xf32>, vector<128x128xf32> -> vector<128x128xf32>
    %c128_50 = arith.constant 128 : index
    %c512_51 = arith.constant 512 : index
    %52 = vector.load %arg8[%c128_50, %c512_51] : memref<256x1152xf32, #tpu.memory_space<vmem>>, vector<128x128xf32>
    %53 = arith.addf %51, %52 : vector<128x128xf32>
    %54 = arith.select %30, %53, %51 : vector<128x128xf32>
    %cst_52 = arith.constant 0.000000e+00 : f32
    %55 = vector.broadcast %cst_52 : f32 to vector<128x128xf32>
    %56 = arith.maximumf %54, %55 : vector<128x128xf32>
    %57 = arith.select %31, %56, %54 : vector<128x128xf32>
    %58 = vector.shape_cast %57 : vector<128x128xf32> to vector<8x16x128xf32>
    %c9 = arith.constant 9 : index
    %c1_53 = arith.constant 1 : index
    %c0_54 = arith.constant 0 : index
    %59 = vector.load %arg7[%c9, %c1_53, %c0_54] : memref<18x18x128xf32, #tpu.memory_space<vmem>>, vector<8x16x128xf32>
    tpu.vector_store %arg7[%c9, %c1_53, %c0_54], %58 {strides = array<i32>} : memref<18x18x128xf32, #tpu.memory_space<vmem>>, vector<8x16x128xf32>,
    %c25_i32_55 = arith.constant 25 : i32
    %60 = arith.cmpi eq, %arg1, %c25_i32_55 : i32
    %61 = arith.extui %60 : i1 to i32
    %c0_i32_56 = arith.constant 0 : i32
    %62 = arith.cmpi ne, %61, %c0_i32_56 : i32
    scf.if %62 {
      %c0_57 = arith.constant 0 : index
      %c0_58 = arith.constant 0 : index
      %63 = vector.load %arg4[%c0_57, %c0_58] : memref<128x512xf32, #tpu.memory_space<vmem>>, vector<128x512xf32>
      %cst_59 = arith.constant dense<0.000000e+00> : vector<128x512xf32>
      %64 = tpu.matmul %57, %63, %cst_59 {dimension_numbers = #tpu.dot_dimension_numbers<[1], [0], [0], [1], [0, 0, 1, 1], [], []>} : vector<128x128xf32>, vector<128x512xf32>, vector<128x512xf32> -> vector<128x512xf32>
      %cst_60 = arith.constant 0.000000e+00 : f32
      %65 = vector.broadcast %cst_60 : f32 to vector<128x512xf32>
      %66 = arith.maximumf %64, %65 : vector<128x512xf32>
      %c0_61 = arith.constant 0 : index
      %c0_62 = arith.constant 0 : index
      %67 = vector.load %arg5[%c0_61, %c0_62] : memref<512x512xf32, #tpu.memory_space<vmem>>, vector<512x512xf32>
      %cst_63 = arith.constant dense<0.000000e+00> : vector<128x512xf32>
      %68 = tpu.matmul %66, %67, %cst_63 {dimension_numbers = #tpu.dot_dimension_numbers<[1], [0], [0], [1], [0, 0, 1, 1], [], []>} : vector<128x512xf32>, vector<512x512xf32>, vector<128x512xf32> -> vector<128x512xf32>
      %cst_64 = arith.constant -1.000000e+30 : f32
      %69 = vector.shape_cast %36 : vector<1x512xi1> to vector<1x512xi1>
      %70 = vector.broadcast %69 : vector<1x512xi1> to vector<128x512xi1>
      %71 = vector.broadcast %cst_64 : f32 to vector<128x512xf32>
      %72 = arith.select %70, %68, %71 : vector<128x512xi1>, vector<128x512xf32>
      %cst_65 = arith.constant dense<0xFF800000> : vector<128xf32>
      %73 = vector.multi_reduction <maximumf>, %72, %cst_65 [1] : vector<128x512xf32> to vector<128xf32>
      %74 = vector.shape_cast %73 : vector<128xf32> to vector<128x1xf32>
      %75 = vector.broadcast %74 : vector<128x1xf32> to vector<128x512xf32>
      %76 = arith.subf %72, %75 : vector<128x512xf32>
      %77 = math.exp %76 : vector<128x512xf32>
      %cst_66 = arith.constant dense<0.000000e+00> : vector<128xf32>
      %78 = vector.multi_reduction <add>, %77, %cst_66 [1] : vector<128x512xf32> to vector<128xf32>
      %79 = vector.shape_cast %78 : vector<128xf32> to vector<128x1xf32>
      %80 = vector.broadcast %79 : vector<128x1xf32> to vector<128x512xf32>
      %81 = arith.divf %77, %80 : vector<128x512xf32>
      %c0_67 = arith.constant 0 : index
      %c128_68 = arith.constant 128 : index
      %c0_69 = arith.constant 0 : index
      %82 = vector.load %arg6[%c0_67, %c128_68, %c0_69] : memref<1x256x512xf32, #tpu.memory_space<vmem>>, vector<1x128x512xf32>
      %83 = vector.shape_cast %82 : vector<1x128x512xf32> to vector<128x512xf32>
      %84 = vector.shape_cast %81 : vector<128x512xf32> to vector<1x128x512xf32>
      tpu.vector_store %arg6[%c0_67, %c128_68, %c0_69], %84 {strides = array<i32>} : memref<1x256x512xf32, #tpu.memory_space<vmem>>, vector<1x128x512xf32>,
    } else {
    }
    return
  }
  func.func @transform_0(%arg0: i32, %arg1: i32) -> (i32, i32, i32, i32) {
    %c0_i32 = arith.constant 0 : i32
    %c0_i32_0 = arith.constant 0 : i32
    %c0_i32_1 = arith.constant 0 : i32
    %c0_i32_2 = arith.constant 0 : i32
    return %arg0, %c0_i32, %c0_i32_0, %c0_i32_1 : i32, i32, i32, i32
  }
  func.func @transform_1(%arg0: i32, %arg1: i32) -> (i32, i32, i32) {
    %c0_i32 = arith.constant 0 : i32
    %c0_i32_0 = arith.constant 0 : i32
    %c0_i32_1 = arith.constant 0 : i32
    return %arg1, %c0_i32, %c0_i32_0 : i32, i32, i32
  }
  func.func @transform_2(%arg0: i32, %arg1: i32) -> (i32, i32) {
    %c0_i32 = arith.constant 0 : i32
    %c0_i32_0 = arith.constant 0 : i32
    %c0_i32_1 = arith.constant 0 : i32
    return %c0_i32, %c0_i32_0 : i32, i32
  }
  func.func @transform_3(%arg0: i32, %arg1: i32) -> (i32, i32) {
    %c0_i32 = arith.constant 0 : i32
    %c0_i32_0 = arith.constant 0 : i32
    %c0_i32_1 = arith.constant 0 : i32
    return %c0_i32, %c0_i32_0 : i32, i32
  }
  func.func @transform_4(%arg0: i32, %arg1: i32) -> (i32, i32, i32) {
    %c0_i32 = arith.constant 0 : i32
    %c0_i32_0 = arith.constant 0 : i32
    %c0_i32_1 = arith.constant 0 : i32
    return %arg0, %c0_i32, %c0_i32_0 : i32, i32, i32
  }
}

</mosaic_0001>

<bundles_post_ra>
// kernel: kpcn_forward.1
= control target key start
LH: loop header
LB: loop body
LE: loop exit
PB: predicated region body
PF: predicated region fallthrough
CT: control target
= control target key end

     0   :  { %s8289_s15 = smov 0   ;;  %s8291_s16 = smov 0   ;;  %s14208_s0 = inlined_call_operand.vmem [shape: f32[2,16,16,128], index: 0, kind: input, shape index: {}]   ;;  %s14209_s1 = inlined_call_operand.vmem [shape: f32[26,1152,128], index: 1, kind: input, shape index: {}]   ;;  %s14210_s2 = inlined_call_operand.vmem [shape: f32[128,512], index: 2, kind: input, shape index: {}]   ;;  %s14211_s3 = inlined_call_operand.vmem [shape: f32[512,512], index: 3, kind: input, shape index: {}]   ;;  %s14212_s4 = inlined_call_operand.vmem [shape: f32[2,256,512], index: 4, kind: output, shape index: {}]  }
   0x1   :  { %s8293_s17 = smov 0   ;;  %s8295_s18 = smov 0  }
   0x2   :  { %s8297_s19 = smov 0  }
   0x3 LB: > { %s23_s20 = sadd.s32 1, %s8253_s17  ;;  %s26_s21 = sadd.s32 1, %s8257_s18  ;;  %s8261_s19 = sphi %s8297_s19, %s14_s19   ;;  %s8257_s18 = sphi %s8295_s18, %s15247_s18   ;;  %s8253_s17 = sphi %s8293_s17, %s15246_s17   ;;  %s8249_s16 = sphi %s8291_s16, %s15245_s16   ;;  %s8245_s15 = sphi %s8289_s15, %s15244_s15  }
   0x4   : > { %p24_p0 = scmp.ge.s32.totalorder %s23_s20, 26  ;;  %p7752_p1 = scmp.ge.s32.totalorder %s8261_s19, 1 }
   0x5   : > { %p184_p2 = scmp.lt.s32.totalorder %s8261_s19, 53 }
   0x6   : > { %s15249_s20 = smov (%p24_p0, %s23_s20), 0  ;;  %s15251_s21 = smov (!%p24_p0, %s26_s21), %s8257_s18 }
   0x7   : > { %p185_p3 = pnand %p7752_p1, %p184_p2  ;;  %p28_p4 = scmp.ge.s32.totalorder %s15251_s21, 2 }
   0x9   : > { %s15253_s21 = smov (%p28_p4, %s15251_s21), 0  ;;  %188 = sbr.rel (%p185_p3) target bundleno = 3315 (0xcf3), region = 36 }
   0xe   : > { %p215_p5 = scmp.lt.s32.totalorder %s8249_s16, 1  ;;  %p220_p6 = scmp.lt.s32.totalorder %s8245_s15, 25 }
   0xf   : > { %p7758_p7 = scmp.ne.s32.totalorder %s8245_s15, 0 }
  0x10   : > { %s15255_s16 = smov (!%p215_p5, %s8249_s16), 1 }
  0x11   : > { %s221_s22 = scalar_select %p220_p6, %s8245_s15, 25 }
  0x12   : > { %s7763_s23 = sshll.u32 %s15255_s16, 8  ;;  %s7764_s24 = sshll.u32 %s15255_s16, 10 }
  0x13   : > { %s8326_s27 = scalar_lea.vmem %s14208_s0, %s7763_s23  ;;  %s7861_s28 = smul.u32 1152, %s221_s22 }
  0x14   : > { %s8331_s5 = scalar_lea.vmem %s14212_s4, %s7764_s24  ;;  %233 = sbr.rel (%p7758_p7) target bundleno = 112 (0x70), region = 40 }
  0x15   : > { %s8336_s8 = scalar_lea.vmem %s14209_s1, %s7861_s28 }
  0x19   : > { %v8263_v0 = vmov 0.0   ;;  %v288_v1 = vld [vmem:[%s8326_s27] sm:$0xff]  ;;  %v289_v2 = vld [vmem:[%s8326_s27 + $0x8] sm:$0xff]  ;;  %v290_v3 = vld [vmem:[%s8326_s27 + $0x10] sm:$0xff] }
  0x1a   : > { %237 = vst [vmem:[#allocation2 + $0x18] sm:$0xff] %v8263_v0  ;;  %v291_v4 = vld [vmem:[%s8326_s27 + $0x18] sm:$0xff]  ;;  %v292_v5 = vld [vmem:[%s8326_s27 + $0x20] sm:$0xff]  ;;  %v293_v6 = vld [vmem:[%s8326_s27 + $0x28] sm:$0xff] }
  0x1b   : > { %234 = vst [vmem:[#allocation2] sm:$0xff] %v8263_v0  ;;  %v294_v7 = vld [vmem:[%s8326_s27 + $0x30] sm:$0xff]  ;;  %v295_v8 = vld [vmem:[%s8326_s27 + $0x38] sm:$0xff]  ;;  %v296_v9 = vld [vmem:[%s8326_s27 + $0x40] sm:$0xff] }
  0x1c   : > { %235 = vst [vmem:[#allocation2 + $0x8] sm:$0xff] %v8263_v0  ;;  %v297_v10 = vld [vmem:[%s8326_s27 + $0x48] sm:$0xff]  ;;  %v298_v11 = vld [vmem:[%s8326_s27 + $0x50] sm:$0xff]  ;;  %v299_v12 = vld [vmem:[%s8326_s27 + $0x58] sm:$0xff] }
  0x1d   : > { %236 = vst [vmem:[#allocation2 + $0x10] sm:$0x3] %v8263_v0  ;;  %v300_v13 = vld [vmem:[%s8326_s27 + $0x60] sm:$0xff]  ;;  %v301_v14 = vld [vmem:[%s8326_s27 + $0x68] sm:$0xff]  ;;  %v302_v15 = vld [vmem:[%s8326_s27 + $0x70] sm:$0xff] }
  0x1e   : > { %238 = vst [vmem:[#allocation2 + $0x20] sm:$0xff] %v8263_v0  ;;  %v303_v16 = vld [vmem:[%s8326_s27 + $0x78] sm:$0xff]  ;;  %v304_v17 = vld [vmem:[%s8326_s27 + $0x80] sm:$0xff]  ;;  %v305_v18 = vld [vmem:[%s8326_s27 + $0x88] sm:$0xff] }
  0x1f   : > { %239 = vst [vmem:[#allocation2 + $0x28] sm:$0x3] %v8263_v0  ;;  %v306_v19 = vld [vmem:[%s8326_s27 + $0x90] sm:$0xff]  ;;  %v307_v20 = vld [vmem:[%s8326_s27 + $0x98] sm:$0xff]  ;;  %v308_v21 = vld [vmem:[%s8326_s27 + $0xa0] sm:$0xff] }
  0x20   : > { %240 = vst [vmem:[#allocation2 + $0x30] sm:$0xff] %v8263_v0  ;;  %v309_v22 = vld [vmem:[%s8326_s27 + $0xa8] sm:$0xff]  ;;  %v310_v23 = vld [vmem:[%s8326_s27 + $0xb0] sm:$0xff]  ;;  %v311_v24 = vld [vmem:[%s8326_s27 + $0xb8] sm:$0xff] }
  0x21   : > { %241 = vst [vmem:[#allocation2 + $0x38] sm:$0xff] %v8263_v0  ;;  %v312_v25 = vld [vmem:[%s8326_s27 + $0xc0] sm:$0xff]  ;;  %v313_v26 = vld [vmem:[%s8326_s27 + $0xc8] sm:$0xff]  ;;  %v314_v27 = vld [vmem:[%s8326_s27 + $0xd0] sm:$0xff] }
  0x22   : > { %242 = vst [vmem:[#allocation2 + $0x40] sm:$0x3] %v8263_v0  ;;  %v315_v28 = vld [vmem:[%s8326_s27 + $0xd8] sm:$0xff]  ;;  %v316_v29 = vld [vmem:[%s8326_s27 + $0xe0] sm:$0xff]  ;;  %v317_v30 = vld [vmem:[%s8326_s27 + $0xe8] sm:$0xff] }
  0x23   : > { %243 = vst [vmem:[#allocation2 + $0x48] sm:$0xff] %v8263_v0  ;;  %v318_v31 = vld [vmem:[%s8326_s27 + $0xf0] sm:$0xff]  ;;  %v319_v32 = vld [vmem:[%s8326_s27 + $0xf8] sm:$0xff] }
  0x24   : > { %244 = vst [vmem:[#allocation2 + $0x50] sm:$0xff] %v8263_v0 }
  0x25   : > { %245 = vst [vmem:[#allocation2 + $0x58] sm:$0x3] %v8263_v0 }
  0x26   : > { %246 = vst [vmem:[#allocation2 + $0x60] sm:$0xff] %v8263_v0 }
  0x27   : > { %247 = vst [vmem:[#allocation2 + $0x68] sm:$0xff] %v8263_v0 }
  0x28   : > { %248 = vst [vmem:[#allocation2 + $0x70] sm:$0x3] %v8263_v0 }
  0x29   : > { %249 = vst [vmem:[#allocation2 + $0x78] sm:$0xff] %v8263_v0 }
  0x2a   : > { %250 = vst [vmem:[#allocation2 + $0x80] sm:$0xff] %v8263_v0 }
  0x2b   : > { %251 = vst [vmem:[#allocation2 + $0x88] sm:$0x3] %v8263_v0 }
  0x2c   : > { %252 = vst [vmem:[#allocation2 + $0x90] sm:$0xff] %v8263_v0 }
  0x2d   : > { %253 = vst [vmem:[#allocation2 + $0x98] sm:$0xff] %v8263_v0 }
  0x2e   : > { %254 = vst [vmem:[#allocation2 + $0xa0] sm:$0x3] %v8263_v0 }
  0x2f   : > { %255 = vst [vmem:[#allocation2 + $0xa8] sm:$0xff] %v8263_v0 }
  0x30   : > { %256 = vst [vmem:[#allocation2 + $0xb0] sm:$0xff] %v8263_v0 }
  0x31   : > { %257 = vst [vmem:[#allocation2 + $0xb8] sm:$0x3] %v8263_v0 }
  0x32   : > { %258 = vst [vmem:[#allocation2 + $0xc0] sm:$0xff] %v8263_v0 }
  0x33   : > { %259 = vst [vmem:[#allocation2 + $0xc8] sm:$0xff] %v8263_v0 }
  0x34   : > { %260 = vst [vmem:[#allocation2 + $0xd0] sm:$0x3] %v8263_v0 }
  0x35   : > { %261 = vst [vmem:[#allocation2 + $0xd8] sm:$0xff] %v8263_v0 }
  0x36   : > { %262 = vst [vmem:[#allocation2 + $0xe0] sm:$0xff] %v8263_v0 }
  0x37   : > { %263 = vst [vmem:[#allocation2 + $0xe8] sm:$0x3] %v8263_v0 }
  0x38   : > { %264 = vst [vmem:[#allocation2 + $0xf0] sm:$0xff] %v8263_v0 }
  0x39   : > { %265 = vst [vmem:[#allocation2 + $0xf8] sm:$0xff] %v8263_v0 }
  0x3a   : > { %266 = vst [vmem:[#allocation2 + $0x100] sm:$0x3] %v8263_v0 }
  0x3b   : > { %267 = vst [vmem:[#allocation2 + $0x108] sm:$0xff] %v8263_v0 }
  0x3c   : > { %268 = vst [vmem:[#allocation2 + $0x110] sm:$0xff] %v8263_v0 }
  0x3d   : > { %269 = vst [vmem:[#allocation2 + $0x118] sm:$0x3] %v8263_v0 }
  0x3e   : > { %270 = vst [vmem:[#allocation2 + $0x120] sm:$0xff] %v8263_v0 }
  0x3f   : > { %271 = vst [vmem:[#allocation2 + $0x128] sm:$0xff] %v8263_v0 }
  0x40   : > { %272 = vst [vmem:[#allocation2 + $0x130] sm:$0x3] %v8263_v0 }
  0x41   : > { %273 = vst [vmem:[#allocation2 + $0x138] sm:$0xff] %v8263_v0 }
  0x42   : > { %274 = vst [vmem:[#allocation2 + $0x140] sm:$0xff] %v8263_v0 }
  0x43   : > { %275 = vst [vmem:[#allocation2 + $0x148] sm:$0x3] %v8263_v0 }
  0x44   : > { %276 = vst [vmem:[#allocation2 + $0x150] sm:$0xff] %v8263_v0 }
  0x45   : > { %277 = vst [vmem:[#allocation2 + $0x158] sm:$0xff] %v8263_v0 }
  0x46   : > { %278 = vst [vmem:[#allocation2 + $0x160] sm:$0x3] %v8263_v0 }
  0x47   : > { %279 = vst [vmem:[#allocation2 + $0x168] sm:$0xff] %v8263_v0 }
  0x48   : > { %280 = vst [vmem:[#allocation2 + $0x170] sm:$0xff] %v8263_v0 }
  0x49   : > { %281 = vst [vmem:[#allocation2 + $0x178] sm:$0x3] %v8263_v0 }
  0x4a   : > { %282 = vst [vmem:[#allocation2 + $0x180] sm:$0xff] %v8263_v0 }
  0x4b   : > { %283 = vst [vmem:[#allocation2 + $0x188] sm:$0xff] %v8263_v0 }
  0x4c   : > { %284 = vst [vmem:[#allocation2 + $0x190] sm:$0x3] %v8263_v0 }
  0x4d   : > { %285 = vst [vmem:[#allocation2 + $0x198] sm:$0xff] %v8263_v0 }
  0x4e   : > { %286 = vst [vmem:[#allocation2 + $0x1a0] sm:$0xff] %v8263_v0 }
  0x4f   : > { %287 = vst [vmem:[#allocation2 + $0x1a8] sm:$0x3] %v8263_v0 }
  0x50   : > { %321 = vst [vmem:[#allocation2 + $0x19] sm:$0xff] %v288_v1 }
  0x51   : > { %322 = vst [vmem:[#allocation2 + $0x21] sm:$0xff] %v289_v2 }
  0x52   : > { %323 = vst [vmem:[#allocation2 + $0x31] sm:$0xff] %v290_v3 }
  0x53   : > { %324 = vst [vmem:[#allocation2 + $0x39] sm:$0xff] %v291_v4 }
  0x54   : > { %325 = vst [vmem:[#allocation2 + $0x49] sm:$0xff] %v292_v5 }
  0x55   : > { %326 = vst [vmem:[#allocation2 + $0x51] sm:$0xff] %v293_v6 }
  0x56   : > { %327 = vst [vmem:[#allocation2 + $0x61] sm:$0xff] %v294_v7 }
  0x57   : > { %328 = vst [vmem:[#allocation2 + $0x69] sm:$0xff] %v295_v8 }
  0x58   : > { %329 = vst [vmem:[#allocation2 + $0x79] sm:$0xff] %v296_v9 }
  0x59   : > { %330 = vst [vmem:[#allocation2 + $0x81] sm:$0xff] %v297_v10 }
  0x5a   : > { %331 = vst [vmem:[#allocation2 + $0x91] sm:$0xff] %v298_v11 }
  0x5b   : > { %332 = vst [vmem:[#allocation2 + $0x99] sm:$0xff] %v299_v12 }
  0x5c   : > { %333 = vst [vmem:[#allocation2 + $0xa9] sm:$0xff] %v300_v13 }
  0x5d   : > { %334 = vst [vmem:[#allocation2 + $0xb1] sm:$0xff] %v301_v14 }
  0x5e   : > { %335 = vst [vmem:[#allocation2 + $0xc1] sm:$0xff] %v302_v15 }
  0x5f   : > { %336 = vst [vmem:[#allocation2 + $0xc9] sm:$0xff] %v303_v16 }
  0x60   : > { %337 = vst [vmem:[#allocation2 + $0xd9] sm:$0xff] %v304_v17 }
  0x61   : > { %338 = vst [vmem:[#allocation2 + $0xe1] sm:$0xff] %v305_v18 }
  0x62   : > { %339 = vst [vmem:[#allocation2 + $0xf1] sm:$0xff] %v306_v19 }
  0x63   : > { %340 = vst [vmem:[#allocation2 + $0xf9] sm:$0xff] %v307_v20 }
  0x64   : > { %341 = vst [vmem:[#allocation2 + $0x109] sm:$0xff] %v308_v21 }
  0x65   : > { %342 = vst [vmem:[#allocation2 + $0x111] sm:$0xff] %v309_v22 }
  0x66   : > { %343 = vst [vmem:[#allocation2 + $0x121] sm:$0xff] %v310_v23 }
  0x67   : > { %344 = vst [vmem:[#allocation2 + $0x129] sm:$0xff] %v311_v24 }
  0x68   : > { %345 = vst [vmem:[#allocation2 + $0x139] sm:$0xff] %v312_v25 }
  0x69   : > { %346 = vst [vmem:[#allocation2 + $0x141] sm:$0xff] %v313_v26 }
  0x6a   : > { %347 = vst [vmem:[#allocation2 + $0x151] sm:$0xff] %v314_v27 }
  0x6b   : > { %348 = vst [vmem:[#allocation2 + $0x159] sm:$0xff] %v315_v28 }
  0x6c   : > { %349 = vst [vmem:[#allocation2 + $0x169] sm:$0xff] %v316_v29 }
  0x6d   : > { %350 = vst [vmem:[#allocation2 + $0x171] sm:$0xff] %v317_v30 }
  0x6e   : > { %351 = vst [vmem:[#allocation2 + $0x181] sm:$0xff] %v318_v31 }
  0x6f   : > { %352 = vst [vmem:[#allocation2 + $0x189] sm:$0xff] %v319_v32 }
  0x70 PF: > { %v8372_v33 = vld [vmem:[%s8336_s8 + $0x78] sm:$0xff]  ;;  %v8375_v34 = vld [vmem:[%s8336_s8 + $0x70] sm:$0xff]  ;;  %v8380_v35 = vld [vmem:[%s8336_s8 + $0x68] sm:$0xff]  ;;  %p931_p8 = scmp.ge.s32.totalorder %s8245_s15, 2  ;;  %p932_p9 = scmp.ne.s32.totalorder %s8245_s15, 1 }
  0x71   : > { %14575 = vst [vmem:[#allocation4_spill] sm:$0xff] %v8372_v33  ;;  %7765 = vmatpush.msra.mxu1 %v8372_v33  ;;  %7766 = vmatpush.msra.mxu2 %v8372_v33  ;;  %v8382_v36 = vld [vmem:[#allocation2 + $0xd8] sm:$0xff]  ;;  %v8385_v37 = vld [vmem:[#allocation2 + $0xe0] sm:$0xff]  ;;  %v8387_v38 = vld [vmem:[#allocation2 + $0xf0] sm:$0xff]  ;;  %p7759_p10 = scmp.ne.s32.totalorder %s8245_s15, 25 }
  0x72   : > { %14576 = vst [vmem:[#allocation5_spill] sm:$0xff] %v8375_v34  ;;  %7767 = vmatpush.msra.mxu3 %v8372_v33  ;;  %v8389_v39 = vld [vmem:[#allocation2 + $0xf8] sm:$0xff]  ;;  %1230 = vmatpush.msra.mxu0 %v8372_v33  ;;  %v8395_v40 = vld [vmem:[#allocation2 + $0x108] sm:$0xff]  ;;  %v8400_v41 = vld [vmem:[%s8336_s8 + $0x60] sm:$0xff]  ;;  %s1847_s9 = scalar_select %p931_p8, 1, 0 }
  0x73   : > { %14577 = vst [vmem:[#allocation6_spill] sm:$0xff] %v8380_v35  ;;  %7768 = vmatpush.msra.mxu1 %v8375_v34  ;;  %7769 = vmatpush.msra.mxu2 %v8375_v34  ;;  %v8402_v42 = vld [vmem:[#allocation2 + $0x110] sm:$0xff]  ;;  %v8408_v43 = vld [vmem:[#allocation2 + $0x120] sm:$0xff]  ;;  %v8413_v44 = vld [vmem:[%s8336_s8 + $0x58] sm:$0xff]  ;;  %s1882_s10 = scalar_select %p932_p9, 1, 0 }
  0x74   : > { %403 = vst [vmem:[#allocation3 + $0x550] sm:$0xff] %v8382_v36  ;;  %7770 = vmatpush.msra.mxu3 %v8375_v34  ;;  %1231 = vmatpush.msra.mxu0 %v8375_v34  ;;  %v8415_v45 = vld [vmem:[#allocation2 + $0x128] sm:$0xff]  ;;  %v8421_v46 = vld [vmem:[#allocation2 + $0x138] sm:$0xff]  ;;  %v8425_v47 = vld [vmem:[#allocation2 + $0x140] sm:$0xff] }
  0x75   : > { %404 = vst [vmem:[#allocation3 + $0x788] sm:$0xff] %v8385_v37  ;;  %7771 = vmatpush.msra.mxu1 %v8380_v35  ;;  %7772 = vmatpush.msra.mxu2 %v8380_v35  ;;  %v8431_v48 = vld [vmem:[#allocation2 + $0x150] sm:$0xff]  ;;  %v8434_v49 = vld [vmem:[#allocation2 + $0x158] sm:$0xff]  ;;  %v8439_v50 = vld [vmem:[#allocation2 + $0x168] sm:$0xff] }
  0x76   : > { %14578 = vst [vmem:[#allocation7_spill] sm:$0xff] %v8400_v41  ;;  %7773 = vmatpush.msra.mxu3 %v8380_v35  ;;  %1232 = vmatpush.msra.mxu0 %v8380_v35  ;;  %v8442_v51 = vld [vmem:[#allocation2 + $0x170] sm:$0xff]  ;;  %v8446_v52 = vld [vmem:[#allocation2 + $0xd9] sm:$0xff]  ;;  %v8449_v53 = vld [vmem:[#allocation2 + $0xe1] sm:$0xff] }
  0x77   : > { %405 = vst [vmem:[#allocation3 + $0x428] sm:$0xff] %v8387_v38  ;;  %7774 = vmatpush.msra.mxu1 %v8400_v41  ;;  %7775 = vmatpush.msra.mxu2 %v8400_v41  ;;  %v8452_v54 = vld [vmem:[#allocation2 + $0xf1] sm:$0xff]  ;;  %v8454_v55 = vld [vmem:[#allocation2 + $0xf9] sm:$0xff]  ;;  %v8461_v57 = vld [vmem:[%s8336_s8 + $0x48] sm:$0xff] }
  0x78   : > { %406 = vst [vmem:[#allocation3 + $0x4a0] sm:$0xff] %v8389_v39  ;;  %7776 = vmatpush.msra.mxu3 %v8400_v41  ;;  %1233 = vmatpush.msra.mxu0 %v8400_v41  ;;  %v8458_v56 = vld [vmem:[%s8336_s8 + $0x50] sm:$0xff]  ;;  %v8473_v60 = vld [vmem:[%s8336_s8 + $0x40] sm:$0xff]  ;;  %v8486_v63 = vld [vmem:[%s8336_s8 + $0x38] sm:$0xff] }
  0x79   : > { %14579 = vst [vmem:[#allocation8_spill] sm:$0xff] %v8413_v44  ;;  %7777 = vmatpush.msra.mxu1 %v8413_v44  ;;  %7778 = vmatpush.msra.mxu2 %v8413_v44  ;;  %v8463_v58 = vld [vmem:[#allocation2 + $0x109] sm:$0xff]  ;;  %v8468_v59 = vld [vmem:[#allocation2 + $0x111] sm:$0xff]  ;;  %v8476_v61 = vld [vmem:[#allocation2 + $0x121] sm:$0xff] }
  0x7a   : > { %407 = vst [vmem:[#allocation3 + $0x408] sm:$0xff] %v8395_v40  ;;  %7779 = vmatpush.msra.mxu3 %v8413_v44  ;;  %1234 = vmatpush.msra.mxu0 %v8413_v44  ;;  %v8481_v62 = vld [vmem:[#allocation2 + $0x129] sm:$0xff]  ;;  %v8489_v0 = vld [vmem:[#allocation2 + $0x139] sm:$0xff]  ;;  %v8494_v1 = vld [vmem:[#allocation2 + $0x141] sm:$0xff] }
  0x7b   : > { %408 = vst [vmem:[#allocation3 + $0x510] sm:$0xff] %v8402_v42  ;;  %7780 = vmatpush.msra.mxu1 %v8458_v56  ;;  %7781 = vmatpush.msra.mxu2 %v8458_v56  ;;  %v8499_v2 = vld [vmem:[%s8336_s8 + $0x30] sm:$0xff]  ;;  %v8507_v4 = vld [vmem:[#allocation2 + $0x159] sm:$0xff]  ;;  %v8512_v5 = vld [vmem:[%s8336_s8 + $0x28] sm:$0xff] }
  0x7c   : > { %409 = vst [vmem:[#allocation3 + $0x3c0] sm:$0xff] %v8408_v43  ;;  %7782 = vmatpush.msra.mxu3 %v8458_v56  ;;  %1235 = vmatpush.msra.mxu0 %v8458_v56  ;;  %v8502_v3 = vld [vmem:[#allocation2 + $0x151] sm:$0xff]  ;;  %v8515_v6 = vld [vmem:[#allocation2 + $0x169] sm:$0xff]  ;;  %v8525_v8 = vld [vmem:[%s8336_s8 + $0x20] sm:$0xff] }
  0x7d   : > { %410 = vst [vmem:[#allocation3 + $0x1f0] sm:$0xff] %v8415_v45  ;;  %7783 = vmatpush.msra.mxu1 %v8461_v57  ;;  %7784 = vmatpush.msra.mxu2 %v8461_v57  ;;  %v8520_v7 = vld [vmem:[#allocation2 + $0x171] sm:$0xff]  ;;  %v8529_v9 = vld [vmem:[#allocation2 + $0xda] sm:$0xff]  ;;  %v8534_v10 = vld [vmem:[#allocation2 + $0xe2] sm:$0xff] }
  0x7e   : > { %411 = vst [vmem:[#allocation3 + $0x90] sm:$0xff] %v8421_v46  ;;  %7785 = vmatpush.msra.mxu3 %v8461_v57  ;;  %1236 = vmatpush.msra.mxu0 %v8461_v57  ;;  %v8538_v11 = vld [vmem:[%s8336_s8 + $0x18] sm:$0xff]  ;;  %v8551_v14 = vld [vmem:[%s8336_s8 + $0x10] sm:$0xff]  ;;  %v8564_v17 = vld [vmem:[%s8336_s8 + $0x8] sm:$0xff] }
  0x7f   : > { %412 = vst [vmem:[#allocation3 + $0x3b8] sm:$0xff] %v8425_v47  ;;  %7786 = vmatpush.msra.mxu1 %v8473_v60  ;;  %7787 = vmatpush.msra.mxu2 %v8473_v60  ;;  %v8542_v12 = vld [vmem:[#allocation2 + $0xf2] sm:$0xff]  ;;  %v8546_v13 = vld [vmem:[#allocation2 + $0xfa] sm:$0xff]  ;;  %v8554_v15 = vld [vmem:[#allocation2 + $0x10a] sm:$0xff] }
  0x80   : > { %413 = vst [vmem:[#allocation3 + $0x2b8] sm:$0xff] %v8431_v48  ;;  %7788 = vmatpush.msra.mxu3 %v8473_v60  ;;  %1237 = vmatpush.msra.mxu0 %v8473_v60  ;;  %v8559_v16 = vld [vmem:[#allocation2 + $0x112] sm:$0xff]  ;;  %v8567_v18 = vld [vmem:[#allocation2 + $0x122] sm:$0xff]  ;;  %v8572_v19 = vld [vmem:[#allocation2 + $0x12a] sm:$0xff] }
  0x81   : > { %414 = vst [vmem:[#allocation3 + $0x268] sm:$0xff] %v8434_v49  ;;  %7789 = vmatpush.msra.mxu1 %v8486_v63  ;;  %7790 = vmatpush.msra.mxu2 %v8486_v63  ;;  %v8577_v20 = vld [vmem:[%s8336_s8] sm:$0xff]  ;;  %v8585_v22 = vld [vmem:[#allocation2 + $0x30] sm:$0xff]  ;;  %v8594_v25 = vld [vmem:[%s8336_s8 + $0x178] sm:$0xff] }
  0x82   : > { %415 = vst [vmem:[#allocation3 + $0x3d0] sm:$0xff] %v8439_v50  ;;  %7791 = vmatpush.msra.mxu3 %v8486_v63  ;;  %1238 = vmatpush.msra.mxu0 %v8486_v63  ;;  %v8580_v21 = vld [vmem:[#allocation2 + $0x13a] sm:$0xff]  ;;  %v8589_v24 = vld [vmem:[#allocation2 + $0x142] sm:$0xff]  ;;  %v8597_v26 = vld [vmem:[#allocation2 + $0x152] sm:$0xff] }
  0x83   : > { %416 = vst [vmem:[#allocation3 + $0x460] sm:$0xff] %v8442_v51  ;;  %7792 = vmatpush.msra.mxu1 %v8499_v2  ;;  %7793 = vmatpush.msra.mxu2 %v8499_v2  ;;  %v8587_v23 = vld [vmem:[#allocation2 + $0x60] sm:$0xff]  ;;  %v8603_v27 = vld [vmem:[%s8336_s8 + $0xf8] sm:$0xff]  ;;  %v8605_v28 = vld [vmem:[#allocation2 + $0x90] sm:$0xff] }
  0x84   : > { %467 = vst [vmem:[#allocation3] sm:$0xff] %v8446_v52  ;;  %7794 = vmatpush.msra.mxu3 %v8499_v2  ;;  %1239 = vmatpush.msra.mxu0 %v8499_v2  ;;  %v8607_v29 = vld [vmem:[#allocation2 + $0x15a] sm:$0xff]  ;;  %v8613_v30 = vld [vmem:[%s8336_s8 + $0x170] sm:$0xff]  ;;  %v8787_v44 = vld [vmem:[%s8336_s8 + $0x128] sm:$0xff] }
  0x85   : > { %14580 = vst [vmem:[#allocation9_spill] sm:$0xff] %v8458_v56  ;;  %7795 = vmatpush.msra.mxu1 %v8512_v5  ;;  %7796 = vmatpush.msra.mxu2 %v8512_v5  ;;  %v8616_v31 = vld [vmem:[%s8336_s8 + $0x1f8] sm:$0xff]  ;;  %v8618_v32 = vld [vmem:[#allocation2 + $0x16a] sm:$0xff]  ;;  %v8888_v35 = vld [vmem:[%s8336_s8 + $0x100] sm:$0xff] }
  0x86   : > { %14581 = vst [vmem:[#allocation10_spill] sm:$0xff] %v8461_v57  ;;  %7797 = vmatpush.msra.mxu3 %v8512_v5  ;;  %1240 = vmatpush.msra.mxu0 %v8512_v5  ;;  %v8776_v57 = vld [vmem:[%s8336_s8 + $0x1b8] sm:$0xff]  ;;  %v8870_v41 = vld [vmem:[%s8336_s8 + $0x108] sm:$0xff] }
  0x87   : > { %468 = vst [vmem:[#allocation3 + $0x228] sm:$0xff] %v8449_v53  ;;  %7798 = vmatpush.msra.mxu1 %v8525_v8  ;;  %7799 = vmatpush.msra.mxu2 %v8525_v8  ;;  %v8779_v56 = vld [vmem:[%s8336_s8 + $0x258] sm:$0xff]  ;;  %v8890_v34 = vld [vmem:[#allocation2 + $0x181] sm:$0xff] }
  0x88   : > { %469 = vst [vmem:[#allocation3 + $0x158] sm:$0xff] %v8452_v54  ;;  %7800 = vmatpush.msra.mxu3 %v8525_v8  ;;  %1241 = vmatpush.msra.mxu0 %v8525_v8  ;;  %v8899_v33 = vld [vmem:[%s8336_s8 + $0x228] sm:$0xff] }
  0x89   : > { %14582 = vst [vmem:[#allocation11_spill] sm:$0xff] %v8473_v60  ;;  %7801 = vmatpush.msra.mxu1 %v8538_v11  ;;  %7802 = vmatpush.msra.mxu2 %v8538_v11  ;;  %v8754_v60 = vld [vmem:[#allocation2 + $0x180] sm:$0xff] }
  0x8a   : > { %470 = vst [vmem:[#allocation3 + $0xc0] sm:$0xff] %v8454_v55  ;;  %7803 = vmatpush.msra.mxu3 %v8538_v11  ;;  %1242 = vmatpush.msra.mxu0 %v8538_v11 }
  0x8b   : > { %471 = vst [vmem:[#allocation3 + $0x8d8] sm:$0xff] %v8463_v58  ;;  %7804 = vmatpush.msra.mxu1 %v8551_v14  ;;  %7805 = vmatpush.msra.mxu2 %v8551_v14 }
  0x8c   : > { %14583 = vst [vmem:[#allocation12_spill] sm:$0xff] %v8486_v63  ;;  %7806 = vmatpush.msra.mxu3 %v8551_v14  ;;  %1243 = vmatpush.msra.mxu0 %v8551_v14  ;;  %v8665_v63 = vld [vmem:[%s8336_s8 + $0x158] sm:$0xff] }
  0x8d   : > { %472 = vst [vmem:[#allocation3 + $0x248] sm:$0xff] %v8468_v59  ;;  %7807 = vmatpush.msra.mxu1 %v8564_v17  ;;  %7808 = vmatpush.msra.mxu2 %v8564_v17 }
  0x8e   : > { %473 = vst [vmem:[#allocation3 + $0x150] sm:$0xff] %v8476_v61  ;;  %7809 = vmatpush.msra.mxu3 %v8564_v17  ;;  %1244 = vmatpush.msra.mxu0 %v8564_v17 }
  0x8f   : > { %14584 = vst [vmem:[#allocation13_spill] sm:$0xff] %v8499_v2  ;;  %7810 = vmatpush.msra.mxu1 %v8577_v20  ;;  %7811 = vmatpush.msra.mxu2 %v8577_v20  ;;  %v8649_v2 = vld [vmem:[%s8336_s8 + $0x1e8] sm:$0xff] }
  0x90   : > { %474 = vst [vmem:[#allocation3 + $0xa8] sm:$0xff] %v8481_v62  ;;  %1258 = vmatmul.f32.vlgmr.msra.gmra.mxu1 %v8585_v22  ;;  %1270 = vmatmul.f32.vlgmr.msra.gmra.mxu2 %v8587_v23 }
  0x91   : > { %475 = vst [vmem:[#allocation3 + $0x4b0] sm:$0xff] %v8489_v0  ;;  %1360 = vmatpush.msrb.mxu2 %v8594_v25  ;;  %7812 = vmatpush.msra.mxu3 %v8577_v20 }
  0x92   : > { %14585 = vst [vmem:[#allocation14_spill] sm:$0xff] %v8512_v5  ;;  %1295 = vmatpush.msrb.mxu1 %v8603_v27  ;;  %1282 = vmatmul.f32.vlgmr.msra.gmra.mxu3 %v8605_v28  ;;  %v353_v5 = vld [vmem:[#allocation2] sm:$0xff] }
  0x93   : > { %476 = vst [vmem:[#allocation3 + $0x4d8] sm:$0xff] %v8494_v1  ;;  %1361 = vmatpush.msrb.mxu2 %v8613_v30  ;;  %1425 = vmatpush.msrb.mxu3 %v8616_v31 }
  0x94   : > { %477 = vst [vmem:[#allocation3 + $0x240] sm:$0xff] %v8502_v3  ;;  %1245 = vmatpush.msra.mxu0 %v8577_v20 }
  0x95   : > { %14586 = vst [vmem:[#allocation15_spill] sm:$0xff] %v8525_v8  ;;  %v8635_v8 = vld [vmem:[%s8336_s8 + $0x1f0] sm:$0xff]  ;;  %1246 = vmatmul.f32.vlgmr.msra.gmra.mxu0 %v353_v5  ;;  %v8679_v5 = vld [vmem:[#allocation2 + $0x98] sm:$0xff] }
  0x96   : > { %478 = vst [vmem:[#allocation3 + $0x3a8] sm:$0xff] %v8507_v4  ;;  %1426 = vmatpush.msrb.mxu3 %v8635_v8 }
  0x97   : > { %479 = vst [vmem:[#allocation3 + $0x538] sm:$0xff] %v8515_v6 }
  0x98   : > { %14587 = vst [vmem:[#allocation16_spill] sm:$0xff] %v8538_v11  ;;  %v8632_v11 = vld [vmem:[%s8336_s8 + $0x168] sm:$0xff]  ;;  %1427 = vmatpush.msrb.mxu3 %v8649_v2 }
  0x99   : > { %480 = vst [vmem:[#allocation3 + $0x780] sm:$0xff] %v8520_v7  ;;  %1362 = vmatpush.msrb.mxu2 %v8632_v11 }
  0x9a   : > { %531 = vst [vmem:[#allocation3 + $0x8e0] sm:$0xff] %v8529_v9  ;;  %1285 = vmatmul.f32.gmra.mxu3 %v8679_v5 }
  0x9b   : > { %14588 = vst [vmem:[#allocation17_spill] sm:$0xff] %v8551_v14  ;;  %v8626_v14 = vld [vmem:[#allocation2 + $0x172] sm:$0xff] }
  0x9c   : > { %532 = vst [vmem:[#allocation3 + $0x378] sm:$0xff] %v8534_v10 }
  0x9d   : > { %533 = vst [vmem:[#allocation3 + $0x330] sm:$0xff] %v8542_v12 }
  0x9e   : > { %14589 = vst [vmem:[#allocation18_spill] sm:$0xff] %v8564_v17  ;;  %v8624_v17 = vld [vmem:[%s8336_s8 + $0xf0] sm:$0xff] }
  0x9f   : > { %534 = vst [vmem:[#allocation3 + $0x288] sm:$0xff] %v8546_v13  ;;  %1296 = vmatpush.msrb.mxu1 %v8624_v17 }
  0xa0   : > { %535 = vst [vmem:[#allocation3 + $0x40] sm:$0xff] %v8554_v15 }
  0xa1   : > { %14590 = vst [vmem:[#allocation19_spill] sm:$0xff] %v8577_v20  ;;  %v8727_v20 = vld [vmem:[%s8336_s8 + $0x268] sm:$0xff] }
  0xa2   : > { %536 = vst [vmem:[#allocation3 + $0x2f0] sm:$0xff] %v8559_v16 }
  0xa3   : > { %537 = vst [vmem:[#allocation3 + $0x30] sm:$0xff] %v8567_v18 }
  0xa4   : > { %14591 = vst [vmem:[#allocation20_spill] sm:$0xff] %v8594_v25  ;;  %v8641_v25 = vld [vmem:[%s8336_s8 + $0xe8] sm:$0xff] }
  0xa5   : > { %538 = vst [vmem:[#allocation3 + $0x450] sm:$0xff] %v8572_v19  ;;  %1297 = vmatpush.msrb.mxu1 %v8641_v25 }
  0xa6   : > { %14592 = vst [vmem:[#allocation21_spill] sm:$0xff] %v8603_v27  ;;  %v8646_v27 = vld [vmem:[%s8336_s8 + $0x160] sm:$0xff] }
  0xa7   : > { %539 = vst [vmem:[#allocation3 + $0x590] sm:$0xff] %v8580_v21  ;;  %1363 = vmatpush.msrb.mxu2 %v8646_v27 }
  0xa8   : > { %14593 = vst [vmem:[#allocation22_spill] sm:$0xff] %v8613_v30  ;;  %v8658_v30 = vld [vmem:[#allocation2 + $0x68] sm:$0xff] }
  0xa9   : > { %14594 = vst [vmem:[#allocation23_spill] sm:$0xff] %v8616_v31  ;;  %v8656_v31 = vld [vmem:[%s8336_s8 + $0xe0] sm:$0xff]  ;;  %1273 = vmatmul.f32.gmra.mxu2 %v8658_v30 }
  0xaa   : > { %540 = vst [vmem:[#allocation3 + $0x888] sm:$0xff] %v8589_v24  ;;  %1298 = vmatpush.msrb.mxu1 %v8656_v31  ;;  %1364 = vmatpush.msrb.mxu2 %v8665_v63 }
  0xab   : > { %14595 = vst [vmem:[#allocation24_spill] sm:$0xff] %v8624_v17  ;;  %v8662_v17 = vld [vmem:[#allocation2 + $0x38] sm:$0xff] }
  0xac   : > { %541 = vst [vmem:[#allocation3 + $0x10] sm:$0xff] %v8597_v26  ;;  %1261 = vmatmul.f32.gmra.mxu1 %v8662_v17 }
  0xad   : > { %14596 = vst [vmem:[#allocation25_spill] sm:$0xff] %v8632_v11  ;;  %v8709_v11 = vld [vmem:[%s8336_s8 + $0x270] sm:$0xff] }
  0xae   : > { %14597 = vst [vmem:[#allocation26_spill] sm:$0xff] %v8635_v8  ;;  %v8671_v8 = vld [vmem:[%s8336_s8 + $0x1e0] sm:$0xff] }
  0xaf   : > { %542 = vst [vmem:[#allocation3 + $0x4e8] sm:$0xff] %v8607_v29  ;;  %1428 = vmatpush.msrb.mxu3 %v8671_v8 }
  0xb0   : > { %14598 = vst [vmem:[#allocation27_spill] sm:$0xff] %v8641_v25  ;;  %v8700_v25 = vld [vmem:[%s8336_s8 + $0x148] sm:$0xff] }
  0xb1   : > { %543 = vst [vmem:[#allocation3 + $0x880] sm:$0xff] %v8618_v32 }
  0xb2   : > { %14599 = vst [vmem:[#allocation28_spill] sm:$0xff] %v8646_v27  ;;  %v8691_v27 = vld [vmem:[%s8336_s8 + $0x278] sm:$0xff] }
  0xb3   : > { %14600 = vst [vmem:[#allocation29_spill] sm:$0xff] %v8649_v2  ;;  %v8688_v2 = vld [vmem:[%s8336_s8 + $0x1d8] sm:$0xff]  ;;  %1490 = vmatpush.msrb.mxu0 %v8691_v27 }
  0xb4   : > { %544 = vst [vmem:[#allocation3 + $0x710] sm:$0xff] %v8626_v14  ;;  %1429 = vmatpush.msrb.mxu3 %v8688_v2 }
  0xb5   : > { %14601 = vst [vmem:[#allocation30_spill] sm:$0xff] %v8656_v31  ;;  %v8697_v31 = vld [vmem:[%s8336_s8 + $0xd0] sm:$0xff]  ;;  %1491 = vmatpush.msrb.mxu0 %v8709_v11 }
  0xb6   : > { %594 = vst [vmem:[#allocation3 + $0x118] sm:$0xff] %v8382_v36  ;;  %v8674_v36 = vld [vmem:[%s8336_s8 + $0xd8] sm:$0xff] }
  0xb7   : > { %14602 = vst [vmem:[#allocation31_spill] sm:$0xff] %v8665_v63  ;;  %1299 = vmatpush.msrb.mxu1 %v8674_v36  ;;  %v8706_v63 = vld [vmem:[%s8336_s8 + $0x1d0] sm:$0xff]  ;;  %1492 = vmatpush.msrb.mxu0 %v8727_v20 }
  0xb8   : > { %595 = vst [vmem:[#allocation3 + $0x448] sm:$0xff] %v8385_v37  ;;  %v8682_v37 = vld [vmem:[%s8336_s8 + $0x150] sm:$0xff]  ;;  %1430 = vmatpush.msrb.mxu3 %v8706_v63 }
  0xb9   : > { %14603 = vst [vmem:[#allocation32_spill] sm:$0xff] %v8671_v8  ;;  %1365 = vmatpush.msrb.mxu2 %v8682_v37  ;;  %v8718_v8 = vld [vmem:[%s8336_s8 + $0x140] sm:$0xff]  ;;  %1300 = vmatpush.msrb.mxu1 %v8697_v31 }
  0xba   : > { %14604 = vst [vmem:[#allocation33_spill] sm:$0xff] %v8674_v36  ;;  %v8715_v36 = vld [vmem:[%s8336_s8 + $0xc8] sm:$0xff] }
  0xbb   : > { %596 = vst [vmem:[#allocation3 + $0x270] sm:$0xff] %v8387_v38  ;;  %1366 = vmatpush.msrb.mxu2 %v8700_v25  ;;  %1301 = vmatpush.msrb.mxu1 %v8715_v36 }
  0xbc   : > { %14605 = vst [vmem:[#allocation34_spill] sm:$0xff] %v8682_v37  ;;  %v8724_v37 = vld [vmem:[%s8336_s8 + $0x1c8] sm:$0xff] }
  0xbd   : > { %597 = vst [vmem:[#allocation3 + $0x4e0] sm:$0xff] %v8389_v39  ;;  %1367 = vmatpush.msrb.mxu2 %v8718_v8  ;;  %1431 = vmatpush.msrb.mxu3 %v8724_v37 }
  0xbe   : > { %14606 = vst [vmem:[#allocation35_spill] sm:$0xff] %v8688_v2  ;;  %v8735_v2 = vld [vmem:[#allocation2 + $0x78] sm:$0xff] }
  0xbf   : > { %14607 = vst [vmem:[#allocation36_spill] sm:$0xff] %v8691_v27  ;;  %v8733_v27 = vld [vmem:[%s8336_s8 + $0xc0] sm:$0xff]  ;;  %1276 = vmatmul.f32.gmra.mxu2 %v8735_v2 }
  0xc0   : > { %598 = vst [vmem:[#allocation3 + $0x310] sm:$0xff] %v8395_v40  ;;  %1302 = vmatpush.msrb.mxu1 %v8733_v27 }
  0xc1   : > { %14608 = vst [vmem:[#allocation37_spill] sm:$0xff] %v8697_v31  ;;  %v8743_v31 = vld [vmem:[%s8336_s8 + $0x138] sm:$0xff] }
  0xc2   : > { %14609 = vst [vmem:[#allocation38_spill] sm:$0xff] %v8700_v25  ;;  %v8740_v25 = vld [vmem:[#allocation2 + $0x48] sm:$0xff]  ;;  %1368 = vmatpush.msrb.mxu2 %v8743_v31 }
  0xc3   : > { %599 = vst [vmem:[#allocation3 + $0x3c8] sm:$0xff] %v8402_v42  ;;  %1264 = vmatmul.f32.gmra.mxu1 %v8740_v25 }
  0xc4   : > { %14610 = vst [vmem:[#allocation39_spill] sm:$0xff] %v8706_v63  ;;  %v8752_v63 = vld [vmem:[%s8336_s8 + $0x260] sm:$0xff] }
  0xc5   : > { %14611 = vst [vmem:[#allocation40_spill] sm:$0xff] %v8709_v11  ;;  %v8749_v11 = vld [vmem:[%s8336_s8 + $0x1c0] sm:$0xff]  ;;  %1493 = vmatpush.msrb.mxu0 %v8752_v63 }
  0xc6   : > { %600 = vst [vmem:[#allocation3 + $0x2e0] sm:$0xff] %v8408_v43  ;;  %1432 = vmatpush.msrb.mxu3 %v8749_v11 }
  0xc7   : > { %14612 = vst [vmem:[#allocation41_spill] sm:$0xff] %v8715_v36  ;;  %v8767_v36 = vld [vmem:[#allocation2 + $0xa8] sm:$0xff]  ;;  %1494 = vmatpush.msrb.mxu0 %v8779_v56 }
  0xc8   : > { %14613 = vst [vmem:[#allocation42_spill] sm:$0xff] %v8718_v8  ;;  %v8760_v8 = vld [vmem:[%s8336_s8 + $0xb8] sm:$0xff]  ;;  %1288 = vmatmul.f32.gmra.mxu3 %v8767_v36 }
  0xc9   : > { %601 = vst [vmem:[#allocation3 + $0x7d0] sm:$0xff] %v8415_v45  ;;  %1303 = vmatpush.msrb.mxu1 %v8760_v8  ;;  %1433 = vmatpush.msrb.mxu3 %v8776_v57 }
  0xca   : > { %14614 = vst [vmem:[#allocation43_spill] sm:$0xff] %v8724_v37  ;;  %v354_v37 = vld [vmem:[#allocation2 + $0x8] sm:$0xff] }
  0xcb   : > { %14615 = vst [vmem:[#allocation44_spill] sm:$0xff] %v8727_v20  ;;  %v8762_v20 = vld [vmem:[#allocation2 + $0x188] sm:$0xff]  ;;  %1249 = vmatmul.f32.gmra.mxu0 %v354_v37 }
  0xcc   : > { %602 = vst [vmem:[#allocation3 + $0x790] sm:$0xff] %v8421_v46  ;;  %v8802_v37 = vld [vmem:[%s8336_s8 + $0xa8] sm:$0xff] }
  0xcd   : > { %14616 = vst [vmem:[#allocation45_spill] sm:$0xff] %v8733_v27  ;;  %v8770_v27 = vld [vmem:[%s8336_s8 + $0x130] sm:$0xff] }
  0xce   : > { %603 = vst [vmem:[#allocation3 + $0x8] sm:$0xff] %v8425_v47  ;;  %1369 = vmatpush.msrb.mxu2 %v8770_v27 }
  0xcf   : > { %14617 = vst [vmem:[#allocation46_spill] sm:$0xff] %v8743_v31  ;;  %v8784_v31 = vld [vmem:[%s8336_s8 + $0xb0] sm:$0xff] }
  0xd0   : > { %604 = vst [vmem:[#allocation3 + $0x850] sm:$0xff] %v8431_v48  ;;  %1304 = vmatpush.msrb.mxu1 %v8784_v31  ;;  %1370 = vmatpush.msrb.mxu2 %v8787_v44 }
  0xd1   : > { %14618 = vst [vmem:[#allocation47_spill] sm:$0xff] %v8749_v11  ;;  %v8796_v11 = vld [vmem:[%s8336_s8 + $0x250] sm:$0xff] }
  0xd2   : > { %14619 = vst [vmem:[#allocation48_spill] sm:$0xff] %v8752_v63  ;;  %v8793_v63 = vld [vmem:[%s8336_s8 + $0x1b0] sm:$0xff]  ;;  %1495 = vmatpush.msrb.mxu0 %v8796_v11  ;;  %1305 = vmatpush.msrb.mxu1 %v8802_v37 }
  0xd3   : > { %605 = vst [vmem:[#allocation3 + $0x60] sm:$0xff] %v8434_v49  ;;  %1434 = vmatpush.msrb.mxu3 %v8793_v63 }
  0xd4   : > { %14620 = vst [vmem:[#allocation49_spill] sm:$0xff] %v8760_v8  ;;  %v8805_v8 = vld [vmem:[%s8336_s8 + $0x120] sm:$0xff] }
  0xd5   : > { %606 = vst [vmem:[#allocation3 + $0x720] sm:$0xff] %v8439_v50  ;;  %1371 = vmatpush.msrb.mxu2 %v8805_v8 }
  0xd6   : > { %14621 = vst [vmem:[#allocation50_spill] sm:$0xff] %v8770_v27  ;;  %v8811_v27 = vld [vmem:[%s8336_s8 + $0x1a8] sm:$0xff] }
  0xd7   : > { %607 = vst [vmem:[#allocation3 + $0x168] sm:$0xff] %v8442_v51  ;;  %1435 = vmatpush.msrb.mxu3 %v8811_v27 }
  0xd8   : > { %14622 = vst [vmem:[#allocation51_spill] sm:$0xff] %v8776_v57  ;;  %v8862_v57 = vld [vmem:[%s8336_s8 + $0x238] sm:$0xff] }
  0xd9   : > { %14623 = vst [vmem:[#allocation52_spill] sm:$0xff] %v8779_v56  ;;  %v8820_v56 = vld [vmem:[%s8336_s8 + $0xa0] sm:$0xff] }
  0xda   : > { %608 = vst [vmem:[#allocation3 + $0x440] sm:$0xff] %v8754_v60  ;;  %1306 = vmatpush.msrb.mxu1 %v8820_v56 }
  0xdb   : > { %14624 = vst [vmem:[#allocation53_spill] sm:$0xff] %v8784_v31  ;;  %v8830_v31 = vld [vmem:[%s8336_s8 + $0x118] sm:$0xff] }
  0xdc   : > { %14625 = vst [vmem:[#allocation54_spill] sm:$0xff] %v8787_v44  ;;  %v8827_v44 = vld [vmem:[#allocation2 + $0x50] sm:$0xff]  ;;  %1372 = vmatpush.msrb.mxu2 %v8830_v31 }
  0xdd   : > { %609 = vst [vmem:[#allocation3 + $0x358] sm:$0xff] %v8762_v20  ;;  %1267 = vmatmul.f32.gmra.mxu1 %v8827_v44 }
  0xde   : > { %14626 = vst [vmem:[#allocation55_spill] sm:$0xff] %v8793_v63  ;;  %v8839_v63 = vld [vmem:[%s8336_s8 + $0x240] sm:$0xff] }
  0xdf   : > { %14627 = vst [vmem:[#allocation56_spill] sm:$0xff] %v8796_v11  ;;  %v8836_v11 = vld [vmem:[%s8336_s8 + $0x1a0] sm:$0xff] }
  0xe0   : > { %658 = vst [vmem:[#allocation3 + $0x2d0] sm:$0xff] %v8446_v52  ;;  %v8814_v52 = vld [vmem:[%s8336_s8 + $0x248] sm:$0xff]  ;;  %1436 = vmatpush.msrb.mxu3 %v8836_v11 }
  0xe1   : > { %14628 = vst [vmem:[#allocation57_spill] sm:$0xff] %v8802_v37  ;;  %1496 = vmatpush.msrb.mxu0 %v8814_v52  ;;  %v355_v37 = vld [vmem:[#allocation2 + $0x18] sm:$0xff] }
  0xe2   : > { %14629 = vst [vmem:[#allocation58_spill] sm:$0xff] %v8805_v8  ;;  %v8845_v8 = vld [vmem:[%s8336_s8 + $0x98] sm:$0xff]  ;;  %1252 = vmatmul.f32.gmra.mxu0 %v355_v37 }
  0xe3   : > { %659 = vst [vmem:[#allocation3 + $0x468] sm:$0xff] %v8449_v53  ;;  %v8822_v53 = vld [vmem:[#allocation2 + $0x80] sm:$0xff]  ;;  %1497 = vmatpush.msrb.mxu0 %v8839_v63  ;;  %1307 = vmatpush.msrb.mxu1 %v8845_v8 }
  0xe4   : > { %14630 = vst [vmem:[#allocation59_spill] sm:$0xff] %v8811_v27  ;;  %1279 = vmatmul.f32.gmra.mxu2 %v8822_v53  ;;  %v8853_v27 = vld [vmem:[%s8336_s8 + $0x110] sm:$0xff] }
  0xe5   : > { %14631 = vst [vmem:[#allocation60_spill] sm:$0xff] %v8814_v52  ;;  %v8850_v52 = vld [vmem:[#allocation2 + $0xb0] sm:$0xff]  ;;  %1373 = vmatpush.msrb.mxu2 %v8853_v27  ;;  %1498 = vmatpush.msrb.mxu0 %v8862_v57 }
  0xe6   : > { %660 = vst [vmem:[#allocation3 + $0xa0] sm:$0xff] %v8452_v54  ;;  %1291 = vmatmul.f32.gmra.mxu3 %v8850_v52 }
  0xe7   : > { %14632 = vst [vmem:[#allocation61_spill] sm:$0xff] %v8820_v56  ;;  %v8859_v56 = vld [vmem:[%s8336_s8 + $0x198] sm:$0xff]  ;;  %1374 = vmatpush.msrb.mxu2 %v8870_v41 }
  0xe8   : > { %661 = vst [vmem:[#allocation3 + $0x1d8] sm:$0xff] %v8454_v55  ;;  %1437 = vmatpush.msrb.mxu3 %v8859_v56 }
  0xe9   : > { %14633 = vst [vmem:[#allocation62_spill] sm:$0xff] %v8830_v31  ;;  %v8867_v31 = vld [vmem:[%s8336_s8 + $0x90] sm:$0xff]  ;;  %1375 = vmatpush.msrb.mxu2 %v8888_v35 }
  0xea   : > { %662 = vst [vmem:[#allocation3 + $0x6d0] sm:$0xff] %v8463_v58  ;;  %1308 = vmatpush.msrb.mxu1 %v8867_v31 }
  0xeb   : > { %14634 = vst [vmem:[#allocation63_spill] sm:$0xff] %v8836_v11  ;;  %v8879_v11 = vld [vmem:[%s8336_s8 + $0x230] sm:$0xff] }
  0xec   : > { %14635 = vst [vmem:[#allocation64_spill] sm:$0xff] %v8839_v63  ;;  %v8876_v63 = vld [vmem:[%s8336_s8 + $0x190] sm:$0xff]  ;;  %1499 = vmatpush.msrb.mxu0 %v8879_v11 }
  0xed   : > { %663 = vst [vmem:[#allocation3 + $0x7d8] sm:$0xff] %v8468_v59  ;;  %1438 = vmatpush.msrb.mxu3 %v8876_v63 }
  0xee   : > { %14636 = vst [vmem:[#allocation65_spill] sm:$0xff] %v8845_v8  ;;  %v8885_v8 = vld [vmem:[%s8336_s8 + $0x88] sm:$0xff]  ;;  %1500 = vmatpush.msrb.mxu0 %v8899_v33 }
  0xef   : > { %664 = vst [vmem:[#allocation3 + $0x68] sm:$0xff] %v8476_v61  ;;  %1309 = vmatpush.msrb.mxu1 %v8885_v8 }
  0xf0   : > { %14637 = vst [vmem:[#allocation66_spill] sm:$0xff] %v8850_v52  ;;  %v481_v52 = vld [vmem:[#allocation2 + $0x2] sm:$0xff] }
  0xf1   : > { %14638 = vst [vmem:[#allocation67_spill] sm:$0xff] %v8853_v27  ;;  %v8896_v27 = vld [vmem:[%s8336_s8 + $0x188] sm:$0xff]  ;;  %1376 = vmatmul.f32.vlgmr.msrb.gmra.mxu2 %v481_v52  ;;  %v8948_v52 = vld [vmem:[#allocation2 + $0x19] sm:$0xff] }
  0xf2   : > { %665 = vst [vmem:[#allocation3 + $0x840] sm:$0xff] %v8481_v62  ;;  %1439 = vmatpush.msrb.mxu3 %v8896_v27 }
  0xf3   : > { %14639 = vst [vmem:[#allocation68_spill] sm:$0xff] %v8859_v56  ;;  %v8901_v56 = vld [vmem:[#allocation2 + $0x189] sm:$0xff] }
  0xf4   : > { %14640 = vst [vmem:[#allocation69_spill] sm:$0xff] %v8862_v57  ;;  %v8907_v57 = vld [vmem:[%s8336_s8 + $0x80] sm:$0xff] }
  0xf5   : > { %666 = vst [vmem:[#allocation3 + $0x488] sm:$0xff] %v8489_v0  ;;  %1310 = vmatpush.msrb.mxu1 %v8907_v57 }
  0xf6   : > { %14641 = vst [vmem:[#allocation70_spill] sm:$0xff] %v8867_v31  ;;  %v8913_v31 = vld [vmem:[%s8336_s8 + $0x180] sm:$0xff] }
  0xf7   : > { %14642 = vst [vmem:[#allocation71_spill] sm:$0xff] %v8870_v41  ;;  %v417_v41 = vld [vmem:[#allocation2 + $0x1] sm:$0xff]  ;;  %1440 = vmatpush.msrb.mxu3 %v8913_v31 }
  0xf8   : > { %667 = vst [vmem:[#allocation3 + $0x5d8] sm:$0xff] %v8494_v1  ;;  %1311 = vmatmul.f32.vlgmr.msrb.gmra.mxu1 %v417_v41  ;;  %1441 = vmatmul.f32.vlgmr.msrb.gmra.mxu3 %v355_v37  ;;  %v8938_v41 = vld [vmem:[%s8336_s8 + $0x208] sm:$0xff]  ;;  %v8944_v37 = vld [vmem:[%s8336_s8 + $0x200] sm:$0xff] }
  0xf9   : > { %14643 = vst [vmem:[#allocation72_spill] sm:$0xff] %v8876_v63 }
  0xfa   : > { %14644 = vst [vmem:[#allocation73_spill] sm:$0xff] %v8879_v11  ;;  %v8919_v11 = vld [vmem:[%s8336_s8 + $0x220] sm:$0xff] }
  0xfb   : > { %668 = vst [vmem:[#allocation3 + $0x478] sm:$0xff] %v8502_v3  ;;  %1501 = vmatpush.msrb.mxu0 %v8919_v11 }
  0xfc   : > { %14645 = vst [vmem:[#allocation74_spill] sm:$0xff] %v8885_v8  ;;  %v356_v8 = vld [vmem:[#allocation2 + $0x20] sm:$0xff] }
  0xfd   : > { %14646 = vst [vmem:[#allocation75_spill] sm:$0xff] %v8888_v35  ;;  %v8926_v35 = vld [vmem:[%s8336_s8 + $0x218] sm:$0xff]  ;;  %1255 = vmatmul.f32.gmra.mxu0 %v356_v8 }
  0xfe   : > { %669 = vst [vmem:[#allocation3 + $0x578] sm:$0xff] %v8507_v4  ;;  %1502 = vmatpush.msrb.mxu0 %v8926_v35 }
  0xff   : > { %14647 = vst [vmem:[#allocation76_spill] sm:$0xff] %v8896_v27 }
 0x100   : > { %14648 = vst [vmem:[#allocation77_spill] sm:$0xff] %v8899_v33  ;;  %1444 = vmatmul.f32.gmra.mxu3 %v356_v8  ;;  %v8967_v8 = vld [vmem:[#allocation2 + $0x21] sm:$0xff] }
 0x101   : > { %670 = vst [vmem:[#allocation3 + $0x1b8] sm:$0xff] %v8515_v6 }
 0x102   : > { %14649 = vst [vmem:[#allocation78_spill] sm:$0xff] %v8907_v57  ;;  %v8932_v57 = vld [vmem:[%s8336_s8 + $0x210] sm:$0xff] }
 0x103   : > { %671 = vst [vmem:[#allocation3 + $0x520] sm:$0xff] %v8520_v7  ;;  %1503 = vmatpush.msrb.mxu0 %v8932_v57 }
 0x104   : > { %14650 = vst [vmem:[#allocation79_spill] sm:$0xff] %v8913_v31 }
 0x105   : > { %672 = vst [vmem:[#allocation3 + $0x6d8] sm:$0xff] %v8890_v34  ;;  %1504 = vmatpush.msrb.mxu0 %v8938_v41 }
 0x106   : > { %14651 = vst [vmem:[#allocation80_spill] sm:$0xff] %v8919_v11 }
 0x107   : > { %673 = vst [vmem:[#allocation3 + $0x878] sm:$0xff] %v8901_v56  ;;  %1505 = vmatpush.msrb.mxu0 %v8944_v37 }
 0x108   : > { %722 = vst [vmem:[#allocation3 + $0x6a0] sm:$0xff] %v8529_v9  ;;  %v482_v9 = vld [vmem:[#allocation2 + $0xa] sm:$0xff]  ;;  %1506 = vmatmul.f32.vlgmr.msrb.gmra.mxu0 %v8948_v52  ;;  %1447 = vmatmul.f32.gmra.mxu3 %v8585_v22 }
 0x109   : > { %14652 = vst [vmem:[#allocation81_spill] sm:$0xff] %v8926_v35  ;;  %1379 = vmatmul.f32.gmra.mxu2 %v482_v9  ;;  %v8961_v9 = vld [vmem:[#allocation2 + $0x1a] sm:$0xff]  ;;  %v9142_v22 = vld [vmem:[%s8336_s8 + $0x350] sm:$0xff] }
 0x10a   : > { %723 = vst [vmem:[#allocation3 + $0x4b8] sm:$0xff] %v8534_v10  ;;  %v418_v10 = vld [vmem:[#allocation2 + $0x9] sm:$0xff] }
 0x10b   : > { %724 = vst [vmem:[#allocation3 + $0x6e0] sm:$0xff] %v8542_v12  ;;  %1314 = vmatmul.f32.gmra.mxu1 %v418_v10  ;;  %v8977_v10 = vld [vmem:[#allocation2 + $0x22] sm:$0xff] }
 0x10c   : > { %14653 = vst [vmem:[#allocation82_spill] sm:$0xff] %v8932_v57  ;;  %v8955_v57 = vld [vmem:[#allocation2 + $0x182] sm:$0xff] }
 0x10d   : > { %725 = vst [vmem:[#allocation3 + $0x190] sm:$0xff] %v8546_v13 }
 0x10e   : > { %726 = vst [vmem:[#allocation3 + $0x2f8] sm:$0xff] %v8554_v15 }
 0x10f   : > { %14654 = vst [vmem:[#allocation83_spill] sm:$0xff] %v8938_v41  ;;  %v8958_v41 = vld [vmem:[#allocation2 + $0x18a] sm:$0xff] }
 0x110   : > { %727 = vst [vmem:[#allocation3 + $0x2a8] sm:$0xff] %v8559_v16  ;;  %1509 = vmatmul.f32.gmra.mxu0 %v8967_v8  ;;  %1450 = vmatmul.f32.gmra.mxu3 %v8662_v17  ;;  %v9114_v17 = vld [vmem:[%s8336_s8 + $0x2e0] sm:$0xff] }
 0x111   : > { %728 = vst [vmem:[#allocation3 + $0x528] sm:$0xff] %v8567_v18  ;;  %1382 = vmatmul.f32.gmra.mxu2 %v8961_v9 }
 0x112   : > { %14655 = vst [vmem:[#allocation84_spill] sm:$0xff] %v8944_v37  ;;  %v9421_v37 = vld [vmem:[#allocation2 + $0xc9] sm:$0xff] }
 0x113   : > { %729 = vst [vmem:[#allocation3 + $0x1f8] sm:$0xff] %v8572_v19  ;;  %1317 = vmatmul.f32.gmra.mxu1 %v8948_v52 }
 0x114   : > { %730 = vst [vmem:[#allocation3 + $0x7c8] sm:$0xff] %v8580_v21 }
 0x115   : > { %731 = vst [vmem:[#allocation3 + $0x738] sm:$0xff] %v8589_v24 }
 0x116   : > { %732 = vst [vmem:[#allocation3 + $0x3a0] sm:$0xff] %v8597_v26 }
 0x117   : > { %733 = vst [vmem:[#allocation3 + $0x690] sm:$0xff] %v8607_v29 }
 0x118   : > { %734 = vst [vmem:[#allocation3 + $0x508] sm:$0xff] %v8618_v32  ;;  %1453 = vmatmul.f32.gmra.mxu3 %v8740_v25  ;;  %v9154_v25 = vld [vmem:[%s8336_s8 + $0x2d0] sm:$0xff] }
 0x119   : > { %735 = vst [vmem:[#allocation3 + $0x598] sm:$0xff] %v8626_v14  ;;  %1385 = vmatmul.f32.gmra.mxu2 %v8977_v10 }
 0x11a   : > { %736 = vst [vmem:[#allocation3 + $0x1a0] sm:$0xff] %v8955_v57 }
 0x11b   : > { %737 = vst [vmem:[#allocation3 + $0x6f8] sm:$0xff] %v8958_v41  ;;  %1320 = vmatmul.f32.gmra.mxu1 %v8967_v8 }
 0x11c   : > { %787 = vst [vmem:[#allocation3 + $0x7f0] sm:$0xff] %v8387_v38  ;;  %v8983_v38 = vld [vmem:[#allocation2 + $0x31] sm:$0xff] }
 0x11d   : > { %788 = vst [vmem:[#allocation3 + $0x70] sm:$0xff] %v8389_v39  ;;  %1512 = vmatmul.f32.gmra.mxu0 %v8983_v38  ;;  %v769_v39 = vld [vmem:[#allocation2 + $0x198] sm:$0xff] }
 0x11e   : > { %789 = vst [vmem:[#allocation3 + $0x368] sm:$0xff] %v8395_v40  ;;  %v770_v40 = vld [vmem:[#allocation2 + $0x1a0] sm:$0xff] }
 0x11f   : > { %790 = vst [vmem:[#allocation3 + $0x38] sm:$0xff] %v8402_v42  ;;  %v8993_v42 = vld [vmem:[#allocation2 + $0x32] sm:$0xff] }
 0x120   : > { %791 = vst [vmem:[#allocation3 + $0x800] sm:$0xff] %v8408_v43  ;;  %v1077_v43 = vlaneseq  ;;  %1456 = vmatmul.f32.gmra.mxu3 %v8827_v44  ;;  %v9030_v44 = vld [vmem:[#allocation2 + $0x51] sm:$0xff] }
 0x121   : > { %792 = vst [vmem:[#allocation3 + $0x8d0] sm:$0xff] %v8415_v45  ;;  %1388 = vmatmul.f32.gmra.mxu2 %v8993_v42  ;;  %v8997_v45 = vld [vmem:[#allocation2 + $0x39] sm:$0xff] }
 0x122   : > { %793 = vst [vmem:[#allocation3 + $0x658] sm:$0xff] %v8421_v46  ;;  %v1078_v46 = vand.u32 127, %v1077_v43  ;;  %v9188_v43 = vld [vmem:[%s8336_s8 + $0x3c0] sm:$0xff] }
 0x123   : > { %794 = vst [vmem:[#allocation3 + $0x58] sm:$0xff] %v8425_v47  ;;  %1323 = vmatmul.f32.gmra.mxu1 %v8983_v38 }
 0x124   : > { %795 = vst [vmem:[#allocation3 + $0x2b0] sm:$0xff] %v8431_v48  ;;  %v9006_v47 = vadd.s32 384, %v1078_v46  ;;  %v9009_v48 = vld [vmem:[#allocation2 + $0x3a] sm:$0xff] }
 0x125   : > { %796 = vst [vmem:[#allocation3 + $0x370] sm:$0xff] %v8434_v49  ;;  %1515 = vmatmul.f32.gmra.mxu0 %v8997_v45  ;;  %v9016_v49 = vld [vmem:[#allocation2 + $0x49] sm:$0xff]  ;;  %v9194_v46 = vld [vmem:[%s8336_s8 + $0x2c0] sm:$0xff] }
 0x126   : > { %797 = vst [vmem:[#allocation3 + $0x1c8] sm:$0xff] %v8439_v50  ;;  %vm1085_vm0 = vcmp.lt.s32.totalorder %v9006_v47, 441  ;;  %v833_v50 = vld [vmem:[#allocation2 + $0x199] sm:$0xff] }
 0x127   : > { %798 = vst [vmem:[#allocation3 + $0x170] sm:$0xff] %v8442_v51  ;;  %v834_v51 = vld [vmem:[#allocation2 + $0x1a1] sm:$0xff] }
 0x128   : > { %799 = vst [vmem:[#allocation3 + $0x668] sm:$0xff] %v8754_v60  ;;  %1459 = vmatmul.f32.gmra.mxu3 %v8587_v23  ;;  %v9061_v60 = vld [vmem:[%s8336_s8 + $0x3f0] sm:$0xff] }
 0x129   : > { %800 = vst [vmem:[#allocation3 + $0x518] sm:$0xff] %v8762_v20  ;;  %1391 = vmatmul.f32.gmra.mxu2 %v9009_v48  ;;  %v9131_v20 = vld [vmem:[%s8336_s8 + $0x460] sm:$0xff]  ;;  %v9145_v23 = vld [vmem:[#allocation2 + $0x6a] sm:$0xff] }
 0x12a   : > { %801 = vst [vmem:[#allocation3 + $0x7e8] sm:$0xff] %v769_v39  ;;  %v9182_v39 = vld [vmem:[%s8336_s8 + $0x340] sm:$0xff] }
 0x12b   : > { %802 = vst [vmem:[#allocation3 + $0x898] sm:$0xff] %v770_v40  ;;  %1326 = vmatmul.f32.gmra.mxu1 %v8997_v45  ;;  %v9185_v40 = vld [vmem:[#allocation2 + $0x7a] sm:$0xff] }
 0x12c   : > { %851 = vst [vmem:[#allocation3 + $0x188] sm:$0xff] %v8452_v54  ;;  %v9026_v54 = vld [vmem:[#allocation2 + $0x4a] sm:$0xff] }
 0x12d   : > { %852 = vst [vmem:[#allocation3 + $0x630] sm:$0xff] %v8454_v55  ;;  %1518 = vmatmul.f32.gmra.mxu0 %v9016_v49  ;;  %v9034_v55 = vld [vmem:[%s8336_s8 + $0x378] sm:$0xff] }
 0x12e   : > { %853 = vst [vmem:[#allocation3 + $0x558] sm:$0xff] %v8463_v58  ;;  %1620 = vmatpush.msra.mxu2 %v9034_v55  ;;  %v9053_v58 = vld [vmem:[%s8336_s8 + $0x370] sm:$0xff] }
 0x12f   : > { %854 = vst [vmem:[#allocation3 + $0x628] sm:$0xff] %v8468_v59  ;;  %v9057_v59 = vld [vmem:[#allocation2 + $0x52] sm:$0xff] }
 0x130   : > { %14656 = vst [vmem:[#allocation85_spill] sm:$0xff] %v9006_v47  ;;  %1621 = vmatpush.msra.mxu2 %v9053_v58  ;;  %1462 = vmatmul.f32.gmra.mxu3 %v8658_v30  ;;  %v9168_v30 = vld [vmem:[%s8336_s8 + $0x3c8] sm:$0xff] }
 0x131   : > { %855 = vst [vmem:[#allocation3 + $0x700] sm:$0xff] %v8476_v61  ;;  %1394 = vmatmul.f32.gmra.mxu2 %v9026_v54  ;;  %v9064_v61 = vld [vmem:[%s8336_s8 + $0x478] sm:$0xff] }
 0x132   : > { %856 = vst [vmem:[#allocation3 + $0x490] sm:$0xff] %v8481_v62  ;;  %v9067_v62 = vld [vmem:[%s8336_s8 + $0x2f0] sm:$0xff]  ;;  %1750 = vmatpush.msra.mxu0 %v9064_v61 }
 0x133   : > { %857 = vst [vmem:[#allocation3 + $0x750] sm:$0xff] %v8489_v0  ;;  %1329 = vmatmul.f32.gmra.mxu1 %v9016_v49  ;;  %v9072_v0 = vld [vmem:[#allocation2 + $0x61] sm:$0xff] }
 0x134   : > { %858 = vst [vmem:[#allocation3 + $0x4d0] sm:$0xff] %v8494_v1  ;;  %v9077_v1 = vld [vmem:[%s8336_s8 + $0x368] sm:$0xff] }
 0x135   : > { %859 = vst [vmem:[#allocation3 + $0x2c0] sm:$0xff] %v8502_v3  ;;  %1521 = vmatmul.f32.gmra.mxu0 %v9030_v44  ;;  %1622 = vmatpush.msra.mxu2 %v9077_v1  ;;  %v9085_v3 = vld [vmem:[%s8336_s8 + $0x3e8] sm:$0xff] }
 0x136   : > { %860 = vst [vmem:[#allocation3 + $0x890] sm:$0xff] %v8507_v4  ;;  %v9088_v4 = vld [vmem:[%s8336_s8 + $0x470] sm:$0xff] }
 0x137   : > { %861 = vst [vmem:[#allocation3 + $0x6c0] sm:$0xff] %v8515_v6  ;;  %v9091_v6 = vld [vmem:[%s8336_s8 + $0x2e8] sm:$0xff]  ;;  %1751 = vmatpush.msra.mxu0 %v9088_v4 }
 0x138   : > { %862 = vst [vmem:[#allocation3 + $0x540] sm:$0xff] %v8520_v7  ;;  %v897_v7 = vld [vmem:[#allocation2 + $0x19a] sm:$0xff]  ;;  %1465 = vmatmul.f32.gmra.mxu3 %v8735_v2 }
 0x139   : > { %863 = vst [vmem:[#allocation3 + $0x348] sm:$0xff] %v8890_v34  ;;  %v9042_v34 = vld [vmem:[%s8336_s8 + $0x3f8] sm:$0xff]  ;;  %1397 = vmatmul.f32.gmra.mxu2 %v9057_v59 }
 0x13a   : > { %864 = vst [vmem:[#allocation3 + $0x570] sm:$0xff] %v8901_v56  ;;  %v9045_v56 = vld [vmem:[%s8336_s8 + $0x2f8] sm:$0xff]  ;;  %1685 = vmatpush.msra.mxu3 %v9042_v34 }
 0x13b   : > { %865 = vst [vmem:[#allocation3 + $0x1d0] sm:$0xff] %v833_v50  ;;  %1555 = vmatpush.msra.mxu1 %v9045_v56  ;;  %v9151_v2 = vld [vmem:[%s8336_s8 + $0x458] sm:$0xff] }
 0x13c   : > { %866 = vst [vmem:[#allocation3 + $0x5a8] sm:$0xff] %v834_v51  ;;  %1686 = vmatpush.msra.mxu3 %v9061_v60  ;;  %1332 = vmatmul.f32.gmra.mxu1 %v9030_v44  ;;  %v9200_v50 = vld [vmem:[%s8336_s8 + $0x338] sm:$0xff] }
 0x13d   : > { %915 = vst [vmem:[#allocation3 + $0x328] sm:$0xff] %v8542_v12  ;;  %1556 = vmatpush.msra.mxu1 %v9067_v62  ;;  %1524 = vmatmul.f32.gmra.mxu0 %v9072_v0  ;;  %v898_v12 = vld [vmem:[#allocation2 + $0x1a2] sm:$0xff]  ;;  %v9205_v51 = vld [vmem:[%s8336_s8 + $0x2b8] sm:$0xff] }
 0x13e   : > { %14657 = vst [vmem:[#allocation86_spill] sm:$0xff] %v9034_v55  ;;  %1687 = vmatpush.msra.mxu3 %v9085_v3 }
 0x13f   : > { %916 = vst [vmem:[#allocation3 + $0x210] sm:$0xff] %v8546_v13  ;;  %1557 = vmatpush.msra.mxu1 %v9091_v6  ;;  %v9101_v13 = vld [vmem:[%s8336_s8 + $0x360] sm:$0xff] }
 0x140   : > { %917 = vst [vmem:[#allocation3 + $0x2a0] sm:$0xff] %v8554_v15  ;;  %1623 = vmatpush.msra.mxu2 %v9101_v13  ;;  %v9105_v15 = vld [vmem:[#allocation2 + $0x62] sm:$0xff]  ;;  %1468 = vmatmul.f32.gmra.mxu3 %v8822_v53 }
 0x141   : > { %14658 = vst [vmem:[#allocation87_spill] sm:$0xff] %v9042_v34  ;;  %1558 = vmatpush.msra.mxu1 %v9114_v17  ;;  %1400 = vmatmul.f32.gmra.mxu2 %v9105_v15  ;;  %v9191_v53 = vld [vmem:[%s8336_s8 + $0x448] sm:$0xff] }
 0x142   : > { %14659 = vst [vmem:[#allocation88_spill] sm:$0xff] %v9045_v56  ;;  %v740_v56 = vld [vmem:[#allocation2 + $0x38] sm:$0xff] }
 0x143   : > { %918 = vst [vmem:[#allocation3 + $0x298] sm:$0xff] %v8559_v16  ;;  %v9111_v16 = vld [vmem:[%s8336_s8 + $0x468] sm:$0xff] }
 0x144   : > { %919 = vst [vmem:[#allocation3 + $0x5f8] sm:$0xff] %v8567_v18  ;;  %1752 = vmatpush.msra.mxu0 %v9111_v16  ;;  %v9122_v18 = vld [vmem:[%s8336_s8 + $0x358] sm:$0xff]  ;;  %1335 = vmatmul.f32.gmra.mxu1 %v9072_v0 }
 0x145   : > { %14660 = vst [vmem:[#allocation89_spill] sm:$0xff] %v9053_v58  ;;  %1624 = vmatpush.msra.mxu2 %v9122_v18 }
 0x146   : > { %920 = vst [vmem:[#allocation3 + $0xf8] sm:$0xff] %v8572_v19  ;;  %v9128_v19 = vld [vmem:[%s8336_s8 + $0x3d8] sm:$0xff]  ;;  %1753 = vmatpush.msra.mxu0 %v9131_v20 }
 0x147   : > { %921 = vst [vmem:[#allocation3 + $0x5f0] sm:$0xff] %v8580_v21  ;;  %v9134_v21 = vld [vmem:[%s8336_s8 + $0x2d8] sm:$0xff]  ;;  %1625 = vmatpush.msra.mxu2 %v9142_v22 }
 0x148   : > { %14661 = vst [vmem:[#allocation90_spill] sm:$0xff] %v9061_v60  ;;  %1559 = vmatpush.msra.mxu1 %v9134_v21  ;;  %1754 = vmatpush.msra.mxu0 %v9151_v2 }
 0x149   : > { %14662 = vst [vmem:[#allocation91_spill] sm:$0xff] %v9064_v61  ;;  %1403 = vmatmul.f32.gmra.mxu2 %v9145_v23  ;;  %1471 = vmatmul.f32.gmra.mxu3 %v8605_v28  ;;  %v9232_v28 = vld [vmem:[%s8336_s8 + $0x328] sm:$0xff] }
 0x14a   : > { %14663 = vst [vmem:[#allocation92_spill] sm:$0xff] %v9067_v62  ;;  %1560 = vmatpush.msra.mxu1 %v9154_v25 }
 0x14b   : > { %922 = vst [vmem:[#allocation3 + $0x108] sm:$0xff] %v8589_v24  ;;  %v9148_v24 = vld [vmem:[%s8336_s8 + $0x3d0] sm:$0xff] }
 0x14c   : > { %923 = vst [vmem:[#allocation3 + $0x5e0] sm:$0xff] %v8597_v26  ;;  %v9158_v26 = vld [vmem:[#allocation2 + $0x79] sm:$0xff] }
 0x14d   : > { %14664 = vst [vmem:[#allocation93_spill] sm:$0xff] %v9077_v1 }
 0x14e   : > { %924 = vst [vmem:[#allocation3 + $0x360] sm:$0xff] %v8607_v29  ;;  %v9162_v29 = vld [vmem:[%s8336_s8 + $0x348] sm:$0xff] }
 0x14f   : > { %925 = vst [vmem:[#allocation3 + $0x680] sm:$0xff] %v8618_v32  ;;  %1626 = vmatpush.msra.mxu2 %v9162_v29  ;;  %v9171_v32 = vld [vmem:[%s8336_s8 + $0x450] sm:$0xff] }
 0x150   : > { %14665 = vst [vmem:[#allocation94_spill] sm:$0xff] %v9085_v3  ;;  %1755 = vmatpush.msra.mxu0 %v9171_v32 }
 0x151   : > { %14666 = vst [vmem:[#allocation95_spill] sm:$0xff] %v9088_v4  ;;  %1627 = vmatpush.msra.mxu2 %v9182_v39  ;;  %1474 = vmatmul.f32.gmra.mxu3 %v8679_v5  ;;  %v9287_v5 = vld [vmem:[%s8336_s8 + $0x398] sm:$0xff]  ;;  %v9411_v4 = vld [vmem:[#allocation2 + $0xc1] sm:$0xff] }
 0x152   : > { %14667 = vst [vmem:[#allocation96_spill] sm:$0xff] %v9091_v6  ;;  %1756 = vmatpush.msra.mxu0 %v9191_v53  ;;  %1406 = vmatmul.f32.gmra.mxu2 %v9185_v40 }
 0x153   : > { %926 = vst [vmem:[#allocation3 + $0x148] sm:$0xff] %v8626_v14  ;;  %v9108_v14 = vld [vmem:[%s8336_s8 + $0x3e0] sm:$0xff]  ;;  %1628 = vmatpush.msra.mxu2 %v9200_v50 }
 0x154   : > { %927 = vst [vmem:[#allocation3 + $0x430] sm:$0xff] %v8955_v57  ;;  %1688 = vmatpush.msra.mxu3 %v9108_v14  ;;  %v9118_v57 = vld [vmem:[#allocation2 + $0x69] sm:$0xff] }
 0x155   : > { %14668 = vst [vmem:[#allocation97_spill] sm:$0xff] %v9101_v13  ;;  %1527 = vmatmul.f32.gmra.mxu0 %v9118_v57  ;;  %1338 = vmatmul.f32.gmra.mxu1 %v9118_v57  ;;  %v739_v13 = vld [vmem:[#allocation2 + $0x30] sm:$0xff] }
 0x156   : > { %928 = vst [vmem:[#allocation3 + $0x258] sm:$0xff] %v8958_v41  ;;  %1689 = vmatpush.msra.mxu3 %v9128_v19  ;;  %v9174_v41 = vld [vmem:[%s8336_s8 + $0x2c8] sm:$0xff] }
 0x157   : > { %929 = vst [vmem:[#allocation3 + $0x3e8] sm:$0xff] %v897_v7  ;;  %1561 = vmatpush.msra.mxu1 %v9174_v41  ;;  %v9209_v7 = vld [vmem:[%s8336_s8 + $0x3b8] sm:$0xff] }
 0x158   : > { %14669 = vst [vmem:[#allocation98_spill] sm:$0xff] %v9108_v14  ;;  %1690 = vmatpush.msra.mxu3 %v9148_v24 }
 0x159   : > { %14670 = vst [vmem:[#allocation99_spill] sm:$0xff] %v9111_v16  ;;  %1562 = vmatpush.msra.mxu1 %v9194_v46  ;;  %1477 = vmatmul.f32.gmra.mxu3 %v8767_v36  ;;  %v9361_v36 = vld [vmem:[%s8336_s8 + $0x410] sm:$0xff] }
 0x15a   : > { %14671 = vst [vmem:[#allocation100_spill] sm:$0xff] %v9114_v17  ;;  %1691 = vmatpush.msra.mxu3 %v9168_v30 }
 0x15b   : > { %930 = vst [vmem:[#allocation3 + $0x808] sm:$0xff] %v898_v12  ;;  %v9212_v12 = vld [vmem:[%s8336_s8 + $0x440] sm:$0xff]  ;;  %1563 = vmatpush.msra.mxu1 %v9205_v51 }
 0x15c   : > { %14672 = vst [vmem:[#allocation101_spill] sm:$0xff] %v9122_v18  ;;  %1692 = vmatpush.msra.mxu3 %v9188_v43  ;;  %1757 = vmatpush.msra.mxu0 %v9212_v12 }
 0x15d   : > { %14673 = vst [vmem:[#allocation102_spill] sm:$0xff] %v9128_v19  ;;  %1530 = vmatmul.f32.gmra.mxu0 %v9158_v26  ;;  %1341 = vmatmul.f32.gmra.mxu1 %v9158_v26  ;;  %v9405_v19 = vld [vmem:[#allocation2 + $0xc8] sm:$0xff] }
 0x15e   : > { %14674 = vst [vmem:[#allocation103_spill] sm:$0xff] %v9131_v20  ;;  %1693 = vmatpush.msra.mxu3 %v9209_v7 }
 0x15f   : > { %14675 = vst [vmem:[#allocation104_spill] sm:$0xff] %v9134_v21  ;;  %v9401_v21 = vld [vmem:[#allocation2 + $0xb2] sm:$0xff] }
 0x160   : > { %14676 = vst [vmem:[#allocation105_spill] sm:$0xff] %v9142_v22  ;;  %v9389_v22 = vld [vmem:[#allocation2 + $0xc0] sm:$0xff] }
 0x161   : > { %14677 = vst [vmem:[#allocation106_spill] sm:$0xff] %v9148_v24  ;;  %v9379_v24 = vld [vmem:[%s8336_s8 + $0x400] sm:$0xff] }
 0x162   : > { %14678 = vst [vmem:[#allocation107_spill] sm:$0xff] %v9151_v2  ;;  %v9349_v2 = vld [vmem:[#allocation2 + $0x9a] sm:$0xff] }
 0x163   : > { %14679 = vst [vmem:[#allocation108_spill] sm:$0xff] %v9154_v25  ;;  %v9334_v25 = vld [vmem:[%s8336_s8 + $0x420] sm:$0xff] }
 0x164   : > { %14680 = vst [vmem:[#allocation109_spill] sm:$0xff] %v9162_v29  ;;  %v9331_v29 = vld [vmem:[#allocation2 + $0x99] sm:$0xff] }
 0x165   : > { %14681 = vst [vmem:[#allocation110_spill] sm:$0xff] %v9168_v30  ;;  %v9328_v30 = vld [vmem:[%s8336_s8 + $0x300] sm:$0xff] }
 0x166   : > { %14682 = vst [vmem:[#allocation111_spill] sm:$0xff] %v9171_v32  ;;  %v9311_v32 = vld [vmem:[%s8336_s8 + $0x308] sm:$0xff] }
 0x167   : > { %14683 = vst [vmem:[#allocation112_spill] sm:$0xff] %v9174_v41  ;;  %v9278_v41 = vld [vmem:[%s8336_s8 + $0x298] sm:$0xff] }
 0x168   : > { %14684 = vst [vmem:[#allocation113_spill] sm:$0xff] %v9182_v39  ;;  %v9275_v39 = vld [vmem:[%s8336_s8 + $0x318] sm:$0xff] }
 0x169   : > { %14685 = vst [vmem:[#allocation114_spill] sm:$0xff] %v9188_v43  ;;  %v9272_v43 = vld [vmem:[%s8336_s8 + $0x3a0] sm:$0xff] }
 0x16a   : > { %14686 = vst [vmem:[#allocation115_spill] sm:$0xff] %v9191_v53  ;;  %v9224_v53 = vld [vmem:[%s8336_s8 + $0x2b0] sm:$0xff] }
 0x16b   : > { %14687 = vst [vmem:[#allocation116_spill] sm:$0xff] %v9194_v46  ;;  %v9216_v46 = vld [vmem:[#allocation2 + $0x81] sm:$0xff]  ;;  %1564 = vmatpush.msra.mxu1 %v9224_v53 }
 0x16c   : > { %14688 = vst [vmem:[#allocation117_spill] sm:$0xff] %v9200_v50  ;;  %v9221_v50 = vld [vmem:[%s8336_s8 + $0x330] sm:$0xff]  ;;  %1533 = vmatmul.f32.gmra.mxu0 %v9216_v46  ;;  %1344 = vmatmul.f32.gmra.mxu1 %v9216_v46 }
 0x16d   : > { %14689 = vst [vmem:[#allocation118_spill] sm:$0xff] %v9205_v51  ;;  %1629 = vmatpush.msra.mxu2 %v9221_v50  ;;  %v9229_v51 = vld [vmem:[%s8336_s8 + $0x3b0] sm:$0xff] }
 0x16e   : > { %14690 = vst [vmem:[#allocation119_spill] sm:$0xff] %v9209_v7  ;;  %v9235_v7 = vld [vmem:[#allocation2 + $0x82] sm:$0xff]  ;;  %1694 = vmatpush.msra.mxu3 %v9229_v51 }
 0x16f   : > { %14691 = vst [vmem:[#allocation120_spill] sm:$0xff] %v9212_v12  ;;  %v9240_v12 = vld [vmem:[%s8336_s8 + $0x438] sm:$0xff]  ;;  %1630 = vmatpush.msra.mxu2 %v9232_v28 }
 0x170   : > { %14692 = vst [vmem:[#allocation121_spill] sm:$0xff] %v9221_v50  ;;  %1758 = vmatpush.msra.mxu0 %v9240_v12  ;;  %v9247_v50 = vpop.f32.mrf.mxu1  ;;  %1409 = vmatmul.f32.gmra.mxu2 %v9235_v7 }
 0x171   : > { %14693 = vst [vmem:[#allocation122_spill] sm:$0xff] %v9224_v53  ;;  %v9245_v53 = vld [vmem:[%s8336_s8 + $0x2a8] sm:$0xff] }
 0x172   : > { %14694 = vst [vmem:[#allocation123_spill] sm:$0xff] %v9229_v51  ;;  %1565 = vmatpush.msra.mxu1 %v9245_v53  ;;  %v9256_v51 = vld [vmem:[%s8336_s8 + $0x320] sm:$0xff] }
 0x173   : > { %14695 = vst [vmem:[#allocation124_spill] sm:$0xff] %v9232_v28  ;;  %v9259_v28 = vld [vmem:[%s8336_s8 + $0x2a0] sm:$0xff]  ;;  %1631 = vmatpush.msra.mxu2 %v9256_v51 }
 0x174   : > { %642 = vst [vmem:[#allocation3 + $0x128] sm:$0xff] %v8948_v52  ;;  %v9252_v52 = vld [vmem:[%s8336_s8 + $0x3a8] sm:$0xff]  ;;  %1566 = vmatpush.msra.mxu1 %v9259_v28 }
 0x175   : > { %14696 = vst [vmem:[#allocation125_spill] sm:$0xff] %v9240_v12  ;;  %1695 = vmatpush.msra.mxu3 %v9252_v52  ;;  %v9264_v12 = vld [vmem:[%s8336_s8 + $0x430] sm:$0xff]  ;;  %1632 = vmatpush.msra.mxu2 %v9275_v39 }
 0x176   : > { %14697 = vst [vmem:[#allocation126_spill] sm:$0xff] %v9245_v53  ;;  %v9267_v53 = vld [vmem:[#allocation2 + $0x91] sm:$0xff]  ;;  %1759 = vmatpush.msra.mxu0 %v9264_v12  ;;  %1567 = vmatpush.msra.mxu1 %v9278_v41 }
 0x177   : > { %14698 = vst [vmem:[#allocation127_spill] sm:$0xff] %v9252_v52  ;;  %1696 = vmatpush.msra.mxu3 %v9272_v43  ;;  %1536 = vmatmul.f32.gmra.mxu0 %v9267_v53  ;;  %v9308_v52 = vld [vmem:[%s8336_s8 + $0x290] sm:$0xff] }
 0x178   : > { %14699 = vst [vmem:[#allocation128_spill] sm:$0xff] %v9256_v51  ;;  %v9289_v51 = vpop.f32.mrf.mxu2  ;;  %1347 = vmatmul.f32.gmra.mxu1 %v9267_v53 }
 0x179   : > { %14700 = vst [vmem:[#allocation129_spill] sm:$0xff] %v9259_v28  ;;  %1697 = vmatpush.msra.mxu3 %v9287_v5  ;;  %v9305_v28 = vld [vmem:[%s8336_s8 + $0x390] sm:$0xff]  ;;  %1568 = vmatpush.msra.mxu1 %v9308_v52 }
 0x17a   : > { %643 = vst [vmem:[#allocation3 + $0x28] sm:$0xff] %v8967_v8  ;;  %v9283_v8 = vld [vmem:[#allocation2 + $0x92] sm:$0xff] }
 0x17b   : > { %14701 = vst [vmem:[#allocation130_spill] sm:$0xff] %v9264_v12  ;;  %v9292_v12 = vld [vmem:[%s8336_s8 + $0x310] sm:$0xff]  ;;  %1412 = vmatmul.f32.gmra.mxu2 %v9283_v8  ;;  %1698 = vmatpush.msra.mxu3 %v9305_v28 }
 0x17c   : > { %14702 = vst [vmem:[#allocation131_spill] sm:$0xff] %v9272_v43  ;;  %v9296_v43 = vld [vmem:[%s8336_s8 + $0x428] sm:$0xff]  ;;  %1633 = vmatpush.msra.mxu2 %v9292_v12 }
 0x17d   : > { %14703 = vst [vmem:[#allocation132_spill] sm:$0xff] %v9275_v39  ;;  %1760 = vmatpush.msra.mxu0 %v9296_v43  ;;  %v9301_v39 = vpop.f32.mrf.mxu3 }
 0x17e   : > { %14704 = vst [vmem:[#allocation133_spill] sm:$0xff] %v9278_v41  ;;  %v9318_v41 = vpop.f32.mrf.mxu0  ;;  %1634 = vmatpush.msra.mxu2 %v9311_v32 }
 0x17f   : > { %14705 = vst [vmem:[#allocation134_spill] sm:$0xff] %v9287_v5  ;;  %v9314_v5 = vpop.f32.mrf.mxu1  ;;  %1761 = vmatpush.msra.mxu0 %v9334_v25 }
 0x180   : > { %14706 = vst [vmem:[#allocation135_spill] sm:$0xff] %v9292_v12  ;;  %v9322_v12 = vld [vmem:[%s8336_s8 + $0x388] sm:$0xff]  ;;  %1635 = vmatpush.msra.mxu2 %v9328_v30  ;;  %1539 = vmatmul.f32.gmra.mxu0 %v9331_v29 }
 0x181   : > { %644 = vst [vmem:[#allocation3 + $0x760] sm:$0xff] %v8983_v38  ;;  %1699 = vmatpush.msra.mxu3 %v9322_v12  ;;  %1350 = vmatmul.f32.gmra.mxu1 %v9331_v29 }
 0x182   : > { %14707 = vst [vmem:[#allocation136_spill] sm:$0xff] %v9296_v43  ;;  %v9325_v43 = vld [vmem:[%s8336_s8 + $0x288] sm:$0xff] }
 0x183   : > { %14708 = vst [vmem:[#allocation137_spill] sm:$0xff] %v9305_v28  ;;  %v9344_v28 = vld [vmem:[%s8336_s8 + $0x280] sm:$0xff]  ;;  %1569 = vmatpush.msra.mxu1 %v9325_v43  ;;  %1415 = vmatmul.f32.gmra.mxu2 %v9349_v2 }
 0x184   : > { %14709 = vst [vmem:[#allocation138_spill] sm:$0xff] %v9308_v52  ;;  %v9352_v52 = vld [vmem:[%s8336_s8 + $0x418] sm:$0xff] }
 0x185   : > { %14710 = vst [vmem:[#allocation139_spill] sm:$0xff] %v9311_v32  ;;  %v9341_v32 = vld [vmem:[%s8336_s8 + $0x380] sm:$0xff]  ;;  %1762 = vmatpush.msra.mxu0 %v9352_v52  ;;  %1570 = vmatpush.msra.mxu1 %v9344_v28 }
 0x186   : > { %14711 = vst [vmem:[#allocation140_spill] sm:$0xff] %v9322_v12  ;;  %v9354_v12 = vpop.f32.mrf.mxu2  ;;  %1700 = vmatpush.msra.mxu3 %v9341_v32 }
 0x187   : > { %14712 = vst [vmem:[#allocation141_spill] sm:$0xff] %v9325_v43  ;;  %1763 = vmatpush.msra.mxu0 %v9361_v36  ;;  %v9368_v43 = vpop.f32.mrf.mxu1 }
 0x188   : > { %14713 = vst [vmem:[#allocation142_spill] sm:$0xff] %v9328_v30  ;;  %v9364_v30 = vpop.f32.mrf.mxu3 }
 0x189   : > { %645 = vst [vmem:[#allocation3 + $0x290] sm:$0xff] %v8997_v45 }
 0x18a   : > { %14714 = vst [vmem:[#allocation143_spill] sm:$0xff] %v9334_v25  ;;  %v9374_v25 = vld [vmem:[#allocation2 + $0xa9] sm:$0xff] }
 0x18b   : > { %14715 = vst [vmem:[#allocation144_spill] sm:$0xff] %v9341_v32  ;;  %v9371_v32 = vld [vmem:[%s8336_s8 + $0x408] sm:$0xff]  ;;  %1542 = vmatmul.f32.gmra.mxu0 %v9374_v25  ;;  %1353 = vmatmul.f32.gmra.mxu1 %v9374_v25 }
 0x18c   : > { %14716 = vst [vmem:[#allocation145_spill] sm:$0xff] %v9344_v28  ;;  %1764 = vmatpush.msra.mxu0 %v9371_v32  ;;  %v14720_v28 = vld [vmem:[#allocation66_spill] sm:$0xff] }
 0x18d   : > { %14717 = vst [vmem:[#allocation146_spill] sm:$0xff] %v9352_v52  ;;  %1480 = vmatmul.f32.gmra.mxu3 %v14720_v28  ;;  %v1250_v52 = vpop.f32.mrf.mxu0  ;;  %v9393_v28 = vld [vmem:[#allocation2 + $0xb1] sm:$0xff] }
 0x18e   : > { %646 = vst [vmem:[#allocation3 + $0x660] sm:$0xff] %v9016_v49  ;;  %1765 = vmatpush.msra.mxu0 %v9379_v24  ;;  %v9386_v20 = vpop.f32.mrf.mxu2 }
 0x18f   : > { %14718 = vst [vmem:[#allocation147_spill] sm:$0xff] %v9361_v36  ;;  %v9383_v36 = vld [vmem:[#allocation2 + $0xaa] sm:$0xff] }
 0x190   : > { %14719 = vst [vmem:[#allocation148_spill] sm:$0xff] %v9371_v32  ;;  %1418 = vmatmul.f32.gmra.mxu2 %v9383_v36  ;;  %v9395_v32 = vpop.f32.mrf.mxu3 }
 0x191   : > { %647 = vst [vmem:[#allocation3 + $0x1e8] sm:$0xff] %v9030_v44 }
 0x192   : > { %14721 = vst [vmem:[#allocation66_spill] sm:$0xff] %v9379_v24  ;;  %v9398_v24 = vpop.f32.mrf.mxu1 }
 0x193   : > { %648 = vst [vmem:[#allocation3 + $0x140] sm:$0xff] %v9072_v0  ;;  %1545 = vmatmul.f32.gmra.mxu0 %v9393_v28  ;;  %1356 = vmatmul.f32.gmra.mxu1 %v9393_v28 }
 0x194   : > { %649 = vst [vmem:[#allocation3 + $0x400] sm:$0xff] %v9118_v57 }
 0x195   : > { %1483 = vmatmul.f32.gmra.mxu3 %v9389_v22  ;;  %v1253_v16 = vpop.f32.mrf.mxu0  ;;  %650 = vst [vmem:[#allocation3 + $0x848] sm:$0xff] %v9158_v26 }
 0x196   : > { %v9407_v18 = vpop.f32.mrf.mxu2  ;;  %651 = vst [vmem:[#allocation3 + $0x320] sm:$0xff] %v9216_v46 }
 0x197   : > { %652 = vst [vmem:[#allocation3 + $0x818] sm:$0xff] %v9267_v53 }
 0x198   : > { %1421 = vmatmul.f32.gmra.mxu2 %v9401_v21  ;;  %v9414_v17 = vpop.f32.mrf.mxu3  ;;  %653 = vst [vmem:[#allocation3 + $0x7f8] sm:$0xff] %v9331_v29 }
 0x199   : > { %654 = vst [vmem:[#allocation3 + $0x698] sm:$0xff] %v9374_v25 }
 0x19a   : > { %v1312_v14 = vpop.f32.mrf.mxu1  ;;  %655 = vst [vmem:[#allocation3 + $0x868] sm:$0xff] %v9393_v28 }
 0x19b   : > { %1548 = vmatmul.f32.gmra.mxu0 %v9411_v4  ;;  %v1313_v6 = vadd.f32 %v1312_v14, %v9318_v41  ;;  %1571 = vmatmul.f32.vlgmr.msra.gmra.mxu1 %v8961_v9  ;;  %656 = vst [vmem:[#allocation3 + $0x260] sm:$0xff] %v9411_v4 }
 0x19c   : > { %657 = vst [vmem:[#allocation3 + $0x8e8] sm:$0xff] %v9421_v37 }
 0x19d   : > { %1486 = vmatmul.f32.gmra.mxu3 %v9405_v19  ;;  %v1256_v61 = vpop.f32.mrf.mxu0 }
 0x19e   : > { %v1377_v3 = vpop.f32.mrf.mxu2 }
 0x19f   : > { %v1378_v1 = vadd.f32 %v1377_v3, %v1313_v6  ;;  %v741_v6 = vld [vmem:[#allocation2 + $0x48] sm:$0xff] }
 0x1a0   : > { %1636 = vmatmul.f32.vlgmr.msra.gmra.mxu2 %v739_v13  ;;  %v1442_v62 = vpop.f32.mrf.mxu3 }
 0x1a1   : > { %v9425_v58 = vadd.f32 %v1442_v62, %v1378_v1 }
 0x1a2   : > { %v1315_v60 = vpop.f32.mrf.mxu1 }
 0x1a3   : > { %1551 = vmatmul.f32.gmra.mxu0 %v9421_v37  ;;  %v1316_v9 = vadd.f32 %v1315_v60, %v1250_v52  ;;  %1574 = vmatmul.f32.gmra.mxu1 %v8977_v10 }
 0x1a5   : > { %1701 = vmatmul.f32.vlgmr.msra.gmra.mxu3 %v8983_v38  ;;  %v9428_v13 = vpop.f32.mrf.mxu0 }
 0x1a6   : > { %v1380_v14 = vpop.f32.mrf.mxu2 }
 0x1a7   : > { %v1381_v38 = vadd.f32 %v1380_v14, %v1316_v9  ;;  %v742_v14 = vld [vmem:[#allocation2 + $0x50] sm:$0xff] }
 0x1a8   : > { %1639 = vmatmul.f32.gmra.mxu2 %v740_v56  ;;  %v1445_v3 = vpop.f32.mrf.mxu3 }
 0x1a9   : > { %v9434_v1 = vadd.f32 %v1445_v3, %v1381_v38 }
 0x1aa   : > { %v1318_v62 = vpop.f32.mrf.mxu1 }
 0x1ab   : > { %1766 = vmatmul.f32.vlgmr.msra.gmra.mxu0 %v8993_v42  ;;  %v1319_v10 = vadd.f32 %v1318_v62, %v1253_v16  ;;  %1577 = vmatmul.f32.gmra.mxu1 %v8993_v42 }
 0x1ad   : > { %1704 = vmatmul.f32.gmra.mxu3 %v8997_v45  ;;  %v9437_v41 = vpop.f32.mrf.mxu0 }
 0x1ae   : > { %v1383_v56 = vpop.f32.mrf.mxu2 }
 0x1af   : > { %v1384_v45 = vadd.f32 %v1383_v56, %v1319_v10  ;;  %v743_v10 = vld [vmem:[#allocation2 + $0x60] sm:$0xff] }
 0x1b0   : > { %1642 = vmatmul.f32.gmra.mxu2 %v741_v6  ;;  %v1448_v60 = vpop.f32.mrf.mxu3 }
 0x1b1   : > { %v9443_v9 = vadd.f32 %v1448_v60, %v1384_v45 }
 0x1b2   : > { %v1321_v52 = vpop.f32.mrf.mxu1 }
 0x1b3   : > { %1769 = vmatmul.f32.gmra.mxu0 %v9009_v48  ;;  %v1322_v3 = vadd.f32 %v1321_v52, %v1256_v61  ;;  %1580 = vmatmul.f32.gmra.mxu1 %v9009_v48 }
 0x1b5   : > { %1707 = vmatmul.f32.gmra.mxu3 %v9016_v49  ;;  %v9445_v38 = vpop.f32.mrf.mxu0 }
 0x1b6   : > { %v1386_v16 = vpop.f32.mrf.mxu2 }
 0x1b7   : > { %v1387_v42 = vadd.f32 %v1386_v16, %v1322_v3  ;;  %v745_v16 = vld [vmem:[#allocation2 + $0x78] sm:$0xff] }
 0x1b8   : > { %1645 = vmatmul.f32.gmra.mxu2 %v742_v14  ;;  %v1451_v62 = vpop.f32.mrf.mxu3 }
 0x1b9   : > { %v9450_v6 = vadd.f32 %v1451_v62, %v1387_v42 }
 0x1ba   : > { %v1324_v49 = vpop.f32.mrf.mxu1 }
 0x1bb   : > { %1772 = vmatmul.f32.gmra.mxu0 %v9026_v54  ;;  %v1325_v45 = vadd.f32 %v1324_v49, %v9247_v50  ;;  %1583 = vmatmul.f32.gmra.mxu1 %v9026_v54  ;;  %v746_v50 = vld [vmem:[#allocation2 + $0x80] sm:$0xff] }
 0x1bd   : > { %1710 = vmatmul.f32.gmra.mxu3 %v9030_v44  ;;  %v9452_v56 = vpop.f32.mrf.mxu0  ;;  %v744_v44 = vld [vmem:[#allocation2 + $0x68] sm:$0xff] }
 0x1be   : > { %v1389_v61 = vpop.f32.mrf.mxu2 }
 0x1bf   : > { %v1390_v48 = vadd.f32 %v1389_v61, %v1325_v45  ;;  %v747_v61 = vld [vmem:[#allocation2 + $0x90] sm:$0xff] }
 0x1c0   : > { %1648 = vmatmul.f32.gmra.mxu2 %v743_v10  ;;  %v1454_v60 = vpop.f32.mrf.mxu3 }
 0x1c1   : > { %v9458_v14 = vadd.f32 %v1454_v60, %v1390_v48 }
 0x1c2   : > { %v1327_v52 = vpop.f32.mrf.mxu1 }
 0x1c3   : > { %1775 = vmatmul.f32.gmra.mxu0 %v9057_v59  ;;  %v1328_v42 = vadd.f32 %v1327_v52, %v9314_v5  ;;  %1586 = vmatmul.f32.gmra.mxu1 %v9057_v59  ;;  %v748_v5 = vld [vmem:[#allocation2 + $0x98] sm:$0xff] }
 0x1c5   : > { %1713 = vmatmul.f32.gmra.mxu3 %v9072_v0  ;;  %v9460_v3 = vpop.f32.mrf.mxu0 }
 0x1c6   : > { %v1392_v54 = vpop.f32.mrf.mxu2 }
 0x1c7   : > { %v1393_v0 = vadd.f32 %v1392_v54, %v1328_v42  ;;  %v749_v54 = vld [vmem:[#allocation2 + $0xa8] sm:$0xff] }
 0x1c8   : > { %1651 = vmatmul.f32.gmra.mxu2 %v744_v44  ;;  %v1457_v62 = vpop.f32.mrf.mxu3 }
 0x1c9   : > { %v9466_v10 = vadd.f32 %v1457_v62, %v1393_v0 }
 0x1ca   : > { %v1330_v49 = vpop.f32.mrf.mxu1 }
 0x1cb   : > { %1778 = vmatmul.f32.gmra.mxu0 %v9105_v15  ;;  %v1331_v48 = vadd.f32 %v1330_v49, %v9368_v43  ;;  %1589 = vmatmul.f32.gmra.mxu1 %v9105_v15 }
 0x1cd   : > { %1716 = vmatmul.f32.gmra.mxu3 %v9118_v57  ;;  %v9468_v45 = vpop.f32.mrf.mxu0 }
 0x1ce   : > { %v1395_v59 = vpop.f32.mrf.mxu2 }
 0x1cf   : > { %v1396_v57 = vadd.f32 %v1395_v59, %v1331_v48 }
 0x1d0   : > { %1654 = vmatmul.f32.gmra.mxu2 %v745_v16  ;;  %v1460_v44 = vpop.f32.mrf.mxu3 }
 0x1d1   : > { %v9474_v60 = vadd.f32 %v1460_v44, %v1396_v57 }
 0x1d2   : > { %v1333_v52 = vpop.f32.mrf.mxu1 }
 0x1d3   : > { %1781 = vmatmul.f32.gmra.mxu0 %v9145_v23  ;;  %1592 = vmatmul.f32.gmra.mxu1 %v9145_v23  ;;  %v1334_v43 = vadd.f32 %v1333_v52, %v9398_v24 }
 0x1d5   : > { %1719 = vmatmul.f32.gmra.mxu3 %v9158_v26  ;;  %v9476_v42 = vpop.f32.mrf.mxu0  ;;  %v750_v26 = vld [vmem:[#allocation2 + $0xb0] sm:$0xff] }
 0x1d6   : > { %v1398_v15 = vpop.f32.mrf.mxu2 }
 0x1d7   : > { %v1399_v16 = vadd.f32 %v1398_v15, %v1334_v43 }
 0x1d8   : > { %1657 = vmatmul.f32.gmra.mxu2 %v746_v50  ;;  %v1463_v0 = vpop.f32.mrf.mxu3 }
 0x1d9   : > { %v9482_v49 = vadd.f32 %v1463_v0, %v1399_v16 }
 0x1da   : > { %v1336_v62 = vpop.f32.mrf.mxu1 }
 0x1db   : > { %1784 = vmatmul.f32.gmra.mxu0 %v9185_v40  ;;  %1595 = vmatmul.f32.gmra.mxu1 %v9185_v40  ;;  %v1337_v23 = vadd.f32 %v1336_v62, %v9289_v51  ;;  %v9495_v51 = vld [vmem:[#allocation2 + $0xc2] sm:$0xff]  ;;  %v817_v62 = vld [vmem:[#allocation2 + $0xd9] sm:$0xff] }
 0x1dc   : > { %529 = vst [vmem:[#allocation3 + $0x7a8] sm:$0xff] %v9495_v51 }
 0x1dd   : > { %1722 = vmatmul.f32.gmra.mxu3 %v9216_v46  ;;  %v9484_v48 = vpop.f32.mrf.mxu0 }
 0x1de   : > { %v1401_v24 = vpop.f32.mrf.mxu2 }
 0x1df   : > { %v1402_v46 = vadd.f32 %v1401_v24, %v1337_v23  ;;  %v880_v24 = vld [vmem:[#allocation2 + $0xca] sm:$0xff] }
 0x1e0   : > { %1660 = vmatmul.f32.gmra.mxu2 %v747_v61  ;;  %v1466_v50 = vpop.f32.mrf.mxu3  ;;  %530 = vst [vmem:[#allocation3 + $0x670] sm:$0xff] %v880_v24 }
 0x1e1   : > { %v1467_v57 = vadd.f32 %v1466_v50, %v1402_v46 }
 0x1e2   : > { %v1339_v59 = vpop.f32.mrf.mxu1 }
 0x1e3   : > { %1787 = vmatmul.f32.gmra.mxu0 %v9235_v7  ;;  %1598 = vmatmul.f32.gmra.mxu1 %v9235_v7  ;;  %v1340_v61 = vadd.f32 %v1339_v59, %v9354_v12  ;;  %v753_v12 = vld [vmem:[#allocation2 + $0xd8] sm:$0xff] }
 0x1e5   : > { %1725 = vmatmul.f32.gmra.mxu3 %v9267_v53  ;;  %v1531_v44 = vpop.f32.mrf.mxu0 }
 0x1e6   : > { %v9490_v52 = vadd.f32 %v1531_v44, %v1467_v57  ;;  %v1404_v40 = vpop.f32.mrf.mxu2  ;;  %v818_v44 = vld [vmem:[#allocation2 + $0xe1] sm:$0xff] }
 0x1e7   : > { %v1405_v53 = vadd.f32 %v1404_v40, %v1340_v61  ;;  %v881_v40 = vld [vmem:[#allocation2 + $0xda] sm:$0xff] }
 0x1e8   : > { %1663 = vmatmul.f32.gmra.mxu2 %v748_v5  ;;  %v1469_v43 = vpop.f32.mrf.mxu3 }
 0x1e9   : > { %v1470_v16 = vadd.f32 %v1469_v43, %v1405_v53 }
 0x1ea   : > { %v1342_v15 = vpop.f32.mrf.mxu1 }
 0x1eb   : > { %1790 = vmatmul.f32.gmra.mxu0 %v9283_v8  ;;  %1601 = vmatmul.f32.gmra.mxu1 %v9283_v8  ;;  %v1343_v7 = vadd.f32 %v1342_v15, %v9386_v20 }
 0x1ed   : > { %1728 = vmatmul.f32.gmra.mxu3 %v9331_v29  ;;  %v1534_v5 = vpop.f32.mrf.mxu0 }
 0x1ee   : > { %v9501_v0 = vadd.f32 %v1534_v5, %v1470_v16  ;;  %v1407_v29 = vpop.f32.mrf.mxu2  ;;  %v882_v16 = vld [vmem:[#allocation2 + $0xe2] sm:$0xff] }
 0x1ef   : > { %v1408_v23 = vadd.f32 %v1407_v29, %v1343_v7 }
 0x1f0   : > { %1666 = vmatmul.f32.gmra.mxu2 %v749_v54  ;;  %v1472_v46 = vpop.f32.mrf.mxu3  ;;  %v754_v54 = vld [vmem:[#allocation2 + $0xe0] sm:$0xff] }
 0x1f1   : > { %v1473_v59 = vadd.f32 %v1472_v46, %v1408_v23 }
 0x1f2   : > { %v1345_v50 = vpop.f32.mrf.mxu1 }
 0x1f3   : > { %1793 = vmatmul.f32.gmra.mxu0 %v9349_v2  ;;  %1604 = vmatmul.f32.gmra.mxu1 %v9349_v2  ;;  %v1346_v20 = vadd.f32 %v1345_v50, %v9407_v18 }
 0x1f5   : > { %1731 = vmatmul.f32.gmra.mxu3 %v9374_v25  ;;  %v1537_v8 = vpop.f32.mrf.mxu0 }
 0x1f6   : > { %v9507_v57 = vadd.f32 %v1537_v8, %v1473_v59  ;;  %v1410_v25 = vpop.f32.mrf.mxu2 }
 0x1f7   : > { %v1411_v61 = vadd.f32 %v1410_v25, %v1346_v20 }
 0x1f8   : > { %1669 = vmatmul.f32.gmra.mxu2 %v750_v26  ;;  %v1475_v43 = vpop.f32.mrf.mxu3 }
 0x1f9   : > { %v1476_v15 = vadd.f32 %v1475_v43, %v1411_v61 }
 0x1fa   : > { %v1348_v53 = vpop.f32.mrf.mxu1 }
 0x1fb   : > { %1796 = vmatmul.f32.gmra.mxu0 %v9383_v36  ;;  %1607 = vmatmul.f32.gmra.mxu1 %v9383_v36  ;;  %v1349_v18 = vadd.f32 %v1348_v53, %v9301_v39 }
 0x1fd   : > { %1734 = vmatmul.f32.gmra.mxu3 %v9393_v28  ;;  %v1540_v2 = vpop.f32.mrf.mxu0 }
 0x1fe   : > { %v9514_v26 = vadd.f32 %v1540_v2, %v1476_v15  ;;  %v1413_v28 = vpop.f32.mrf.mxu2 }
 0x1ff   : > { %v1414_v7 = vadd.f32 %v1413_v28, %v1349_v18  ;;  %v1508_v28 = vadd.f32 %v9428_v13, %v9425_v58  ;;  %v1815_v13 = vld [vmem:[#allocation3 + $0x128] sm:$0xff] }
 0x200   : > { %1672 = vmatmul.f32.gmra.mxu2 %v9389_v22  ;;  %v1478_v29 = vpop.f32.mrf.mxu3 }
 0x201   : > { %v1479_v23 = vadd.f32 %v1478_v29, %v1414_v7 }
 0x202   : > { %v1351_v5 = vpop.f32.mrf.mxu1 }
 0x203   : > { %1799 = vmatmul.f32.gmra.mxu0 %v9401_v21  ;;  %1610 = vmatmul.f32.gmra.mxu1 %v9401_v21  ;;  %v1352_v22 = vadd.f32 %v1351_v5, %v9364_v30 }
 0x205   : > { %1737 = vmatmul.f32.gmra.mxu3 %v9411_v4 }
 0x206   : > { %v1416_v4 = vpop.f32.mrf.mxu2 }
 0x207   : > { %v1417_v46 = vadd.f32 %v1416_v4, %v1352_v22  ;;  %v1848_v22 = vstv %s1847_s9 }
 0x208   : > { %1675 = vmatmul.f32.gmra.mxu2 %v9405_v19  ;;  %v1543_v39 = vpop.f32.mrf.mxu0  ;;  %vm9540_vm1 = vcmp.eq.s32.totalorder %v1848_v22, 1 }
 0x209   : > { %v9521_v36 = vadd.f32 %v1543_v39, %v1479_v23 }
 0x20a   : > { %v1354_v50 = vpop.f32.mrf.mxu1 }
 0x20b   : > { %1802 = vmatmul.f32.gmra.mxu0 %v9495_v51  ;;  %1613 = vmatmul.f32.gmra.mxu1 %v9495_v51  ;;  %v1355_v19 = vadd.f32 %v1354_v50, %v9395_v32  ;;  %v14722_v50 = vmov 0 }
 0x20c   : > { %v14723_v50 = vsel %vm9540_vm1, 4294967295, %v14722_v50 }
 0x20d   : > { %1740 = vmatmul.f32.gmra.mxu3 %v9421_v37  ;;  %14724 = vst [vmem:[#allocation149_spill] sm:$0xff] %v14723_v50 }
 0x210   : > { %v1481_v59 = vpop.f32.mrf.mxu3  ;;  %1678 = vmatmul.f32.gmra.mxu2 %v753_v12  ;;  %v1546_v21 = vpop.f32.mrf.mxu0 }
 0x211   : > { %v1482_v20 = vadd.f32 %v1481_v59, %v1417_v46  ;;  %v1883_v59 = vstv %s1882_s10 }
 0x212   : > { %v1357_v37 = vpop.f32.mrf.mxu1  ;;  %vm9546_vm2 = vcmp.eq.s32.totalorder %v1883_v59, 1 }
 0x213   : > { %v9527_v8 = vadd.f32 %v1546_v21, %v1482_v20  ;;  %v1419_v30 = vpop.f32.mrf.mxu2  ;;  %1805 = vmatmul.f32.gmra.mxu0 %v880_v24  ;;  %1616 = vmatmul.f32.gmra.mxu1 %v880_v24  ;;  %v1358_v43 = vadd.f32 %v1357_v37, %v9414_v17 }
 0x214   : > { %v1420_v25 = vadd.f32 %v1419_v30, %v1355_v19 }
 0x215   : > { %1743 = vmatmul.f32.gmra.mxu3 %v817_v62 }
 0x218   : > { %v1484_v61 = vpop.f32.mrf.mxu3  ;;  %1681 = vmatmul.f32.gmra.mxu2 %v754_v54  ;;  %v1549_v12 = vpop.f32.mrf.mxu0 }
 0x219   : > { %v1485_v53 = vadd.f32 %v1484_v61, %v1420_v25  ;;  %v1514_v25 = vadd.f32 %v9445_v38, %v9443_v9  ;;  %v1517_v38 = vadd.f32 %v9452_v56, %v9450_v6  ;;  %v1520_v56 = vadd.f32 %v9460_v3, %v9458_v14 }
 0x21a   : > { %v1572_v18 = vpop.f32.mrf.mxu1  ;;  %v1523_v3 = vadd.f32 %v9468_v45, %v9466_v10  ;;  %v1526_v45 = vadd.f32 %v9476_v42, %v9474_v60  ;;  %v1529_v42 = vadd.f32 %v9484_v48, %v9482_v49 }
 0x21b   : > { %v9530_v51 = vadd.f32 %v1549_v12, %v1485_v53  ;;  %v1422_v32 = vpop.f32.mrf.mxu2  ;;  %1808 = vmatmul.f32.gmra.mxu0 %v881_v40  ;;  %v1573_v7 = vadd.f32 %v1572_v18, %v1508_v28  ;;  %v1511_v40 = vadd.f32 %v9437_v41, %v9434_v1  ;;  %v14725_v1 = vmov 0  ;;  %v1816_v12 = vld [vmem:[#allocation3 + $0x28] sm:$0xff] }
 0x21c   : > { %v1423_v15 = vadd.f32 %v1422_v32, %v1358_v43  ;;  %v14726_v1 = vsel %vm9546_vm2, 4294967295, %v14725_v1 }
 0x21d   : > { %1746 = vmatmul.f32.gmra.mxu3 %v818_v44  ;;  %14727 = vst [vmem:[#allocation150_spill] sm:$0xff] %v14726_v1 }
 0x220   : > { %v1487_v62 = vpop.f32.mrf.mxu3  ;;  %v1552_v54 = vpop.f32.mrf.mxu0 }
 0x221   : > { %v1488_v2 = vadd.f32 %v1487_v62, %v1423_v15 }
 0x222   : > { %v1575_v44 = vpop.f32.mrf.mxu1 }
 0x223   : > { %v9535_v24 = vadd.f32 %v1552_v54, %v1488_v2  ;;  %v1637_v17 = vpop.f32.mrf.mxu2  ;;  %1811 = vmatmul.f32.gmra.mxu0 %v882_v16  ;;  %v1576_v39 = vadd.f32 %v1575_v44, %v1511_v40 }
 0x224   : > { %v1638_v5 = vadd.f32 %v1637_v17, %v1573_v7 }
 0x228   : > { %v1702_v29 = vpop.f32.mrf.mxu3  ;;  %v1767_v58 = vpop.f32.mrf.mxu0 }
 0x229   : > { %v1703_v23 = vadd.f32 %v1702_v29, %v1638_v5  ;;  %v1817_v29 = vld [vmem:[#allocation3 + $0x760] sm:$0xff] }
 0x22a   : > { %v1578_v19 = vpop.f32.mrf.mxu1 }
 0x22b   : > { %v1768_v4 = vadd.f32 %v1767_v58, %v1703_v23  ;;  %v1640_v46 = vpop.f32.mrf.mxu2  ;;  %v1579_v53 = vadd.f32 %v1578_v19, %v1514_v25  ;;  %v1818_v19 = vld [vmem:[#allocation3 + $0x290] sm:$0xff] }
 0x22c   : > { %v1641_v16 = vadd.f32 %v1640_v46, %v1576_v39 }
 0x22d   : > { %v1831_v20 = vadd.f32 %v1815_v13, %v1768_v4 }
 0x22f   : > { %v1850_v30 = vsel %vm9540_vm1, %v1831_v20, %v1768_v4 }
 0x230   : > { %v1705_v21 = vpop.f32.mrf.mxu3  ;;  %v1866_v37 = vmax.f32 %v1850_v30, 0.0  ;;  %v1770_v43 = vpop.f32.mrf.mxu0 }
 0x231   : > { %v1706_v41 = vadd.f32 %v1705_v21, %v1641_v16 }
 0x232   : > { %v9554_v61 = vsel %vm9546_vm2, %v1866_v37, %v1850_v30  ;;  %v1581_v2 = vpop.f32.mrf.mxu1 }
 0x233   : > { %1901 = vst [vmem:[#allocation2 + $0x19] sm:$0xff] %v9554_v61  ;;  %v1771_v32 = vadd.f32 %v1770_v43, %v1706_v41  ;;  %v1643_v15 = vpop.f32.mrf.mxu2  ;;  %v1582_v5 = vadd.f32 %v1581_v2, %v1517_v38 }
 0x234   : > { %v1644_v62 = vadd.f32 %v1643_v15, %v1579_v53 }
 0x235   : > { %v1832_v18 = vadd.f32 %v1816_v12, %v1771_v32 }
 0x237   : > { %v1851_v7 = vsel %vm9540_vm1, %v1832_v18, %v1771_v32  ;;  %v1819_v18 = vld [vmem:[#allocation3 + $0x660] sm:$0xff] }
 0x238   : > { %v1708_v28 = vpop.f32.mrf.mxu3  ;;  %v1867_v54 = vmax.f32 %v1851_v7, 0.0  ;;  %v1773_v44 = vpop.f32.mrf.mxu0 }
 0x239   : > { %v1709_v9 = vadd.f32 %v1708_v28, %v1644_v62 }
 0x23a   : > { %v9563_v17 = vsel %vm9546_vm2, %v1867_v54, %v1851_v7  ;;  %v1584_v58 = vpop.f32.mrf.mxu1 }
 0x23b   : > { %1902 = vst [vmem:[#allocation2 + $0x21] sm:$0xff] %v9563_v17  ;;  %v1774_v23 = vadd.f32 %v1773_v44, %v1709_v9  ;;  %v1646_v40 = vpop.f32.mrf.mxu2  ;;  %v1585_v16 = vadd.f32 %v1584_v58, %v1520_v56 }
 0x23c   : > { %v1647_v22 = vadd.f32 %v1646_v40, %v1582_v5 }
 0x23d   : > { %v1833_v39 = vadd.f32 %v1817_v29, %v1774_v23 }
 0x23f   : > { %v1852_v4 = vsel %vm9540_vm1, %v1833_v39, %v1774_v23 }
 0x240   : > { %v1711_v13 = vpop.f32.mrf.mxu3  ;;  %v1868_v46 = vmax.f32 %v1852_v4, 0.0  ;;  %v1776_v20 = vpop.f32.mrf.mxu0 }
 0x241   : > { %v1712_v6 = vadd.f32 %v1711_v13, %v1647_v22  ;;  %v1820_v22 = vld [vmem:[#allocation3 + $0x1e8] sm:$0xff] }
 0x242   : > { %v9572_v59 = vsel %vm9546_vm2, %v1868_v46, %v1852_v4  ;;  %v1587_v37 = vpop.f32.mrf.mxu1 }
 0x243   : > { %1903 = vst [vmem:[#allocation2 + $0x31] sm:$0xff] %v9572_v59  ;;  %v1777_v21 = vadd.f32 %v1776_v20, %v1712_v6  ;;  %v1649_v30 = vpop.f32.mrf.mxu2  ;;  %v1588_v15 = vadd.f32 %v1587_v37, %v1523_v3 }
 0x244   : > { %v1650_v41 = vadd.f32 %v1649_v30, %v1585_v16  ;;  %v1821_v30 = vld [vmem:[#allocation3 + $0x140] sm:$0xff] }
 0x245   : > { %v1834_v25 = vadd.f32 %v1818_v19, %v1777_v21 }
 0x247   : > { %v1853_v43 = vsel %vm9540_vm1, %v1834_v25, %v1777_v21 }
 0x248   : > { %v1714_v53 = vpop.f32.mrf.mxu3  ;;  %v1869_v12 = vmax.f32 %v1853_v43, 0.0  ;;  %v1779_v62 = vpop.f32.mrf.mxu0 }
 0x249   : > { %v1715_v14 = vadd.f32 %v1714_v53, %v1650_v41 }
 0x24a   : > { %v9581_v32 = vsel %vm9546_vm2, %v1869_v12, %v1853_v43  ;;  %v1590_v38 = vpop.f32.mrf.mxu1 }
 0x24b   : > { %1904 = vst [vmem:[#allocation2 + $0x39] sm:$0xff] %v9581_v32  ;;  %v1780_v2 = vadd.f32 %v1779_v62, %v1715_v14  ;;  %v1652_v28 = vpop.f32.mrf.mxu2  ;;  %v1591_v23 = vadd.f32 %v1590_v38, %v1526_v45 }
 0x24c   : > { %v1653_v7 = vadd.f32 %v1652_v28, %v1588_v15 }
 0x24d   : > { %v1835_v9 = vadd.f32 %v1819_v18, %v1780_v2  ;;  %v1822_v18 = vld [vmem:[#allocation3 + $0x400] sm:$0xff] }
 0x24f   : > { %v1854_v5 = vsel %vm9540_vm1, %v1835_v9, %v1780_v2 }
 0x250   : > { %v1717_v54 = vpop.f32.mrf.mxu3  ;;  %v1870_v44 = vmax.f32 %v1854_v5, 0.0  ;;  %v1782_v40 = vpop.f32.mrf.mxu0 }
 0x251   : > { %v1718_v10 = vadd.f32 %v1717_v54, %v1653_v7 }
 0x252   : > { %v9590_v29 = vsel %vm9546_vm2, %v1870_v44, %v1854_v5  ;;  %v1593_v6 = vpop.f32.mrf.mxu1 }
 0x253   : > { %1905 = vst [vmem:[#allocation2 + $0x49] sm:$0xff] %v9590_v29  ;;  %v1783_v39 = vadd.f32 %v1782_v40, %v1718_v10  ;;  %v1655_v58 = vpop.f32.mrf.mxu2  ;;  %v1594_v19 = vadd.f32 %v1593_v6, %v1529_v42  ;;  %v1823_v40 = vld [vmem:[#allocation3 + $0x848] sm:$0xff] }
 0x254   : > { %v1656_v13 = vadd.f32 %v1655_v58, %v1591_v23 }
 0x255   : > { %v1836_v4 = vadd.f32 %v1820_v22, %v1783_v39 }
 0x257   : > { %v1855_v46 = vsel %vm9540_vm1, %v1836_v4, %v1783_v39 }
 0x258   : > { %v1720_v56 = vpop.f32.mrf.mxu3  ;;  %v1871_v16 = vmax.f32 %v1855_v46, 0.0  ;;  %v1785_v21 = vpop.f32.mrf.mxu0 }
 0x259   : > { %v1721_v60 = vadd.f32 %v1720_v56, %v1656_v13 }
 0x25a   : > { %v9599_v20 = vsel %vm9546_vm2, %v1871_v16, %v1855_v46  ;;  %v1596_v43 = vpop.f32.mrf.mxu1 }
 0x25b   : > { %1906 = vst [vmem:[#allocation2 + $0x51] sm:$0xff] %v9599_v20  ;;  %v1786_v41 = vadd.f32 %v1785_v21, %v1721_v60  ;;  %v1658_v25 = vpop.f32.mrf.mxu2  ;;  %v1597_v15 = vadd.f32 %v1596_v43, %v9490_v52 }
 0x25c   : > { %v1659_v37 = vadd.f32 %v1658_v25, %v1594_v19  ;;  %v1824_v19 = vld [vmem:[#allocation3 + $0x320] sm:$0xff] }
 0x25d   : > { %v1837_v53 = vadd.f32 %v1821_v30, %v1786_v41 }
 0x25f   : > { %v1856_v3 = vsel %vm9540_vm1, %v1837_v53, %v1786_v41 }
 0x260   : > { %v1723_v14 = vpop.f32.mrf.mxu3  ;;  %v1872_v48 = vmax.f32 %v1856_v3, 0.0  ;;  %v1788_v62 = vpop.f32.mrf.mxu0 }
 0x261   : > { %v1724_v49 = vadd.f32 %v1723_v14, %v1659_v37 }
 0x262   : > { %v9606_v12 = vsel %vm9546_vm2, %v1872_v48, %v1856_v3  ;;  %v1599_v38 = vpop.f32.mrf.mxu1 }
 0x263   : > { %1907 = vst [vmem:[#allocation2 + $0x61] sm:$0xff] %v9606_v12  ;;  %v1789_v2 = vadd.f32 %v1788_v62, %v1724_v49  ;;  %v1661_v28 = vpop.f32.mrf.mxu2  ;;  %v1600_v52 = vadd.f32 %v1599_v38, %v9501_v0  ;;  %v433_v38 = vld [vmem:[#allocation2 + $0xc1] sm:$0xff] }
 0x264   : > { %v1662_v7 = vadd.f32 %v1661_v28, %v1597_v15  ;;  %v1825_v15 = vld [vmem:[#allocation3 + $0x818] sm:$0xff]  ;;  %465 = vst [vmem:[#allocation3 + $0x608] sm:$0xff] %v433_v38 }
 0x265   : > { %v1838_v9 = vadd.f32 %v1822_v18, %v1789_v2 }
 0x267   : > { %v1857_v5 = vsel %vm9540_vm1, %v1838_v9, %v1789_v2  ;;  %v369_v2 = vld [vmem:[#allocation2 + $0xc0] sm:$0xff] }
 0x268   : > { %v1726_v54 = vpop.f32.mrf.mxu3  ;;  %v1873_v45 = vmax.f32 %v1857_v5, 0.0  ;;  %v1791_v23 = vpop.f32.mrf.mxu0  ;;  %401 = vst [vmem:[#allocation3 + $0x600] sm:$0xff] %v369_v2 }
 0x269   : > { %v1727_v10 = vadd.f32 %v1726_v54, %v1662_v7  ;;  %v370_v7 = vld [vmem:[#allocation2 + $0xc8] sm:$0xff] }
 0x26a   : > { %v9614_v44 = vsel %vm9546_vm2, %v1873_v45, %v1857_v5  ;;  %v1602_v4 = vpop.f32.mrf.mxu1  ;;  %402 = vst [vmem:[#allocation3 + $0x820] sm:$0xff] %v370_v7 }
 0x26b   : > { %1908 = vst [vmem:[#allocation2 + $0x69] sm:$0xff] %v9614_v44  ;;  %v1792_v22 = vadd.f32 %v1791_v23, %v1727_v10  ;;  %v1664_v39 = vpop.f32.mrf.mxu2  ;;  %v1603_v0 = vadd.f32 %v1602_v4, %v9507_v57 }
 0x26c   : > { %v1665_v58 = vadd.f32 %v1664_v39, %v1600_v52 }
 0x26d   : > { %v1839_v13 = vadd.f32 %v1823_v40, %v1792_v22 }
 0x26f   : > { %v1858_v56 = vsel %vm9540_vm1, %v1839_v13, %v1792_v22  ;;  %v1826_v22 = vld [vmem:[#allocation3 + $0x7f8] sm:$0xff] }
 0x270   : > { %v1729_v6 = vpop.f32.mrf.mxu3  ;;  %v1874_v60 = vmax.f32 %v1858_v56, 0.0  ;;  %v1794_v16 = vpop.f32.mrf.mxu0  ;;  %v434_v13 = vld [vmem:[#allocation2 + $0xc9] sm:$0xff] }
 0x271   : > { %v1730_v46 = vadd.f32 %v1729_v6, %v1665_v58  ;;  %466 = vst [vmem:[#allocation3 + $0x120] sm:$0xff] %v434_v13 }
 0x272   : > { %v9622_v42 = vsel %vm9546_vm2, %v1874_v60, %v1858_v56  ;;  %v1605_v37 = vpop.f32.mrf.mxu1 }
 0x273   : > { %1909 = vst [vmem:[#allocation2 + $0x79] sm:$0xff] %v9622_v42  ;;  %v1795_v21 = vadd.f32 %v1794_v16, %v1730_v46  ;;  %v1667_v30 = vpop.f32.mrf.mxu2  ;;  %v1606_v57 = vadd.f32 %v1605_v37, %v9514_v26 }
 0x274   : > { %v1668_v41 = vadd.f32 %v1667_v30, %v1603_v0  ;;  %v1827_v30 = vld [vmem:[#allocation3 + $0x698] sm:$0xff] }
 0x275   : > { %v1840_v25 = vadd.f32 %v1824_v19, %v1795_v21 }
 0x277   : > { %v1859_v43 = vsel %vm9540_vm1, %v1840_v25, %v1795_v21 }
 0x278   : > { %v1732_v53 = vpop.f32.mrf.mxu3  ;;  %v1875_v3 = vmax.f32 %v1859_v43, 0.0  ;;  %v1797_v48 = vpop.f32.mrf.mxu0 }
 0x279   : > { %v1733_v14 = vadd.f32 %v1732_v53, %v1668_v41 }
 0x27a   : > { %v9630_v49 = vsel %vm9546_vm2, %v1875_v3, %v1859_v43  ;;  %v1608_v54 = vpop.f32.mrf.mxu1 }
 0x27b   : > { %1910 = vst [vmem:[#allocation2 + $0x81] sm:$0xff] %v9630_v49  ;;  %v1798_v62 = vadd.f32 %v1797_v48, %v1733_v14  ;;  %v1670_v18 = vpop.f32.mrf.mxu2  ;;  %v1609_v23 = vadd.f32 %v1608_v54, %v9521_v36 }
 0x27c   : > { %v1671_v28 = vadd.f32 %v1670_v18, %v1606_v57  ;;  %v1828_v18 = vld [vmem:[#allocation3 + $0x868] sm:$0xff] }
 0x27d   : > { %v1841_v9 = vadd.f32 %v1825_v15, %v1798_v62 }
 0x27f   : > { %v1860_v10 = vsel %vm9540_vm1, %v1841_v9, %v1798_v62 }
 0x280   : > { %v1735_v5 = vpop.f32.mrf.mxu3  ;;  %v1876_v45 = vmax.f32 %v1860_v10, 0.0  ;;  %v1800_v40 = vpop.f32.mrf.mxu0 }
 0x281   : > { %v1736_v26 = vadd.f32 %v1735_v5, %v1671_v28 }
 0x282   : > { %v9638_v52 = vsel %vm9546_vm2, %v1876_v45, %v1860_v10  ;;  %v1611_v56 = vpop.f32.mrf.mxu1 }
 0x283   : > { %1911 = vst [vmem:[#allocation2 + $0x91] sm:$0xff] %v9638_v52  ;;  %v1801_v39 = vadd.f32 %v1800_v40, %v1736_v26  ;;  %v1673_v58 = vpop.f32.mrf.mxu2  ;;  %v1612_v19 = vadd.f32 %v1611_v56, %v9527_v8  ;;  %v1829_v40 = vld [vmem:[#allocation3 + $0x260] sm:$0xff] }
 0x284   : > { %v1674_v4 = vadd.f32 %v1673_v58, %v1609_v23 }
 0x285   : > { %v1842_v6 = vadd.f32 %v1826_v22, %v1801_v39 }
 0x287   : > { %v1861_v60 = vsel %vm9540_vm1, %v1842_v6, %v1801_v39 }
 0x288   : > { %v1738_v46 = vpop.f32.mrf.mxu3  ;;  %v1877_v16 = vmax.f32 %v1861_v60, 0.0  ;;  %v1803_v21 = vpop.f32.mrf.mxu0 }
 0x289   : > { %v1739_v0 = vadd.f32 %v1738_v46, %v1674_v4 }
 0x28a   : > { %v9646_v36 = vsel %vm9546_vm2, %v1877_v16, %v1861_v60  ;;  %v1614_v43 = vpop.f32.mrf.mxu1 }
 0x28b   : > { %1912 = vst [vmem:[#allocation2 + $0x99] sm:$0xff] %v9646_v36  ;;  %v1804_v41 = vadd.f32 %v1803_v21, %v1739_v0  ;;  %v1676_v25 = vpop.f32.mrf.mxu2  ;;  %v1615_v8 = vadd.f32 %v1614_v43, %v9530_v51 }
 0x28c   : > { %v1677_v37 = vadd.f32 %v1676_v25, %v1612_v19 }
 0x28d   : > { %v1843_v53 = vadd.f32 %v1827_v30, %v1804_v41 }
 0x28f   : > { %v1862_v3 = vsel %vm9540_vm1, %v1843_v53, %v1804_v41 }
 0x290   : > { %v1741_v14 = vpop.f32.mrf.mxu3  ;;  %v1878_v48 = vmax.f32 %v1862_v3, 0.0  ;;  %v1806_v62 = vpop.f32.mrf.mxu0 }
 0x291   : > { %v1742_v57 = vadd.f32 %v1741_v14, %v1677_v37 }
 0x292   : > { %v9654_v15 = vsel %vm9546_vm2, %v1878_v48, %v1862_v3  ;;  %v1617_v5 = vpop.f32.mrf.mxu1 }
 0x293   : > { %1913 = vst [vmem:[#allocation2 + $0xa9] sm:$0xff] %v9654_v15  ;;  %v1807_v2 = vadd.f32 %v1806_v62, %v1742_v57  ;;  %v1679_v28 = vpop.f32.mrf.mxu2  ;;  %v1618_v51 = vadd.f32 %v1617_v5, %v9535_v24  ;;  %v1830_v24 = vld [vmem:[#allocation3 + $0x8e8] sm:$0xff] }
 0x294   : > { %v1680_v7 = vadd.f32 %v1679_v28, %v1615_v8 }
 0x295   : > { %v1844_v9 = vadd.f32 %v1828_v18, %v1807_v2 }
 0x297   : > { %v1863_v54 = vsel %vm9540_vm1, %v1844_v9, %v1807_v2 }
 0x298   : > { %v1744_v38 = vpop.f32.mrf.mxu3  ;;  %v1879_v26 = vmax.f32 %v1863_v54, 0.0  ;;  %v1809_v23 = vpop.f32.mrf.mxu0 }
 0x299   : > { %v1745_v10 = vadd.f32 %v1744_v38, %v1680_v7 }
 0x29a   : > { %v9662_v45 = vsel %vm9546_vm2, %v1879_v26, %v1863_v54 }
 0x29b   : > { %1914 = vst [vmem:[#allocation2 + $0xb1] sm:$0xff] %v9662_v45  ;;  %v1810_v22 = vadd.f32 %v1809_v23, %v1745_v10  ;;  %v1682_v39 = vpop.f32.mrf.mxu2 }
 0x29c   : > { %v1683_v58 = vadd.f32 %v1682_v39, %v1618_v51 }
 0x29d   : > { %v1845_v13 = vadd.f32 %v1829_v40, %v1810_v22 }
 0x29f   : > { %v1864_v6 = vsel %vm9540_vm1, %v1845_v13, %v1810_v22 }
 0x2a0   : > { %v1747_v4 = vpop.f32.mrf.mxu3  ;;  %v1880_v46 = vmax.f32 %v1864_v6, 0.0  ;;  %v1812_v0 = vpop.f32.mrf.mxu0 }
 0x2a1   : > { %v1748_v56 = vadd.f32 %v1747_v4, %v1683_v58 }
 0x2a2   : > { %v9670_v60 = vsel %vm9546_vm2, %v1880_v46, %v1864_v6 }
 0x2a3   : > { %1915 = vst [vmem:[#allocation2 + $0xc1] sm:$0xff] %v9670_v60  ;;  %v1813_v16 = vadd.f32 %v1812_v0, %v1748_v56 }
 0x2a5   : > { %v1846_v19 = vadd.f32 %v1830_v24, %v1813_v16 }
 0x2a7   : > { %v1865_v21 = vsel %vm9540_vm1, %v1846_v19, %v1813_v16  ;;  %1920 = sbr.rel (%p7759_p10) target bundleno = 1768 (0x6e8), region = 44 }
 0x2a8   : > { %v1881_v30 = vmax.f32 %v1865_v21, 0.0 }
 0x2aa   : > { %v9677_v41 = vsel %vm9546_vm2, %v1881_v30, %v1865_v21 }
 0x2ab   : > { %1916 = vst [vmem:[#allocation2 + $0xc9] sm:$0xff] %v9677_v41 }
 0x2ac   : > { %v1981_v25 = vld [vmem:[%s14210_s2 + $0x1e0] sm:$0xff]  ;;  %v1982_v37 = vld [vmem:[%s14210_s2 + $0x1e8] sm:$0xff]  ;;  %v1983_v53 = vld [vmem:[%s14210_s2 + $0x1f0] sm:$0xff] }
 0x2ad   : > { %1985 = vmatpush.msra.mxu0 %v1981_v25  ;;  %2050 = vmatpush.msra.mxu1 %v1982_v37  ;;  %v1984_v43 = vld [vmem:[%s14210_s2 + $0x1f8] sm:$0xff]  ;;  %v1977_v14 = vld [vmem:[%s14210_s2 + $0x1c0] sm:$0xff]  ;;  %v1978_v3 = vld [vmem:[%s14210_s2 + $0x1c8] sm:$0xff] }
 0x2ae   : > { %2115 = vmatpush.msra.mxu2 %v1983_v53  ;;  %2180 = vmatpush.msra.mxu3 %v1984_v43  ;;  %v1979_v57 = vld [vmem:[%s14210_s2 + $0x1d0] sm:$0xff]  ;;  %v1980_v48 = vld [vmem:[%s14210_s2 + $0x1d8] sm:$0xff]  ;;  %v1973_v8 = vld [vmem:[%s14210_s2 + $0x1a0] sm:$0xff] }
 0x2af   : > { %1986 = vmatpush.msra.mxu0 %v1977_v14  ;;  %2051 = vmatpush.msra.mxu1 %v1978_v3  ;;  %v1974_v62 = vld [vmem:[%s14210_s2 + $0x1a8] sm:$0xff]  ;;  %v1975_v18 = vld [vmem:[%s14210_s2 + $0x1b0] sm:$0xff]  ;;  %v1976_v2 = vld [vmem:[%s14210_s2 + $0x1b8] sm:$0xff] }
 0x2b0   : > { %2116 = vmatpush.msra.mxu2 %v1979_v57  ;;  %2181 = vmatpush.msra.mxu3 %v1980_v48  ;;  %v1969_v28 = vld [vmem:[%s14210_s2 + $0x180] sm:$0xff]  ;;  %v1970_v7 = vld [vmem:[%s14210_s2 + $0x188] sm:$0xff]  ;;  %v1971_v9 = vld [vmem:[%s14210_s2 + $0x190] sm:$0xff] }
 0x2b1   : > { %1987 = vmatpush.msra.mxu0 %v1973_v8  ;;  %2052 = vmatpush.msra.mxu1 %v1974_v62  ;;  %v1972_v38 = vld [vmem:[%s14210_s2 + $0x198] sm:$0xff]  ;;  %v1965_v54 = vld [vmem:[%s14210_s2 + $0x160] sm:$0xff]  ;;  %v1966_v5 = vld [vmem:[%s14210_s2 + $0x168] sm:$0xff] }
 0x2b2   : > { %2117 = vmatpush.msra.mxu2 %v1975_v18  ;;  %2182 = vmatpush.msra.mxu3 %v1976_v2  ;;  %v1967_v10 = vld [vmem:[%s14210_s2 + $0x170] sm:$0xff]  ;;  %v1968_v26 = vld [vmem:[%s14210_s2 + $0x178] sm:$0xff]  ;;  %v1961_v51 = vld [vmem:[%s14210_s2 + $0x140] sm:$0xff] }
 0x2b3   : > { %1988 = vmatpush.msra.mxu0 %v1969_v28  ;;  %2053 = vmatpush.msra.mxu1 %v1970_v7  ;;  %v1962_v23 = vld [vmem:[%s14210_s2 + $0x148] sm:$0xff]  ;;  %v1963_v40 = vld [vmem:[%s14210_s2 + $0x150] sm:$0xff]  ;;  %v1964_v22 = vld [vmem:[%s14210_s2 + $0x158] sm:$0xff] }
 0x2b4   : > { %2118 = vmatpush.msra.mxu2 %v1971_v9  ;;  %2183 = vmatpush.msra.mxu3 %v1972_v38  ;;  %v1957_v39 = vld [vmem:[%s14210_s2 + $0x120] sm:$0xff]  ;;  %v1958_v58 = vld [vmem:[%s14210_s2 + $0x128] sm:$0xff]  ;;  %v1959_v13 = vld [vmem:[%s14210_s2 + $0x130] sm:$0xff] }
 0x2b5   : > { %1989 = vmatpush.msra.mxu0 %v1965_v54  ;;  %2054 = vmatpush.msra.mxu1 %v1966_v5  ;;  %v1960_v4 = vld [vmem:[%s14210_s2 + $0x138] sm:$0xff]  ;;  %v1953_v6 = vld [vmem:[%s14210_s2 + $0x100] sm:$0xff]  ;;  %v1954_v56 = vld [vmem:[%s14210_s2 + $0x108] sm:$0xff] }
 0x2b6   : > { %2119 = vmatpush.msra.mxu2 %v1967_v10  ;;  %2184 = vmatpush.msra.mxu3 %v1968_v26  ;;  %v1955_v46 = vld [vmem:[%s14210_s2 + $0x110] sm:$0xff]  ;;  %v1956_v0 = vld [vmem:[%s14210_s2 + $0x118] sm:$0xff]  ;;  %v1949_v24 = vld [vmem:[%s14210_s2 + $0xe0] sm:$0xff] }
 0x2b7   : > { %1990 = vmatpush.msra.mxu0 %v1961_v51  ;;  %2055 = vmatpush.msra.mxu1 %v1962_v23  ;;  %v1950_v16 = vld [vmem:[%s14210_s2 + $0xe8] sm:$0xff]  ;;  %v1951_v19 = vld [vmem:[%s14210_s2 + $0xf0] sm:$0xff]  ;;  %v1952_v21 = vld [vmem:[%s14210_s2 + $0xf8] sm:$0xff] }
 0x2b8   : > { %2120 = vmatpush.msra.mxu2 %v1963_v40  ;;  %2185 = vmatpush.msra.mxu3 %v1964_v22  ;;  %v1945_v30 = vld [vmem:[%s14210_s2 + $0xc0] sm:$0xff]  ;;  %v1946_v25 = vld [vmem:[%s14210_s2 + $0xc8] sm:$0xff]  ;;  %v1947_v37 = vld [vmem:[%s14210_s2 + $0xd0] sm:$0xff] }
 0x2b9   : > { %1991 = vmatpush.msra.mxu0 %v1957_v39  ;;  %2056 = vmatpush.msra.mxu1 %v1958_v58  ;;  %v1948_v53 = vld [vmem:[%s14210_s2 + $0xd8] sm:$0xff]  ;;  %v1941_v43 = vld [vmem:[%s14210_s2 + $0xa0] sm:$0xff]  ;;  %v1942_v14 = vld [vmem:[%s14210_s2 + $0xa8] sm:$0xff] }
 0x2ba   : > { %2121 = vmatpush.msra.mxu2 %v1959_v13  ;;  %2186 = vmatpush.msra.mxu3 %v1960_v4  ;;  %v1943_v3 = vld [vmem:[%s14210_s2 + $0xb0] sm:$0xff]  ;;  %v1944_v57 = vld [vmem:[%s14210_s2 + $0xb8] sm:$0xff]  ;;  %v1937_v48 = vld [vmem:[%s14210_s2 + $0x80] sm:$0xff] }
 0x2bb   : > { %1992 = vmatpush.msra.mxu0 %v1953_v6  ;;  %2057 = vmatpush.msra.mxu1 %v1954_v56  ;;  %v1938_v8 = vld [vmem:[%s14210_s2 + $0x88] sm:$0xff]  ;;  %v1939_v62 = vld [vmem:[%s14210_s2 + $0x90] sm:$0xff]  ;;  %v1940_v18 = vld [vmem:[%s14210_s2 + $0x98] sm:$0xff] }
 0x2bc   : > { %2122 = vmatpush.msra.mxu2 %v1955_v46  ;;  %2187 = vmatpush.msra.mxu3 %v1956_v0  ;;  %v1933_v2 = vld [vmem:[%s14210_s2 + $0x60] sm:$0xff]  ;;  %v1934_v28 = vld [vmem:[%s14210_s2 + $0x68] sm:$0xff]  ;;  %v1935_v7 = vld [vmem:[%s14210_s2 + $0x70] sm:$0xff] }
 0x2bd   : > { %1993 = vmatpush.msra.mxu0 %v1949_v24  ;;  %2058 = vmatpush.msra.mxu1 %v1950_v16  ;;  %v1936_v9 = vld [vmem:[%s14210_s2 + $0x78] sm:$0xff]  ;;  %v1929_v38 = vld [vmem:[%s14210_s2 + $0x40] sm:$0xff]  ;;  %v1930_v54 = vld [vmem:[%s14210_s2 + $0x48] sm:$0xff] }
 0x2be   : > { %2123 = vmatpush.msra.mxu2 %v1951_v19  ;;  %2188 = vmatpush.msra.mxu3 %v1952_v21  ;;  %v1931_v5 = vld [vmem:[%s14210_s2 + $0x50] sm:$0xff]  ;;  %v1932_v10 = vld [vmem:[%s14210_s2 + $0x58] sm:$0xff]  ;;  %v1925_v26 = vld [vmem:[%s14210_s2 + $0x20] sm:$0xff] }
 0x2bf   : > { %1994 = vmatpush.msra.mxu0 %v1945_v30  ;;  %2059 = vmatpush.msra.mxu1 %v1946_v25  ;;  %v1926_v51 = vld [vmem:[%s14210_s2 + $0x28] sm:$0xff]  ;;  %v1927_v23 = vld [vmem:[%s14210_s2 + $0x30] sm:$0xff]  ;;  %v1928_v40 = vld [vmem:[%s14210_s2 + $0x38] sm:$0xff] }
 0x2c0   : > { %2124 = vmatpush.msra.mxu2 %v1947_v37  ;;  %2189 = vmatpush.msra.mxu3 %v1948_v53  ;;  %v1921_v22 = vld [vmem:[%s14210_s2] sm:$0xff]  ;;  %v1922_v39 = vld [vmem:[%s14210_s2 + $0x8] sm:$0xff]  ;;  %v1923_v58 = vld [vmem:[%s14210_s2 + $0x10] sm:$0xff] }
 0x2c1   : > { %1995 = vmatpush.msra.mxu0 %v1941_v43  ;;  %2060 = vmatpush.msra.mxu1 %v1942_v14  ;;  %v1924_v13 = vld [vmem:[%s14210_s2 + $0x18] sm:$0xff]  ;;  %v2497_v4 = vld [vmem:[%s14211_s3 + $0x5e0] sm:$0xff]  ;;  %v2371_v63 = vld [vmem:[%s14211_s3 + $0x1f0] sm:$0xff] }
 0x2c2   : > { %2125 = vmatpush.msra.mxu2 %v1943_v3  ;;  %2190 = vmatpush.msra.mxu3 %v1944_v57  ;;  %v2561_v6 = vld [vmem:[%s14211_s3 + $0x7e0] sm:$0xff]  ;;  %v2435_v47 = vld [vmem:[%s14211_s3 + $0x3f0] sm:$0xff] }
 0x2c3   : > { %1996 = vmatpush.msra.mxu0 %v1937_v48  ;;  %2061 = vmatpush.msra.mxu1 %v1938_v8  ;;  %v2369_v56 = vld [vmem:[%s14211_s3 + $0x1e0] sm:$0xff] }
 0x2c4   : > { %2126 = vmatpush.msra.mxu2 %v1939_v62  ;;  %2191 = vmatpush.msra.mxu3 %v1940_v18  ;;  %v2433_v46 = vld [vmem:[%s14211_s3 + $0x3e0] sm:$0xff] }
 0x2c5   : > { %1997 = vmatpush.msra.mxu0 %v1933_v2  ;;  %2062 = vmatpush.msra.mxu1 %v1934_v28  ;;  %v2493_v0 = vld [vmem:[%s14211_s3 + $0x5c0] sm:$0xff] }
 0x2c6   : > { %2127 = vmatpush.msra.mxu2 %v1935_v7  ;;  %2192 = vmatpush.msra.mxu3 %v1936_v9  ;;  %v2557_v24 = vld [vmem:[%s14211_s3 + $0x7c0] sm:$0xff] }
 0x2c7   : > { %1998 = vmatpush.msra.mxu0 %v1929_v38  ;;  %2063 = vmatpush.msra.mxu1 %v1930_v54  ;;  %v2365_v16 = vld [vmem:[%s14211_s3 + $0x1c0] sm:$0xff] }
 0x2c8   : > { %2128 = vmatpush.msra.mxu2 %v1931_v5  ;;  %2193 = vmatpush.msra.mxu3 %v1932_v10  ;;  %v2429_v19 = vld [vmem:[%s14211_s3 + $0x3c0] sm:$0xff] }
 0x2c9   : > { %1999 = vmatpush.msra.mxu0 %v1925_v26  ;;  %2064 = vmatpush.msra.mxu1 %v1926_v51  ;;  %v2553_v21 = vld [vmem:[%s14211_s3 + $0x7a0] sm:$0xff] }
 0x2ca   : > { %2129 = vmatpush.msra.mxu2 %v1927_v23  ;;  %2194 = vmatpush.msra.mxu3 %v1928_v40  ;;  %v2361_v30 = vld [vmem:[%s14211_s3 + $0x1a0] sm:$0xff] }
 0x2cb   : > { %2000 = vmatpush.msra.mxu0 %v1921_v22  ;;  %2065 = vmatpush.msra.mxu1 %v1922_v39  ;;  %v2425_v25 = vld [vmem:[%s14211_s3 + $0x3a0] sm:$0xff] }
 0x2cc   : > { %2130 = vmatpush.msra.mxu2 %v1923_v58  ;;  %2195 = vmatpush.msra.mxu3 %v1924_v13  ;;  %v2485_v37 = vld [vmem:[%s14211_s3 + $0x580] sm:$0xff] }
 0x2cd   : > { %2001 = vmatmul.f32.vlgmr.msra.gmra.mxu0 %v9554_v61  ;;  %2066 = vmatmul.f32.vlgmr.msra.gmra.mxu1 %v9554_v61  ;;  %v2549_v53 = vld [vmem:[%s14211_s3 + $0x780] sm:$0xff] }
 0x2ce   : > { %2131 = vmatmul.f32.vlgmr.msra.gmra.mxu2 %v9554_v61  ;;  %2196 = vmatmul.f32.vlgmr.msra.gmra.mxu3 %v9554_v61  ;;  %v2489_v61 = vld [vmem:[%s14211_s3 + $0x5a0] sm:$0xff] }
 0x2cf   : > { %2695 = vmatpush.msrb.mxu2 %v2497_v4  ;;  %2760 = vmatpush.msrb.mxu3 %v2561_v6  ;;  %v2357_v43 = vld [vmem:[%s14211_s3 + $0x180] sm:$0xff] }
 0x2d0   : > { %2565 = vmatpush.msrb.mxu0 %v2369_v56  ;;  %2630 = vmatpush.msrb.mxu1 %v2433_v46  ;;  %v2421_v14 = vld [vmem:[%s14211_s3 + $0x380] sm:$0xff] }
 0x2d1   : > { %2696 = vmatpush.msrb.mxu2 %v2493_v0  ;;  %2761 = vmatpush.msrb.mxu3 %v2557_v24  ;;  %v2481_v3 = vld [vmem:[%s14211_s3 + $0x560] sm:$0xff] }
 0x2d2   : > { %2566 = vmatpush.msrb.mxu0 %v2365_v16  ;;  %2631 = vmatpush.msrb.mxu1 %v2429_v19  ;;  %v2545_v57 = vld [vmem:[%s14211_s3 + $0x760] sm:$0xff] }
 0x2d3   : > { %2697 = vmatpush.msrb.mxu2 %v2489_v61  ;;  %2762 = vmatpush.msrb.mxu3 %v2553_v21  ;;  %v2353_v48 = vld [vmem:[%s14211_s3 + $0x160] sm:$0xff] }
 0x2d4   : > { %2567 = vmatpush.msrb.mxu0 %v2361_v30  ;;  %2632 = vmatpush.msrb.mxu1 %v2425_v25  ;;  %v2417_v8 = vld [vmem:[%s14211_s3 + $0x360] sm:$0xff] }
 0x2d5   : > { %2004 = vmatmul.f32.gmra.mxu0 %v9563_v17  ;;  %2069 = vmatmul.f32.gmra.mxu1 %v9563_v17  ;;  %v2541_v62 = vld [vmem:[%s14211_s3 + $0x740] sm:$0xff] }
 0x2d6   : > { %2134 = vmatmul.f32.gmra.mxu2 %v9563_v17  ;;  %2199 = vmatmul.f32.gmra.mxu3 %v9563_v17  ;;  %v2477_v17 = vld [vmem:[%s14211_s3 + $0x540] sm:$0xff] }
 0x2d7   : > { %2698 = vmatpush.msrb.mxu2 %v2485_v37  ;;  %2763 = vmatpush.msrb.mxu3 %v2549_v53  ;;  %v2349_v18 = vld [vmem:[%s14211_s3 + $0x140] sm:$0xff] }
 0x2d8   : > { %2568 = vmatpush.msrb.mxu0 %v2357_v43  ;;  %2633 = vmatpush.msrb.mxu1 %v2421_v14  ;;  %v2413_v2 = vld [vmem:[%s14211_s3 + $0x340] sm:$0xff]  ;;  %v2498_v14 = vld [vmem:[%s14211_s3 + $0x5e8] sm:$0xff] }
 0x2d9   : > { %2699 = vmatpush.msrb.mxu2 %v2481_v3  ;;  %2764 = vmatpush.msrb.mxu3 %v2545_v57  ;;  %v2473_v28 = vld [vmem:[%s14211_s3 + $0x520] sm:$0xff]  ;;  %v2562_v3 = vld [vmem:[%s14211_s3 + $0x7e8] sm:$0xff] }
 0x2da   : > { %2569 = vmatpush.msrb.mxu0 %v2353_v48  ;;  %2634 = vmatpush.msrb.mxu1 %v2417_v8  ;;  %v2345_v7 = vld [vmem:[%s14211_s3 + $0x120] sm:$0xff]  ;;  %v2370_v57 = vld [vmem:[%s14211_s3 + $0x1e8] sm:$0xff] }
 0x2db   : > { %2700 = vmatpush.msrb.mxu2 %v2477_v17  ;;  %2765 = vmatpush.msrb.mxu3 %v2541_v62  ;;  %v2409_v9 = vld [vmem:[%s14211_s3 + $0x320] sm:$0xff]  ;;  %v2494_v48 = vld [vmem:[%s14211_s3 + $0x5c8] sm:$0xff] }
 0x2dc   : > { %2570 = vmatpush.msrb.mxu0 %v2349_v18  ;;  %2635 = vmatpush.msrb.mxu1 %v2413_v2  ;;  %v2469_v38 = vld [vmem:[%s14211_s3 + $0x500] sm:$0xff]  ;;  %v2558_v8 = vld [vmem:[%s14211_s3 + $0x7c8] sm:$0xff] }
 0x2dd   : > { %2007 = vmatmul.f32.gmra.mxu0 %v9572_v59  ;;  %2072 = vmatmul.f32.gmra.mxu1 %v9572_v59  ;;  %v2341_v54 = vld [vmem:[%s14211_s3 + $0x100] sm:$0xff]  ;;  %v2430_v17 = vld [vmem:[%s14211_s3 + $0x3c8] sm:$0xff] }
 0x2de   : > { %2137 = vmatmul.f32.gmra.mxu2 %v9572_v59  ;;  %2202 = vmatmul.f32.gmra.mxu3 %v9572_v59  ;;  %v2537_v59 = vld [vmem:[%s14211_s3 + $0x720] sm:$0xff]  ;;  %v2490_v62 = vld [vmem:[%s14211_s3 + $0x5a8] sm:$0xff] }
 0x2df   : > { %2701 = vmatpush.msrb.mxu2 %v2473_v28  ;;  %2766 = vmatpush.msrb.mxu3 %v2537_v59  ;;  %v2405_v5 = vld [vmem:[%s14211_s3 + $0x300] sm:$0xff]  ;;  %v2554_v18 = vld [vmem:[%s14211_s3 + $0x7a8] sm:$0xff] }
 0x2e0   : > { %2571 = vmatpush.msrb.mxu0 %v2345_v7  ;;  %2636 = vmatpush.msrb.mxu1 %v2409_v9  ;;  %v2465_v10 = vld [vmem:[%s14211_s3 + $0x4e0] sm:$0xff]  ;;  %v2426_v2 = vld [vmem:[%s14211_s3 + $0x3a8] sm:$0xff] }
 0x2e1   : > { %2702 = vmatpush.msrb.mxu2 %v2469_v38  ;;  %v2337_v26 = vld [vmem:[%s14211_s3 + $0xe0] sm:$0xff]  ;;  %v2486_v38 = vld [vmem:[%s14211_s3 + $0x588] sm:$0xff] }
 0x2e2   : > { %2572 = vmatpush.msrb.mxu0 %v2341_v54  ;;  %2637 = vmatpush.msrb.mxu1 %v2405_v5  ;;  %v2401_v51 = vld [vmem:[%s14211_s3 + $0x2e0] sm:$0xff]  ;;  %v2422_v54 = vld [vmem:[%s14211_s3 + $0x388] sm:$0xff] }
 0x2e3   : > { %2703 = vmatpush.msrb.mxu2 %v2465_v10  ;;  %v2461_v23 = vld [vmem:[%s14211_s3 + $0x4c0] sm:$0xff] }
 0x2e4   : > { %2573 = vmatpush.msrb.mxu0 %v2337_v26  ;;  %2638 = vmatpush.msrb.mxu1 %v2401_v51  ;;  %v2333_v40 = vld [vmem:[%s14211_s3 + $0xc0] sm:$0xff] }
 0x2e5   : > { %2010 = vmatmul.f32.gmra.mxu0 %v9581_v32  ;;  %2075 = vmatmul.f32.gmra.mxu1 %v9581_v32  ;;  %v2397_v22 = vld [vmem:[%s14211_s3 + $0x2c0] sm:$0xff] }
 0x2e6   : > { %2140 = vmatmul.f32.gmra.mxu2 %v9581_v32  ;;  %2205 = vmatmul.f32.gmra.mxu3 %v9581_v32  ;;  %v2533_v32 = vld [vmem:[%s14211_s3 + $0x700] sm:$0xff] }
 0x2e7   : > { %2767 = vmatpush.msrb.mxu3 %v2533_v32  ;;  %2704 = vmatpush.msrb.mxu2 %v2461_v23  ;;  %v2457_v39 = vld [vmem:[%s14211_s3 + $0x4a0] sm:$0xff]  ;;  %v2358_v32 = vld [vmem:[%s14211_s3 + $0x188] sm:$0xff] }
 0x2e8   : > { %2574 = vmatpush.msrb.mxu0 %v2333_v40  ;;  %2639 = vmatpush.msrb.mxu1 %v2397_v22  ;;  %v2329_v58 = vld [vmem:[%s14211_s3 + $0xa0] sm:$0xff]  ;;  %v2482_v22 = vld [vmem:[%s14211_s3 + $0x568] sm:$0xff] }
 0x2e9   : > { %2705 = vmatpush.msrb.mxu2 %v2457_v39  ;;  %v2393_v13 = vld [vmem:[%s14211_s3 + $0x2a0] sm:$0xff]  ;;  %v2546_v39 = vld [vmem:[%s14211_s3 + $0x768] sm:$0xff] }
 0x2ea   : > { %2575 = vmatpush.msrb.mxu0 %v2329_v58  ;;  %v2453_v4 = vld [vmem:[%s14211_s3 + $0x480] sm:$0xff]  ;;  %2640 = vmatpush.msrb.mxu1 %v2393_v13  ;;  %v2418_v58 = vld [vmem:[%s14211_s3 + $0x368] sm:$0xff] }
 0x2eb   : > { %2706 = vmatpush.msrb.mxu2 %v2453_v4  ;;  %v2325_v6 = vld [vmem:[%s14211_s3 + $0x80] sm:$0xff] }
 0x2ec   : > { %v2389_v56 = vld [vmem:[%s14211_s3 + $0x280] sm:$0xff]  ;;  %2576 = vmatpush.msrb.mxu0 %v2325_v6 }
 0x2ed   : > { %2013 = vmatmul.f32.gmra.mxu0 %v9590_v29  ;;  %2078 = vmatmul.f32.gmra.mxu1 %v9590_v29  ;;  %v2449_v46 = vld [vmem:[%s14211_s3 + $0x460] sm:$0xff] }
 0x2ee   : > { %2143 = vmatmul.f32.gmra.mxu2 %v9590_v29  ;;  %2208 = vmatmul.f32.gmra.mxu3 %v9590_v29  ;;  %v2529_v29 = vld [vmem:[%s14211_s3 + $0x6e0] sm:$0xff] }
 0x2ef   : > { %2768 = vmatpush.msrb.mxu3 %v2529_v29  ;;  %2641 = vmatpush.msrb.mxu1 %v2389_v56  ;;  %v2321_v0 = vld [vmem:[%s14211_s3 + $0x60] sm:$0xff] }
 0x2f0   : > { %2707 = vmatpush.msrb.mxu2 %v2449_v46  ;;  %v2385_v24 = vld [vmem:[%s14211_s3 + $0x260] sm:$0xff]  ;;  %2577 = vmatpush.msrb.mxu0 %v2321_v0 }
 0x2f1   : > { %v2445_v16 = vld [vmem:[%s14211_s3 + $0x440] sm:$0xff]  ;;  %2642 = vmatpush.msrb.mxu1 %v2385_v24  ;;  %v2478_v24 = vld [vmem:[%s14211_s3 + $0x548] sm:$0xff] }
 0x2f2   : > { %2708 = vmatpush.msrb.mxu2 %v2445_v16  ;;  %v2317_v19 = vld [vmem:[%s14211_s3 + $0x40] sm:$0xff]  ;;  %v2542_v16 = vld [vmem:[%s14211_s3 + $0x748] sm:$0xff] }
 0x2f3   : > { %v2381_v61 = vld [vmem:[%s14211_s3 + $0x240] sm:$0xff]  ;;  %2578 = vmatpush.msrb.mxu0 %v2317_v19  ;;  %v2414_v19 = vld [vmem:[%s14211_s3 + $0x348] sm:$0xff] }
 0x2f4   : > { %v2441_v21 = vld [vmem:[%s14211_s3 + $0x420] sm:$0xff]  ;;  %2643 = vmatpush.msrb.mxu1 %v2381_v61 }
 0x2f5   : > { %2016 = vmatmul.f32.gmra.mxu0 %v9599_v20  ;;  %2081 = vmatmul.f32.gmra.mxu1 %v9599_v20  ;;  %v2313_v30 = vld [vmem:[%s14211_s3 + $0x20] sm:$0xff] }
 0x2f6   : > { %2146 = vmatmul.f32.gmra.mxu2 %v9599_v20  ;;  %2211 = vmatmul.f32.gmra.mxu3 %v9599_v20  ;;  %v2525_v20 = vld [vmem:[%s14211_s3 + $0x6c0] sm:$0xff] }
 0x2f7   : > { %2769 = vmatpush.msrb.mxu3 %v2525_v20  ;;  %2709 = vmatpush.msrb.mxu2 %v2441_v21  ;;  %v2377_v25 = vld [vmem:[%s14211_s3 + $0x220] sm:$0xff] }
 0x2f8   : > { %2579 = vmatpush.msrb.mxu0 %v2313_v30  ;;  %2644 = vmatpush.msrb.mxu1 %v2377_v25  ;;  %v2437_v37 = vld [vmem:[%s14211_s3 + $0x400] sm:$0xff] }
 0x2f9   : > { %2710 = vmatpush.msrb.mxu2 %v2437_v37  ;;  %v2373_v53 = vld [vmem:[%s14211_s3 + $0x200] sm:$0xff] }
 0x2fa   : > { %v2501_v43 = vld [vmem:[%s14211_s3 + $0x600] sm:$0xff]  ;;  %2645 = vmatpush.msrb.mxu1 %v2373_v53 }
 0x2fb   : > { %2955 = vmatpush.msra.mxu2 %v2498_v14  ;;  %v2538_v14 = vld [vmem:[%s14211_s3 + $0x728] sm:$0xff] }
 0x2fd   : > { %2019 = vmatmul.f32.gmra.mxu0 %v9606_v12  ;;  %2084 = vmatmul.f32.gmra.mxu1 %v9606_v12 }
 0x2fe   : > { %2149 = vmatmul.f32.gmra.mxu2 %v9606_v12  ;;  %2214 = vmatmul.f32.gmra.mxu3 %v9606_v12  ;;  %v2521_v12 = vld [vmem:[%s14211_s3 + $0x6a0] sm:$0xff] }
 0x2ff   : > { %2770 = vmatpush.msrb.mxu3 %v2521_v12  ;;  %2956 = vmatpush.msra.mxu2 %v2494_v48  ;;  %v2354_v12 = vld [vmem:[%s14211_s3 + $0x168] sm:$0xff] }
 0x301   : > { %2957 = vmatpush.msra.mxu2 %v2490_v62 }
 0x303   : > { %2958 = vmatpush.msra.mxu2 %v2486_v38  ;;  %v2406_v38 = vld [vmem:[%s14211_s3 + $0x308] sm:$0xff] }
 0x305   : > { %2022 = vmatmul.f32.gmra.mxu0 %v9614_v44  ;;  %2087 = vmatmul.f32.gmra.mxu1 %v9614_v44 }
 0x306   : > { %2152 = vmatmul.f32.gmra.mxu2 %v9614_v44  ;;  %2217 = vmatmul.f32.gmra.mxu3 %v9614_v44  ;;  %v2517_v44 = vld [vmem:[%s14211_s3 + $0x680] sm:$0xff] }
 0x307   : > { %2771 = vmatpush.msrb.mxu3 %v2517_v44  ;;  %2959 = vmatpush.msra.mxu2 %v2482_v22 }
 0x309   : > { %2960 = vmatpush.msra.mxu2 %v2478_v24 }
 0x30d   : > { %2025 = vmatmul.f32.gmra.mxu0 %v9622_v42  ;;  %2090 = vmatmul.f32.gmra.mxu1 %v9622_v42 }
 0x30e   : > { %2155 = vmatmul.f32.gmra.mxu2 %v9622_v42  ;;  %2220 = vmatmul.f32.gmra.mxu3 %v9622_v42  ;;  %v2513_v42 = vld [vmem:[%s14211_s3 + $0x660] sm:$0xff] }
 0x30f   : > { %2772 = vmatpush.msrb.mxu3 %v2513_v42 }
 0x315   : > { %2028 = vmatmul.f32.gmra.mxu0 %v9630_v49  ;;  %2093 = vmatmul.f32.gmra.mxu1 %v9630_v49 }
 0x316   : > { %2158 = vmatmul.f32.gmra.mxu2 %v9630_v49  ;;  %2223 = vmatmul.f32.gmra.mxu3 %v9630_v49  ;;  %v2509_v49 = vld [vmem:[%s14211_s3 + $0x640] sm:$0xff] }
 0x317   : > { %2773 = vmatpush.msrb.mxu3 %v2509_v49  ;;  %v2350_v49 = vld [vmem:[%s14211_s3 + $0x148] sm:$0xff] }
 0x31d   : > { %2031 = vmatmul.f32.gmra.mxu0 %v9638_v52  ;;  %2096 = vmatmul.f32.gmra.mxu1 %v9638_v52 }
 0x31e   : > { %2161 = vmatmul.f32.gmra.mxu2 %v9638_v52  ;;  %2226 = vmatmul.f32.gmra.mxu3 %v9638_v52  ;;  %v2505_v52 = vld [vmem:[%s14211_s3 + $0x620] sm:$0xff] }
 0x31f   : > { %2774 = vmatpush.msrb.mxu3 %v2505_v52 }
 0x321   : > { %2775 = vmatpush.msrb.mxu3 %v2501_v43  ;;  %v2474_v43 = vld [vmem:[%s14211_s3 + $0x528] sm:$0xff] }
 0x322   : > { %2961 = vmatpush.msra.mxu2 %v2474_v43  ;;  %v2398_v43 = vld [vmem:[%s14211_s3 + $0x2c8] sm:$0xff] }
 0x323   : > { %3020 = vmatpush.msra.mxu3 %v2562_v3  ;;  %v2346_v3 = vld [vmem:[%s14211_s3 + $0x128] sm:$0xff] }
 0x325   : > { %2034 = vmatmul.f32.gmra.mxu0 %v9646_v36  ;;  %2099 = vmatmul.f32.gmra.mxu1 %v9646_v36 }
 0x326   : > { %2164 = vmatmul.f32.gmra.mxu2 %v9646_v36  ;;  %2229 = vmatmul.f32.gmra.mxu3 %v9646_v36  ;;  %v2309_v36 = vld [vmem:[%s14211_s3] sm:$0xff] }
 0x327   : > { %2580 = vmatpush.msrb.mxu0 %v2309_v36  ;;  %3021 = vmatpush.msra.mxu3 %v2558_v8 }
 0x329   : > { %2825 = vmatpush.msra.mxu0 %v2370_v57  ;;  %3022 = vmatpush.msra.mxu3 %v2554_v18  ;;  %v2410_v57 = vld [vmem:[%s14211_s3 + $0x328] sm:$0xff] }
 0x32d   : > { %2037 = vmatmul.f32.gmra.mxu0 %v9654_v15  ;;  %2102 = vmatmul.f32.gmra.mxu1 %v9654_v15 }
 0x32e   : > { %2167 = vmatmul.f32.gmra.mxu2 %v9654_v15  ;;  %2232 = vmatmul.f32.gmra.mxu3 %v9654_v15  ;;  %v2434_v15 = vld [vmem:[%s14211_s3 + $0x3e8] sm:$0xff] }
 0x32f   : > { %2890 = vmatpush.msra.mxu1 %v2434_v15 }
 0x331   : > { %2891 = vmatpush.msra.mxu1 %v2430_v17 }
 0x333   : > { %2892 = vmatpush.msra.mxu1 %v2426_v2  ;;  %v2470_v2 = vld [vmem:[%s14211_s3 + $0x508] sm:$0xff] }
 0x334   : > { %2962 = vmatpush.msra.mxu2 %v2470_v2 }
 0x335   : > { %2040 = vmatmul.f32.gmra.mxu0 %v9662_v45  ;;  %2105 = vmatmul.f32.gmra.mxu1 %v9662_v45 }
 0x336   : > { %2170 = vmatmul.f32.gmra.mxu2 %v9662_v45  ;;  %2235 = vmatmul.f32.gmra.mxu3 %v9662_v45  ;;  %v2366_v45 = vld [vmem:[%s14211_s3 + $0x1c8] sm:$0xff] }
 0x337   : > { %2826 = vmatpush.msra.mxu0 %v2366_v45  ;;  %2893 = vmatpush.msra.mxu1 %v2422_v54 }
 0x339   : > { %2894 = vmatpush.msra.mxu1 %v2418_v58  ;;  %v2338_v58 = vld [vmem:[%s14211_s3 + $0xe8] sm:$0xff] }
 0x33b   : > { %2895 = vmatpush.msra.mxu1 %v2414_v19 }
 0x33d   : > { %2043 = vmatmul.f32.gmra.mxu0 %v9670_v60  ;;  %2108 = vmatmul.f32.gmra.mxu1 %v9670_v60 }
 0x33e   : > { %2173 = vmatmul.f32.gmra.mxu2 %v9670_v60  ;;  %2238 = vmatmul.f32.gmra.mxu3 %v9670_v60  ;;  %v2362_v60 = vld [vmem:[%s14211_s3 + $0x1a8] sm:$0xff] }
 0x33f   : > { %2827 = vmatpush.msra.mxu0 %v2362_v60  ;;  %2896 = vmatpush.msra.mxu1 %v2410_v57 }
 0x341   : > { %2828 = vmatpush.msra.mxu0 %v2358_v32  ;;  %2897 = vmatpush.msra.mxu1 %v2406_v38  ;;  %v2330_v38 = vld [vmem:[%s14211_s3 + $0xa8] sm:$0xff] }
 0x343   : > { %2829 = vmatpush.msra.mxu0 %v2354_v12  ;;  %v2530_v12 = vld [vmem:[%s14211_s3 + $0x6e8] sm:$0xff] }
 0x345   : > { %2046 = vmatmul.f32.gmra.mxu0 %v9677_v41  ;;  %2111 = vmatmul.f32.gmra.mxu1 %v9677_v41 }
 0x346   : > { %2176 = vmatmul.f32.gmra.mxu2 %v9677_v41  ;;  %2241 = vmatmul.f32.gmra.mxu3 %v9677_v41  ;;  %v2550_v41 = vld [vmem:[%s14211_s3 + $0x788] sm:$0xff] }
 0x347   : > { %3023 = vmatpush.msra.mxu3 %v2550_v41  ;;  %2830 = vmatpush.msra.mxu0 %v2350_v49 }
 0x349   : > { %3024 = vmatpush.msra.mxu3 %v2546_v39  ;;  %2831 = vmatpush.msra.mxu0 %v2346_v3  ;;  %v2466_v39 = vld [vmem:[%s14211_s3 + $0x4e8] sm:$0xff] }
 0x34a   : > { %v2002_v28 = vpop.f32.mrf.mxu0  ;;  %v2067_v59 = vpop.f32.mrf.mxu1  ;;  %2963 = vmatpush.msra.mxu2 %v2466_v39 }
 0x34b   : > { %v10167_v7 = vmax.f32 %v2002_v28, 0.0  ;;  %v10169_v9 = vmax.f32 %v2067_v59, 0.0  ;;  %3025 = vmatpush.msra.mxu3 %v2542_v16  ;;  %v2534_v28 = vld [vmem:[%s14211_s3 + $0x708] sm:$0xff] }
 0x34c   : > { %v2342_v59 = vld [vmem:[%s14211_s3 + $0x108] sm:$0xff] }
 0x34d   : > { %14728 = vst [vmem:[#allocation151_spill] sm:$0xff] %v10167_v7  ;;  %2581 = vmatmul.f32.vlgmr.msrb.gmra.mxu0 %v10167_v7  ;;  %2646 = vmatmul.f32.vlgmr.msrb.gmra.mxu1 %v10169_v9 }
 0x34e   : > { %14729 = vst [vmem:[#allocation152_spill] sm:$0xff] %v10169_v9  ;;  %3026 = vmatpush.msra.mxu3 %v2538_v14  ;;  %2832 = vmatpush.msra.mxu0 %v2342_v59  ;;  %v2522_v59 = vld [vmem:[%s14211_s3 + $0x6a8] sm:$0xff] }
 0x350   : > { %3027 = vmatpush.msra.mxu3 %v2534_v28  ;;  %2833 = vmatpush.msra.mxu0 %v2338_v58  ;;  %v2458_v28 = vld [vmem:[%s14211_s3 + $0x4a8] sm:$0xff] }
 0x351   : > { %v2132_v5 = vpop.f32.mrf.mxu2  ;;  %v2197_v10 = vpop.f32.mrf.mxu3 }
 0x352   : > { %v10185_v29 = vmax.f32 %v2132_v5, 0.0  ;;  %v10187_v26 = vmax.f32 %v2197_v10, 0.0  ;;  %v2005_v51 = vpop.f32.mrf.mxu0  ;;  %v2070_v23 = vpop.f32.mrf.mxu1  ;;  %3028 = vmatpush.msra.mxu3 %v2530_v12 }
 0x353   : > { %v10189_v20 = vmax.f32 %v2005_v51, 0.0  ;;  %v10191_v40 = vmax.f32 %v2070_v23, 0.0 }
 0x354   : > { %14730 = vst [vmem:[#allocation153_spill] sm:$0xff] %v10185_v29  ;;  %2711 = vmatmul.f32.vlgmr.msrb.gmra.mxu2 %v10185_v29  ;;  %2776 = vmatmul.f32.vlgmr.msrb.gmra.mxu3 %v10187_v26 }
 0x355   : > { %14731 = vst [vmem:[#allocation154_spill] sm:$0xff] %v10187_v26  ;;  %2584 = vmatmul.f32.gmra.mxu0 %v10189_v20  ;;  %2649 = vmatmul.f32.gmra.mxu1 %v10191_v40 }
 0x356   : > { %14732 = vst [vmem:[#allocation155_spill] sm:$0xff] %v10189_v20 }
 0x357   : > { %14733 = vst [vmem:[#allocation156_spill] sm:$0xff] %v10191_v40 }
 0x359   : > { %v2135_v13 = vpop.f32.mrf.mxu2  ;;  %v2200_v4 = vpop.f32.mrf.mxu3 }
 0x35a   : > { %v10209_v44 = vmax.f32 %v2135_v13, 0.0  ;;  %v10211_v6 = vmax.f32 %v2200_v4, 0.0  ;;  %v2008_v56 = vpop.f32.mrf.mxu0  ;;  %v2073_v46 = vpop.f32.mrf.mxu1  ;;  %v2402_v13 = vld [vmem:[%s14211_s3 + $0x2e8] sm:$0xff] }
 0x35b   : > { %v10213_v42 = vmax.f32 %v2008_v56, 0.0  ;;  %v10215_v0 = vmax.f32 %v2073_v46, 0.0  ;;  %2898 = vmatpush.msra.mxu1 %v2402_v13 }
 0x35c   : > { %2714 = vmatmul.f32.gmra.mxu2 %v10209_v44  ;;  %2779 = vmatmul.f32.gmra.mxu3 %v10211_v6 }
 0x35d   : > { %2587 = vmatmul.f32.gmra.mxu0 %v10213_v42  ;;  %2652 = vmatmul.f32.gmra.mxu1 %v10215_v0 }
 0x35e   : > { %2899 = vmatpush.msra.mxu1 %v2398_v43 }
 0x361   : > { %v2138_v61 = vpop.f32.mrf.mxu2  ;;  %v2203_v21 = vpop.f32.mrf.mxu3 }
 0x362   : > { %v10233_v52 = vmax.f32 %v2138_v61, 0.0  ;;  %v10235_v30 = vmax.f32 %v2203_v21, 0.0  ;;  %v2011_v25 = vpop.f32.mrf.mxu0  ;;  %v2076_v37 = vpop.f32.mrf.mxu1  ;;  %v2462_v21 = vld [vmem:[%s14211_s3 + $0x4c8] sm:$0xff] }
 0x363   : > { %v10237_v36 = vmax.f32 %v2011_v25, 0.0  ;;  %v10239_v53 = vmax.f32 %v2076_v37, 0.0  ;;  %v2526_v25 = vld [vmem:[%s14211_s3 + $0x6c8] sm:$0xff]  ;;  %2964 = vmatpush.msra.mxu2 %v2462_v21 }
 0x364   : > { %2717 = vmatmul.f32.gmra.mxu2 %v10233_v52  ;;  %2782 = vmatmul.f32.gmra.mxu3 %v10235_v30  ;;  %v2334_v37 = vld [vmem:[%s14211_s3 + $0xc8] sm:$0xff] }
 0x365   : > { %2590 = vmatmul.f32.gmra.mxu0 %v10237_v36  ;;  %2655 = vmatmul.f32.gmra.mxu1 %v10239_v53  ;;  %v2390_v21 = vld [vmem:[%s14211_s3 + $0x288] sm:$0xff] }
 0x366   : > { %3029 = vmatpush.msra.mxu3 %v2526_v25  ;;  %2834 = vmatpush.msra.mxu0 %v2334_v37 }
 0x367   : > { %2965 = vmatpush.msra.mxu2 %v2458_v28 }
 0x368   : > { %3030 = vmatpush.msra.mxu3 %v2522_v59  ;;  %2835 = vmatpush.msra.mxu0 %v2330_v38  ;;  %v2450_v59 = vld [vmem:[%s14211_s3 + $0x468] sm:$0xff] }
 0x369   : > { %v2141_v15 = vpop.f32.mrf.mxu2  ;;  %v2206_v48 = vpop.f32.mrf.mxu3  ;;  %v2514_v38 = vld [vmem:[%s14211_s3 + $0x668] sm:$0xff] }
 0x36a   : > { %v10257_v8 = vmax.f32 %v2141_v15, 0.0  ;;  %v10259_v45 = vmax.f32 %v2206_v48, 0.0  ;;  %v2014_v17 = vpop.f32.mrf.mxu0  ;;  %v2079_v62 = vpop.f32.mrf.mxu1 }
 0x36b   : > { %v10261_v18 = vmax.f32 %v2014_v17, 0.0  ;;  %v10263_v60 = vmax.f32 %v2079_v62, 0.0 }
 0x36c   : > { %2720 = vmatmul.f32.gmra.mxu2 %v10257_v8  ;;  %2785 = vmatmul.f32.gmra.mxu3 %v10259_v45 }
 0x36d   : > { %2593 = vmatmul.f32.gmra.mxu0 %v10261_v18  ;;  %2658 = vmatmul.f32.gmra.mxu1 %v10263_v60 }
 0x371   : > { %v2144_v41 = vpop.f32.mrf.mxu2  ;;  %v2209_v32 = vpop.f32.mrf.mxu3 }
 0x372   : > { %v10281_v54 = vmax.f32 %v2144_v41, 0.0  ;;  %v10283_v5 = vmax.f32 %v2209_v32, 0.0  ;;  %v2017_v10 = vpop.f32.mrf.mxu0  ;;  %v2082_v51 = vpop.f32.mrf.mxu1  ;;  %v2394_v41 = vld [vmem:[%s14211_s3 + $0x2a8] sm:$0xff] }
 0x373   : > { %v10285_v23 = vmax.f32 %v2017_v10, 0.0  ;;  %v10287_v22 = vmax.f32 %v2082_v51, 0.0  ;;  %2900 = vmatpush.msra.mxu1 %v2394_v41  ;;  %v2322_v41 = vld [vmem:[%s14211_s3 + $0x68] sm:$0xff] }
 0x374   : > { %2723 = vmatmul.f32.gmra.mxu2 %v10281_v54  ;;  %2788 = vmatmul.f32.gmra.mxu3 %v10283_v5 }
 0x375   : > { %2596 = vmatmul.f32.gmra.mxu0 %v10285_v23  ;;  %2661 = vmatmul.f32.gmra.mxu1 %v10287_v22 }
 0x376   : > { %2901 = vmatpush.msra.mxu1 %v2390_v21 }
 0x379   : > { %v2147_v4 = vpop.f32.mrf.mxu2  ;;  %v2212_v56 = vpop.f32.mrf.mxu3 }
 0x37a   : > { %v10305_v46 = vmax.f32 %v2147_v4, 0.0  ;;  %v10307_v24 = vmax.f32 %v2212_v56, 0.0  ;;  %v2020_v16 = vpop.f32.mrf.mxu0  ;;  %v2085_v49 = vpop.f32.mrf.mxu1  ;;  %v2454_v56 = vld [vmem:[%s14211_s3 + $0x488] sm:$0xff] }
 0x37b   : > { %v10309_v19 = vmax.f32 %v2020_v16, 0.0  ;;  %v10311_v61 = vmax.f32 %v2085_v49, 0.0  ;;  %v2518_v16 = vld [vmem:[%s14211_s3 + $0x688] sm:$0xff]  ;;  %2966 = vmatpush.msra.mxu2 %v2454_v56 }
 0x37c   : > { %2726 = vmatmul.f32.gmra.mxu2 %v10305_v46  ;;  %2791 = vmatmul.f32.gmra.mxu3 %v10307_v24  ;;  %v2326_v49 = vld [vmem:[%s14211_s3 + $0x88] sm:$0xff] }
 0x37d   : > { %2599 = vmatmul.f32.gmra.mxu0 %v10309_v19  ;;  %2664 = vmatmul.f32.gmra.mxu1 %v10311_v61 }
 0x37e   : > { %3031 = vmatpush.msra.mxu3 %v2518_v16  ;;  %2836 = vmatpush.msra.mxu0 %v2326_v49 }
 0x37f   : > { %2967 = vmatpush.msra.mxu2 %v2450_v59  ;;  %v2382_v59 = vld [vmem:[%s14211_s3 + $0x248] sm:$0xff] }
 0x380   : > { %3032 = vmatpush.msra.mxu3 %v2514_v38  ;;  %2837 = vmatpush.msra.mxu0 %v2322_v41 }
 0x381   : > { %v2150_v14 = vpop.f32.mrf.mxu2  ;;  %v2215_v3 = vpop.f32.mrf.mxu3 }
 0x382   : > { %v10329_v57 = vmax.f32 %v2150_v14, 0.0  ;;  %v10331_v15 = vmax.f32 %v2215_v3, 0.0  ;;  %v2023_v48 = vpop.f32.mrf.mxu0  ;;  %v2088_v17 = vpop.f32.mrf.mxu1 }
 0x383   : > { %v10333_v62 = vmax.f32 %v2023_v48, 0.0  ;;  %v10335_v2 = vmax.f32 %v2088_v17, 0.0 }
 0x384   : > { %2729 = vmatmul.f32.gmra.mxu2 %v10329_v57  ;;  %2794 = vmatmul.f32.gmra.mxu3 %v10331_v15 }
 0x385   : > { %2602 = vmatmul.f32.gmra.mxu0 %v10333_v62  ;;  %2667 = vmatmul.f32.gmra.mxu1 %v10335_v2 }
 0x389   : > { %v2153_v32 = vpop.f32.mrf.mxu2  ;;  %v2218_v10 = vpop.f32.mrf.mxu3 }
 0x38a   : > { %v10353_v51 = vmax.f32 %v2153_v32, 0.0  ;;  %v10355_v39 = vmax.f32 %v2218_v10, 0.0  ;;  %v2026_v12 = vpop.f32.mrf.mxu0  ;;  %v2091_v58 = vpop.f32.mrf.mxu1  ;;  %v2386_v32 = vld [vmem:[%s14211_s3 + $0x268] sm:$0xff] }
 0x38b   : > { %v10357_v13 = vmax.f32 %v2026_v12, 0.0  ;;  %v10359_v4 = vmax.f32 %v2091_v58, 0.0  ;;  %2902 = vmatpush.msra.mxu1 %v2386_v32 }
 0x38c   : > { %2732 = vmatmul.f32.gmra.mxu2 %v10353_v51  ;;  %2797 = vmatmul.f32.gmra.mxu3 %v10355_v39 }
 0x38d   : > { %2605 = vmatmul.f32.gmra.mxu0 %v10357_v13  ;;  %2670 = vmatmul.f32.gmra.mxu1 %v10359_v4 }
 0x38e   : > { %2903 = vmatpush.msra.mxu1 %v2382_v59  ;;  %v2378_v59 = vld [vmem:[%s14211_s3 + $0x228] sm:$0xff] }
 0x390   : > { %2904 = vmatpush.msra.mxu1 %v2378_v59 }
 0x391   : > { %v2156_v25 = vpop.f32.mrf.mxu2  ;;  %v2221_v37 = vpop.f32.mrf.mxu3 }
 0x392   : > { %v10377_v43 = vmax.f32 %v2156_v25, 0.0  ;;  %v10379_v14 = vmax.f32 %v2221_v37, 0.0  ;;  %v2029_v3 = vpop.f32.mrf.mxu0  ;;  %v2094_v48 = vpop.f32.mrf.mxu1  ;;  %v2446_v37 = vld [vmem:[%s14211_s3 + $0x448] sm:$0xff] }
 0x393   : > { %v10381_v17 = vmax.f32 %v2029_v3, 0.0  ;;  %v10383_v28 = vmax.f32 %v2094_v48, 0.0  ;;  %v2510_v3 = vld [vmem:[%s14211_s3 + $0x648] sm:$0xff]  ;;  %2968 = vmatpush.msra.mxu2 %v2446_v37 }
 0x394   : > { %2735 = vmatmul.f32.gmra.mxu2 %v10377_v43  ;;  %2800 = vmatmul.f32.gmra.mxu3 %v10379_v14  ;;  %v2318_v48 = vld [vmem:[%s14211_s3 + $0x48] sm:$0xff] }
 0x395   : > { %2608 = vmatmul.f32.gmra.mxu0 %v10381_v17  ;;  %2673 = vmatmul.f32.gmra.mxu1 %v10383_v28  ;;  %v2442_v37 = vld [vmem:[%s14211_s3 + $0x428] sm:$0xff] }
 0x396   : > { %3033 = vmatpush.msra.mxu3 %v2510_v3  ;;  %2838 = vmatpush.msra.mxu0 %v2318_v48  ;;  %v2506_v3 = vld [vmem:[%s14211_s3 + $0x628] sm:$0xff] }
 0x397   : > { %v2314_v48 = vld [vmem:[%s14211_s3 + $0x28] sm:$0xff]  ;;  %2969 = vmatpush.msra.mxu2 %v2442_v37 }
 0x398   : > { %3034 = vmatpush.msra.mxu3 %v2506_v3  ;;  %2839 = vmatpush.msra.mxu0 %v2314_v48  ;;  %v2438_v37 = vld [vmem:[%s14211_s3 + $0x408] sm:$0xff] }
 0x399   : > { %v2159_v10 = vpop.f32.mrf.mxu2  ;;  %v2224_v12 = vpop.f32.mrf.mxu3  ;;  %v2310_v3 = vld [vmem:[%s14211_s3 + $0x8] sm:$0xff]  ;;  %2970 = vmatpush.msra.mxu2 %v2438_v37  ;;  %v2499_v37 = vld [vmem:[%s14211_s3 + $0x5f0] sm:$0xff] }
 0x39a   : > { %v10401_v58 = vmax.f32 %v2159_v10, 0.0  ;;  %v10403_v56 = vmax.f32 %v2224_v12, 0.0  ;;  %v2032_v16 = vpop.f32.mrf.mxu0  ;;  %v2097_v49 = vpop.f32.mrf.mxu1  ;;  %v2374_v48 = vld [vmem:[%s14211_s3 + $0x208] sm:$0xff]  ;;  %2840 = vmatpush.msra.mxu0 %v2310_v3  ;;  %v2563_v3 = vld [vmem:[%s14211_s3 + $0x7f0] sm:$0xff] }
 0x39b   : > { %v10405_v21 = vmax.f32 %v2032_v16, 0.0  ;;  %v10407_v25 = vmax.f32 %v2097_v49, 0.0  ;;  %2905 = vmatpush.msra.mxu1 %v2374_v48  ;;  %3215 = vmatpush.msrb.mxu2 %v2499_v37 }
 0x39c   : > { %2738 = vmatmul.f32.gmra.mxu2 %v10401_v58  ;;  %2803 = vmatmul.f32.gmra.mxu3 %v10403_v56 }
 0x39d   : > { %2611 = vmatmul.f32.gmra.mxu0 %v10405_v21  ;;  %2676 = vmatmul.f32.gmra.mxu1 %v10407_v25 }
 0x39e   : > { %3085 = vmatpush.msrb.mxu0 %v2371_v63  ;;  %3150 = vmatpush.msrb.mxu1 %v2435_v47 }
 0x3a1   : > { %v2162_v38 = vpop.f32.mrf.mxu2  ;;  %v2227_v41 = vpop.f32.mrf.mxu3 }
 0x3a2   : > { %v10425_v32 = vmax.f32 %v2162_v38, 0.0  ;;  %v10427_v10 = vmax.f32 %v2227_v41, 0.0  ;;  %v2035_v12 = vpop.f32.mrf.mxu0  ;;  %v2100_v16 = vpop.f32.mrf.mxu1 }
 0x3a3   : > { %v10429_v49 = vmax.f32 %v2035_v12, 0.0  ;;  %v10431_v1 = vmax.f32 %v2100_v16, 0.0 }
 0x3a4   : > { %2741 = vmatmul.f32.gmra.mxu2 %v10425_v32  ;;  %2806 = vmatmul.f32.gmra.mxu3 %v10427_v10 }
 0x3a5   : > { %14734 = vst [vmem:[#allocation157_spill] sm:$0xff] %v10431_v1  ;;  %2614 = vmatmul.f32.gmra.mxu0 %v10429_v49  ;;  %2679 = vmatmul.f32.gmra.mxu1 %v10431_v1 }
 0x3a9   : > { %v2165_v38 = vpop.f32.mrf.mxu2  ;;  %v2230_v41 = vpop.f32.mrf.mxu3 }
 0x3aa   : > { %v10449_v12 = vmax.f32 %v2165_v38, 0.0  ;;  %v10451_v16 = vmax.f32 %v2230_v41, 0.0  ;;  %v2038_v50 = vpop.f32.mrf.mxu0  ;;  %v2103_v34 = vpop.f32.mrf.mxu1 }
 0x3ab   : > { %v10453_v35 = vmax.f32 %v2038_v50, 0.0  ;;  %v10455_v55 = vmax.f32 %v2103_v34, 0.0  ;;  %v2502_v34 = vld [vmem:[%s14211_s3 + $0x608] sm:$0xff] }
 0x3ac   : > { %2744 = vmatmul.f32.gmra.mxu2 %v10449_v12  ;;  %2809 = vmatmul.f32.gmra.mxu3 %v10451_v16 }
 0x3ad   : > { %14735 = vst [vmem:[#allocation158_spill] sm:$0xff] %v10453_v35  ;;  %2617 = vmatmul.f32.gmra.mxu0 %v10453_v35  ;;  %2682 = vmatmul.f32.gmra.mxu1 %v10455_v55 }
 0x3ae   : > { %14736 = vst [vmem:[#allocation159_spill] sm:$0xff] %v10455_v55  ;;  %3035 = vmatpush.msra.mxu3 %v2502_v34 }
 0x3b0   : > { %3280 = vmatpush.msrb.mxu3 %v2563_v3  ;;  %v2495_v3 = vld [vmem:[%s14211_s3 + $0x5d0] sm:$0xff] }
 0x3b1   : > { %v2168_v50 = vpop.f32.mrf.mxu2  ;;  %v2233_v59 = vpop.f32.mrf.mxu3  ;;  %3216 = vmatpush.msrb.mxu2 %v2495_v3 }
 0x3b2   : > { %v10473_v38 = vmax.f32 %v2168_v50, 0.0  ;;  %v10475_v41 = vmax.f32 %v2233_v59, 0.0  ;;  %v2041_v11 = vpop.f32.mrf.mxu0  ;;  %v2106_v31 = vpop.f32.mrf.mxu1 }
 0x3b3   : > { %v10477_v33 = vmax.f32 %v2041_v11, 0.0  ;;  %v10479_v27 = vmax.f32 %v2106_v31, 0.0 }
 0x3b4   : > { %14737 = vst [vmem:[#allocation160_spill] sm:$0xff] %v10475_v41  ;;  %2747 = vmatmul.f32.gmra.mxu2 %v10473_v38  ;;  %2812 = vmatmul.f32.gmra.mxu3 %v10475_v41 }
 0x3b5   : > { %14738 = vst [vmem:[#allocation161_spill] sm:$0xff] %v10477_v33  ;;  %2620 = vmatmul.f32.gmra.mxu0 %v10477_v33  ;;  %2685 = vmatmul.f32.gmra.mxu1 %v10479_v27 }
 0x3b6   : > { %14739 = vst [vmem:[#allocation162_spill] sm:$0xff] %v10479_v27 }
 0x3b9   : > { %v2171_v11 = vpop.f32.mrf.mxu2  ;;  %v2236_v31 = vpop.f32.mrf.mxu3 }
 0x3ba   : > { %v10491_v48 = vmax.f32 %v2171_v11, 0.0  ;;  %v10493_v34 = vmax.f32 %v2236_v31, 0.0  ;;  %v2044_v50 = vpop.f32.mrf.mxu0  ;;  %v2109_v59 = vpop.f32.mrf.mxu1  ;;  %v2559_v11 = vld [vmem:[%s14211_s3 + $0x7d0] sm:$0xff] }
 0x3bb   : > { %v10501_v27 = vmax.f32 %v2044_v50, 0.0  ;;  %v10503_v37 = vmax.f32 %v2109_v59, 0.0  ;;  %3281 = vmatpush.msrb.mxu3 %v2559_v11  ;;  %v2491_v11 = vld [vmem:[%s14211_s3 + $0x5b0] sm:$0xff] }
 0x3bc   : > { %14740 = vst [vmem:[#allocation163_spill] sm:$0xff] %v10491_v48  ;;  %2750 = vmatmul.f32.gmra.mxu2 %v10491_v48  ;;  %2815 = vmatmul.f32.gmra.mxu3 %v10493_v34 }
 0x3bd   : > { %14741 = vst [vmem:[#allocation164_spill] sm:$0xff] %v10493_v34  ;;  %2623 = vmatmul.f32.gmra.mxu0 %v10501_v27  ;;  %2688 = vmatmul.f32.gmra.mxu1 %v10503_v37 }
 0x3be   : > { %14742 = vst [vmem:[#allocation165_spill] sm:$0xff] %v10501_v27  ;;  %v2367_v27 = vld [vmem:[%s14211_s3 + $0x1d0] sm:$0xff]  ;;  %3217 = vmatpush.msrb.mxu2 %v2491_v11 }
 0x3bf   : > { %14743 = vst [vmem:[#allocation166_spill] sm:$0xff] %v10503_v37  ;;  %v2431_v37 = vld [vmem:[%s14211_s3 + $0x3d0] sm:$0xff]  ;;  %3086 = vmatpush.msrb.mxu0 %v2367_v27 }
 0x3c0   : > { %3151 = vmatpush.msrb.mxu1 %v2431_v37  ;;  %v2487_v11 = vld [vmem:[%s14211_s3 + $0x590] sm:$0xff] }
 0x3c1   : > { %v2174_v63 = vpop.f32.mrf.mxu2  ;;  %v2239_v47 = vpop.f32.mrf.mxu3  ;;  %3218 = vmatpush.msrb.mxu2 %v2487_v11  ;;  %v2483_v11 = vld [vmem:[%s14211_s3 + $0x570] sm:$0xff] }
 0x3c2   : > { %v10515_v31 = vmax.f32 %v2174_v63, 0.0  ;;  %v10517_v50 = vmax.f32 %v2239_v47, 0.0  ;;  %v2047_v59 = vpop.f32.mrf.mxu0  ;;  %v2112_v34 = vpop.f32.mrf.mxu1  ;;  %v2555_v63 = vld [vmem:[%s14211_s3 + $0x7b0] sm:$0xff] }
 0x3c3   : > { %v10525_v48 = vmax.f32 %v2047_v59, 0.0  ;;  %v10527_v3 = vmax.f32 %v2112_v34, 0.0  ;;  %3282 = vmatpush.msrb.mxu3 %v2555_v63  ;;  %v2551_v63 = vld [vmem:[%s14211_s3 + $0x790] sm:$0xff]  ;;  %3219 = vmatpush.msrb.mxu2 %v2483_v11 }
 0x3c4   : > { %14744 = vst [vmem:[#allocation167_spill] sm:$0xff] %v10515_v31  ;;  %2753 = vmatmul.f32.gmra.mxu2 %v10515_v31  ;;  %2818 = vmatmul.f32.gmra.mxu3 %v10517_v50  ;;  %v2543_v11 = vld [vmem:[%s14211_s3 + $0x750] sm:$0xff] }
 0x3c5   : > { %14745 = vst [vmem:[#allocation168_spill] sm:$0xff] %v10517_v50  ;;  %2626 = vmatmul.f32.gmra.mxu0 %v10525_v48  ;;  %2691 = vmatmul.f32.gmra.mxu1 %v10527_v3 }
 0x3c6   : > { %14746 = vst [vmem:[#allocation169_spill] sm:$0xff] %v10525_v48  ;;  %v2363_v48 = vld [vmem:[%s14211_s3 + $0x1b0] sm:$0xff]  ;;  %3283 = vmatpush.msrb.mxu3 %v2551_v63 }
 0x3c7   : > { %14747 = vst [vmem:[#allocation170_spill] sm:$0xff] %v10527_v3  ;;  %v2427_v3 = vld [vmem:[%s14211_s3 + $0x3b0] sm:$0xff]  ;;  %3087 = vmatpush.msrb.mxu0 %v2363_v48 }
 0x3c8   : > { %3152 = vmatpush.msrb.mxu1 %v2427_v3  ;;  %v2547_v63 = vld [vmem:[%s14211_s3 + $0x770] sm:$0xff] }
 0x3c9   : > { %v2177_v27 = vpop.f32.mrf.mxu2  ;;  %v2242_v34 = vpop.f32.mrf.mxu3  ;;  %3284 = vmatpush.msrb.mxu3 %v2547_v63 }
 0x3ca   : > { %v10539_v37 = vmax.f32 %v2177_v27, 0.0  ;;  %v10541_v47 = vmax.f32 %v2242_v34, 0.0  ;;  %v2582_v59 = vpop.f32.mrf.mxu0  ;;  %v2647_v50 = vpop.f32.mrf.mxu1  ;;  %v2359_v27 = vld [vmem:[%s14211_s3 + $0x190] sm:$0xff] }
 0x3cb   : > { %v2423_v34 = vld [vmem:[%s14211_s3 + $0x390] sm:$0xff]  ;;  %3088 = vmatpush.msrb.mxu0 %v2359_v27  ;;  %3285 = vmatpush.msrb.mxu3 %v2543_v11 }
 0x3cc   : > { %14748 = vst [vmem:[#allocation171_spill] sm:$0xff] %v10539_v37  ;;  %2756 = vmatmul.f32.gmra.mxu2 %v10539_v37  ;;  %2821 = vmatmul.f32.gmra.mxu3 %v10541_v47 }
 0x3cd   : > { %14749 = vst [vmem:[#allocation172_spill] sm:$0xff] %v10541_v47  ;;  %2841 = vmatmul.f32.vlgmr.msra.gmra.mxu0 %v10167_v7  ;;  %2906 = vmatmul.f32.vlgmr.msra.gmra.mxu1 %v10169_v9  ;;  %v2648_v7 = vadd.f32 %v2647_v50, %v2582_v59  ;;  %v2355_v9 = vld [vmem:[%s14211_s3 + $0x170] sm:$0xff] }
 0x3ce   : > { %3153 = vmatpush.msrb.mxu1 %v2423_v34  ;;  %3089 = vmatpush.msrb.mxu0 %v2355_v9 }
 0x3d2   : > { %v2585_v48 = vpop.f32.mrf.mxu0  ;;  %v2650_v3 = vpop.f32.mrf.mxu1 }
 0x3d4   : > { %2971 = vmatmul.f32.vlgmr.msra.gmra.mxu2 %v10185_v29  ;;  %3036 = vmatmul.f32.vlgmr.msra.gmra.mxu3 %v10187_v26 }
 0x3d5   : > { %2844 = vmatmul.f32.gmra.mxu0 %v10189_v20  ;;  %2909 = vmatmul.f32.gmra.mxu1 %v10191_v40  ;;  %v2419_v40 = vld [vmem:[%s14211_s3 + $0x370] sm:$0xff]  ;;  %v2651_v20 = vadd.f32 %v2650_v3, %v2585_v48 }
 0x3d6   : > { %3154 = vmatpush.msrb.mxu1 %v2419_v40 }
 0x3d7   : > { %v2712_v27 = vpop.f32.mrf.mxu2  ;;  %v2777_v50 = vpop.f32.mrf.mxu3 }
 0x3d8   : > { %v2713_v59 = vadd.f32 %v2712_v27, %v2648_v7  ;;  %v2479_v7 = vld [vmem:[%s14211_s3 + $0x550] sm:$0xff] }
 0x3d9   : > { %3220 = vmatpush.msrb.mxu2 %v2479_v7  ;;  %v2539_v7 = vld [vmem:[%s14211_s3 + $0x730] sm:$0xff] }
 0x3da   : > { %v10575_v34 = vadd.f32 %v2777_v50, %v2713_v59  ;;  %v2588_v26 = vpop.f32.mrf.mxu0  ;;  %v2653_v29 = vpop.f32.mrf.mxu1  ;;  %v2351_v50 = vld [vmem:[%s14211_s3 + $0x150] sm:$0xff]  ;;  %3286 = vmatpush.msrb.mxu3 %v2539_v7 }
 0x3db   : > { %v2415_v59 = vld [vmem:[%s14211_s3 + $0x350] sm:$0xff]  ;;  %3090 = vmatpush.msrb.mxu0 %v2351_v50 }
 0x3dc   : > { %14750 = vst [vmem:[#allocation173_spill] sm:$0xff] %v10575_v34  ;;  %2974 = vmatmul.f32.gmra.mxu2 %v10209_v44  ;;  %3039 = vmatmul.f32.gmra.mxu3 %v10211_v6  ;;  %v2654_v34 = vadd.f32 %v2653_v29, %v2588_v26  ;;  %v2347_v50 = vld [vmem:[%s14211_s3 + $0x130] sm:$0xff] }
 0x3dd   : > { %2847 = vmatmul.f32.gmra.mxu0 %v10213_v42  ;;  %2912 = vmatmul.f32.gmra.mxu1 %v10215_v0 }
 0x3de   : > { %3155 = vmatpush.msrb.mxu1 %v2415_v59  ;;  %v2411_v59 = vld [vmem:[%s14211_s3 + $0x330] sm:$0xff]  ;;  %3091 = vmatpush.msrb.mxu0 %v2347_v50 }
 0x3df   : > { %v2715_v9 = vpop.f32.mrf.mxu2  ;;  %v2780_v40 = vpop.f32.mrf.mxu3  ;;  %v2343_v50 = vld [vmem:[%s14211_s3 + $0x110] sm:$0xff] }
 0x3e0   : > { %v2716_v48 = vadd.f32 %v2715_v9, %v2651_v20  ;;  %v2475_v20 = vld [vmem:[%s14211_s3 + $0x530] sm:$0xff]  ;;  %3156 = vmatpush.msrb.mxu1 %v2411_v59  ;;  %3092 = vmatpush.msrb.mxu0 %v2343_v50 }
 0x3e1   : > { %3221 = vmatpush.msrb.mxu2 %v2475_v20  ;;  %v2535_v20 = vld [vmem:[%s14211_s3 + $0x710] sm:$0xff] }
 0x3e2   : > { %v10593_v3 = vadd.f32 %v2780_v40, %v2716_v48  ;;  %v2591_v63 = vpop.f32.mrf.mxu0  ;;  %v2656_v27 = vpop.f32.mrf.mxu1  ;;  %3287 = vmatpush.msrb.mxu3 %v2535_v20  ;;  %v2407_v59 = vld [vmem:[%s14211_s3 + $0x310] sm:$0xff] }
 0x3e3   : > { %3157 = vmatpush.msrb.mxu1 %v2407_v59  ;;  %v2339_v50 = vld [vmem:[%s14211_s3 + $0xf0] sm:$0xff] }
 0x3e4   : > { %14751 = vst [vmem:[#allocation174_spill] sm:$0xff] %v10593_v3  ;;  %2977 = vmatmul.f32.gmra.mxu2 %v10233_v52  ;;  %3042 = vmatmul.f32.gmra.mxu3 %v10235_v30  ;;  %v2657_v3 = vadd.f32 %v2656_v27, %v2591_v63  ;;  %v2403_v59 = vld [vmem:[%s14211_s3 + $0x2f0] sm:$0xff] }
 0x3e5   : > { %2850 = vmatmul.f32.gmra.mxu0 %v10237_v36  ;;  %2915 = vmatmul.f32.gmra.mxu1 %v10239_v53 }
 0x3e6   : > { %3093 = vmatpush.msrb.mxu0 %v2339_v50  ;;  %3158 = vmatpush.msrb.mxu1 %v2403_v59  ;;  %v2335_v50 = vld [vmem:[%s14211_s3 + $0xd0] sm:$0xff] }
 0x3e7   : > { %v2718_v11 = vpop.f32.mrf.mxu2  ;;  %v2783_v29 = vpop.f32.mrf.mxu3  ;;  %v2399_v59 = vld [vmem:[%s14211_s3 + $0x2d0] sm:$0xff] }
 0x3e8   : > { %v2719_v26 = vadd.f32 %v2718_v11, %v2654_v34  ;;  %v2471_v34 = vld [vmem:[%s14211_s3 + $0x510] sm:$0xff]  ;;  %3094 = vmatpush.msrb.mxu0 %v2335_v50  ;;  %3159 = vmatpush.msrb.mxu1 %v2399_v59 }
 0x3e9   : > { %3222 = vmatpush.msrb.mxu2 %v2471_v34  ;;  %v2531_v34 = vld [vmem:[%s14211_s3 + $0x6f0] sm:$0xff] }
 0x3ea   : > { %v10611_v9 = vadd.f32 %v2783_v29, %v2719_v26  ;;  %v2594_v40 = vpop.f32.mrf.mxu0  ;;  %v2659_v48 = vpop.f32.mrf.mxu1  ;;  %3288 = vmatpush.msrb.mxu3 %v2531_v34  ;;  %v2331_v50 = vld [vmem:[%s14211_s3 + $0xb0] sm:$0xff] }
 0x3eb   : > { %v2395_v59 = vld [vmem:[%s14211_s3 + $0x2b0] sm:$0xff]  ;;  %3095 = vmatpush.msrb.mxu0 %v2331_v50 }
 0x3ec   : > { %14752 = vst [vmem:[#allocation175_spill] sm:$0xff] %v10611_v9  ;;  %2980 = vmatmul.f32.gmra.mxu2 %v10257_v8  ;;  %3045 = vmatmul.f32.gmra.mxu3 %v10259_v45  ;;  %v2660_v9 = vadd.f32 %v2659_v48, %v2594_v40  ;;  %v2327_v50 = vld [vmem:[%s14211_s3 + $0x90] sm:$0xff] }
 0x3ed   : > { %2853 = vmatmul.f32.gmra.mxu0 %v10261_v18  ;;  %2918 = vmatmul.f32.gmra.mxu1 %v10263_v60 }
 0x3ee   : > { %3160 = vmatpush.msrb.mxu1 %v2395_v59  ;;  %v2391_v59 = vld [vmem:[%s14211_s3 + $0x290] sm:$0xff]  ;;  %3096 = vmatpush.msrb.mxu0 %v2327_v50 }
 0x3ef   : > { %v2721_v7 = vpop.f32.mrf.mxu2  ;;  %v2786_v63 = vpop.f32.mrf.mxu3  ;;  %v2323_v50 = vld [vmem:[%s14211_s3 + $0x70] sm:$0xff] }
 0x3f0   : > { %v2722_v27 = vadd.f32 %v2721_v7, %v2657_v3  ;;  %v2467_v3 = vld [vmem:[%s14211_s3 + $0x4f0] sm:$0xff]  ;;  %3161 = vmatpush.msrb.mxu1 %v2391_v59  ;;  %3097 = vmatpush.msrb.mxu0 %v2323_v50 }
 0x3f1   : > { %3223 = vmatpush.msrb.mxu2 %v2467_v3  ;;  %v2527_v3 = vld [vmem:[%s14211_s3 + $0x6d0] sm:$0xff] }
 0x3f2   : > { %v10629_v11 = vadd.f32 %v2786_v63, %v2722_v27  ;;  %v2597_v29 = vpop.f32.mrf.mxu0  ;;  %v2662_v26 = vpop.f32.mrf.mxu1  ;;  %3289 = vmatpush.msrb.mxu3 %v2527_v3  ;;  %v2387_v59 = vld [vmem:[%s14211_s3 + $0x270] sm:$0xff] }
 0x3f3   : > { %3162 = vmatpush.msrb.mxu1 %v2387_v59  ;;  %v2319_v50 = vld [vmem:[%s14211_s3 + $0x50] sm:$0xff] }
 0x3f4   : > { %14753 = vst [vmem:[#allocation176_spill] sm:$0xff] %v10629_v11  ;;  %2983 = vmatmul.f32.gmra.mxu2 %v10281_v54  ;;  %3048 = vmatmul.f32.gmra.mxu3 %v10283_v5  ;;  %v2663_v11 = vadd.f32 %v2662_v26, %v2597_v29  ;;  %v2383_v59 = vld [vmem:[%s14211_s3 + $0x250] sm:$0xff] }
 0x3f5   : > { %2856 = vmatmul.f32.gmra.mxu0 %v10285_v23  ;;  %2921 = vmatmul.f32.gmra.mxu1 %v10287_v22 }
 0x3f6   : > { %3098 = vmatpush.msrb.mxu0 %v2319_v50  ;;  %3163 = vmatpush.msrb.mxu1 %v2383_v59  ;;  %v2315_v50 = vld [vmem:[%s14211_s3 + $0x30] sm:$0xff] }
 0x3f7   : > { %v2724_v20 = vpop.f32.mrf.mxu2  ;;  %v2789_v40 = vpop.f32.mrf.mxu3  ;;  %v2379_v59 = vld [vmem:[%s14211_s3 + $0x230] sm:$0xff] }
 0x3f8   : > { %v2725_v48 = vadd.f32 %v2724_v20, %v2660_v9  ;;  %v2463_v9 = vld [vmem:[%s14211_s3 + $0x4d0] sm:$0xff]  ;;  %3099 = vmatpush.msrb.mxu0 %v2315_v50  ;;  %3164 = vmatpush.msrb.mxu1 %v2379_v59 }
 0x3f9   : > { %3224 = vmatpush.msrb.mxu2 %v2463_v9  ;;  %v2523_v9 = vld [vmem:[%s14211_s3 + $0x6b0] sm:$0xff] }
 0x3fa   : > { %v10647_v7 = vadd.f32 %v2789_v40, %v2725_v48  ;;  %v2600_v63 = vpop.f32.mrf.mxu0  ;;  %v2665_v27 = vpop.f32.mrf.mxu1  ;;  %3290 = vmatpush.msrb.mxu3 %v2523_v9 }
 0x3fc   : > { %14754 = vst [vmem:[#allocation177_spill] sm:$0xff] %v10647_v7  ;;  %2986 = vmatmul.f32.gmra.mxu2 %v10305_v46  ;;  %3051 = vmatmul.f32.gmra.mxu3 %v10307_v24  ;;  %v2666_v7 = vadd.f32 %v2665_v27, %v2600_v63 }
 0x3fd   : > { %2859 = vmatmul.f32.gmra.mxu0 %v10309_v19  ;;  %2924 = vmatmul.f32.gmra.mxu1 %v10311_v61 }
 0x3ff   : > { %v2727_v34 = vpop.f32.mrf.mxu2  ;;  %v2792_v29 = vpop.f32.mrf.mxu3 }
 0x400   : > { %v2728_v26 = vadd.f32 %v2727_v34, %v2663_v11  ;;  %v2459_v11 = vld [vmem:[%s14211_s3 + $0x4b0] sm:$0xff] }
 0x401   : > { %3225 = vmatpush.msrb.mxu2 %v2459_v11  ;;  %v2519_v11 = vld [vmem:[%s14211_s3 + $0x690] sm:$0xff] }
 0x402   : > { %v10665_v20 = vadd.f32 %v2792_v29, %v2728_v26  ;;  %v2603_v40 = vpop.f32.mrf.mxu0  ;;  %v2668_v48 = vpop.f32.mrf.mxu1  ;;  %3291 = vmatpush.msrb.mxu3 %v2519_v11 }
 0x404   : > { %14755 = vst [vmem:[#allocation178_spill] sm:$0xff] %v10665_v20  ;;  %2989 = vmatmul.f32.gmra.mxu2 %v10329_v57  ;;  %3054 = vmatmul.f32.gmra.mxu3 %v10331_v15  ;;  %v2669_v20 = vadd.f32 %v2668_v48, %v2603_v40 }
 0x405   : > { %2862 = vmatmul.f32.gmra.mxu0 %v10333_v62  ;;  %2927 = vmatmul.f32.gmra.mxu1 %v10335_v2 }
 0x407   : > { %v2730_v3 = vpop.f32.mrf.mxu2  ;;  %v2795_v63 = vpop.f32.mrf.mxu3 }
 0x408   : > { %v2731_v27 = vadd.f32 %v2730_v3, %v2666_v7  ;;  %v2455_v7 = vld [vmem:[%s14211_s3 + $0x490] sm:$0xff] }
 0x409   : > { %3226 = vmatpush.msrb.mxu2 %v2455_v7  ;;  %v2515_v7 = vld [vmem:[%s14211_s3 + $0x670] sm:$0xff] }
 0x40a   : > { %v10683_v34 = vadd.f32 %v2795_v63, %v2731_v27  ;;  %v2606_v29 = vpop.f32.mrf.mxu0  ;;  %v2671_v26 = vpop.f32.mrf.mxu1  ;;  %3292 = vmatpush.msrb.mxu3 %v2515_v7 }
 0x40c   : > { %14756 = vst [vmem:[#allocation179_spill] sm:$0xff] %v10683_v34  ;;  %2992 = vmatmul.f32.gmra.mxu2 %v10353_v51  ;;  %3057 = vmatmul.f32.gmra.mxu3 %v10355_v39  ;;  %v2672_v34 = vadd.f32 %v2671_v26, %v2606_v29 }
 0x40d   : > { %2865 = vmatmul.f32.gmra.mxu0 %v10357_v13  ;;  %2930 = vmatmul.f32.gmra.mxu1 %v10359_v4 }
 0x40f   : > { %v2733_v9 = vpop.f32.mrf.mxu2  ;;  %v2798_v40 = vpop.f32.mrf.mxu3 }
 0x410   : > { %v2734_v48 = vadd.f32 %v2733_v9, %v2669_v20  ;;  %v2451_v20 = vld [vmem:[%s14211_s3 + $0x470] sm:$0xff] }
 0x411   : > { %3227 = vmatpush.msrb.mxu2 %v2451_v20  ;;  %v2511_v20 = vld [vmem:[%s14211_s3 + $0x650] sm:$0xff] }
 0x412   : > { %v10701_v3 = vadd.f32 %v2798_v40, %v2734_v48  ;;  %v2609_v63 = vpop.f32.mrf.mxu0  ;;  %v2674_v27 = vpop.f32.mrf.mxu1  ;;  %3293 = vmatpush.msrb.mxu3 %v2511_v20 }
 0x414   : > { %14757 = vst [vmem:[#allocation180_spill] sm:$0xff] %v10701_v3  ;;  %2995 = vmatmul.f32.gmra.mxu2 %v10377_v43  ;;  %3060 = vmatmul.f32.gmra.mxu3 %v10379_v14  ;;  %v2675_v3 = vadd.f32 %v2674_v27, %v2609_v63 }
 0x415   : > { %2868 = vmatmul.f32.gmra.mxu0 %v10381_v17  ;;  %2933 = vmatmul.f32.gmra.mxu1 %v10383_v28 }
 0x417   : > { %v2736_v11 = vpop.f32.mrf.mxu2  ;;  %v2801_v29 = vpop.f32.mrf.mxu3 }
 0x418   : > { %v2737_v26 = vadd.f32 %v2736_v11, %v2672_v34  ;;  %v2447_v34 = vld [vmem:[%s14211_s3 + $0x450] sm:$0xff] }
 0x419   : > { %3228 = vmatpush.msrb.mxu2 %v2447_v34  ;;  %v2507_v34 = vld [vmem:[%s14211_s3 + $0x630] sm:$0xff] }
 0x41a   : > { %v10719_v9 = vadd.f32 %v2801_v29, %v2737_v26  ;;  %v2612_v40 = vpop.f32.mrf.mxu0  ;;  %v2677_v48 = vpop.f32.mrf.mxu1  ;;  %3294 = vmatpush.msrb.mxu3 %v2507_v34  ;;  %v2375_v34 = vld [vmem:[%s14211_s3 + $0x210] sm:$0xff] }
 0x41b   : > { %3165 = vmatpush.msrb.mxu1 %v2375_v34 }
 0x41c   : > { %14758 = vst [vmem:[#allocation181_spill] sm:$0xff] %v10719_v9  ;;  %2998 = vmatmul.f32.gmra.mxu2 %v10401_v58  ;;  %3063 = vmatmul.f32.gmra.mxu3 %v10403_v56  ;;  %v2678_v9 = vadd.f32 %v2677_v48, %v2612_v40 }
 0x41d   : > { %2871 = vmatmul.f32.gmra.mxu0 %v10405_v21  ;;  %2936 = vmatmul.f32.gmra.mxu1 %v10407_v25 }
 0x41f   : > { %v2739_v7 = vpop.f32.mrf.mxu2  ;;  %v2804_v63 = vpop.f32.mrf.mxu3 }
 0x420   : > { %v2740_v27 = vadd.f32 %v2739_v7, %v2675_v3  ;;  %v2443_v3 = vld [vmem:[%s14211_s3 + $0x430] sm:$0xff] }
 0x421   : > { %3229 = vmatpush.msrb.mxu2 %v2443_v3  ;;  %v2311_v3 = vld [vmem:[%s14211_s3 + $0x10] sm:$0xff] }
 0x422   : > { %v10737_v11 = vadd.f32 %v2804_v63, %v2740_v27  ;;  %v2615_v29 = vpop.f32.mrf.mxu0  ;;  %v2680_v26 = vpop.f32.mrf.mxu1  ;;  %3100 = vmatpush.msrb.mxu0 %v2311_v3 }
 0x424   : > { %14759 = vst [vmem:[#allocation182_spill] sm:$0xff] %v10737_v11  ;;  %3001 = vmatmul.f32.gmra.mxu2 %v10425_v32  ;;  %3066 = vmatmul.f32.gmra.mxu3 %v10427_v10  ;;  %v2681_v11 = vadd.f32 %v2680_v26, %v2615_v29  ;;  %v2503_v29 = vld [vmem:[%s14211_s3 + $0x610] sm:$0xff] }
 0x425   : > { %2874 = vmatmul.f32.gmra.mxu0 %v10429_v49  ;;  %2939 = vmatmul.f32.gmra.mxu1 %v10431_v1 }
 0x426   : > { %3295 = vmatpush.msrb.mxu3 %v2503_v29 }
 0x427   : > { %v2742_v20 = vpop.f32.mrf.mxu2  ;;  %v2807_v40 = vpop.f32.mrf.mxu3 }
 0x428   : > { %v2743_v48 = vadd.f32 %v2742_v20, %v2678_v9  ;;  %v2439_v9 = vld [vmem:[%s14211_s3 + $0x410] sm:$0xff] }
 0x429   : > { %3230 = vmatpush.msrb.mxu2 %v2439_v9  ;;  %v14762_v9 = vld [vmem:[#allocation162_spill] sm:$0xff] }
 0x42a   : > { %v10755_v7 = vadd.f32 %v2807_v40, %v2743_v48  ;;  %v2618_v63 = vpop.f32.mrf.mxu0  ;;  %v2683_v27 = vpop.f32.mrf.mxu1 }
 0x42c   : > { %14760 = vst [vmem:[#allocation183_spill] sm:$0xff] %v10755_v7  ;;  %3004 = vmatmul.f32.gmra.mxu2 %v10449_v12  ;;  %3069 = vmatmul.f32.gmra.mxu3 %v10451_v16  ;;  %v2684_v7 = vadd.f32 %v2683_v27, %v2618_v63 }
 0x42d   : > { %2877 = vmatmul.f32.gmra.mxu0 %v10453_v35  ;;  %2942 = vmatmul.f32.gmra.mxu1 %v10455_v55  ;;  %v2500_v55 = vld [vmem:[%s14211_s3 + $0x5f8] sm:$0xff] }
 0x42e   : > { %3475 = vmatpush.msra.mxu2 %v2500_v55  ;;  %v2436_v55 = vld [vmem:[%s14211_s3 + $0x3f8] sm:$0xff] }
 0x42f   : > { %v2745_v26 = vpop.f32.mrf.mxu2  ;;  %v2810_v20 = vpop.f32.mrf.mxu3  ;;  %3410 = vmatpush.msra.mxu1 %v2436_v55  ;;  %v14770_v55 = vld [vmem:[#allocation169_spill] sm:$0xff] }
 0x430   : > { %v2746_v40 = vadd.f32 %v2745_v26, %v2681_v11  ;;  %v2564_v11 = vld [vmem:[%s14211_s3 + $0x7f8] sm:$0xff] }
 0x431   : > { %3540 = vmatpush.msra.mxu3 %v2564_v11  ;;  %v14766_v11 = vld [vmem:[#allocation165_spill] sm:$0xff] }
 0x432   : > { %v10779_v48 = vadd.f32 %v2810_v20, %v2746_v40  ;;  %v2621_v50 = vpop.f32.mrf.mxu0  ;;  %v2686_v59 = vpop.f32.mrf.mxu1  ;;  %v14764_v40 = vld [vmem:[#allocation163_spill] sm:$0xff] }
 0x433   : > { %v2687_v20 = vadd.f32 %v2686_v59, %v2621_v50  ;;  %v2560_v50 = vld [vmem:[%s14211_s3 + $0x7d8] sm:$0xff] }
 0x434   : > { %14761 = vst [vmem:[#allocation184_spill] sm:$0xff] %v10779_v48  ;;  %3007 = vmatmul.f32.gmra.mxu2 %v10473_v38  ;;  %3072 = vmatmul.f32.gmra.mxu3 %v10475_v41  ;;  %v14765_v48 = vld [vmem:[#allocation164_spill] sm:$0xff] }
 0x435   : > { %2880 = vmatmul.f32.gmra.mxu0 %v10477_v33  ;;  %2945 = vmatmul.f32.gmra.mxu1 %v14762_v9  ;;  %v2372_v9 = vld [vmem:[%s14211_s3 + $0x1f8] sm:$0xff] }
 0x436   : > { %3345 = vmatpush.msra.mxu0 %v2372_v9  ;;  %3541 = vmatpush.msra.mxu3 %v2560_v50  ;;  %v2432_v9 = vld [vmem:[%s14211_s3 + $0x3d8] sm:$0xff] }
 0x437   : > { %v2748_v3 = vpop.f32.mrf.mxu2  ;;  %v2813_v63 = vpop.f32.mrf.mxu3  ;;  %3411 = vmatpush.msra.mxu1 %v2432_v9  ;;  %v14773_v9 = vld [vmem:[#allocation151_spill] sm:$0xff] }
 0x438   : > { %v2749_v27 = vadd.f32 %v2748_v3, %v2684_v7  ;;  %v2496_v7 = vld [vmem:[%s14211_s3 + $0x5d8] sm:$0xff]  ;;  %v14767_v3 = vld [vmem:[#allocation166_spill] sm:$0xff] }
 0x439   : > { %3476 = vmatpush.msra.mxu2 %v2496_v7  ;;  %v14771_v7 = vld [vmem:[#allocation170_spill] sm:$0xff] }
 0x43a   : > { %v10791_v34 = vadd.f32 %v2813_v63, %v2749_v27  ;;  %v2624_v29 = vpop.f32.mrf.mxu0  ;;  %v2689_v26 = vpop.f32.mrf.mxu1 }
 0x43b   : > { %v2690_v33 = vadd.f32 %v2689_v26, %v2624_v29  ;;  %v2556_v29 = vld [vmem:[%s14211_s3 + $0x7b8] sm:$0xff] }
 0x43c   : > { %14763 = vst [vmem:[#allocation185_spill] sm:$0xff] %v10791_v34  ;;  %3010 = vmatmul.f32.gmra.mxu2 %v14764_v40  ;;  %3075 = vmatmul.f32.gmra.mxu3 %v14765_v48 }
 0x43d   : > { %2883 = vmatmul.f32.gmra.mxu0 %v14766_v11  ;;  %2948 = vmatmul.f32.gmra.mxu1 %v14767_v3  ;;  %v14769_v11 = vld [vmem:[#allocation168_spill] sm:$0xff]  ;;  %v2368_v3 = vld [vmem:[%s14211_s3 + $0x1d8] sm:$0xff] }
 0x43e   : > { %3346 = vmatpush.msra.mxu0 %v2368_v3  ;;  %3542 = vmatpush.msra.mxu3 %v2556_v29  ;;  %v2428_v3 = vld [vmem:[%s14211_s3 + $0x3b8] sm:$0xff] }
 0x43f   : > { %v2751_v59 = vpop.f32.mrf.mxu2  ;;  %v2816_v63 = vpop.f32.mrf.mxu3  ;;  %3412 = vmatpush.msra.mxu1 %v2428_v3  ;;  %v14778_v3 = vld [vmem:[#allocation155_spill] sm:$0xff] }
 0x440   : > { %v2752_v27 = vadd.f32 %v2751_v59, %v2687_v20  ;;  %v2492_v20 = vld [vmem:[%s14211_s3 + $0x5b8] sm:$0xff] }
 0x441   : > { %3477 = vmatpush.msra.mxu2 %v2492_v20  ;;  %v14774_v20 = vld [vmem:[#allocation152_spill] sm:$0xff] }
 0x442   : > { %v10809_v34 = vadd.f32 %v2816_v63, %v2752_v27  ;;  %v2627_v48 = vpop.f32.mrf.mxu0  ;;  %v2692_v40 = vpop.f32.mrf.mxu1 }
 0x444   : > { %14768 = vst [vmem:[#allocation186_spill] sm:$0xff] %v10809_v34  ;;  %3013 = vmatmul.f32.gmra.mxu2 %v10515_v31  ;;  %3078 = vmatmul.f32.gmra.mxu3 %v14769_v11  ;;  %v2693_v11 = vadd.f32 %v2692_v40, %v2627_v48  ;;  %v2552_v48 = vld [vmem:[%s14211_s3 + $0x798] sm:$0xff] }
 0x445   : > { %2886 = vmatmul.f32.gmra.mxu0 %v14770_v55  ;;  %2951 = vmatmul.f32.gmra.mxu1 %v14771_v7  ;;  %v2364_v7 = vld [vmem:[%s14211_s3 + $0x1b8] sm:$0xff] }
 0x446   : > { %3347 = vmatpush.msra.mxu0 %v2364_v7  ;;  %3543 = vmatpush.msra.mxu3 %v2552_v48  ;;  %v2424_v7 = vld [vmem:[%s14211_s3 + $0x398] sm:$0xff] }
 0x447   : > { %v2754_v26 = vpop.f32.mrf.mxu2  ;;  %v2819_v50 = vpop.f32.mrf.mxu3  ;;  %v2548_v48 = vld [vmem:[%s14211_s3 + $0x778] sm:$0xff]  ;;  %3413 = vmatpush.msra.mxu1 %v2424_v7 }
 0x448   : > { %v2755_v59 = vadd.f32 %v2754_v26, %v2690_v33  ;;  %v2488_v33 = vld [vmem:[%s14211_s3 + $0x598] sm:$0xff]  ;;  %3544 = vmatpush.msra.mxu3 %v2548_v48 }
 0x449   : > { %3478 = vmatpush.msra.mxu2 %v2488_v33  ;;  %v14779_v33 = vld [vmem:[#allocation156_spill] sm:$0xff] }
 0x44a   : > { %v10827_v63 = vadd.f32 %v2819_v50, %v2755_v59  ;;  %v2842_v27 = vpop.f32.mrf.mxu0  ;;  %v2907_v34 = vpop.f32.mrf.mxu1 }
 0x44c   : > { %14772 = vst [vmem:[#allocation187_spill] sm:$0xff] %v10827_v63  ;;  %3016 = vmatmul.f32.gmra.mxu2 %v10539_v37  ;;  %3081 = vmatmul.f32.gmra.mxu3 %v10541_v47  ;;  %v14776_v47 = vld [vmem:[#allocation153_spill] sm:$0xff] }
 0x44d   : > { %3101 = vmatmul.f32.vlgmr.msrb.gmra.mxu0 %v14773_v9  ;;  %3166 = vmatmul.f32.vlgmr.msrb.gmra.mxu1 %v14774_v20  ;;  %v14777_v9 = vld [vmem:[#allocation154_spill] sm:$0xff]  ;;  %v2360_v20 = vld [vmem:[%s14211_s3 + $0x198] sm:$0xff] }
 0x44e   : > { %3348 = vmatpush.msra.mxu0 %v2360_v20  ;;  %v2544_v20 = vld [vmem:[%s14211_s3 + $0x758] sm:$0xff] }
 0x44f   : > { %v2757_v40 = vpop.f32.mrf.mxu2  ;;  %v2822_v29 = vpop.f32.mrf.mxu3  ;;  %3545 = vmatpush.msra.mxu3 %v2544_v20 }
 0x450   : > { %v2758_v26 = vadd.f32 %v2757_v40, %v2693_v11  ;;  %v2484_v11 = vld [vmem:[%s14211_s3 + $0x578] sm:$0xff]  ;;  %v2908_v40 = vadd.f32 %v2907_v34, %v2842_v27 }
 0x451   : > { %3479 = vmatpush.msra.mxu2 %v2484_v11  ;;  %v2420_v34 = vld [vmem:[%s14211_s3 + $0x378] sm:$0xff] }
 0x452   : > { %v10845_v50 = vadd.f32 %v2822_v29, %v2758_v26  ;;  %v2845_v59 = vpop.f32.mrf.mxu0  ;;  %v2910_v63 = vpop.f32.mrf.mxu1  ;;  %v2480_v27 = vld [vmem:[%s14211_s3 + $0x558] sm:$0xff]  ;;  %3414 = vmatpush.msra.mxu1 %v2420_v34 }
 0x453   : > { %3480 = vmatpush.msra.mxu2 %v2480_v27 }
 0x454   : > { %14775 = vst [vmem:[#allocation188_spill] sm:$0xff] %v10845_v50  ;;  %3231 = vmatmul.f32.vlgmr.msrb.gmra.mxu2 %v14776_v47  ;;  %3296 = vmatmul.f32.vlgmr.msrb.gmra.mxu3 %v14777_v9 }
 0x455   : > { %3104 = vmatmul.f32.gmra.mxu0 %v14778_v3  ;;  %3169 = vmatmul.f32.gmra.mxu1 %v14779_v33  ;;  %v2356_v33 = vld [vmem:[%s14211_s3 + $0x178] sm:$0xff] }
 0x456   : > { %3349 = vmatpush.msra.mxu0 %v2356_v33  ;;  %v2540_v33 = vld [vmem:[%s14211_s3 + $0x738] sm:$0xff] }
 0x457   : > { %v2972_v29 = vpop.f32.mrf.mxu2  ;;  %v3037_v26 = vpop.f32.mrf.mxu3  ;;  %3546 = vmatpush.msra.mxu3 %v2540_v33 }
 0x458   : > { %v2973_v50 = vadd.f32 %v2972_v29, %v2908_v40 }
 0x45a   : > { %v10863_v9 = vadd.f32 %v3037_v26, %v2973_v50  ;;  %v2848_v47 = vpop.f32.mrf.mxu0  ;;  %v2913_v37 = vpop.f32.mrf.mxu1  ;;  %v2911_v50 = vadd.f32 %v2910_v63, %v2845_v59  ;;  %v2416_v63 = vld [vmem:[%s14211_s3 + $0x358] sm:$0xff] }
 0x45b   : > { %v2476_v59 = vld [vmem:[%s14211_s3 + $0x538] sm:$0xff]  ;;  %v2914_v34 = vadd.f32 %v2913_v37, %v2848_v47  ;;  %3415 = vmatpush.msra.mxu1 %v2416_v63 }
 0x45c   : > { %14780 = vst [vmem:[#allocation155_spill] sm:$0xff] %v10863_v9  ;;  %3234 = vmatmul.f32.gmra.mxu2 %v10209_v44  ;;  %3299 = vmatmul.f32.gmra.mxu3 %v10211_v6  ;;  %v2352_v9 = vld [vmem:[%s14211_s3 + $0x158] sm:$0xff] }
 0x45d   : > { %3107 = vmatmul.f32.gmra.mxu0 %v10213_v42  ;;  %3172 = vmatmul.f32.gmra.mxu1 %v10215_v0  ;;  %v2412_v37 = vld [vmem:[%s14211_s3 + $0x338] sm:$0xff] }
 0x45e   : > { %3350 = vmatpush.msra.mxu0 %v2352_v9  ;;  %3481 = vmatpush.msra.mxu2 %v2476_v59  ;;  %v2472_v47 = vld [vmem:[%s14211_s3 + $0x518] sm:$0xff] }
 0x45f   : > { %v2975_v7 = vpop.f32.mrf.mxu2  ;;  %v3040_v11 = vpop.f32.mrf.mxu3  ;;  %v2536_v9 = vld [vmem:[%s14211_s3 + $0x718] sm:$0xff]  ;;  %3416 = vmatpush.msra.mxu1 %v2412_v37 }
 0x460   : > { %v2976_v48 = vadd.f32 %v2975_v7, %v2911_v50  ;;  %3482 = vmatpush.msra.mxu2 %v2472_v47  ;;  %3547 = vmatpush.msra.mxu3 %v2536_v9 }
 0x462   : > { %v10881_v40 = vadd.f32 %v3040_v11, %v2976_v48  ;;  %v2851_v29 = vpop.f32.mrf.mxu0  ;;  %v2916_v26 = vpop.f32.mrf.mxu1 }
 0x463   : > { %v2917_v63 = vadd.f32 %v2916_v26, %v2851_v29  ;;  %v2468_v29 = vld [vmem:[%s14211_s3 + $0x4f8] sm:$0xff] }
 0x464   : > { %14781 = vst [vmem:[#allocation189_spill] sm:$0xff] %v10881_v40  ;;  %3237 = vmatmul.f32.gmra.mxu2 %v10233_v52  ;;  %3302 = vmatmul.f32.gmra.mxu3 %v10235_v30  ;;  %v2348_v40 = vld [vmem:[%s14211_s3 + $0x138] sm:$0xff] }
 0x465   : > { %3110 = vmatmul.f32.gmra.mxu0 %v10237_v36  ;;  %3175 = vmatmul.f32.gmra.mxu1 %v10239_v53  ;;  %v2532_v26 = vld [vmem:[%s14211_s3 + $0x6f8] sm:$0xff] }
 0x466   : > { %3351 = vmatpush.msra.mxu0 %v2348_v40  ;;  %v2408_v40 = vld [vmem:[%s14211_s3 + $0x318] sm:$0xff]  ;;  %3483 = vmatpush.msra.mxu2 %v2468_v29 }
 0x467   : > { %v2978_v27 = vpop.f32.mrf.mxu2  ;;  %v3043_v20 = vpop.f32.mrf.mxu3  ;;  %3417 = vmatpush.msra.mxu1 %v2408_v40  ;;  %3548 = vmatpush.msra.mxu3 %v2532_v26 }
 0x468   : > { %v2979_v50 = vadd.f32 %v2978_v27, %v2914_v34 }
 0x46a   : > { %v10899_v7 = vadd.f32 %v3043_v20, %v2979_v50  ;;  %v2854_v11 = vpop.f32.mrf.mxu0  ;;  %v2919_v48 = vpop.f32.mrf.mxu1 }
 0x46b   : > { %v2920_v37 = vadd.f32 %v2919_v48, %v2854_v11  ;;  %v2464_v11 = vld [vmem:[%s14211_s3 + $0x4d8] sm:$0xff] }
 0x46c   : > { %14782 = vst [vmem:[#allocation190_spill] sm:$0xff] %v10899_v7  ;;  %3240 = vmatmul.f32.gmra.mxu2 %v10257_v8  ;;  %3305 = vmatmul.f32.gmra.mxu3 %v10259_v45  ;;  %v2344_v7 = vld [vmem:[%s14211_s3 + $0x118] sm:$0xff] }
 0x46d   : > { %3113 = vmatmul.f32.gmra.mxu0 %v10261_v18  ;;  %3178 = vmatmul.f32.gmra.mxu1 %v10263_v60  ;;  %v2528_v48 = vld [vmem:[%s14211_s3 + $0x6d8] sm:$0xff] }
 0x46e   : > { %3352 = vmatpush.msra.mxu0 %v2344_v7  ;;  %v2404_v7 = vld [vmem:[%s14211_s3 + $0x2f8] sm:$0xff]  ;;  %3484 = vmatpush.msra.mxu2 %v2464_v11 }
 0x46f   : > { %v2981_v59 = vpop.f32.mrf.mxu2  ;;  %v3046_v33 = vpop.f32.mrf.mxu3  ;;  %3418 = vmatpush.msra.mxu1 %v2404_v7  ;;  %3549 = vmatpush.msra.mxu3 %v2528_v48 }
 0x470   : > { %v2982_v34 = vadd.f32 %v2981_v59, %v2917_v63 }
 0x472   : > { %v10917_v27 = vadd.f32 %v3046_v33, %v2982_v34  ;;  %v2857_v20 = vpop.f32.mrf.mxu0  ;;  %v2922_v50 = vpop.f32.mrf.mxu1 }
 0x473   : > { %v2923_v40 = vadd.f32 %v2922_v50, %v2857_v20  ;;  %v2460_v20 = vld [vmem:[%s14211_s3 + $0x4b8] sm:$0xff] }
 0x474   : > { %14783 = vst [vmem:[#allocation191_spill] sm:$0xff] %v10917_v27  ;;  %3243 = vmatmul.f32.gmra.mxu2 %v10281_v54  ;;  %3308 = vmatmul.f32.gmra.mxu3 %v10283_v5  ;;  %v2340_v27 = vld [vmem:[%s14211_s3 + $0xf8] sm:$0xff] }
 0x475   : > { %3116 = vmatmul.f32.gmra.mxu0 %v10285_v23  ;;  %3181 = vmatmul.f32.gmra.mxu1 %v10287_v22  ;;  %v2524_v50 = vld [vmem:[%s14211_s3 + $0x6b8] sm:$0xff] }
 0x476   : > { %3353 = vmatpush.msra.mxu0 %v2340_v27  ;;  %v2400_v27 = vld [vmem:[%s14211_s3 + $0x2d8] sm:$0xff]  ;;  %3485 = vmatpush.msra.mxu2 %v2460_v20 }
 0x477   : > { %v2984_v47 = vpop.f32.mrf.mxu2  ;;  %v3049_v9 = vpop.f32.mrf.mxu3  ;;  %3419 = vmatpush.msra.mxu1 %v2400_v27  ;;  %3550 = vmatpush.msra.mxu3 %v2524_v50 }
 0x478   : > { %v2985_v63 = vadd.f32 %v2984_v47, %v2920_v37 }
 0x47a   : > { %v10935_v59 = vadd.f32 %v3049_v9, %v2985_v63  ;;  %v2860_v33 = vpop.f32.mrf.mxu0  ;;  %v2925_v34 = vpop.f32.mrf.mxu1 }
 0x47b   : > { %v2926_v7 = vadd.f32 %v2925_v34, %v2860_v33  ;;  %v2456_v33 = vld [vmem:[%s14211_s3 + $0x498] sm:$0xff] }
 0x47c   : > { %14784 = vst [vmem:[#allocation192_spill] sm:$0xff] %v10935_v59  ;;  %3246 = vmatmul.f32.gmra.mxu2 %v10305_v46  ;;  %3311 = vmatmul.f32.gmra.mxu3 %v10307_v24  ;;  %v2336_v59 = vld [vmem:[%s14211_s3 + $0xd8] sm:$0xff] }
 0x47d   : > { %3119 = vmatmul.f32.gmra.mxu0 %v10309_v19  ;;  %3184 = vmatmul.f32.gmra.mxu1 %v10311_v61  ;;  %v2520_v34 = vld [vmem:[%s14211_s3 + $0x698] sm:$0xff] }
 0x47e   : > { %3354 = vmatpush.msra.mxu0 %v2336_v59  ;;  %v2396_v59 = vld [vmem:[%s14211_s3 + $0x2b8] sm:$0xff]  ;;  %3486 = vmatpush.msra.mxu2 %v2456_v33 }
 0x47f   : > { %v2987_v29 = vpop.f32.mrf.mxu2  ;;  %v3052_v26 = vpop.f32.mrf.mxu3  ;;  %3420 = vmatpush.msra.mxu1 %v2396_v59  ;;  %3551 = vmatpush.msra.mxu3 %v2520_v34 }
 0x480   : > { %v2988_v37 = vadd.f32 %v2987_v29, %v2923_v40 }
 0x482   : > { %v10953_v47 = vadd.f32 %v3052_v26, %v2988_v37  ;;  %v2863_v9 = vpop.f32.mrf.mxu0  ;;  %v2928_v63 = vpop.f32.mrf.mxu1 }
 0x483   : > { %v2929_v27 = vadd.f32 %v2928_v63, %v2863_v9  ;;  %v2452_v9 = vld [vmem:[%s14211_s3 + $0x478] sm:$0xff] }
 0x484   : > { %14785 = vst [vmem:[#allocation193_spill] sm:$0xff] %v10953_v47  ;;  %3249 = vmatmul.f32.gmra.mxu2 %v10329_v57  ;;  %3314 = vmatmul.f32.gmra.mxu3 %v10331_v15  ;;  %v2332_v47 = vld [vmem:[%s14211_s3 + $0xb8] sm:$0xff] }
 0x485   : > { %3122 = vmatmul.f32.gmra.mxu0 %v10333_v62  ;;  %3187 = vmatmul.f32.gmra.mxu1 %v10335_v2  ;;  %v2516_v63 = vld [vmem:[%s14211_s3 + $0x678] sm:$0xff] }
 0x486   : > { %3355 = vmatpush.msra.mxu0 %v2332_v47  ;;  %v2392_v47 = vld [vmem:[%s14211_s3 + $0x298] sm:$0xff]  ;;  %3487 = vmatpush.msra.mxu2 %v2452_v9 }
 0x487   : > { %v2990_v11 = vpop.f32.mrf.mxu2  ;;  %v3055_v48 = vpop.f32.mrf.mxu3  ;;  %3421 = vmatpush.msra.mxu1 %v2392_v47  ;;  %3552 = vmatpush.msra.mxu3 %v2516_v63 }
 0x488   : > { %v2991_v40 = vadd.f32 %v2990_v11, %v2926_v7 }
 0x48a   : > { %v10971_v29 = vadd.f32 %v3055_v48, %v2991_v40  ;;  %v2866_v26 = vpop.f32.mrf.mxu0  ;;  %v2931_v37 = vpop.f32.mrf.mxu1 }
 0x48b   : > { %v2932_v59 = vadd.f32 %v2931_v37, %v2866_v26  ;;  %v2448_v26 = vld [vmem:[%s14211_s3 + $0x458] sm:$0xff] }
 0x48c   : > { %14786 = vst [vmem:[#allocation194_spill] sm:$0xff] %v10971_v29  ;;  %3252 = vmatmul.f32.gmra.mxu2 %v10353_v51  ;;  %3317 = vmatmul.f32.gmra.mxu3 %v10355_v39  ;;  %v2328_v29 = vld [vmem:[%s14211_s3 + $0x98] sm:$0xff] }
 0x48d   : > { %3125 = vmatmul.f32.gmra.mxu0 %v10357_v13  ;;  %3190 = vmatmul.f32.gmra.mxu1 %v10359_v4  ;;  %v2512_v37 = vld [vmem:[%s14211_s3 + $0x658] sm:$0xff] }
 0x48e   : > { %3356 = vmatpush.msra.mxu0 %v2328_v29  ;;  %v2388_v29 = vld [vmem:[%s14211_s3 + $0x278] sm:$0xff]  ;;  %3488 = vmatpush.msra.mxu2 %v2448_v26 }
 0x48f   : > { %v2993_v20 = vpop.f32.mrf.mxu2  ;;  %v3058_v50 = vpop.f32.mrf.mxu3  ;;  %3422 = vmatpush.msra.mxu1 %v2388_v29  ;;  %3553 = vmatpush.msra.mxu3 %v2512_v37 }
 0x490   : > { %v2994_v7 = vadd.f32 %v2993_v20, %v2929_v27 }
 0x492   : > { %v10989_v11 = vadd.f32 %v3058_v50, %v2994_v7  ;;  %v2869_v48 = vpop.f32.mrf.mxu0  ;;  %v2934_v40 = vpop.f32.mrf.mxu1 }
 0x493   : > { %v2935_v47 = vadd.f32 %v2934_v40, %v2869_v48  ;;  %v2444_v48 = vld [vmem:[%s14211_s3 + $0x438] sm:$0xff] }
 0x494   : > { %14787 = vst [vmem:[#allocation195_spill] sm:$0xff] %v10989_v11  ;;  %3255 = vmatmul.f32.gmra.mxu2 %v10377_v43  ;;  %3320 = vmatmul.f32.gmra.mxu3 %v10379_v14  ;;  %v2324_v11 = vld [vmem:[%s14211_s3 + $0x78] sm:$0xff] }
 0x495   : > { %3128 = vmatmul.f32.gmra.mxu0 %v10381_v17  ;;  %3193 = vmatmul.f32.gmra.mxu1 %v10383_v28  ;;  %v2508_v40 = vld [vmem:[%s14211_s3 + $0x638] sm:$0xff] }
 0x496   : > { %3357 = vmatpush.msra.mxu0 %v2324_v11  ;;  %v2384_v11 = vld [vmem:[%s14211_s3 + $0x258] sm:$0xff]  ;;  %3489 = vmatpush.msra.mxu2 %v2444_v48 }
 0x497   : > { %v2996_v33 = vpop.f32.mrf.mxu2  ;;  %v3061_v34 = vpop.f32.mrf.mxu3  ;;  %3423 = vmatpush.msra.mxu1 %v2384_v11  ;;  %3554 = vmatpush.msra.mxu3 %v2508_v40 }
 0x498   : > { %v2997_v27 = vadd.f32 %v2996_v33, %v2932_v59 }
 0x49a   : > { %v11007_v20 = vadd.f32 %v3061_v34, %v2997_v27  ;;  %v2872_v50 = vpop.f32.mrf.mxu0  ;;  %v2937_v7 = vpop.f32.mrf.mxu1 }
 0x49b   : > { %v2938_v29 = vadd.f32 %v2937_v7, %v2872_v50  ;;  %v2312_v50 = vld [vmem:[%s14211_s3 + $0x18] sm:$0xff] }
 0x49c   : > { %14788 = vst [vmem:[#allocation196_spill] sm:$0xff] %v11007_v20  ;;  %3258 = vmatmul.f32.gmra.mxu2 %v10401_v58  ;;  %3323 = vmatmul.f32.gmra.mxu3 %v10403_v56  ;;  %v2320_v20 = vld [vmem:[%s14211_s3 + $0x58] sm:$0xff] }
 0x49d   : > { %3131 = vmatmul.f32.gmra.mxu0 %v10405_v21  ;;  %3196 = vmatmul.f32.gmra.mxu1 %v10407_v25  ;;  %v2376_v7 = vld [vmem:[%s14211_s3 + $0x218] sm:$0xff] }
 0x49e   : > { %3358 = vmatpush.msra.mxu0 %v2320_v20  ;;  %v2440_v20 = vld [vmem:[%s14211_s3 + $0x418] sm:$0xff] }
 0x49f   : > { %v2999_v9 = vpop.f32.mrf.mxu2  ;;  %v3064_v63 = vpop.f32.mrf.mxu3  ;;  %3490 = vmatpush.msra.mxu2 %v2440_v20 }
 0x4a0   : > { %v3000_v59 = vadd.f32 %v2999_v9, %v2935_v47 }
 0x4a2   : > { %v11025_v33 = vadd.f32 %v3064_v63, %v3000_v59  ;;  %v2875_v34 = vpop.f32.mrf.mxu0  ;;  %v2940_v27 = vpop.f32.mrf.mxu1 }
 0x4a3   : > { %v2941_v11 = vadd.f32 %v2940_v27, %v2875_v34 }
 0x4a4   : > { %14789 = vst [vmem:[#allocation197_spill] sm:$0xff] %v11025_v33  ;;  %3261 = vmatmul.f32.gmra.mxu2 %v10425_v32  ;;  %3326 = vmatmul.f32.gmra.mxu3 %v10427_v10  ;;  %v2316_v33 = vld [vmem:[%s14211_s3 + $0x38] sm:$0xff] }
 0x4a5   : > { %3134 = vmatmul.f32.gmra.mxu0 %v10429_v49  ;;  %3199 = vmatmul.f32.gmra.mxu1 %v10431_v1  ;;  %v2380_v1 = vld [vmem:[%s14211_s3 + $0x238] sm:$0xff] }
 0x4a6   : > { %3359 = vmatpush.msra.mxu0 %v2316_v33  ;;  %3424 = vmatpush.msra.mxu1 %v2380_v1  ;;  %v14791_v33 = vld [vmem:[#allocation159_spill] sm:$0xff]  ;;  %v2504_v1 = vld [vmem:[%s14211_s3 + $0x618] sm:$0xff] }
 0x4a7   : > { %v3002_v26 = vpop.f32.mrf.mxu2  ;;  %v3067_v37 = vpop.f32.mrf.mxu3  ;;  %3555 = vmatpush.msra.mxu3 %v2504_v1 }
 0x4a8   : > { %v3003_v47 = vadd.f32 %v3002_v26, %v2938_v29  ;;  %3360 = vmatpush.msra.mxu0 %v2312_v50  ;;  %3425 = vmatpush.msra.mxu1 %v2376_v7 }
 0x4aa   : > { %v11043_v9 = vadd.f32 %v3067_v37, %v3003_v47  ;;  %v2878_v63 = vpop.f32.mrf.mxu0  ;;  %v2943_v59 = vpop.f32.mrf.mxu1 }
 0x4ab   : > { %v2944_v34 = vadd.f32 %v2943_v59, %v2878_v63 }
 0x4ac   : > { %14790 = vst [vmem:[#allocation198_spill] sm:$0xff] %v11043_v9  ;;  %3264 = vmatmul.f32.gmra.mxu2 %v10449_v12  ;;  %3329 = vmatmul.f32.gmra.mxu3 %v10451_v16  ;;  %v14793_v9 = vld [vmem:[#allocation161_spill] sm:$0xff] }
 0x4ad   : > { %3137 = vmatmul.f32.gmra.mxu0 %v10453_v35  ;;  %3202 = vmatmul.f32.gmra.mxu1 %v14791_v33  ;;  %v14794_v33 = vld [vmem:[#allocation162_spill] sm:$0xff] }
 0x4af   : > { %v3005_v48 = vpop.f32.mrf.mxu2  ;;  %v3070_v40 = vpop.f32.mrf.mxu3 }
 0x4b0   : > { %v3006_v29 = vadd.f32 %v3005_v48, %v2941_v11  ;;  %v14796_v11 = vld [vmem:[#allocation163_spill] sm:$0xff]  ;;  %v14797_v48 = vld [vmem:[#allocation164_spill] sm:$0xff] }
 0x4b2   : > { %v11067_v26 = vadd.f32 %v3070_v40, %v3006_v29  ;;  %v2881_v37 = vpop.f32.mrf.mxu0  ;;  %v2946_v47 = vpop.f32.mrf.mxu1  ;;  %v14798_v40 = vld [vmem:[#allocation165_spill] sm:$0xff]  ;;  %v14799_v29 = vld [vmem:[#allocation166_spill] sm:$0xff] }
 0x4b4   : > { %14792 = vst [vmem:[#allocation199_spill] sm:$0xff] %v11067_v26  ;;  %3267 = vmatmul.f32.gmra.mxu2 %v10473_v38  ;;  %3332 = vmatmul.f32.gmra.mxu3 %v10475_v41  ;;  %v2947_v26 = vadd.f32 %v2946_v47, %v2881_v37 }
 0x4b5   : > { %3140 = vmatmul.f32.gmra.mxu0 %v14793_v9  ;;  %3205 = vmatmul.f32.gmra.mxu1 %v14794_v33 }
 0x4b7   : > { %v3008_v27 = vpop.f32.mrf.mxu2  ;;  %v3073_v20 = vpop.f32.mrf.mxu3 }
 0x4b8   : > { %v3009_v50 = vadd.f32 %v3008_v27, %v2944_v34  ;;  %v14801_v27 = vld [vmem:[#allocation168_spill] sm:$0xff] }
 0x4ba   : > { %v11073_v35 = vadd.f32 %v3073_v20, %v3009_v50  ;;  %v2884_v7 = vpop.f32.mrf.mxu0  ;;  %v2949_v1 = vpop.f32.mrf.mxu1  ;;  %v14802_v20 = vld [vmem:[#allocation170_spill] sm:$0xff] }
 0x4bb   : > { %v2950_v50 = vadd.f32 %v2949_v1, %v2884_v7 }
 0x4bc   : > { %14795 = vst [vmem:[#allocation200_spill] sm:$0xff] %v11073_v35  ;;  %3270 = vmatmul.f32.gmra.mxu2 %v14796_v11  ;;  %3335 = vmatmul.f32.gmra.mxu3 %v14797_v48 }
 0x4bd   : > { %3143 = vmatmul.f32.gmra.mxu0 %v14798_v40  ;;  %3208 = vmatmul.f32.gmra.mxu1 %v14799_v29 }
 0x4bf   : > { %v3011_v9 = vpop.f32.mrf.mxu2  ;;  %v3076_v41 = vpop.f32.mrf.mxu3 }
 0x4c0   : > { %v3012_v33 = vadd.f32 %v3011_v9, %v2947_v26  ;;  %v14806_v26 = vld [vmem:[#allocation151_spill] sm:$0xff] }
 0x4c2   : > { %v11079_v63 = vadd.f32 %v3076_v41, %v3012_v33  ;;  %v2887_v59 = vpop.f32.mrf.mxu0  ;;  %v2952_v34 = vpop.f32.mrf.mxu1  ;;  %v14804_v41 = vld [vmem:[#allocation171_spill] sm:$0xff]  ;;  %v14805_v33 = vld [vmem:[#allocation172_spill] sm:$0xff] }
 0x4c4   : > { %14800 = vst [vmem:[#allocation163_spill] sm:$0xff] %v11079_v63  ;;  %3273 = vmatmul.f32.gmra.mxu2 %v10515_v31  ;;  %3338 = vmatmul.f32.gmra.mxu3 %v14801_v27  ;;  %v14807_v63 = vld [vmem:[#allocation152_spill] sm:$0xff]  ;;  %v2953_v27 = vadd.f32 %v2952_v34, %v2887_v59 }
 0x4c5   : > { %3146 = vmatmul.f32.gmra.mxu0 %v14770_v55  ;;  %3211 = vmatmul.f32.gmra.mxu1 %v14802_v20 }
 0x4c7   : > { %v3014_v35 = vpop.f32.mrf.mxu2  ;;  %v3079_v40 = vpop.f32.mrf.mxu3 }
 0x4c8   : > { %v3015_v29 = vadd.f32 %v3014_v35, %v2950_v50  ;;  %v14810_v50 = vld [vmem:[#allocation156_spill] sm:$0xff] }
 0x4ca   : > { %v11085_v37 = vadd.f32 %v3079_v40, %v3015_v29  ;;  %v3102_v47 = vpop.f32.mrf.mxu0  ;;  %v3167_v9 = vpop.f32.mrf.mxu1  ;;  %v14808_v40 = vld [vmem:[#allocation153_spill] sm:$0xff]  ;;  %v14809_v29 = vld [vmem:[#allocation154_spill] sm:$0xff] }
 0x4cc   : > { %14803 = vst [vmem:[#allocation164_spill] sm:$0xff] %v11085_v37  ;;  %3276 = vmatmul.f32.gmra.mxu2 %v14804_v41  ;;  %3341 = vmatmul.f32.gmra.mxu3 %v14805_v33  ;;  %v3168_v37 = vadd.f32 %v3167_v9, %v3102_v47 }
 0x4cd   : > { %3361 = vmatmul.f32.vlgmr.msra.gmra.mxu0 %v14806_v26  ;;  %3426 = vmatmul.f32.vlgmr.msra.gmra.mxu1 %v14807_v63 }
 0x4cf   : > { %v3017_v55 = vpop.f32.mrf.mxu2  ;;  %v3082_v31 = vpop.f32.mrf.mxu3 }
 0x4d0   : > { %v3018_v20 = vadd.f32 %v3017_v55, %v2953_v27 }
 0x4d2   : > { %v11091_v7 = vadd.f32 %v3082_v31, %v3018_v20  ;;  %v3105_v1 = vpop.f32.mrf.mxu0  ;;  %v3170_v35 = vpop.f32.mrf.mxu1 }
 0x4d3   : > { %v3171_v31 = vadd.f32 %v3170_v35, %v3105_v1 }
 0x4d4   : > { %3491 = vmatmul.f32.vlgmr.msra.gmra.mxu2 %v14808_v40  ;;  %3556 = vmatmul.f32.vlgmr.msra.gmra.mxu3 %v14809_v29 }
 0x4d5   : > { %3364 = vmatmul.f32.gmra.mxu0 %v14778_v3  ;;  %3429 = vmatmul.f32.gmra.mxu1 %v14810_v50 }
 0x4d7   : > { %v3232_v26 = vpop.f32.mrf.mxu2  ;;  %v3297_v33 = vpop.f32.mrf.mxu3 }
 0x4d8   : > { %v3233_v63 = vadd.f32 %v3232_v26, %v3168_v37 }
 0x4da   : > { %v11097_v59 = vadd.f32 %v3297_v33, %v3233_v63  ;;  %v3108_v34 = vpop.f32.mrf.mxu0  ;;  %v3173_v55 = vpop.f32.mrf.mxu1 }
 0x4dc   : > { %3494 = vmatmul.f32.gmra.mxu2 %v10209_v44  ;;  %3559 = vmatmul.f32.gmra.mxu3 %v10211_v6  ;;  %v3174_v44 = vadd.f32 %v3173_v55, %v3108_v34 }
 0x4dd   : > { %3367 = vmatmul.f32.gmra.mxu0 %v10213_v42  ;;  %3432 = vmatmul.f32.gmra.mxu1 %v10215_v0 }
 0x4df   : > { %v3235_v3 = vpop.f32.mrf.mxu2  ;;  %v3300_v27 = vpop.f32.mrf.mxu3 }
 0x4e0   : > { %v3236_v20 = vadd.f32 %v3235_v3, %v3171_v31 }
 0x4e2   : > { %v11103_v47 = vadd.f32 %v3300_v27, %v3236_v20  ;;  %v3111_v9 = vpop.f32.mrf.mxu0  ;;  %v3176_v37 = vpop.f32.mrf.mxu1 }
 0x4e4   : > { %3497 = vmatmul.f32.gmra.mxu2 %v10233_v52  ;;  %3562 = vmatmul.f32.gmra.mxu3 %v10235_v30  ;;  %v3177_v52 = vadd.f32 %v3176_v37, %v3111_v9 }
 0x4e5   : > { %3370 = vmatmul.f32.gmra.mxu0 %v10237_v36  ;;  %3435 = vmatmul.f32.gmra.mxu1 %v10239_v53 }
 0x4e7   : > { %v3238_v6 = vpop.f32.mrf.mxu2  ;;  %v3303_v42 = vpop.f32.mrf.mxu3 }
 0x4e8   : > { %v3239_v0 = vadd.f32 %v3238_v6, %v3174_v44 }
 0x4ea   : > { %v11109_v33 = vadd.f32 %v3303_v42, %v3239_v0  ;;  %v3114_v1 = vpop.f32.mrf.mxu0  ;;  %v3179_v35 = vpop.f32.mrf.mxu1 }
 0x4ec   : > { %3500 = vmatmul.f32.gmra.mxu2 %v10257_v8  ;;  %3565 = vmatmul.f32.gmra.mxu3 %v10259_v45  ;;  %v3180_v8 = vadd.f32 %v3179_v35, %v3114_v1 }
 0x4ed   : > { %3373 = vmatmul.f32.gmra.mxu0 %v10261_v18  ;;  %3438 = vmatmul.f32.gmra.mxu1 %v10263_v60 }
 0x4ef   : > { %v3241_v30 = vpop.f32.mrf.mxu2  ;;  %v3306_v36 = vpop.f32.mrf.mxu3 }
 0x4f0   : > { %v3242_v53 = vadd.f32 %v3241_v30, %v3177_v52 }
 0x4f2   : > { %v11115_v40 = vadd.f32 %v3306_v36, %v3242_v53  ;;  %v3117_v29 = vpop.f32.mrf.mxu0  ;;  %v3182_v50 = vpop.f32.mrf.mxu1 }
 0x4f4   : > { %3503 = vmatmul.f32.gmra.mxu2 %v10281_v54  ;;  %3568 = vmatmul.f32.gmra.mxu3 %v10283_v5  ;;  %v3183_v54 = vadd.f32 %v3182_v50, %v3117_v29 }
 0x4f5   : > { %3376 = vmatmul.f32.gmra.mxu0 %v10285_v23  ;;  %3441 = vmatmul.f32.gmra.mxu1 %v10287_v22 }
 0x4f7   : > { %v3244_v45 = vpop.f32.mrf.mxu2  ;;  %v3309_v18 = vpop.f32.mrf.mxu3 }
 0x4f8   : > { %v3245_v60 = vadd.f32 %v3244_v45, %v3180_v8 }
 0x4fa   : > { %v11121_v26 = vadd.f32 %v3309_v18, %v3245_v60  ;;  %v3120_v63 = vpop.f32.mrf.mxu0  ;;  %v3185_v34 = vpop.f32.mrf.mxu1  ;;  %v14814_v18 = vld [vmem:[#allocation158_spill] sm:$0xff] }
 0x4fc   : > { %3506 = vmatmul.f32.gmra.mxu2 %v10305_v46  ;;  %3571 = vmatmul.f32.gmra.mxu3 %v10307_v24  ;;  %v3186_v46 = vadd.f32 %v3185_v34, %v3120_v63 }
 0x4fd   : > { %3379 = vmatmul.f32.gmra.mxu0 %v10309_v19  ;;  %3444 = vmatmul.f32.gmra.mxu1 %v10311_v61 }
 0x4ff   : > { %v3247_v5 = vpop.f32.mrf.mxu2  ;;  %v3312_v23 = vpop.f32.mrf.mxu3 }
 0x500   : > { %v3248_v22 = vadd.f32 %v3247_v5, %v3183_v54 }
 0x502   : > { %v11127_v55 = vadd.f32 %v3312_v23, %v3248_v22  ;;  %v3123_v31 = vpop.f32.mrf.mxu0  ;;  %v3188_v3 = vpop.f32.mrf.mxu1  ;;  %v14817_v23 = vld [vmem:[#allocation160_spill] sm:$0xff]  ;;  %v14818_v22 = vld [vmem:[#allocation161_spill] sm:$0xff] }
 0x504   : > { %3509 = vmatmul.f32.gmra.mxu2 %v10329_v57  ;;  %3574 = vmatmul.f32.gmra.mxu3 %v10331_v15  ;;  %v3189_v57 = vadd.f32 %v3188_v3, %v3123_v31 }
 0x505   : > { %3382 = vmatmul.f32.gmra.mxu0 %v10333_v62  ;;  %3447 = vmatmul.f32.gmra.mxu1 %v10335_v2 }
 0x507   : > { %v3250_v24 = vpop.f32.mrf.mxu2  ;;  %v3315_v19 = vpop.f32.mrf.mxu3 }
 0x508   : > { %v3251_v61 = vadd.f32 %v3250_v24, %v3186_v46 }
 0x50a   : > { %v11133_v27 = vadd.f32 %v3315_v19, %v3251_v61  ;;  %v3126_v20 = vpop.f32.mrf.mxu0  ;;  %v3191_v9 = vpop.f32.mrf.mxu1 }
 0x50b   : > { %v3192_v37 = vadd.f32 %v3191_v9, %v3126_v20  ;;  %v14820_v20 = vld [vmem:[#allocation165_spill] sm:$0xff] }
 0x50c   : > { %3512 = vmatmul.f32.gmra.mxu2 %v10353_v51  ;;  %3577 = vmatmul.f32.gmra.mxu3 %v10355_v39 }
 0x50d   : > { %3385 = vmatmul.f32.gmra.mxu0 %v10357_v13  ;;  %3450 = vmatmul.f32.gmra.mxu1 %v10359_v4 }
 0x50f   : > { %v3253_v15 = vpop.f32.mrf.mxu2  ;;  %v3318_v62 = vpop.f32.mrf.mxu3 }
 0x510   : > { %v3254_v2 = vadd.f32 %v3253_v15, %v3189_v57 }
 0x512   : > { %v11139_v44 = vadd.f32 %v3318_v62, %v3254_v2  ;;  %v3129_v6 = vpop.f32.mrf.mxu0  ;;  %v3194_v42 = vpop.f32.mrf.mxu1 }
 0x513   : > { %v3195_v0 = vadd.f32 %v3194_v42, %v3129_v6  ;;  %v14822_v42 = vld [vmem:[#allocation167_spill] sm:$0xff] }
 0x514   : > { %3515 = vmatmul.f32.gmra.mxu2 %v10377_v43  ;;  %3580 = vmatmul.f32.gmra.mxu3 %v10379_v14 }
 0x515   : > { %3388 = vmatmul.f32.gmra.mxu0 %v10381_v17  ;;  %3453 = vmatmul.f32.gmra.mxu1 %v10383_v28 }
 0x517   : > { %v3256_v51 = vpop.f32.mrf.mxu2  ;;  %v3321_v39 = vpop.f32.mrf.mxu3 }
 0x518   : > { %v3257_v13 = vadd.f32 %v3256_v51, %v3192_v37  ;;  %v14824_v51 = vld [vmem:[#allocation169_spill] sm:$0xff] }
 0x51a   : > { %v11145_v4 = vadd.f32 %v3321_v39, %v3257_v13  ;;  %v3132_v1 = vpop.f32.mrf.mxu0  ;;  %v3197_v35 = vpop.f32.mrf.mxu1 }
 0x51b   : > { %v3198_v52 = vadd.f32 %v3197_v35, %v3132_v1 }
 0x51c   : > { %3518 = vmatmul.f32.gmra.mxu2 %v10401_v58  ;;  %3583 = vmatmul.f32.gmra.mxu3 %v10403_v56  ;;  %v14812_v58 = vld [vmem:[#allocation157_spill] sm:$0xff] }
 0x51d   : > { %3391 = vmatmul.f32.gmra.mxu0 %v10405_v21  ;;  %3456 = vmatmul.f32.gmra.mxu1 %v10407_v25 }
 0x51f   : > { %v3259_v43 = vpop.f32.mrf.mxu2  ;;  %v3324_v14 = vpop.f32.mrf.mxu3 }
 0x520   : > { %v3260_v17 = vadd.f32 %v3259_v43, %v3195_v0  ;;  %v14823_v0 = vld [vmem:[#allocation168_spill] sm:$0xff] }
 0x521   : > { %v14827_v43 = vld [vmem:[#allocation172_spill] sm:$0xff] }
 0x522   : > { %v11151_v28 = vadd.f32 %v3324_v14, %v3260_v17  ;;  %v3135_v30 = vpop.f32.mrf.mxu0  ;;  %v3200_v36 = vpop.f32.mrf.mxu1 }
 0x523   : > { %v3201_v53 = vadd.f32 %v3200_v36, %v3135_v30 }
 0x524   : > { %14811 = vst [vmem:[#allocation171_spill] sm:$0xff] %v11151_v28  ;;  %3521 = vmatmul.f32.gmra.mxu2 %v10425_v32  ;;  %3586 = vmatmul.f32.gmra.mxu3 %v10427_v10  ;;  %v14815_v32 = vld [vmem:[#allocation159_spill] sm:$0xff] }
 0x525   : > { %3394 = vmatmul.f32.gmra.mxu0 %v10429_v49  ;;  %3459 = vmatmul.f32.gmra.mxu1 %v14812_v58 }
 0x527   : > { %v3262_v56 = vpop.f32.mrf.mxu2  ;;  %v3327_v21 = vpop.f32.mrf.mxu3 }
 0x528   : > { %v3263_v29 = vadd.f32 %v3262_v56, %v3198_v52 }
 0x52a   : > { %v11157_v25 = vadd.f32 %v3327_v21, %v3263_v29  ;;  %v3138_v50 = vpop.f32.mrf.mxu0  ;;  %v3203_v8 = vpop.f32.mrf.mxu1 }
 0x52b   : > { %v3204_v45 = vadd.f32 %v3203_v8, %v3138_v50  ;;  %v14828_v8 = vld [vmem:[#allocation155_spill] sm:$0xff] }
 0x52c   : > { %14813 = vst [vmem:[#allocation151_spill] sm:$0xff] %v11157_v25  ;;  %3524 = vmatmul.f32.gmra.mxu2 %v10449_v12  ;;  %3589 = vmatmul.f32.gmra.mxu3 %v10451_v16  ;;  %v14819_v12 = vld [vmem:[#allocation162_spill] sm:$0xff] }
 0x52d   : > { %3397 = vmatmul.f32.gmra.mxu0 %v14814_v18  ;;  %3462 = vmatmul.f32.gmra.mxu1 %v14815_v32 }
 0x52f   : > { %v3265_v10 = vpop.f32.mrf.mxu2  ;;  %v3330_v49 = vpop.f32.mrf.mxu3 }
 0x530   : > { %v3266_v60 = vadd.f32 %v3265_v10, %v3201_v53 }
 0x532   : > { %v11163_v63 = vadd.f32 %v3330_v49, %v3266_v60  ;;  %v3141_v34 = vpop.f32.mrf.mxu0  ;;  %v3206_v54 = vpop.f32.mrf.mxu1 }
 0x533   : > { %v3207_v5 = vadd.f32 %v3206_v54, %v3141_v34 }
 0x534   : > { %14816 = vst [vmem:[#allocation152_spill] sm:$0xff] %v11163_v63  ;;  %3527 = vmatmul.f32.gmra.mxu2 %v10473_v38  ;;  %3592 = vmatmul.f32.gmra.mxu3 %v14817_v23  ;;  %v14821_v38 = vld [vmem:[#allocation166_spill] sm:$0xff] }
 0x535   : > { %3400 = vmatmul.f32.gmra.mxu0 %v14818_v22  ;;  %3465 = vmatmul.f32.gmra.mxu1 %v14819_v12 }
 0x537   : > { %v3268_v16 = vpop.f32.mrf.mxu2  ;;  %v3333_v31 = vpop.f32.mrf.mxu3 }
 0x538   : > { %v3269_v3 = vadd.f32 %v3268_v16, %v3204_v45  ;;  %v14829_v45 = vld [vmem:[#allocation173_spill] sm:$0xff] }
 0x539   : > { %v3677_v18 = vmax.f32 %v14829_v45, %v14828_v8  ;;  %v14831_v16 = vld [vmem:[#allocation189_spill] sm:$0xff] }
 0x53a   : > { %v11169_v46 = vadd.f32 %v3333_v31, %v3269_v3  ;;  %v3144_v24 = vpop.f32.mrf.mxu0  ;;  %v3209_v19 = vpop.f32.mrf.mxu1  ;;  %v14832_v31 = vld [vmem:[#allocation174_spill] sm:$0xff] }
 0x53b   : > { %v3210_v61 = vadd.f32 %v3209_v19, %v3144_v24  ;;  %v3682_v3 = vmax.f32 %v14832_v31, %v14831_v16 }
 0x53c   : > { %3530 = vmatmul.f32.gmra.mxu2 %v14796_v11  ;;  %3595 = vmatmul.f32.gmra.mxu3 %v14797_v48  ;;  %v14825_v11 = vld [vmem:[#allocation170_spill] sm:$0xff] }
 0x53d   : > { %3403 = vmatmul.f32.gmra.mxu0 %v14820_v20  ;;  %3468 = vmatmul.f32.gmra.mxu1 %v14821_v38  ;;  %v3683_v20 = vmax.f32 %v3682_v3, %v11103_v47 }
 0x53f   : > { %v3271_v9 = vpop.f32.mrf.mxu2  ;;  %v3336_v37 = vpop.f32.mrf.mxu3 }
 0x540   : > { %v3272_v57 = vadd.f32 %v3271_v9, %v3207_v5 }
 0x542   : > { %v11175_v15 = vadd.f32 %v3336_v37, %v3272_v57  ;;  %v3147_v62 = vpop.f32.mrf.mxu0  ;;  %v3212_v2 = vpop.f32.mrf.mxu1 }
 0x543   : > { %v3213_v6 = vadd.f32 %v3212_v2, %v3147_v62 }
 0x544   : > { %3533 = vmatmul.f32.gmra.mxu2 %v14822_v42  ;;  %3598 = vmatmul.f32.gmra.mxu3 %v14823_v0  ;;  %v14834_v42 = vld [vmem:[#allocation175_spill] sm:$0xff] }
 0x545   : > { %3406 = vmatmul.f32.gmra.mxu0 %v14824_v51  ;;  %3471 = vmatmul.f32.gmra.mxu1 %v14825_v11 }
 0x547   : > { %v3274_v48 = vpop.f32.mrf.mxu2  ;;  %v3339_v39 = vpop.f32.mrf.mxu3 }
 0x548   : > { %v3275_v13 = vadd.f32 %v3274_v48, %v3210_v61 }
 0x54a   : > { %v11181_v1 = vadd.f32 %v3339_v39, %v3275_v13  ;;  %v3362_v35 = vpop.f32.mrf.mxu0  ;;  %v3427_v52 = vpop.f32.mrf.mxu1 }
 0x54b   : > { %v3428_v56 = vadd.f32 %v3427_v52, %v3362_v35 }
 0x54c   : > { %14826 = vst [vmem:[#allocation153_spill] sm:$0xff] %v11181_v1  ;;  %3536 = vmatmul.f32.gmra.mxu2 %v14804_v41  ;;  %3601 = vmatmul.f32.gmra.mxu3 %v14827_v43  ;;  %v3678_v41 = vmax.f32 %v3677_v18, %v11097_v59 }
 0x54f   : > { %v3277_v14 = vpop.f32.mrf.mxu2  ;;  %v3342_v17 = vpop.f32.mrf.mxu3 }
 0x550   : > { %v3278_v30 = vadd.f32 %v3277_v14, %v3213_v6  ;;  %v14833_v6 = vld [vmem:[#allocation190_spill] sm:$0xff] }
 0x551   : > { %v3687_v0 = vmax.f32 %v14834_v42, %v14833_v6 }
 0x552   : > { %v11185_v36 = vadd.f32 %v3342_v17, %v3278_v30  ;;  %v3365_v53 = vpop.f32.mrf.mxu0  ;;  %v3430_v58 = vpop.f32.mrf.mxu1  ;;  %v14835_v30 = vld [vmem:[#allocation191_spill] sm:$0xff] }
 0x553   : > { %v3431_v5 = vadd.f32 %v3430_v58, %v3365_v53  ;;  %v3688_v39 = vmax.f32 %v3687_v0, %v11109_v33  ;;  %v14836_v53 = vld [vmem:[#allocation176_spill] sm:$0xff]  ;;  %v14840_v0 = vld [vmem:[#allocation178_spill] sm:$0xff] }
 0x554   : > { %v3692_v58 = vmax.f32 %v14836_v53, %v14835_v30 }
 0x557   : > { %v3492_v21 = vpop.f32.mrf.mxu2  ;;  %v3557_v29 = vpop.f32.mrf.mxu3 }
 0x558   : > { %v3493_v50 = vadd.f32 %v3492_v21, %v3428_v56 }
 0x55a   : > { %v3558_v32 = vadd.f32 %v3557_v29, %v3493_v50  ;;  %v3368_v10 = vpop.f32.mrf.mxu0  ;;  %v3433_v49 = vpop.f32.mrf.mxu1  ;;  %v3693_v50 = vmax.f32 %v3692_v58, %v11115_v40 }
 0x55b   : > { %v3434_v37 = vadd.f32 %v3433_v49, %v3368_v10 }
 0x55c   : > { %v11192_v34 = vsel %vm1085_vm0, %v3558_v32, -1e+30 }
 0x55d   : > { %v3679_v54 = vmax.f32 %v3678_v41, %v11192_v34 }
 0x55f   : > { %v3495_v23 = vpop.f32.mrf.mxu2  ;;  %v3560_v22 = vpop.f32.mrf.mxu3  ;;  %3680 = vmax.xlane.f32.xlu0 %v3679_v54 }
 0x560   : > { %v3496_v12 = vadd.f32 %v3495_v23, %v3431_v5  ;;  %v14837_v5 = vld [vmem:[#allocation192_spill] sm:$0xff]  ;;  %v14838_v23 = vld [vmem:[#allocation177_spill] sm:$0xff] }
 0x562   : > { %v3561_v24 = vadd.f32 %v3560_v22, %v3496_v12  ;;  %v3371_v19 = vpop.f32.mrf.mxu0  ;;  %v3436_v61 = vpop.f32.mrf.mxu1  ;;  %v3697_v22 = vmax.f32 %v14838_v23, %v14837_v5 }
 0x563   : > { %v3437_v52 = vadd.f32 %v3436_v61, %v3371_v19 }
 0x564   : > { %v11200_v38 = vsel %vm1085_vm0, %v3561_v24, -1e+30  ;;  %v3698_v19 = vmax.f32 %v3697_v22, %v11121_v26 }
 0x565   : > { %v3684_v9 = vmax.f32 %v3683_v20, %v11200_v38 }
 0x567   : > { %v3498_v57 = vpop.f32.mrf.mxu2  ;;  %v3563_v62 = vpop.f32.mrf.mxu3  ;;  %3685 = vmax.xlane.f32.xlu0 %v3684_v9 }
 0x568   : > { %v3499_v2 = vadd.f32 %v3498_v57, %v3434_v37 }
 0x56a   : > { %v3564_v51 = vadd.f32 %v3563_v62, %v3499_v2  ;;  %v3374_v11 = vpop.f32.mrf.mxu0  ;;  %v3439_v48 = vpop.f32.mrf.mxu1  ;;  %v14839_v2 = vld [vmem:[#allocation193_spill] sm:$0xff] }
 0x56b   : > { %v3440_v10 = vadd.f32 %v3439_v48, %v3374_v11 }
 0x56c   : > { %v11208_v13 = vsel %vm1085_vm0, %v3564_v51, -1e+30  ;;  %v3702_v51 = vmax.f32 %v14840_v0, %v14839_v2 }
 0x56d   : > { %v3689_v35 = vmax.f32 %v3688_v39, %v11208_v13 }
 0x56f   : > { %v3501_v43 = vpop.f32.mrf.mxu2  ;;  %v3566_v14 = vpop.f32.mrf.mxu3  ;;  %3690 = vmax.xlane.f32.xlu1 %v3689_v35  ;;  %v3703_v35 = vmax.f32 %v3702_v51, %v11127_v55 }
 0x570   : > { %v3502_v17 = vadd.f32 %v3501_v43, %v3437_v52 }
 0x572   : > { %v3567_v56 = vadd.f32 %v3566_v14, %v3502_v17  ;;  %v3377_v21 = vpop.f32.mrf.mxu0  ;;  %v3442_v29 = vpop.f32.mrf.mxu1 }
 0x573   : > { %v3443_v9 = vadd.f32 %v3442_v29, %v3377_v21  ;;  %v14841_v21 = vld [vmem:[#allocation194_spill] sm:$0xff]  ;;  %v14842_v29 = vld [vmem:[#allocation179_spill] sm:$0xff] }
 0x574   : > { %v11216_v18 = vsel %vm1085_vm0, %v3567_v56, -1e+30 }
 0x575   : > { %v3694_v32 = vmax.f32 %v3693_v50, %v11216_v18  ;;  %v3707_v50 = vmax.f32 %v14842_v29, %v14841_v21 }
 0x577   : > { %v3504_v49 = vpop.f32.mrf.mxu2  ;;  %v3569_v41 = vpop.f32.mrf.mxu3  ;;  %3695 = vmax.xlane.f32.xlu1 %v3694_v32 }
 0x578   : > { %v3505_v54 = vadd.f32 %v3504_v49, %v3440_v10 }
 0x57a   : > { %v3570_v12 = vadd.f32 %v3569_v41, %v3505_v54  ;;  %v3380_v3 = vpop.f32.mrf.mxu0  ;;  %v3445_v24 = vpop.f32.mrf.mxu1  ;;  %v3708_v41 = vmax.f32 %v3707_v50, %v11133_v27 }
 0x57b   : > { %v3446_v14 = vadd.f32 %v3445_v24, %v3380_v3 }
 0x57c   : > { %v11224_v61 = vsel %vm1085_vm0, %v3570_v12, -1e+30 }
 0x57d   : > { %v3699_v20 = vmax.f32 %v3698_v19, %v11224_v61 }
 0x57f   : > { %v3507_v37 = vpop.f32.mrf.mxu2  ;;  %v3572_v57 = vpop.f32.mrf.mxu3  ;;  %3700 = vmax.xlane.f32.xlu2 %v3699_v20  ;;  %v14843_v20 = vld [vmem:[#allocation195_spill] sm:$0xff] }
 0x580   : > { %v3508_v62 = vadd.f32 %v3507_v37, %v3443_v9  ;;  %v14844_v9 = vld [vmem:[#allocation180_spill] sm:$0xff] }
 0x581   : > { %v3712_v37 = vmax.f32 %v14844_v9, %v14843_v20 }
 0x582   : > { %v3573_v11 = vadd.f32 %v3572_v57, %v3508_v62  ;;  %v3383_v48 = vpop.f32.mrf.mxu0  ;;  %v3448_v39 = vpop.f32.mrf.mxu1 }
 0x583   : > { %v3449_v12 = vadd.f32 %v3448_v39, %v3383_v48 }
 0x584   : > { %v11232_v52 = vsel %vm1085_vm0, %v3573_v11, -1e+30  ;;  %v3713_v11 = vmax.f32 %v3712_v37, %v11139_v44 }
 0x585   : > { %v3704_v43 = vmax.f32 %v3703_v35, %v11232_v52 }
 0x587   : > { %v3510_v17 = vpop.f32.mrf.mxu2  ;;  %v3575_v58 = vpop.f32.mrf.mxu3  ;;  %3705 = vmax.xlane.f32.xlu2 %v3704_v43 }
 0x588   : > { %v3511_v56 = vadd.f32 %v3510_v17, %v3446_v14 }
 0x58a   : > { %v3576_v32 = vadd.f32 %v3575_v58, %v3511_v56  ;;  %v3386_v10 = vpop.f32.mrf.mxu0  ;;  %v3451_v49 = vpop.f32.mrf.mxu1  ;;  %v14845_v58 = vld [vmem:[#allocation196_spill] sm:$0xff]  ;;  %v14846_v56 = vld [vmem:[#allocation181_spill] sm:$0xff] }
 0x58b   : > { %v3452_v14 = vadd.f32 %v3451_v49, %v3386_v10  ;;  %v3717_v50 = vmax.f32 %v14846_v56, %v14845_v58 }
 0x58c   : > { %v11240_v54 = vsel %vm1085_vm0, %v3576_v32, -1e+30 }
 0x58d   : > { %v3709_v22 = vmax.f32 %v3708_v41, %v11240_v54 }
 0x58f   : > { %v3513_v3 = vpop.f32.mrf.mxu2  ;;  %v3578_v24 = vpop.f32.mrf.mxu3  ;;  %3710 = vmax.xlane.f32.xlu0 %v3709_v22 }
 0x590   : > { %v3514_v19 = vadd.f32 %v3513_v3, %v3449_v12  ;;  %v3718_v12 = vmax.f32 %v3717_v50, %v11145_v4 }
 0x592   : > { %v3579_v57 = vadd.f32 %v3578_v24, %v3514_v19  ;;  %v3389_v62 = vpop.f32.mrf.mxu0  ;;  %v3454_v51 = vpop.f32.mrf.mxu1 }
 0x593   : > { %v3455_v19 = vadd.f32 %v3454_v51, %v3389_v62 }
 0x594   : > { %v11248_v35 = vsel %vm1085_vm0, %v3579_v57, -1e+30  ;;  %v14848_v57 = vld [vmem:[#allocation197_spill] sm:$0xff] }
 0x595   : > { %v3714_v43 = vmax.f32 %v3713_v11, %v11248_v35  ;;  %v14849_v11 = vld [vmem:[#allocation182_spill] sm:$0xff] }
 0x597   : > { %v3516_v48 = vpop.f32.mrf.mxu2  ;;  %v3581_v39 = vpop.f32.mrf.mxu3  ;;  %3715 = vmax.xlane.f32.xlu1 %v3714_v43  ;;  %v3722_v43 = vmax.f32 %v14849_v11, %v14848_v57 }
 0x598   : > { %v3517_v17 = vadd.f32 %v3516_v48, %v3452_v14 }
 0x59a   : > { %v3582_v32 = vadd.f32 %v3581_v39, %v3517_v17  ;;  %v3392_v41 = vpop.f32.mrf.mxu0  ;;  %v3457_v22 = vpop.f32.mrf.mxu1  ;;  %v3723_v17 = vmax.f32 %v3722_v43, %v11151_v28 }
 0x59c   : > { %v11256_v3 = vsel %vm1085_vm0, %v3582_v32, -1e+30 }
 0x59d   : > { %14847 = vst [vmem:[#allocation154_spill] sm:$0xff] %v11256_v3  ;;  %v3719_v24 = vmax.f32 %v3718_v12, %v11256_v3  ;;  %v3458_v12 = vadd.f32 %v3457_v22, %v3392_v41 }
 0x59f   : > { %v3519_v10 = vpop.f32.mrf.mxu2  ;;  %v3584_v49 = vpop.f32.mrf.mxu3  ;;  %3720 = vmax.xlane.f32.xlu2 %v3719_v24 }
 0x5a0   : > { %v3520_v37 = vadd.f32 %v3519_v10, %v3455_v19  ;;  %v14851_v19 = vld [vmem:[#allocation198_spill] sm:$0xff]  ;;  %v14852_v10 = vld [vmem:[#allocation183_spill] sm:$0xff] }
 0x5a1   : > { %v3727_v3 = vmax.f32 %v14852_v10, %v14851_v19 }
 0x5a2   : > { %v3585_v14 = vadd.f32 %v3584_v49, %v3520_v37  ;;  %v3395_v48 = vpop.f32.mrf.mxu0  ;;  %v3460_v39 = vpop.f32.mrf.mxu1 }
 0x5a3   : > { %v3728_v49 = vmax.f32 %v3727_v3, %v11157_v25 }
 0x5a4   : > { %v11264_v50 = vsel %vm1085_vm0, %v3585_v14, -1e+30 }
 0x5a5   : > { %14850 = vst [vmem:[#allocation156_spill] sm:$0xff] %v11264_v50  ;;  %v3724_v32 = vmax.f32 %v3723_v17, %v11264_v50  ;;  %v3461_v17 = vadd.f32 %v3460_v39, %v3395_v48 }
 0x5a7   : > { %v3522_v62 = vpop.f32.mrf.mxu2  ;;  %v3587_v51 = vpop.f32.mrf.mxu3  ;;  %3725 = vmax.xlane.f32.xlu0 %v3724_v32 }
 0x5a8   : > { %v3523_v24 = vadd.f32 %v3522_v62, %v3458_v12  ;;  %v14854_v12 = vld [vmem:[#allocation199_spill] sm:$0xff]  ;;  %v14855_v62 = vld [vmem:[#allocation184_spill] sm:$0xff] }
 0x5a9   : > { %v3732_v50 = vmax.f32 %v14855_v62, %v14854_v12 }
 0x5aa   : > { %v3588_v57 = vadd.f32 %v3587_v51, %v3523_v24  ;;  %v3398_v43 = vpop.f32.mrf.mxu0  ;;  %v3463_v14 = vpop.f32.mrf.mxu1 }
 0x5ab   : > { %v3733_v51 = vmax.f32 %v3732_v50, %v11163_v63  ;;  %v3464_v24 = vadd.f32 %v3463_v14, %v3398_v43 }
 0x5ac   : > { %v11272_v37 = vsel %vm1085_vm0, %v3588_v57, -1e+30 }
 0x5ad   : > { %14853 = vst [vmem:[#allocation157_spill] sm:$0xff] %v11272_v37  ;;  %v3729_v28 = vmax.f32 %v3728_v49, %v11272_v37 }
 0x5af   : > { %v3525_v41 = vpop.f32.mrf.mxu2  ;;  %v3590_v22 = vpop.f32.mrf.mxu3  ;;  %3730 = vmax.xlane.f32.xlu1 %v3729_v28 }
 0x5b0   : > { %v3526_v32 = vadd.f32 %v3525_v41, %v3461_v17  ;;  %v14857_v17 = vld [vmem:[#allocation200_spill] sm:$0xff]  ;;  %v14858_v41 = vld [vmem:[#allocation185_spill] sm:$0xff] }
 0x5b1   : > { %v3737_v37 = vmax.f32 %v14858_v41, %v14857_v17 }
 0x5b2   : > { %v3591_v19 = vadd.f32 %v3590_v22, %v3526_v32  ;;  %v3401_v25 = vpop.f32.mrf.mxu0  ;;  %v3466_v49 = vpop.f32.mrf.mxu1 }
 0x5b3   : > { %v3738_v22 = vmax.f32 %v3737_v37, %v11169_v46  ;;  %v3467_v32 = vadd.f32 %v3466_v49, %v3401_v25 }
 0x5b4   : > { %v11280_v3 = vsel %vm1085_vm0, %v3591_v19, -1e+30 }
 0x5b5   : > { %14856 = vst [vmem:[#allocation158_spill] sm:$0xff] %v11280_v3  ;;  %v3734_v57 = vmax.f32 %v3733_v51, %v11280_v3  ;;  %v14859_v3 = vld [vmem:[#allocation163_spill] sm:$0xff] }
 0x5b7   : > { %v3528_v48 = vpop.f32.mrf.mxu2  ;;  %v3593_v39 = vpop.f32.mrf.mxu3  ;;  %3735 = vmax.xlane.f32.xlu2 %v3734_v57  ;;  %v14860_v57 = vld [vmem:[#allocation186_spill] sm:$0xff] }
 0x5b8   : > { %v3529_v28 = vadd.f32 %v3528_v48, %v3464_v24  ;;  %v3742_v24 = vmax.f32 %v14860_v57, %v14859_v3 }
 0x5ba   : > { %v3594_v12 = vadd.f32 %v3593_v39, %v3529_v28  ;;  %v3404_v48 = vpop.f32.mrf.mxu0  ;;  %v3469_v63 = vpop.f32.mrf.mxu1  ;;  %v3743_v39 = vmax.f32 %v3742_v24, %v11175_v15 }
 0x5bb   : > { %v3470_v28 = vadd.f32 %v3469_v63, %v3404_v48 }
 0x5bc   : > { %v11288_v50 = vsel %vm1085_vm0, %v3594_v12, -1e+30 }
 0x5bd   : > { %v3739_v19 = vmax.f32 %v3738_v22, %v11288_v50 }
 0x5bf   : > { %v3531_v43 = vpop.f32.mrf.mxu2  ;;  %v3596_v14 = vpop.f32.mrf.mxu3  ;;  %3740 = vmax.xlane.f32.xlu0 %v3739_v19  ;;  %v14861_v19 = vld [vmem:[#allocation164_spill] sm:$0xff] }
 0x5c0   : > { %v3532_v51 = vadd.f32 %v3531_v43, %v3467_v32  ;;  %v14862_v32 = vld [vmem:[#allocation187_spill] sm:$0xff] }
 0x5c1   : > { %v3747_v43 = vmax.f32 %v14862_v32, %v14861_v19 }
 0x5c2   : > { %v3597_v17 = vadd.f32 %v3596_v14, %v3532_v51  ;;  %v3407_v14 = vpop.f32.mrf.mxu0  ;;  %v3472_v51 = vpop.f32.mrf.mxu1 }
 0x5c3   : > { %v3748_v57 = vmax.f32 %v3747_v43, %v11181_v1 }
 0x5c4   : > { %v11296_v37 = vsel %vm1085_vm0, %v3597_v17, -1e+30 }
 0x5c5   : > { %v3744_v12 = vmax.f32 %v3743_v39, %v11296_v37  ;;  %v3473_v39 = vadd.f32 %v3472_v51, %v3407_v14 }
 0x5c7   : > { %v3534_v25 = vpop.f32.mrf.mxu2  ;;  %v3599_v49 = vpop.f32.mrf.mxu3  ;;  %3745 = vmax.xlane.f32.xlu1 %v3744_v12  ;;  %v14863_v12 = vld [vmem:[#allocation188_spill] sm:$0xff] }
 0x5c8   : > { %v3535_v22 = vadd.f32 %v3534_v25, %v3470_v28  ;;  %v3752_v28 = vmax.f32 %v14863_v12, %v11091_v7 }
 0x5ca   : > { %v3600_v3 = vadd.f32 %v3599_v49, %v3535_v22  ;;  %v3753_v22 = vmax.f32 %v3752_v28, %v11185_v36 }
 0x5cc   : > { %v11304_v24 = vsel %vm1085_vm0, %v3600_v3, -1e+30 }
 0x5cd   : > { %v3749_v17 = vmax.f32 %v3748_v57, %v11304_v24 }
 0x5cf   : > { %v3537_v63 = vpop.f32.mrf.mxu2  ;;  %3750 = vmax.xlane.f32.xlu2 %v3749_v17  ;;  %v3602_v25 = vpop.f32.mrf.mxu3 }
 0x5d0   : > { %v3538_v48 = vadd.f32 %v3537_v63, %v3473_v39 }
 0x5d2   : > { %v3603_v19 = vadd.f32 %v3602_v25, %v3538_v48  ;;  %v3681_v49 = vpop.xlane.xlu0 %3680 }
 0x5d3   : > { %v3757_v43 = vsub.f32 %v14829_v45, %v3681_v49  ;;  %v3758_v1 = vsub.f32 %v14828_v8, %v3681_v49  ;;  %v3759_v3 = vsub.f32 %v11097_v59, %v3681_v49  ;;  %v3760_v14 = vsub.f32 %v11192_v34, %v3681_v49 }
 0x5d4   : > { %v11315_v57 = vsel %vm1085_vm0, %v3603_v19, -1e+30 }
 0x5d5   : > { %v3821_v51 = vmul.f32 1.442695, %v3757_v43  ;;  %v3823_v17 = vmul.f32 1.442695, %v3758_v1  ;;  %v3754_v39 = vmax.f32 %v3753_v22, %v11315_v57  ;;  %v3825_v63 = vmul.f32 1.442695, %v3759_v3 }
 0x5d6   : > { %v3827_v48 = vmul.f32 1.442695, %v3760_v14 }
 0x5d7   : > { %7903 = vpow2.f32 %v3821_v51  ;;  %3755 = vmax.xlane.f32.xlu0 %v3754_v39 }
 0x5d8   : > { %7905 = vpow2.f32 %v3823_v17 }
 0x5d9   : > { %7907 = vpow2.f32 %v3825_v63 }
 0x5da   : > { %v3686_v45 = vpop.xlane.xlu0 %3685  ;;  %7909 = vpow2.f32 %v3827_v48 }
 0x5db   : > { %v3761_v8 = vsub.f32 %v14832_v31, %v3686_v45  ;;  %v3762_v59 = vsub.f32 %v14831_v16, %v3686_v45  ;;  %v3763_v60 = vsub.f32 %v11103_v47, %v3686_v45  ;;  %v3764_v1 = vsub.f32 %v11200_v38, %v3686_v45 }
 0x5dd   : > { %v11322_v19 = vpop.eup %7903  ;;  %v3829_v34 = vmul.f32 1.442695, %v3761_v8  ;;  %v3831_v28 = vmul.f32 1.442695, %v3762_v59  ;;  %v3833_v49 = vmul.f32 1.442695, %v3763_v60 }
 0x5de   : > { %v11325_v25 = vpop.eup %7905  ;;  %v3835_v16 = vmul.f32 1.442695, %v3764_v1 }
 0x5df   : > { %7911 = vpow2.f32 %v3829_v34  ;;  %v3949_v22 = vadd.f32 %v11325_v25, %v11322_v19  ;;  %v11329_v43 = vpop.eup %7907 }
 0x5e0   : > { %7913 = vpow2.f32 %v3831_v28  ;;  %v11332_v3 = vpop.eup %7909 }
 0x5e1   : > { %v3950_v47 = vadd.f32 %v11329_v43, %v3949_v22  ;;  %7915 = vpow2.f32 %v3833_v49 }
 0x5e2   : > { %v3691_v31 = vpop.xlane.xlu1 %3690  ;;  %7917 = vpow2.f32 %v3835_v16 }
 0x5e3   : > { %v3765_v38 = vsub.f32 %v14834_v42, %v3691_v31  ;;  %v3766_v14 = vsub.f32 %v14833_v6, %v3691_v31  ;;  %v3767_v51 = vsub.f32 %v11109_v33, %v3691_v31  ;;  %v3951_v17 = vadd.f32 %v11332_v3, %v3950_v47 }
 0x5e4   : > { %v3768_v63 = vsub.f32 %v11208_v13, %v3691_v31 }
 0x5e5   : > { %v11338_v39 = vpop.eup %7911  ;;  %v3837_v48 = vmul.f32 1.442695, %v3765_v38  ;;  %v3839_v45 = vmul.f32 1.442695, %v3766_v14  ;;  %v3841_v59 = vmul.f32 1.442695, %v3767_v51  ;;  %3952 = vadd.xlane.f32.xlu1 %v3951_v17 }
 0x5e6   : > { %v11341_v8 = vpop.eup %7913  ;;  %v3843_v33 = vmul.f32 1.442695, %v3768_v63 }
 0x5e7   : > { %7919 = vpow2.f32 %v3837_v48  ;;  %v3954_v42 = vadd.f32 %v11341_v8, %v11338_v39  ;;  %v11345_v6 = vpop.eup %7915 }
 0x5e8   : > { %7921 = vpow2.f32 %v3839_v45  ;;  %v11348_v34 = vpop.eup %7917 }
 0x5e9   : > { %v3955_v60 = vadd.f32 %v11345_v6, %v3954_v42  ;;  %7923 = vpow2.f32 %v3841_v59 }
 0x5ea   : > { %v3696_v1 = vpop.xlane.xlu1 %3695  ;;  %7925 = vpow2.f32 %v3843_v33 }
 0x5eb   : > { %v3769_v13 = vsub.f32 %v14836_v53, %v3696_v1  ;;  %v3770_v28 = vsub.f32 %v14835_v30, %v3696_v1  ;;  %v3771_v49 = vsub.f32 %v11115_v40, %v3696_v1  ;;  %v3956_v22 = vadd.f32 %v11348_v34, %v3955_v60 }
 0x5ec   : > { %v3772_v47 = vsub.f32 %v11216_v18, %v3696_v1 }
 0x5ed   : > { %v11354_v16 = vpop.eup %7919  ;;  %v3845_v31 = vmul.f32 1.442695, %v3769_v13  ;;  %v3847_v38 = vmul.f32 1.442695, %v3770_v28  ;;  %v3849_v51 = vmul.f32 1.442695, %v3771_v49  ;;  %3957 = vadd.xlane.f32.xlu2 %v3956_v22 }
 0x5ee   : > { %v11357_v14 = vpop.eup %7921  ;;  %v3851_v40 = vmul.f32 1.442695, %v3772_v47 }
 0x5ef   : > { %7927 = vpow2.f32 %v3845_v31  ;;  %v3959_v53 = vadd.f32 %v11357_v14, %v11354_v16  ;;  %v11361_v30 = vpop.eup %7923 }
 0x5f0   : > { %7929 = vpow2.f32 %v3847_v38  ;;  %v11364_v48 = vpop.eup %7925 }
 0x5f1   : > { %v3960_v17 = vadd.f32 %v11361_v30, %v3959_v53  ;;  %7931 = vpow2.f32 %v3849_v51 }
 0x5f2   : > { %v3701_v63 = vpop.xlane.xlu2 %3700  ;;  %7933 = vpow2.f32 %v3851_v40 }
 0x5f3   : > { %v3773_v18 = vsub.f32 %v14838_v23, %v3701_v63  ;;  %v3774_v45 = vsub.f32 %v14837_v5, %v3701_v63  ;;  %v3775_v59 = vsub.f32 %v11121_v26, %v3701_v63  ;;  %v3961_v42 = vadd.f32 %v11364_v48, %v3960_v17 }
 0x5f4   : > { %v3776_v60 = vsub.f32 %v11224_v61, %v3701_v63 }
 0x5f5   : > { %v11370_v33 = vpop.eup %7927  ;;  %v3853_v1 = vmul.f32 1.442695, %v3773_v18  ;;  %v3855_v13 = vmul.f32 1.442695, %v3774_v45  ;;  %v3857_v49 = vmul.f32 1.442695, %v3775_v59  ;;  %3962 = vadd.xlane.f32.xlu0 %v3961_v42 }
 0x5f6   : > { %v11373_v28 = vpop.eup %7929  ;;  %v3859_v26 = vmul.f32 1.442695, %v3776_v60 }
 0x5f7   : > { %7935 = vpow2.f32 %v3853_v1  ;;  %v3964_v23 = vadd.f32 %v11373_v28, %v11370_v33  ;;  %v11377_v5 = vpop.eup %7931 }
 0x5f8   : > { %7937 = vpow2.f32 %v3855_v13  ;;  %v11380_v31 = vpop.eup %7933 }
 0x5f9   : > { %v3965_v22 = vadd.f32 %v11377_v5, %v3964_v23  ;;  %7939 = vpow2.f32 %v3857_v49 }
 0x5fa   : > { %v3706_v47 = vpop.xlane.xlu2 %3705  ;;  %7941 = vpow2.f32 %v3859_v26 }
 0x5fb   : > { %v3777_v61 = vsub.f32 %v14840_v0, %v3706_v47  ;;  %v3778_v38 = vsub.f32 %v14839_v2, %v3706_v47  ;;  %v3779_v51 = vsub.f32 %v11127_v55, %v3706_v47  ;;  %v3966_v53 = vadd.f32 %v11380_v31, %v3965_v22 }
 0x5fc   : > { %v3780_v17 = vsub.f32 %v11232_v52, %v3706_v47 }
 0x5fd   : > { %v11386_v40 = vpop.eup %7935  ;;  %v3861_v63 = vmul.f32 1.442695, %v3777_v61  ;;  %v3863_v18 = vmul.f32 1.442695, %v3778_v38  ;;  %v3865_v59 = vmul.f32 1.442695, %v3779_v51  ;;  %3967 = vadd.xlane.f32.xlu1 %v3966_v53 }
 0x5fe   : > { %v11389_v45 = vpop.eup %7937  ;;  %v3867_v55 = vmul.f32 1.442695, %v3780_v17 }
 0x5ff   : > { %7943 = vpow2.f32 %v3861_v63  ;;  %v3969_v0 = vadd.f32 %v11389_v45, %v11386_v40  ;;  %v11393_v2 = vpop.eup %7939 }
 0x600   : > { %7945 = vpow2.f32 %v3863_v18  ;;  %v11396_v1 = vpop.eup %7941 }
 0x601   : > { %v3970_v42 = vadd.f32 %v11393_v2, %v3969_v0  ;;  %7947 = vpow2.f32 %v3865_v59 }
 0x602   : > { %v3711_v60 = vpop.xlane.xlu0 %3710  ;;  %7949 = vpow2.f32 %v3867_v55 }
 0x603   : > { %v3781_v52 = vsub.f32 %v14842_v29, %v3711_v60  ;;  %v3782_v13 = vsub.f32 %v14841_v21, %v3711_v60  ;;  %v3783_v49 = vsub.f32 %v11133_v27, %v3711_v60  ;;  %v3971_v23 = vadd.f32 %v11396_v1, %v3970_v42 }
 0x604   : > { %v3784_v22 = vsub.f32 %v11240_v54, %v3711_v60 }
 0x605   : > { %v11402_v26 = vpop.eup %7943  ;;  %v3869_v47 = vmul.f32 1.442695, %v3781_v52  ;;  %v3871_v61 = vmul.f32 1.442695, %v3782_v13  ;;  %v3873_v51 = vmul.f32 1.442695, %v3783_v49  ;;  %3972 = vadd.xlane.f32.xlu2 %v3971_v23 }
 0x606   : > { %v11405_v38 = vpop.eup %7945  ;;  %v3875_v27 = vmul.f32 1.442695, %v3784_v22 }
 0x607   : > { %7951 = vpow2.f32 %v3869_v47  ;;  %v3974_v29 = vadd.f32 %v11405_v38, %v11402_v26  ;;  %v11409_v21 = vpop.eup %7947 }
 0x608   : > { %7953 = vpow2.f32 %v3871_v61  ;;  %v11412_v63 = vpop.eup %7949 }
 0x609   : > { %v3975_v53 = vadd.f32 %v11409_v21, %v3974_v29  ;;  %7955 = vpow2.f32 %v3873_v51 }
 0x60a   : > { %v3716_v17 = vpop.xlane.xlu1 %3715  ;;  %7957 = vpow2.f32 %v3875_v27 }
 0x60b   : > { %v3785_v54 = vsub.f32 %v14844_v9, %v3716_v17  ;;  %v3786_v18 = vsub.f32 %v14843_v20, %v3716_v17  ;;  %v3787_v59 = vsub.f32 %v11139_v44, %v3716_v17  ;;  %v3976_v0 = vadd.f32 %v11412_v63, %v3975_v53  ;;  %v14864_v53 = vld [vmem:[#allocation154_spill] sm:$0xff] }
 0x60c   : > { %v3788_v42 = vsub.f32 %v11248_v35, %v3716_v17 }
 0x60d   : > { %v11418_v55 = vpop.eup %7951  ;;  %v3877_v60 = vmul.f32 1.442695, %v3785_v54  ;;  %v3879_v52 = vmul.f32 1.442695, %v3786_v18  ;;  %v3881_v49 = vmul.f32 1.442695, %v3787_v59  ;;  %3977 = vadd.xlane.f32.xlu0 %v3976_v0 }
 0x60e   : > { %v11421_v13 = vpop.eup %7953  ;;  %v3883_v44 = vmul.f32 1.442695, %v3788_v42 }
 0x60f   : > { %7959 = vpow2.f32 %v3877_v60  ;;  %v3979_v9 = vadd.f32 %v11421_v13, %v11418_v55  ;;  %v11425_v20 = vpop.eup %7955 }
 0x610   : > { %7961 = vpow2.f32 %v3879_v52  ;;  %v11428_v47 = vpop.eup %7957 }
 0x611   : > { %v3980_v23 = vadd.f32 %v11425_v20, %v3979_v9  ;;  %7963 = vpow2.f32 %v3881_v49  ;;  %v14865_v9 = vld [vmem:[#allocation197_spill] sm:$0xff] }
 0x612   : > { %v3721_v22 = vpop.xlane.xlu2 %3720  ;;  %7965 = vpow2.f32 %v3883_v44 }
 0x613   : > { %v3789_v35 = vsub.f32 %v14846_v56, %v3721_v22  ;;  %v3790_v61 = vsub.f32 %v14845_v58, %v3721_v22  ;;  %v3791_v51 = vsub.f32 %v11145_v4, %v3721_v22  ;;  %v3981_v29 = vadd.f32 %v11428_v47, %v3980_v23  ;;  %v14866_v23 = vld [vmem:[#allocation171_spill] sm:$0xff] }
 0x614   : > { %v3792_v17 = vsub.f32 %v14864_v53, %v3721_v22 }
 0x615   : > { %v11434_v27 = vpop.eup %7959  ;;  %v3885_v54 = vmul.f32 1.442695, %v3789_v35  ;;  %v3887_v18 = vmul.f32 1.442695, %v3790_v61  ;;  %v3889_v0 = vmul.f32 1.442695, %v3791_v51  ;;  %3982 = vadd.xlane.f32.xlu1 %v3981_v29 }
 0x616   : > { %v11437_v59 = vpop.eup %7961  ;;  %v3891_v4 = vmul.f32 1.442695, %v3792_v17  ;;  %v14867_v51 = vld [vmem:[#allocation156_spill] sm:$0xff] }
 0x617   : > { %7967 = vpow2.f32 %v3885_v54  ;;  %v3984_v56 = vadd.f32 %v11437_v59, %v11434_v27  ;;  %v11441_v58 = vpop.eup %7963 }
 0x618   : > { %7969 = vpow2.f32 %v3887_v18  ;;  %v11444_v52 = vpop.eup %7965 }
 0x619   : > { %v3985_v42 = vadd.f32 %v11441_v58, %v3984_v56  ;;  %7971 = vpow2.f32 %v3889_v0 }
 0x61a   : > { %v3726_v60 = vpop.xlane.xlu0 %3725  ;;  %7973 = vpow2.f32 %v3891_v4 }
 0x61b   : > { %v3793_v49 = vsub.f32 %v14849_v11, %v3726_v60  ;;  %v3794_v44 = vsub.f32 %v14865_v9, %v3726_v60  ;;  %v3795_v22 = vsub.f32 %v14866_v23, %v3726_v60  ;;  %v3986_v35 = vadd.f32 %v11444_v52, %v3985_v42  ;;  %v14871_v23 = vld [vmem:[#allocation151_spill] sm:$0xff] }
 0x61c   : > { %v3796_v29 = vsub.f32 %v14867_v51, %v3726_v60 }
 0x61d   : > { %v11450_v61 = vpop.eup %7967  ;;  %v3893_v53 = vmul.f32 1.442695, %v3793_v49  ;;  %v3895_v17 = vmul.f32 1.442695, %v3794_v44  ;;  %v3897_v18 = vmul.f32 1.442695, %v3795_v22  ;;  %3987 = vadd.xlane.f32.xlu2 %v3986_v35 }
 0x61e   : > { %v11453_v54 = vpop.eup %7969  ;;  %v3899_v56 = vmul.f32 1.442695, %v3796_v29  ;;  %v14870_v49 = vld [vmem:[#allocation198_spill] sm:$0xff] }
 0x61f   : > { %14868 = vst [vmem:[#allocation159_spill] sm:$0xff] %v11453_v54  ;;  %7975 = vpow2.f32 %v3893_v53  ;;  %v3989_v11 = vadd.f32 %v11453_v54, %v11450_v61  ;;  %v11457_v0 = vpop.eup %7971  ;;  %v14873_v53 = vld [vmem:[#allocation157_spill] sm:$0xff] }
 0x620   : > { %7977 = vpow2.f32 %v3895_v17  ;;  %v11460_v9 = vpop.eup %7973 }
 0x621   : > { %v3990_v42 = vadd.f32 %v11457_v0, %v3989_v11  ;;  %7979 = vpow2.f32 %v3897_v18  ;;  %14869 = vst [vmem:[#allocation160_spill] sm:$0xff] %v11460_v9 }
 0x622   : > { %v3731_v4 = vpop.xlane.xlu1 %3730  ;;  %7981 = vpow2.f32 %v3899_v56 }
 0x623   : > { %v3797_v60 = vsub.f32 %v14852_v10, %v3731_v4  ;;  %v3798_v44 = vsub.f32 %v14870_v49, %v3731_v4  ;;  %v3799_v22 = vsub.f32 %v14871_v23, %v3731_v4  ;;  %v3991_v35 = vadd.f32 %v11460_v9, %v3990_v42 }
 0x624   : > { %v3800_v17 = vsub.f32 %v14873_v53, %v3731_v4 }
 0x625   : > { %v11466_v51 = vpop.eup %7975  ;;  %v3901_v29 = vmul.f32 1.442695, %v3797_v60  ;;  %v3903_v54 = vmul.f32 1.442695, %v3798_v44  ;;  %v3905_v18 = vmul.f32 1.442695, %v3799_v22  ;;  %3992 = vadd.xlane.f32.xlu0 %v3991_v35 }
 0x626   : > { %14872 = vst [vmem:[#allocation161_spill] sm:$0xff] %v11466_v51  ;;  %v11469_v11 = vpop.eup %7977  ;;  %v3907_v23 = vmul.f32 1.442695, %v3800_v17  ;;  %v14876_v60 = vld [vmem:[#allocation199_spill] sm:$0xff]  ;;  %v14877_v22 = vld [vmem:[#allocation152_spill] sm:$0xff] }
 0x627   : > { %14874 = vst [vmem:[#allocation162_spill] sm:$0xff] %v11469_v11  ;;  %7983 = vpow2.f32 %v3901_v29  ;;  %v3994_v10 = vadd.f32 %v11469_v11, %v11466_v51  ;;  %v11473_v49 = vpop.eup %7979  ;;  %v14878_v11 = vld [vmem:[#allocation158_spill] sm:$0xff] }
 0x628   : > { %7985 = vpow2.f32 %v3903_v54  ;;  %v11476_v9 = vpop.eup %7981 }
 0x629   : > { %v3995_v42 = vadd.f32 %v11473_v49, %v3994_v10  ;;  %7987 = vpow2.f32 %v3905_v18  ;;  %14875 = vst [vmem:[#allocation165_spill] sm:$0xff] %v11476_v9 }
 0x62a   : > { %v3736_v56 = vpop.xlane.xlu2 %3735  ;;  %7989 = vpow2.f32 %v3907_v23 }
 0x62b   : > { %v3801_v4 = vsub.f32 %v14855_v62, %v3736_v56  ;;  %v3802_v44 = vsub.f32 %v14876_v60, %v3736_v56  ;;  %v3803_v35 = vsub.f32 %v14877_v22, %v3736_v56  ;;  %v3996_v53 = vadd.f32 %v11476_v9, %v3995_v42 }
 0x62c   : > { %v3804_v54 = vsub.f32 %v14878_v11, %v3736_v56  ;;  %v14880_v56 = vld [vmem:[#allocation200_spill] sm:$0xff] }
 0x62d   : > { %v11482_v29 = vpop.eup %7983  ;;  %v3909_v17 = vmul.f32 1.442695, %v3801_v4  ;;  %v3911_v51 = vmul.f32 1.442695, %v3802_v44  ;;  %v3913_v18 = vmul.f32 1.442695, %v3803_v35  ;;  %3997 = vadd.xlane.f32.xlu1 %v3996_v53 }
 0x62e   : > { %v11485_v10 = vpop.eup %7985  ;;  %v3915_v22 = vmul.f32 1.442695, %v3804_v54 }
 0x62f   : > { %7991 = vpow2.f32 %v3909_v17  ;;  %v3999_v62 = vadd.f32 %v11485_v10, %v11482_v29  ;;  %v11489_v60 = vpop.eup %7987 }
 0x630   : > { %7993 = vpow2.f32 %v3911_v51  ;;  %v11492_v9 = vpop.eup %7989 }
 0x631   : > { %v4000_v42 = vadd.f32 %v11489_v60, %v3999_v62  ;;  %7995 = vpow2.f32 %v3913_v18  ;;  %14879 = vst [vmem:[#allocation166_spill] sm:$0xff] %v11492_v9 }
 0x632   : > { %v3741_v23 = vpop.xlane.xlu0 %3740  ;;  %7997 = vpow2.f32 %v3915_v22 }
 0x633   : > { %v3805_v11 = vsub.f32 %v14858_v41, %v3741_v23  ;;  %v3806_v4 = vsub.f32 %v14880_v56, %v3741_v23  ;;  %v3807_v44 = vsub.f32 %v11169_v46, %v3741_v23  ;;  %v4001_v35 = vadd.f32 %v11492_v9, %v4000_v42 }
 0x634   : > { %v3808_v51 = vsub.f32 %v11288_v50, %v3741_v23  ;;  %v14883_v50 = vld [vmem:[#allocation186_spill] sm:$0xff] }
 0x635   : > { %v11498_v53 = vpop.eup %7991  ;;  %v3917_v54 = vmul.f32 1.442695, %v3805_v11  ;;  %v3919_v17 = vmul.f32 1.442695, %v3806_v4  ;;  %v3921_v18 = vmul.f32 1.442695, %v3807_v44  ;;  %4002 = vadd.xlane.f32.xlu2 %v4001_v35 }
 0x636   : > { %v11501_v62 = vpop.eup %7993  ;;  %v3923_v46 = vmul.f32 1.442695, %v3808_v51  ;;  %v14884_v11 = vld [vmem:[#allocation163_spill] sm:$0xff] }
 0x637   : > { %14881 = vst [vmem:[#allocation167_spill] sm:$0xff] %v11501_v62  ;;  %7999 = vpow2.f32 %v3917_v54  ;;  %v4004_v41 = vadd.f32 %v11501_v62, %v11498_v53  ;;  %v11505_v56 = vpop.eup %7995 }
 0x638   : > { %8001 = vpow2.f32 %v3919_v17  ;;  %v11508_v9 = vpop.eup %7997 }
 0x639   : > { %v4005_v42 = vadd.f32 %v11505_v56, %v4004_v41  ;;  %8003 = vpow2.f32 %v3921_v18  ;;  %14882 = vst [vmem:[#allocation168_spill] sm:$0xff] %v11508_v9 }
 0x63a   : > { %v3746_v22 = vpop.xlane.xlu1 %3745  ;;  %8005 = vpow2.f32 %v3923_v46 }
 0x63b   : > { %v3809_v23 = vsub.f32 %v14883_v50, %v3746_v22  ;;  %v3810_v4 = vsub.f32 %v14884_v11, %v3746_v22  ;;  %v3811_v44 = vsub.f32 %v11175_v15, %v3746_v22  ;;  %v4006_v35 = vadd.f32 %v11508_v9, %v4005_v42 }
 0x63c   : > { %v3812_v17 = vsub.f32 %v11296_v37, %v3746_v22  ;;  %v14886_v22 = vld [vmem:[#allocation164_spill] sm:$0xff] }
 0x63d   : > { %v11514_v54 = vpop.eup %7999  ;;  %v3925_v51 = vmul.f32 1.442695, %v3809_v23  ;;  %v3927_v62 = vmul.f32 1.442695, %v3810_v4  ;;  %v3929_v18 = vmul.f32 1.442695, %v3811_v44  ;;  %4007 = vadd.xlane.f32.xlu0 %v4006_v35 }
 0x63e   : > { %v11517_v41 = vpop.eup %8001  ;;  %v3931_v15 = vmul.f32 1.442695, %v3812_v17  ;;  %v14887_v4 = vld [vmem:[#allocation153_spill] sm:$0xff] }
 0x63f   : > { %14885 = vst [vmem:[#allocation169_spill] sm:$0xff] %v11517_v41  ;;  %8007 = vpow2.f32 %v3925_v51  ;;  %v4009_v50 = vadd.f32 %v11517_v41, %v11514_v54  ;;  %v11521_v11 = vpop.eup %8003 }
 0x640   : > { %8009 = vpow2.f32 %v3927_v62  ;;  %v11524_v9 = vpop.eup %8005 }
 0x641   : > { %v4010_v42 = vadd.f32 %v11521_v11, %v4009_v50  ;;  %8011 = vpow2.f32 %v3929_v18 }
 0x642   : > { %v3751_v46 = vpop.xlane.xlu2 %3750  ;;  %8013 = vpow2.f32 %v3931_v15 }
 0x643   : > { %v3813_v37 = vsub.f32 %v14862_v32, %v3751_v46  ;;  %v3814_v23 = vsub.f32 %v14886_v22, %v3751_v46  ;;  %v3815_v44 = vsub.f32 %v14887_v4, %v3751_v46  ;;  %v3816_v35 = vsub.f32 %v11304_v24, %v3751_v46 }
 0x644   : > { %v4011_v51 = vadd.f32 %v11524_v9, %v4010_v42 }
 0x645   : > { %v11531_v41 = vpop.eup %8007  ;;  %v3933_v62 = vmul.f32 1.442695, %v3813_v37  ;;  %v3935_v17 = vmul.f32 1.442695, %v3814_v23  ;;  %v3937_v18 = vmul.f32 1.442695, %v3815_v44 }
 0x646   : > { %v11533_v50 = vpop.eup %8009  ;;  %4012 = vadd.xlane.f32.xlu1 %v4011_v51  ;;  %v3939_v4 = vmul.f32 1.442695, %v3816_v35 }
 0x647   : > { %8015 = vpow2.f32 %v3933_v62  ;;  %v4014_v32 = vadd.f32 %v11533_v50, %v11531_v41  ;;  %v11537_v22 = vpop.eup %8011 }
 0x648   : > { %8017 = vpow2.f32 %v3935_v17  ;;  %v11540_v46 = vpop.eup %8013 }
 0x649   : > { %v4015_v24 = vadd.f32 %v11537_v22, %v4014_v32  ;;  %8019 = vpow2.f32 %v3937_v18 }
 0x64a   : > { %v3756_v42 = vpop.xlane.xlu0 %3755  ;;  %8021 = vpow2.f32 %v3939_v4 }
 0x64b   : > { %v3817_v15 = vsub.f32 %v14863_v12, %v3756_v42  ;;  %v3818_v37 = vsub.f32 %v11091_v7, %v3756_v42  ;;  %v3819_v23 = vsub.f32 %v11185_v36, %v3756_v42  ;;  %v3820_v44 = vsub.f32 %v11315_v57, %v3756_v42 }
 0x64c   : > { %v4016_v51 = vadd.f32 %v11540_v46, %v4015_v24 }
 0x64d   : > { %v11547_v62 = vpop.eup %8015  ;;  %v3941_v35 = vmul.f32 1.442695, %v3817_v15  ;;  %v3943_v17 = vmul.f32 1.442695, %v3818_v37  ;;  %v3945_v18 = vmul.f32 1.442695, %v3819_v23 }
 0x64e   : > { %14888 = vst [vmem:[#allocation170_spill] sm:$0xff] %v11547_v62  ;;  %v11549_v32 = vpop.eup %8017  ;;  %4017 = vadd.xlane.f32.xlu2 %v4016_v51  ;;  %v3947_v36 = vmul.f32 1.442695, %v3820_v44 }
 0x64f   : > { %14889 = vst [vmem:[#allocation172_spill] sm:$0xff] %v11549_v32  ;;  %8023 = vpow2.f32 %v3941_v35  ;;  %v4019_v12 = vadd.f32 %v11549_v32, %v11547_v62  ;;  %v11553_v7 = vpop.eup %8019 }
 0x650   : > { %14890 = vst [vmem:[#allocation155_spill] sm:$0xff] %v11553_v7  ;;  %8025 = vpow2.f32 %v3943_v17  ;;  %v11556_v4 = vpop.eup %8021 }
 0x651   : > { %v4020_v57 = vadd.f32 %v11553_v7, %v4019_v12  ;;  %14891 = vst [vmem:[#allocation173_spill] sm:$0xff] %v11556_v4  ;;  %8027 = vpow2.f32 %v3945_v18 }
 0x652   : > { %8029 = vpow2.f32 %v3947_v36 }
 0x653   : > { %v4021_v24 = vadd.f32 %v11556_v4, %v4020_v57 }
 0x655   : > { %v11559_v42 = vpop.eup %8023  ;;  %4022 = vadd.xlane.f32.xlu0 %v4021_v24 }
 0x656   : > { %14892 = vst [vmem:[#allocation189_spill] sm:$0xff] %v11559_v42  ;;  %v11561_v15 = vpop.eup %8025 }
 0x657   : > { %14893 = vst [vmem:[#allocation174_spill] sm:$0xff] %v11561_v15  ;;  %v4024_v37 = vadd.f32 %v11561_v15, %v11559_v42  ;;  %v11565_v23 = vpop.eup %8027 }
 0x658   : > { %14894 = vst [vmem:[#allocation190_spill] sm:$0xff] %v11565_v23  ;;  %v3953_v51 = vpop.xlane.xlu1 %3952  ;;  %v11568_v35 = vpop.eup %8029 }
 0x659   : > { %v4025_v44 = vadd.f32 %v11565_v23, %v4024_v37  ;;  %14895 = vst [vmem:[#allocation175_spill] sm:$0xff] %v11568_v35  ;;  %8031 = vrcp.f32 %v3953_v51  ;;  %v4040_v24 = vand.u32 2147483648, %v3953_v51  ;;  %v4038_v15 = vand.u32 2147483647, %v3953_v51 }
 0x65a   : > { %vm4034_vm4 = vweird.f32 %v3953_v51 }
 0x65b   : > { %v4026_v17 = vadd.f32 %v11568_v35, %v4025_v44  ;;  %v4041_v37 = vor.u32 1.1754944e-38, %v4040_v24  ;;  %vm4039_vm6 = vcmp.eq.f32.partialorder %v4038_v15, 8.507059e+37 }
 0x65d   : > { %4027 = vadd.xlane.f32.xlu1 %v4026_v17 }
 0x65f   : > { %v8032_v18 = vpop.eup %8031 }
 0x660   : > { %v4030_v12 = vmul.f32 %v8032_v18, %v3953_v51  ;;  %v3958_v36 = vpop.xlane.xlu2 %3957  ;;  %vm4035_vm3 = vweird.f32 %v8032_v18 }
 0x661   : > { %8033 = vrcp.f32 %v3958_v36  ;;  %vm4036_vm5 = vmor %vm4034_vm4, %vm4035_vm3  ;;  %v4058_v62 = vand.u32 2147483648, %v3958_v36  ;;  %v4056_v15 = vand.u32 2147483647, %v3958_v36  ;;  %vm4052_vm8 = vweird.f32 %v3958_v36 }
 0x662   : > { %v4031_v57 = vsub.f32 1.0, %v4030_v12 }
 0x663   : > { %vm4057_vm10 = vcmp.eq.f32.partialorder %v4056_v15, 8.507059e+37 }
 0x664   : > { %v4032_v4 = vmul.f32 %v8032_v18, %v4031_v57 }
 0x666   : > { %v4033_v42 = vadd.f32 %v8032_v18, %v4032_v4 }
 0x667   : > { %v8034_v7 = vpop.eup %8033 }
 0x668   : > { %v4037_v23 = vsel %vm4036_vm5, %v8032_v18, %v4033_v42  ;;  %v4048_v44 = vmul.f32 %v8034_v7, %v3958_v36  ;;  %v3963_v17 = vpop.xlane.xlu0 %3962  ;;  %vm4053_vm7 = vweird.f32 %v8034_v7 }
 0x669   : > { %v4042_v35 = vsel %vm4039_vm6, %v4041_v37, %v4037_v23  ;;  %8035 = vrcp.f32 %v3963_v17  ;;  %vm4054_vm9 = vmor %vm4052_vm8, %vm4053_vm7  ;;  %v4076_v36 = vand.u32 2147483648, %v3963_v17  ;;  %vm4070_vm12 = vweird.f32 %v3963_v17 }
 0x66a   : > { %v4043_v12 = vmul.f32 %v11322_v19, %v4042_v35  ;;  %v4044_v57 = vmul.f32 %v11325_v25, %v4042_v35  ;;  %v4045_v4 = vmul.f32 %v11329_v43, %v4042_v35  ;;  %v4046_v51 = vmul.f32 %v11332_v3, %v4042_v35 }
 0x66b   : > { %v4049_v32 = vsub.f32 1.0, %v4048_v44  ;;  %v4059_v19 = vor.u32 1.1754944e-38, %v4058_v62 }
 0x66c   : > { %4317 = vst [vmem:[%s8331_s5] sm:$0xff] %v4043_v12 }
 0x66d   : > { %4318 = vst [vmem:[%s8331_s5 + $0x8] sm:$0xff] %v4044_v57  ;;  %v4050_v42 = vmul.f32 %v8034_v7, %v4049_v32  ;;  %v4074_v57 = vand.u32 2147483647, %v3963_v17 }
 0x66e   : > { %4319 = vst [vmem:[%s8331_s5 + $0x10] sm:$0xff] %v4045_v4 }
 0x66f   : > { %v8036_v18 = vpop.eup %8035  ;;  %4320 = vst [vmem:[%s8331_s5 + $0x18] sm:$0xff] %v4046_v51  ;;  %v4051_v23 = vadd.f32 %v8034_v7, %v4050_v42  ;;  %vm4075_vm14 = vcmp.eq.f32.partialorder %v4074_v57, 8.507059e+37 }
 0x670   : > { %v4066_v25 = vmul.f32 %v8036_v18, %v3963_v17  ;;  %v3968_v43 = vpop.xlane.xlu1 %3967  ;;  %vm4071_vm11 = vweird.f32 %v8036_v18 }
 0x671   : > { %v4055_v24 = vsel %vm4054_vm9, %v8034_v7, %v4051_v23  ;;  %8037 = vrcp.f32 %v3968_v43  ;;  %vm4072_vm13 = vmor %vm4070_vm12, %vm4071_vm11  ;;  %vm4088_vm3 = vweird.f32 %v3968_v43 }
 0x672   : > { %v4060_v3 = vsel %vm4057_vm10, %v4059_v19, %v4055_v24  ;;  %v4067_v35 = vsub.f32 1.0, %v4066_v25  ;;  %v4094_v25 = vand.u32 2147483648, %v3968_v43  ;;  %v4092_v24 = vand.u32 2147483647, %v3968_v43 }
 0x673   : > { %v4061_v32 = vmul.f32 %v11338_v39, %v4060_v3  ;;  %v4062_v37 = vmul.f32 %v11341_v8, %v4060_v3  ;;  %v4063_v44 = vmul.f32 %v11345_v6, %v4060_v3  ;;  %v4064_v62 = vmul.f32 %v11348_v34, %v4060_v3 }
 0x674   : > { %v4068_v12 = vmul.f32 %v8036_v18, %v4067_v35  ;;  %v4077_v39 = vor.u32 1.1754944e-38, %v4076_v36  ;;  %vm4093_vm5 = vcmp.eq.f32.partialorder %v4092_v24, 8.507059e+37 }
 0x675   : > { %4321 = vst [vmem:[%s8331_s5 + $0x20] sm:$0xff] %v4061_v32 }
 0x676   : > { %4322 = vst [vmem:[%s8331_s5 + $0x28] sm:$0xff] %v4062_v37  ;;  %v4069_v7 = vadd.f32 %v8036_v18, %v4068_v12 }
 0x677   : > { %v8038_v4 = vpop.eup %8037  ;;  %4323 = vst [vmem:[%s8331_s5 + $0x30] sm:$0xff] %v4063_v44 }
 0x678   : > { %4324 = vst [vmem:[%s8331_s5 + $0x38] sm:$0xff] %v4064_v62  ;;  %v4073_v8 = vsel %vm4072_vm13, %v8036_v18, %v4069_v7  ;;  %v4084_v6 = vmul.f32 %v8038_v4, %v3968_v43  ;;  %v3973_v51 = vpop.xlane.xlu2 %3972  ;;  %vm4089_vm15 = vweird.f32 %v8038_v4 }
 0x679   : > { %v4078_v34 = vsel %vm4075_vm14, %v4077_v39, %v4073_v8  ;;  %8039 = vrcp.f32 %v3973_v51  ;;  %vm4090_vm4 = vmor %vm4088_vm3, %vm4089_vm15  ;;  %v4112_v43 = vand.u32 2147483648, %v3973_v51  ;;  %v4110_v7 = vand.u32 2147483647, %v3973_v51 }
 0x67a   : > { %v4079_v42 = vmul.f32 %v11354_v16, %v4078_v34  ;;  %v4080_v15 = vmul.f32 %v11357_v14, %v4078_v34  ;;  %v4081_v17 = vmul.f32 %v11361_v30, %v4078_v34  ;;  %v4082_v23 = vmul.f32 %v11364_v48, %v4078_v34 }
 0x67b   : > { %v4085_v19 = vsub.f32 1.0, %v4084_v6  ;;  %v4095_v16 = vor.u32 1.1754944e-38, %v4094_v25  ;;  %vm4106_vm7 = vweird.f32 %v3973_v51  ;;  %vm4111_vm9 = vcmp.eq.f32.partialorder %v4110_v7, 8.507059e+37 }
 0x67c   : > { %4325 = vst [vmem:[%s8331_s5 + $0x40] sm:$0xff] %v4079_v42 }
 0x67d   : > { %4326 = vst [vmem:[%s8331_s5 + $0x48] sm:$0xff] %v4080_v15  ;;  %v4086_v18 = vmul.f32 %v8038_v4, %v4085_v19 }
 0x67e   : > { %4327 = vst [vmem:[%s8331_s5 + $0x50] sm:$0xff] %v4081_v17 }
 0x67f   : > { %v8040_v3 = vpop.eup %8039  ;;  %4328 = vst [vmem:[%s8331_s5 + $0x58] sm:$0xff] %v4082_v23  ;;  %v4087_v35 = vadd.f32 %v8038_v4, %v4086_v18 }
 0x680   : > { %v4102_v14 = vmul.f32 %v8040_v3, %v3973_v51  ;;  %v3978_v30 = vpop.xlane.xlu0 %3977  ;;  %vm4107_vm6 = vweird.f32 %v8040_v3 }
 0x681   : > { %v4091_v32 = vsel %vm4090_vm4, %v8038_v4, %v4087_v35  ;;  %8041 = vrcp.f32 %v3978_v30  ;;  %vm4108_vm8 = vmor %vm4106_vm7, %vm4107_vm6  ;;  %v4130_v17 = vand.u32 2147483648, %v3978_v30  ;;  %v4128_v19 = vand.u32 2147483647, %v3978_v30 }
 0x682   : > { %v4096_v48 = vsel %vm4093_vm5, %v4095_v16, %v4091_v32  ;;  %v4103_v37 = vsub.f32 1.0, %v4102_v14  ;;  %vm4124_vm11 = vweird.f32 %v3978_v30 }
 0x683   : > { %v4097_v44 = vmul.f32 %v11370_v33, %v4096_v48  ;;  %v4098_v36 = vmul.f32 %v11373_v28, %v4096_v48  ;;  %v4099_v62 = vmul.f32 %v11377_v5, %v4096_v48  ;;  %v4100_v12 = vmul.f32 %v11380_v31, %v4096_v48 }
 0x684   : > { %v4104_v57 = vmul.f32 %v8040_v3, %v4103_v37  ;;  %v4113_v33 = vor.u32 1.1754944e-38, %v4112_v43  ;;  %vm4129_vm13 = vcmp.eq.f32.partialorder %v4128_v19, 8.507059e+37 }
 0x685   : > { %4329 = vst [vmem:[%s8331_s5 + $0x60] sm:$0xff] %v4097_v44 }
 0x686   : > { %4330 = vst [vmem:[%s8331_s5 + $0x68] sm:$0xff] %v4098_v36  ;;  %v4105_v4 = vadd.f32 %v8040_v3, %v4104_v57 }
 0x687   : > { %v8042_v39 = vpop.eup %8041  ;;  %4331 = vst [vmem:[%s8331_s5 + $0x70] sm:$0xff] %v4099_v62 }
 0x688   : > { %4332 = vst [vmem:[%s8331_s5 + $0x78] sm:$0xff] %v4100_v12  ;;  %v4109_v28 = vsel %vm4108_vm8, %v8040_v3, %v4105_v4  ;;  %v4120_v5 = vmul.f32 %v8042_v39, %v3978_v30  ;;  %v3983_v8 = vpop.xlane.xlu1 %3982  ;;  %vm4125_vm10 = vweird.f32 %v8042_v39 }
 0x689   : > { %v4114_v31 = vsel %vm4111_vm9, %v4113_v33, %v4109_v28  ;;  %8043 = vrcp.f32 %v3983_v8  ;;  %vm4126_vm12 = vmor %vm4124_vm11, %vm4125_vm10  ;;  %v4148_v30 = vand.u32 2147483648, %v3983_v8  ;;  %v4146_v37 = vand.u32 2147483647, %v3983_v8 }
 0x68a   : > { %v4115_v6 = vmul.f32 %v11386_v40, %v4114_v31  ;;  %v4116_v34 = vmul.f32 %v11389_v45, %v4114_v31  ;;  %v4117_v51 = vmul.f32 %v11393_v2, %v4114_v31  ;;  %v4118_v42 = vmul.f32 %v11396_v1, %v4114_v31 }
 0x68b   : > { %v4121_v15 = vsub.f32 1.0, %v4120_v5  ;;  %v4131_v40 = vor.u32 1.1754944e-38, %v4130_v17  ;;  %vm4142_vm15 = vweird.f32 %v3983_v8  ;;  %vm4147_vm4 = vcmp.eq.f32.partialorder %v4146_v37, 8.507059e+37 }
 0x68c   : > { %4333 = vst [vmem:[%s8331_s5 + $0x80] sm:$0xff] %v4115_v6 }
 0x68d   : > { %4334 = vst [vmem:[%s8331_s5 + $0x88] sm:$0xff] %v4116_v34  ;;  %v4122_v23 = vmul.f32 %v8042_v39, %v4121_v15 }
 0x68e   : > { %4335 = vst [vmem:[%s8331_s5 + $0x90] sm:$0xff] %v4117_v51 }
 0x68f   : > { %v8044_v25 = vpop.eup %8043  ;;  %4336 = vst [vmem:[%s8331_s5 + $0x98] sm:$0xff] %v4118_v42  ;;  %v4123_v18 = vadd.f32 %v8042_v39, %v4122_v23 }
 0x690   : > { %v4138_v45 = vmul.f32 %v8044_v25, %v3983_v8  ;;  %v3988_v2 = vpop.xlane.xlu2 %3987  ;;  %vm4143_vm14 = vweird.f32 %v8044_v25 }
 0x691   : > { %v4127_v24 = vsel %vm4126_vm12, %v8042_v39, %v4123_v18  ;;  %8045 = vrcp.f32 %v3988_v2  ;;  %vm4144_vm3 = vmor %vm4142_vm15, %vm4143_vm14  ;;  %v4166_v39 = vand.u32 2147483648, %v3988_v2  ;;  %v4164_v28 = vand.u32 2147483647, %v3988_v2 }
 0x692   : > { %v4132_v1 = vsel %vm4129_vm13, %v4131_v40, %v4127_v24  ;;  %v4139_v3 = vsub.f32 1.0, %v4138_v45  ;;  %vm4160_vm6 = vweird.f32 %v3988_v2 }
 0x693   : > { %v4133_v35 = vmul.f32 %v11402_v26, %v4132_v1  ;;  %v4134_v16 = vmul.f32 %v11405_v38, %v4132_v1  ;;  %v4135_v14 = vmul.f32 %v11409_v21, %v4132_v1  ;;  %v4136_v32 = vmul.f32 %v11412_v63, %v4132_v1 }
 0x694   : > { %v4140_v48 = vmul.f32 %v8044_v25, %v4139_v3  ;;  %v4149_v26 = vor.u32 1.1754944e-38, %v4148_v30  ;;  %vm4165_vm8 = vcmp.eq.f32.partialorder %v4164_v28, 8.507059e+37  ;;  %v14897_v3 = vld [vmem:[#allocation160_spill] sm:$0xff] }
 0x695   : > { %4337 = vst [vmem:[%s8331_s5 + $0xa0] sm:$0xff] %v4133_v35 }
 0x696   : > { %4338 = vst [vmem:[%s8331_s5 + $0xa8] sm:$0xff] %v4134_v16  ;;  %v4141_v44 = vadd.f32 %v8044_v25, %v4140_v48 }
 0x697   : > { %v8046_v36 = vpop.eup %8045  ;;  %4339 = vst [vmem:[%s8331_s5 + $0xb0] sm:$0xff] %v4135_v14 }
 0x698   : > { %4340 = vst [vmem:[%s8331_s5 + $0xb8] sm:$0xff] %v4136_v32  ;;  %v4145_v38 = vsel %vm4144_vm3, %v8044_v25, %v4141_v44  ;;  %v4156_v21 = vmul.f32 %v8046_v36, %v3988_v2  ;;  %v3993_v62 = vpop.xlane.xlu0 %3992  ;;  %vm4161_vm5 = vweird.f32 %v8046_v36  ;;  %v14896_v2 = vld [vmem:[#allocation159_spill] sm:$0xff] }
 0x699   : > { %v4150_v63 = vsel %vm4147_vm4, %v4149_v26, %v4145_v38  ;;  %8047 = vrcp.f32 %v3993_v62  ;;  %vm4162_vm7 = vmor %vm4160_vm6, %vm4161_vm5  ;;  %v4184_v15 = vand.u32 2147483648, %v3993_v62  ;;  %v4182_v19 = vand.u32 2147483647, %v3993_v62 }
 0x69a   : > { %v4151_v43 = vmul.f32 %v11418_v55, %v4150_v63  ;;  %v4152_v12 = vmul.f32 %v11421_v13, %v4150_v63  ;;  %v4153_v57 = vmul.f32 %v11425_v20, %v4150_v63  ;;  %v4154_v7 = vmul.f32 %v11428_v47, %v4150_v63  ;;  %v14899_v63 = vld [vmem:[#allocation162_spill] sm:$0xff] }
 0x69b   : > { %v4157_v4 = vsub.f32 1.0, %v4156_v21  ;;  %v4167_v55 = vor.u32 1.1754944e-38, %v4166_v39  ;;  %vm4178_vm10 = vweird.f32 %v3993_v62  ;;  %vm4183_vm12 = vcmp.eq.f32.partialorder %v4182_v19, 8.507059e+37  ;;  %v14898_v21 = vld [vmem:[#allocation161_spill] sm:$0xff] }
 0x69c   : > { %4341 = vst [vmem:[%s8331_s5 + $0xc0] sm:$0xff] %v4151_v43 }
 0x69d   : > { %4342 = vst [vmem:[%s8331_s5 + $0xc8] sm:$0xff] %v4152_v12  ;;  %v4158_v33 = vmul.f32 %v8046_v36, %v4157_v4 }
 0x69e   : > { %4343 = vst [vmem:[%s8331_s5 + $0xd0] sm:$0xff] %v4153_v57 }
 0x69f   : > { %v8048_v5 = vpop.eup %8047  ;;  %4344 = vst [vmem:[%s8331_s5 + $0xd8] sm:$0xff] %v4154_v7  ;;  %v4159_v8 = vadd.f32 %v8046_v36, %v4158_v33  ;;  %v14900_v7 = vld [vmem:[#allocation165_spill] sm:$0xff] }
 0x6a0   : > { %v4174_v13 = vmul.f32 %v8048_v5, %v3993_v62  ;;  %v3998_v20 = vpop.xlane.xlu1 %3997  ;;  %vm4179_vm9 = vweird.f32 %v8048_v5 }
 0x6a1   : > { %v4163_v31 = vsel %vm4162_vm7, %v8046_v36, %v4159_v8  ;;  %8049 = vrcp.f32 %v3998_v20  ;;  %vm4180_vm11 = vmor %vm4178_vm10, %vm4179_vm9  ;;  %v4202_v14 = vand.u32 2147483648, %v3998_v20  ;;  %v4200_v32 = vand.u32 2147483647, %v3998_v20 }
 0x6a2   : > { %v4168_v47 = vsel %vm4165_vm8, %v4167_v55, %v4163_v31  ;;  %v4175_v6 = vsub.f32 1.0, %v4174_v13  ;;  %vm4196_vm14 = vweird.f32 %v3998_v20 }
 0x6a3   : > { %v4169_v34 = vmul.f32 %v11434_v27, %v4168_v47  ;;  %v4170_v51 = vmul.f32 %v11437_v59, %v4168_v47  ;;  %v4171_v42 = vmul.f32 %v11441_v58, %v4168_v47  ;;  %v4172_v17 = vmul.f32 %v11444_v52, %v4168_v47 }
 0x6a4   : > { %v4176_v23 = vmul.f32 %v8048_v5, %v4175_v6  ;;  %v4185_v27 = vor.u32 1.1754944e-38, %v4184_v15  ;;  %vm4201_vm3 = vcmp.eq.f32.partialorder %v4200_v32, 8.507059e+37 }
 0x6a5   : > { %4345 = vst [vmem:[%s8331_s5 + $0xe0] sm:$0xff] %v4169_v34  ;;  %v14901_v34 = vld [vmem:[#allocation166_spill] sm:$0xff] }
 0x6a6   : > { %4346 = vst [vmem:[%s8331_s5 + $0xe8] sm:$0xff] %v4170_v51  ;;  %v4177_v25 = vadd.f32 %v8048_v5, %v4176_v23 }
 0x6a7   : > { %v8050_v18 = vpop.eup %8049  ;;  %4347 = vst [vmem:[%s8331_s5 + $0xf0] sm:$0xff] %v4171_v42 }
 0x6a8   : > { %4348 = vst [vmem:[%s8331_s5 + $0xf8] sm:$0xff] %v4172_v17  ;;  %v4181_v59 = vsel %vm4180_vm11, %v8048_v5, %v4177_v25  ;;  %v4192_v58 = vmul.f32 %v8050_v18, %v3998_v20  ;;  %v4003_v40 = vpop.xlane.xlu2 %4002  ;;  %vm4197_vm13 = vweird.f32 %v8050_v18 }
 0x6a9   : > { %v4186_v52 = vsel %vm4183_vm12, %v4185_v27, %v4181_v59  ;;  %8051 = vrcp.f32 %v4003_v40  ;;  %vm4198_vm15 = vmor %vm4196_vm14, %vm4197_vm13  ;;  %v4220_v57 = vand.u32 2147483648, %v4003_v40  ;;  %v4218_v33 = vand.u32 2147483647, %v4003_v40 }
 0x6aa   : > { %v4187_v45 = vmul.f32 %v11450_v61, %v4186_v52  ;;  %v4188_v24 = vmul.f32 %v14896_v2, %v4186_v52  ;;  %v4189_v1 = vmul.f32 %v11457_v0, %v4186_v52  ;;  %v4190_v35 = vmul.f32 %v14897_v3, %v4186_v52 }
 0x6ab   : > { %v4193_v16 = vsub.f32 1.0, %v4192_v58  ;;  %v4203_v61 = vor.u32 1.1754944e-38, %v4202_v14  ;;  %vm4214_vm5 = vweird.f32 %v4003_v40  ;;  %v4221_v8 = vor.u32 1.1754944e-38, %v4220_v57 }
 0x6ac   : > { %4349 = vst [vmem:[%s8331_s5 + $0x100] sm:$0xff] %v4187_v45  ;;  %vm4219_vm7 = vcmp.eq.f32.partialorder %v4218_v33, 8.507059e+37 }
 0x6ad   : > { %4350 = vst [vmem:[%s8331_s5 + $0x108] sm:$0xff] %v4188_v24  ;;  %v4194_v30 = vmul.f32 %v8050_v18, %v4193_v16  ;;  %v14903_v24 = vld [vmem:[#allocation168_spill] sm:$0xff] }
 0x6ae   : > { %4351 = vst [vmem:[%s8331_s5 + $0x110] sm:$0xff] %v4189_v1 }
 0x6af   : > { %v8052_v48 = vpop.eup %8051  ;;  %4352 = vst [vmem:[%s8331_s5 + $0x118] sm:$0xff] %v4190_v35  ;;  %v4195_v37 = vadd.f32 %v8050_v18, %v4194_v30 }
 0x6b0   : > { %v4210_v44 = vmul.f32 %v8052_v48, %v4003_v40  ;;  %v4008_v0 = vpop.xlane.xlu0 %4007  ;;  %vm4215_vm4 = vweird.f32 %v8052_v48  ;;  %v14902_v40 = vld [vmem:[#allocation167_spill] sm:$0xff] }
 0x6b1   : > { %v4199_v36 = vsel %vm4198_vm15, %v8050_v18, %v4195_v37  ;;  %8053 = vrcp.f32 %v4008_v0  ;;  %vm4216_vm6 = vmor %vm4214_vm5, %vm4215_vm4  ;;  %v4238_v15 = vand.u32 2147483648, %v4008_v0  ;;  %v4236_v23 = vand.u32 2147483647, %v4008_v0 }
 0x6b2   : > { %v4204_v26 = vsel %vm4201_vm3, %v4203_v61, %v4199_v36  ;;  %v4211_v38 = vsub.f32 1.0, %v4210_v44  ;;  %vm4232_vm9 = vweird.f32 %v4008_v0  ;;  %v14904_v61 = vld [vmem:[#allocation169_spill] sm:$0xff] }
 0x6b3   : > { %v4205_v62 = vmul.f32 %v14898_v21, %v4204_v26  ;;  %v4206_v43 = vmul.f32 %v14899_v63, %v4204_v26  ;;  %v4207_v12 = vmul.f32 %v11473_v49, %v4204_v26  ;;  %v4208_v4 = vmul.f32 %v14900_v7, %v4204_v26 }
 0x6b4   : > { %v4212_v39 = vmul.f32 %v8052_v48, %v4211_v38  ;;  %vm4237_vm11 = vcmp.eq.f32.partialorder %v4236_v23, 8.507059e+37 }
 0x6b5   : > { %4353 = vst [vmem:[%s8331_s5 + $0x120] sm:$0xff] %v4205_v62 }
 0x6b6   : > { %4354 = vst [vmem:[%s8331_s5 + $0x128] sm:$0xff] %v4206_v43  ;;  %v4213_v28 = vadd.f32 %v8052_v48, %v4212_v39 }
 0x6b7   : > { %v8054_v5 = vpop.eup %8053  ;;  %4355 = vst [vmem:[%s8331_s5 + $0x130] sm:$0xff] %v4207_v12 }
 0x6b8   : > { %4356 = vst [vmem:[%s8331_s5 + $0x138] sm:$0xff] %v4208_v4  ;;  %v4217_v55 = vsel %vm4216_vm6, %v8052_v48, %v4213_v28  ;;  %v4228_v49 = vmul.f32 %v8054_v5, %v4008_v0  ;;  %vm4233_vm8 = vweird.f32 %v8054_v5 }
 0x6b9   : > { %v4013_v13 = vpop.xlane.xlu1 %4012  ;;  %v4222_v20 = vsel %vm4219_vm7, %v4221_v8, %v4217_v55  ;;  %vm4234_vm10 = vmor %vm4232_vm9, %vm4233_vm8 }
 0x6ba   : > { %8055 = vrcp.f32 %v4013_v13  ;;  %v4223_v31 = vmul.f32 %v11482_v29, %v4222_v20  ;;  %v4224_v47 = vmul.f32 %v11485_v10, %v4222_v20  ;;  %v4225_v6 = vmul.f32 %v11489_v60, %v4222_v20 }
 0x6bb   : > { %v4226_v51 = vmul.f32 %v14901_v34, %v4222_v20  ;;  %v4229_v42 = vsub.f32 1.0, %v4228_v49  ;;  %v4239_v29 = vor.u32 1.1754944e-38, %v4238_v15  ;;  %v4256_v2 = vand.u32 2147483648, %v4013_v13 }
 0x6bc   : > { %4357 = vst [vmem:[%s8331_s5 + $0x140] sm:$0xff] %v4223_v31  ;;  %v4254_v35 = vand.u32 2147483647, %v4013_v13  ;;  %vm4250_vm13 = vweird.f32 %v4013_v13  ;;  %v14905_v31 = vld [vmem:[#allocation170_spill] sm:$0xff] }
 0x6bd   : > { %4358 = vst [vmem:[%s8331_s5 + $0x148] sm:$0xff] %v4224_v47  ;;  %v4230_v17 = vmul.f32 %v8054_v5, %v4229_v42 }
 0x6be   : > { %4359 = vst [vmem:[%s8331_s5 + $0x150] sm:$0xff] %v4225_v6  ;;  %vm4255_vm15 = vcmp.eq.f32.partialorder %v4254_v35, 8.507059e+37  ;;  %v14906_v6 = vld [vmem:[#allocation172_spill] sm:$0xff] }
 0x6bf   : > { %4360 = vst [vmem:[%s8331_s5 + $0x158] sm:$0xff] %v4226_v51  ;;  %v4231_v25 = vadd.f32 %v8054_v5, %v4230_v17  ;;  %v14907_v51 = vld [vmem:[#allocation155_spill] sm:$0xff]  ;;  %v14908_v17 = vld [vmem:[#allocation173_spill] sm:$0xff] }
 0x6c0   : > { %v8056_v19 = vpop.eup %8055 }
 0x6c1   : > { %v4246_v10 = vmul.f32 %v8056_v19, %v4013_v13  ;;  %v4018_v60 = vpop.xlane.xlu2 %4017  ;;  %v4235_v18 = vsel %vm4234_vm10, %v8054_v5, %v4231_v25  ;;  %vm4251_vm12 = vweird.f32 %v8056_v19 }
 0x6c2   : > { %8057 = vrcp.f32 %v4018_v60  ;;  %v4240_v27 = vsel %vm4237_vm11, %v4239_v29, %v4235_v18  ;;  %vm4252_vm14 = vmor %vm4250_vm13, %vm4251_vm12  ;;  %v4274_v38 = vand.u32 2147483648, %v4018_v60  ;;  %v4272_v62 = vand.u32 2147483647, %v4018_v60 }
 0x6c3   : > { %v4247_v59 = vsub.f32 1.0, %v4246_v10  ;;  %v4241_v58 = vmul.f32 %v11498_v53, %v4240_v27  ;;  %v4242_v52 = vmul.f32 %v14902_v40, %v4240_v27  ;;  %v4243_v45 = vmul.f32 %v11505_v56, %v4240_v27 }
 0x6c4   : > { %v4244_v1 = vmul.f32 %v14903_v24, %v4240_v27  ;;  %v4257_v53 = vor.u32 1.1754944e-38, %v4256_v2  ;;  %vm4268_vm4 = vweird.f32 %v4018_v60  ;;  %v4275_v57 = vor.u32 1.1754944e-38, %v4274_v38  ;;  %v14909_v27 = vld [vmem:[#allocation189_spill] sm:$0xff]  ;;  %v14912_v2 = vld [vmem:[#allocation175_spill] sm:$0xff] }
 0x6c5   : > { %v4248_v3 = vmul.f32 %v8056_v19, %v4247_v59  ;;  %4361 = vst [vmem:[%s8331_s5 + $0x160] sm:$0xff] %v4241_v58  ;;  %vm4273_vm6 = vcmp.eq.f32.partialorder %v4272_v62, 8.507059e+37  ;;  %v14910_v58 = vld [vmem:[#allocation174_spill] sm:$0xff] }
 0x6c6   : > { %4362 = vst [vmem:[%s8331_s5 + $0x168] sm:$0xff] %v4242_v52  ;;  %v14911_v52 = vld [vmem:[#allocation190_spill] sm:$0xff] }
 0x6c7   : > { %v4249_v16 = vadd.f32 %v8056_v19, %v4248_v3  ;;  %4363 = vst [vmem:[%s8331_s5 + $0x170] sm:$0xff] %v4243_v45 }
 0x6c8   : > { %v8058_v14 = vpop.eup %8057  ;;  %v4023_v30 = vpop.xlane.xlu0 %4022  ;;  %4364 = vst [vmem:[%s8331_s5 + $0x178] sm:$0xff] %v4244_v1 }
 0x6c9   : > { %v4253_v32 = vsel %vm4252_vm14, %v8056_v19, %v4249_v16  ;;  %v4264_v56 = vmul.f32 %v8058_v14, %v4018_v60  ;;  %8059 = vrcp.f32 %v4023_v30  ;;  %vm4269_vm3 = vweird.f32 %v8058_v14 }
 0x6ca   : > { %v4258_v48 = vsel %vm4255_vm15, %v4257_v53, %v4253_v32  ;;  %vm4270_vm5 = vmor %vm4268_vm4, %vm4269_vm3  ;;  %v4292_v28 = vand.u32 2147483648, %v4023_v30  ;;  %v4290_v55 = vand.u32 2147483647, %v4023_v30  ;;  %vm4286_vm8 = vweird.f32 %v4023_v30 }
 0x6cb   : > { %v4259_v37 = vmul.f32 %v11514_v54, %v4258_v48  ;;  %v4260_v44 = vmul.f32 %v14904_v61, %v4258_v48  ;;  %v4261_v0 = vmul.f32 %v11521_v11, %v4258_v48  ;;  %v4262_v36 = vmul.f32 %v11524_v9, %v4258_v48 }
 0x6cc   : > { %v4265_v26 = vsub.f32 1.0, %v4264_v56  ;;  %vm4291_vm10 = vcmp.eq.f32.partialorder %v4290_v55, 8.507059e+37 }
 0x6cd   : > { %4365 = vst [vmem:[%s8331_s5 + $0x180] sm:$0xff] %v4259_v37 }
 0x6ce   : > { %4366 = vst [vmem:[%s8331_s5 + $0x188] sm:$0xff] %v4260_v44  ;;  %v4266_v21 = vmul.f32 %v8058_v14, %v4265_v26 }
 0x6cf   : > { %v8060_v63 = vpop.eup %8059  ;;  %4367 = vst [vmem:[%s8331_s5 + $0x190] sm:$0xff] %v4261_v0 }
 0x6d0   : > { %4368 = vst [vmem:[%s8331_s5 + $0x198] sm:$0xff] %v4262_v36  ;;  %v4267_v43 = vadd.f32 %v8058_v14, %v4266_v21  ;;  %v4282_v12 = vmul.f32 %v8060_v63, %v4023_v30  ;;  %v4028_v54 = vpop.xlane.xlu1 %4027  ;;  %vm4287_vm7 = vweird.f32 %v8060_v63 }
 0x6d1   : > { %8061 = vrcp.f32 %v4028_v54  ;;  %vm4288_vm9 = vmor %vm4286_vm8, %vm4287_vm7  ;;  %v4310_v15 = vand.u32 2147483648, %v4028_v54  ;;  %v4308_v25 = vand.u32 2147483647, %v4028_v54  ;;  %vm4304_vm12 = vweird.f32 %v4028_v54 }
 0x6d2   : > { %v4271_v9 = vsel %vm4270_vm5, %v8058_v14, %v4267_v43  ;;  %v4283_v11 = vsub.f32 1.0, %v4282_v12 }
 0x6d3   : > { %v4276_v7 = vsel %vm4273_vm6, %v4275_v57, %v4271_v9  ;;  %v4311_v10 = vor.u32 1.1754944e-38, %v4310_v15  ;;  %vm4309_vm14 = vcmp.eq.f32.partialorder %v4308_v25, 8.507059e+37 }
 0x6d4   : > { %v4277_v4 = vmul.f32 %v11531_v41, %v4276_v7  ;;  %v4278_v39 = vmul.f32 %v11533_v50, %v4276_v7  ;;  %v4279_v33 = vmul.f32 %v11537_v22, %v4276_v7  ;;  %v4280_v5 = vmul.f32 %v11540_v46, %v4276_v7 }
 0x6d5   : > { %v4284_v8 = vmul.f32 %v8060_v63, %v4283_v11  ;;  %v4293_v41 = vor.u32 1.1754944e-38, %v4292_v28 }
 0x6d6   : > { %4369 = vst [vmem:[%s8331_s5 + $0x1a0] sm:$0xff] %v4277_v4 }
 0x6d7   : > { %v8062_v49 = vpop.eup %8061  ;;  %4370 = vst [vmem:[%s8331_s5 + $0x1a8] sm:$0xff] %v4278_v39  ;;  %v4285_v13 = vadd.f32 %v8060_v63, %v4284_v8 }
 0x6d8   : > { %4371 = vst [vmem:[%s8331_s5 + $0x1b0] sm:$0xff] %v4279_v33  ;;  %v4300_v50 = vmul.f32 %v8062_v49, %v4028_v54  ;;  %vm4305_vm11 = vweird.f32 %v8062_v49 }
 0x6d9   : > { %4372 = vst [vmem:[%s8331_s5 + $0x1b8] sm:$0xff] %v4280_v5  ;;  %v4289_v20 = vsel %vm4288_vm9, %v8060_v63, %v4285_v13  ;;  %vm4306_vm13 = vmor %vm4304_vm12, %vm4305_vm11 }
 0x6da   : > { %v4294_v22 = vsel %vm4291_vm10, %v4293_v41, %v4289_v20  ;;  %v4301_v46 = vsub.f32 1.0, %v4300_v50 }
 0x6db   : > { %v4295_v47 = vmul.f32 %v14905_v31, %v4294_v22  ;;  %v4296_v34 = vmul.f32 %v14906_v6, %v4294_v22  ;;  %v4297_v42 = vmul.f32 %v14907_v51, %v4294_v22  ;;  %v4298_v23 = vmul.f32 %v14908_v17, %v4294_v22 }
 0x6dc   : > { %v4302_v19 = vmul.f32 %v8062_v49, %v4301_v46 }
 0x6dd   : > { %4373 = vst [vmem:[%s8331_s5 + $0x1c0] sm:$0xff] %v4295_v47 }
 0x6de   : > { %4374 = vst [vmem:[%s8331_s5 + $0x1c8] sm:$0xff] %v4296_v34  ;;  %v4303_v29 = vadd.f32 %v8062_v49, %v4302_v19 }
 0x6df   : > { %4375 = vst [vmem:[%s8331_s5 + $0x1d0] sm:$0xff] %v4297_v42 }
 0x6e0   : > { %4376 = vst [vmem:[%s8331_s5 + $0x1d8] sm:$0xff] %v4298_v23  ;;  %v4307_v60 = vsel %vm4306_vm13, %v8062_v49, %v4303_v29 }
 0x6e1   : > { %v4312_v18 = vsel %vm4309_vm14, %v4311_v10, %v4307_v60 }
 0x6e2   : > { %v4313_v59 = vmul.f32 %v14909_v27, %v4312_v18  ;;  %v4314_v40 = vmul.f32 %v14910_v58, %v4312_v18  ;;  %v4315_v45 = vmul.f32 %v14911_v52, %v4312_v18  ;;  %v4316_v24 = vmul.f32 %v14912_v2, %v4312_v18 }
 0x6e4   : > { %4377 = vst [vmem:[%s8331_s5 + $0x1e0] sm:$0xff] %v4313_v59 }
 0x6e5   : > { %4378 = vst [vmem:[%s8331_s5 + $0x1e8] sm:$0xff] %v4314_v40 }
 0x6e6   : > { %4379 = vst [vmem:[%s8331_s5 + $0x1f0] sm:$0xff] %v4315_v45 }
 0x6e7   : > { %4380 = vst [vmem:[%s8331_s5 + $0x1f8] sm:$0xff] %v4316_v24 }
 0x6e8 PF: > { %v14913_v1 = vld [vmem:[#allocation4_spill] sm:$0xff]  ;;  %v14914_v3 = vld [vmem:[#allocation5_spill] sm:$0xff]  ;;  %v14915_v35 = vld [vmem:[#allocation6_spill] sm:$0xff] }
 0x6e9   : > { %7813 = vmatpush.msra.mxu1 %v14913_v1  ;;  %7814 = vmatpush.msra.mxu2 %v14913_v1  ;;  %v14916_v16 = vld [vmem:[#allocation7_spill] sm:$0xff]  ;;  %v14917_v14 = vld [vmem:[#allocation8_spill] sm:$0xff]  ;;  %v14918_v53 = vld [vmem:[#allocation9_spill] sm:$0xff] }
 0x6ea   : > { %7815 = vmatpush.msra.mxu3 %v14913_v1  ;;  %4525 = vmatpush.msra.mxu0 %v14913_v1  ;;  %v14919_v30 = vld [vmem:[#allocation10_spill] sm:$0xff]  ;;  %v14920_v32 = vld [vmem:[#allocation11_spill] sm:$0xff]  ;;  %v14921_v56 = vld [vmem:[#allocation12_spill] sm:$0xff] }
 0x6eb   : > { %7816 = vmatpush.msra.mxu1 %v14914_v3  ;;  %7817 = vmatpush.msra.mxu2 %v14914_v3  ;;  %v14922_v48 = vld [vmem:[#allocation13_spill] sm:$0xff]  ;;  %v14923_v37 = vld [vmem:[#allocation14_spill] sm:$0xff]  ;;  %v14924_v61 = vld [vmem:[#allocation15_spill] sm:$0xff] }
 0x6ec   : > { %7818 = vmatpush.msra.mxu3 %v14914_v3  ;;  %4526 = vmatpush.msra.mxu0 %v14914_v3  ;;  %v14925_v44 = vld [vmem:[#allocation16_spill] sm:$0xff]  ;;  %v14926_v0 = vld [vmem:[#allocation17_spill] sm:$0xff]  ;;  %v14927_v36 = vld [vmem:[#allocation18_spill] sm:$0xff] }
 0x6ed   : > { %7819 = vmatpush.msra.mxu1 %v14915_v35  ;;  %7820 = vmatpush.msra.mxu2 %v14915_v35  ;;  %v4417_v26 = vld [vmem:[#allocation3 + $0x428] sm:$0xff]  ;;  %v4453_v38 = vld [vmem:[#allocation3 + $0x3c0] sm:$0xff]  ;;  %v14928_v21 = vld [vmem:[#allocation19_spill] sm:$0xff] }
 0x6ee   : > { %7821 = vmatpush.msra.mxu3 %v14915_v35  ;;  %4527 = vmatpush.msra.mxu0 %v14915_v35  ;;  %v4489_v62 = vld [vmem:[#allocation3 + $0x2b8] sm:$0xff]  ;;  %v14929_v63 = vld [vmem:[#allocation20_spill] sm:$0xff]  ;;  %v14930_v43 = vld [vmem:[#allocation21_spill] sm:$0xff] }
 0x6ef   : > { %7822 = vmatpush.msra.mxu1 %v14916_v16  ;;  %7823 = vmatpush.msra.mxu2 %v14916_v16  ;;  %v14931_v12 = vld [vmem:[#allocation22_spill] sm:$0xff]  ;;  %v14932_v54 = vld [vmem:[#allocation23_spill] sm:$0xff]  ;;  %v4381_v57 = vld [vmem:[#allocation3 + $0x600] sm:$0xff] }
 0x6f0   : > { %7824 = vmatpush.msra.mxu3 %v14916_v16  ;;  %4528 = vmatpush.msra.mxu0 %v14916_v16  ;;  %v14933_v9 = vld [vmem:[#allocation24_spill] sm:$0xff]  ;;  %v14934_v11 = vld [vmem:[#allocation25_spill] sm:$0xff]  ;;  %v14935_v7 = vld [vmem:[#allocation26_spill] sm:$0xff] }
 0x6f1   : > { %7825 = vmatpush.msra.mxu1 %v14917_v14  ;;  %7826 = vmatpush.msra.mxu2 %v14917_v14  ;;  %v4462_v4 = vld [vmem:[#allocation3 + $0x1f0] sm:$0xff]  ;;  %v14936_v39 = vld [vmem:[#allocation27_spill] sm:$0xff]  ;;  %v4426_v33 = vld [vmem:[#allocation3 + $0x4a0] sm:$0xff] }
 0x6f2   : > { %7827 = vmatpush.msra.mxu3 %v14917_v14  ;;  %4529 = vmatpush.msra.mxu0 %v14917_v14  ;;  %v14937_v28 = vld [vmem:[#allocation28_spill] sm:$0xff]  ;;  %v14938_v5 = vld [vmem:[#allocation29_spill] sm:$0xff]  ;;  %v14939_v8 = vld [vmem:[#allocation30_spill] sm:$0xff] }
 0x6f3   : > { %7828 = vmatpush.msra.mxu1 %v14918_v53  ;;  %7829 = vmatpush.msra.mxu2 %v14918_v53  ;;  %v4498_v55 = vld [vmem:[#allocation3 + $0x268] sm:$0xff]  ;;  %v14940_v49 = vld [vmem:[#allocation31_spill] sm:$0xff]  ;;  %v14941_v13 = vld [vmem:[#allocation32_spill] sm:$0xff] }
 0x6f4   : > { %7830 = vmatpush.msra.mxu3 %v14918_v53  ;;  %4530 = vmatpush.msra.mxu0 %v14918_v53  ;;  %v14942_v41 = vld [vmem:[#allocation33_spill] sm:$0xff]  ;;  %v14943_v50 = vld [vmem:[#allocation34_spill] sm:$0xff]  ;;  %v14944_v20 = vld [vmem:[#allocation35_spill] sm:$0xff] }
 0x6f5   : > { %7831 = vmatpush.msra.mxu1 %v14919_v30  ;;  %7832 = vmatpush.msra.mxu2 %v14919_v30  ;;  %v14945_v22 = vld [vmem:[#allocation36_spill] sm:$0xff]  ;;  %v14946_v46 = vld [vmem:[#allocation37_spill] sm:$0xff]  ;;  %v14947_v31 = vld [vmem:[#allocation38_spill] sm:$0xff] }
 0x6f6   : > { %7833 = vmatpush.msra.mxu3 %v14919_v30  ;;  %4531 = vmatpush.msra.mxu0 %v14919_v30  ;;  %v14948_v47 = vld [vmem:[#allocation39_spill] sm:$0xff]  ;;  %v14949_v6 = vld [vmem:[#allocation40_spill] sm:$0xff]  ;;  %v4471_v34 = vld [vmem:[#allocation3 + $0x90] sm:$0xff] }
 0x6f7   : > { %7834 = vmatpush.msra.mxu1 %v14920_v32  ;;  %7835 = vmatpush.msra.mxu2 %v14920_v32  ;;  %v14950_v51 = vld [vmem:[#allocation41_spill] sm:$0xff]  ;;  %v14951_v42 = vld [vmem:[#allocation42_spill] sm:$0xff]  ;;  %v14952_v17 = vld [vmem:[#allocation43_spill] sm:$0xff] }
 0x6f8   : > { %7836 = vmatpush.msra.mxu3 %v14920_v32  ;;  %4532 = vmatpush.msra.mxu0 %v14920_v32  ;;  %v4435_v15 = vld [vmem:[#allocation3 + $0x408] sm:$0xff]  ;;  %v14953_v23 = vld [vmem:[#allocation44_spill] sm:$0xff]  ;;  %v14955_v29 = vld [vmem:[#allocation46_spill] sm:$0xff] }
 0x6f9   : > { %7837 = vmatpush.msra.mxu1 %v14921_v56  ;;  %7838 = vmatpush.msra.mxu2 %v14921_v56  ;;  %v14954_v19 = vld [vmem:[#allocation45_spill] sm:$0xff]  ;;  %v4390_v25 = vld [vmem:[#allocation3 + $0x820] sm:$0xff]  ;;  %v4507_v10 = vld [vmem:[#allocation3 + $0x3d0] sm:$0xff] }
 0x6fa   : > { %7839 = vmatpush.msra.mxu3 %v14921_v56  ;;  %4533 = vmatpush.msra.mxu0 %v14921_v56  ;;  %v14956_v60 = vld [vmem:[#allocation47_spill] sm:$0xff]  ;;  %v14957_v18 = vld [vmem:[#allocation48_spill] sm:$0xff]  ;;  %v14958_v27 = vld [vmem:[#allocation49_spill] sm:$0xff] }
 0x6fb   : > { %7840 = vmatpush.msra.mxu1 %v14922_v48  ;;  %7841 = vmatpush.msra.mxu2 %v14922_v48  ;;  %v14959_v59 = vld [vmem:[#allocation50_spill] sm:$0xff]  ;;  %v14960_v58 = vld [vmem:[#allocation51_spill] sm:$0xff]  ;;  %v14961_v40 = vld [vmem:[#allocation52_spill] sm:$0xff] }
 0x6fc   : > { %7842 = vmatpush.msra.mxu3 %v14922_v48  ;;  %4534 = vmatpush.msra.mxu0 %v14922_v48  ;;  %v14962_v52 = vld [vmem:[#allocation53_spill] sm:$0xff]  ;;  %v14963_v45 = vld [vmem:[#allocation54_spill] sm:$0xff]  ;;  %v14964_v2 = vld [vmem:[#allocation55_spill] sm:$0xff] }
 0x6fd   : > { %7843 = vmatpush.msra.mxu1 %v14923_v37  ;;  %7844 = vmatpush.msra.mxu2 %v14923_v37  ;;  %v14965_v24 = vld [vmem:[#allocation56_spill] sm:$0xff]  ;;  %v4480_v1 = vld [vmem:[#allocation3 + $0x3b8] sm:$0xff]  ;;  %v14966_v3 = vld [vmem:[#allocation57_spill] sm:$0xff] }
 0x6fe   : > { %7845 = vmatpush.msra.mxu3 %v14923_v37  ;;  %4535 = vmatpush.msra.mxu0 %v14923_v37  ;;  %v14967_v35 = vld [vmem:[#allocation58_spill] sm:$0xff]  ;;  %v14968_v14 = vld [vmem:[#allocation59_spill] sm:$0xff]  ;;  %v14969_v53 = vld [vmem:[#allocation60_spill] sm:$0xff] }
 0x6ff   : > { %7846 = vmatpush.msra.mxu1 %v14924_v61  ;;  %7847 = vmatpush.msra.mxu2 %v14924_v61  ;;  %v4444_v16 = vld [vmem:[#allocation3 + $0x510] sm:$0xff]  ;;  %v14970_v30 = vld [vmem:[#allocation61_spill] sm:$0xff]  ;;  %v4516_v48 = vld [vmem:[#allocation3 + $0x460] sm:$0xff] }
 0x700   : > { %7848 = vmatpush.msra.mxu3 %v14924_v61  ;;  %4536 = vmatpush.msra.mxu0 %v14924_v61  ;;  %v4399_v32 = vld [vmem:[#allocation3 + $0x550] sm:$0xff]  ;;  %v14972_v37 = vld [vmem:[#allocation63_spill] sm:$0xff]  ;;  %v14973_v61 = vld [vmem:[#allocation64_spill] sm:$0xff] }
 0x701   : > { %7849 = vmatpush.msra.mxu1 %v14925_v44  ;;  %7850 = vmatpush.msra.mxu2 %v14925_v44  ;;  %v14971_v56 = vld [vmem:[#allocation62_spill] sm:$0xff] }
 0x702   : > { %7851 = vmatpush.msra.mxu3 %v14925_v44  ;;  %4537 = vmatpush.msra.mxu0 %v14925_v44  ;;  %v14974_v44 = vld [vmem:[#allocation65_spill] sm:$0xff] }
 0x703   : > { %7852 = vmatpush.msra.mxu1 %v14926_v0  ;;  %7853 = vmatpush.msra.mxu2 %v14926_v0 }
 0x704   : > { %7854 = vmatpush.msra.mxu3 %v14926_v0  ;;  %4538 = vmatpush.msra.mxu0 %v14926_v0  ;;  %v14975_v0 = vld [vmem:[#allocation67_spill] sm:$0xff] }
 0x705   : > { %7855 = vmatpush.msra.mxu1 %v14927_v36  ;;  %7856 = vmatpush.msra.mxu2 %v14927_v36 }
 0x706   : > { %7857 = vmatpush.msra.mxu3 %v14927_v36  ;;  %4539 = vmatpush.msra.mxu0 %v14927_v36  ;;  %v14976_v36 = vld [vmem:[#allocation68_spill] sm:$0xff] }
 0x707   : > { %7858 = vmatpush.msra.mxu1 %v14928_v21  ;;  %7859 = vmatpush.msra.mxu2 %v14928_v21 }
 0x708   : > { %4553 = vmatmul.f32.vlgmr.msra.gmra.mxu1 %v4417_v26  ;;  %4565 = vmatmul.f32.vlgmr.msra.gmra.mxu2 %v4453_v38  ;;  %v14977_v26 = vld [vmem:[#allocation69_spill] sm:$0xff]  ;;  %v14978_v38 = vld [vmem:[#allocation70_spill] sm:$0xff] }
 0x709   : > { %4655 = vmatpush.msrb.mxu2 %v14929_v63  ;;  %7860 = vmatpush.msra.mxu3 %v14928_v21  ;;  %v14981_v63 = vld [vmem:[#allocation73_spill] sm:$0xff] }
 0x70a   : > { %4590 = vmatpush.msrb.mxu1 %v14930_v43  ;;  %4577 = vmatmul.f32.vlgmr.msra.gmra.mxu3 %v4489_v62  ;;  %v14980_v62 = vld [vmem:[#allocation72_spill] sm:$0xff]  ;;  %v4383_v43 = vld [vmem:[#allocation3 + $0x7a8] sm:$0xff] }
 0x70b   : > { %4656 = vmatpush.msrb.mxu2 %v14931_v12  ;;  %4720 = vmatpush.msrb.mxu3 %v14932_v54  ;;  %v14982_v12 = vld [vmem:[#allocation74_spill] sm:$0xff]  ;;  %v14983_v54 = vld [vmem:[#allocation75_spill] sm:$0xff] }
 0x70c   : > { %4591 = vmatpush.msrb.mxu1 %v14933_v9  ;;  %4540 = vmatpush.msra.mxu0 %v14928_v21  ;;  %v14979_v21 = vld [vmem:[#allocation71_spill] sm:$0xff]  ;;  %v14984_v9 = vld [vmem:[#allocation76_spill] sm:$0xff] }
 0x70d   : > { %4657 = vmatpush.msrb.mxu2 %v14934_v11  ;;  %4721 = vmatpush.msrb.mxu3 %v14935_v7  ;;  %v14985_v11 = vld [vmem:[#allocation77_spill] sm:$0xff]  ;;  %v14986_v7 = vld [vmem:[#allocation78_spill] sm:$0xff] }
 0x70e   : > { %4592 = vmatpush.msrb.mxu1 %v14936_v39  ;;  %4541 = vmatmul.f32.vlgmr.msra.gmra.mxu0 %v4381_v57  ;;  %v4382_v57 = vld [vmem:[#allocation3 + $0x608] sm:$0xff]  ;;  %v4384_v39 = vld [vmem:[#allocation3 + $0x118] sm:$0xff] }
 0x70f   : > { %4658 = vmatpush.msrb.mxu2 %v14937_v28  ;;  %4722 = vmatpush.msrb.mxu3 %v14938_v5  ;;  %v14988_v28 = vld [vmem:[#allocation80_spill] sm:$0xff]  ;;  %v14989_v5 = vld [vmem:[#allocation86_spill] sm:$0xff] }
 0x710   : > { %4593 = vmatpush.msrb.mxu1 %v14939_v8  ;;  %4568 = vmatmul.f32.gmra.mxu2 %v4462_v4  ;;  %v4408_v4 = vld [vmem:[#allocation3 + $0x788] sm:$0xff] }
 0x711   : > { %4556 = vmatmul.f32.gmra.mxu1 %v4426_v33  ;;  %4659 = vmatpush.msrb.mxu2 %v14940_v49  ;;  %v14987_v33 = vld [vmem:[#allocation79_spill] sm:$0xff]  ;;  %v14990_v8 = vld [vmem:[#allocation81_spill] sm:$0xff]  ;;  %v14992_v49 = vld [vmem:[#allocation88_spill] sm:$0xff] }
 0x712   : > { %4723 = vmatpush.msrb.mxu3 %v14941_v13  ;;  %4594 = vmatpush.msrb.mxu1 %v14942_v41  ;;  %v4392_v13 = vld [vmem:[#allocation3 + $0x670] sm:$0xff]  ;;  %v14993_v41 = vld [vmem:[#allocation89_spill] sm:$0xff] }
 0x713   : > { %4580 = vmatmul.f32.gmra.mxu3 %v4498_v55  ;;  %4660 = vmatpush.msrb.mxu2 %v14943_v50  ;;  %v14991_v55 = vld [vmem:[#allocation87_spill] sm:$0xff]  ;;  %v14994_v50 = vld [vmem:[#allocation82_spill] sm:$0xff] }
 0x714   : > { %4724 = vmatpush.msrb.mxu3 %v14944_v20  ;;  %4785 = vmatpush.msrb.mxu0 %v14945_v22  ;;  %v4391_v20 = vld [vmem:[#allocation3 + $0x120] sm:$0xff]  ;;  %v14995_v22 = vld [vmem:[#allocation90_spill] sm:$0xff] }
 0x715   : > { %4595 = vmatpush.msrb.mxu1 %v14946_v46  ;;  %4661 = vmatpush.msrb.mxu2 %v14947_v31  ;;  %v14996_v46 = vld [vmem:[#allocation92_spill] sm:$0xff]  ;;  %v14997_v31 = vld [vmem:[#allocation93_spill] sm:$0xff] }
 0x716   : > { %4725 = vmatpush.msrb.mxu3 %v14948_v47  ;;  %4786 = vmatpush.msrb.mxu0 %v14949_v6  ;;  %v14998_v47 = vld [vmem:[#allocation83_spill] sm:$0xff]  ;;  %v4393_v6 = vld [vmem:[#allocation3 + $0x448] sm:$0xff] }
 0x717   : > { %4596 = vmatpush.msrb.mxu1 %v14950_v51  ;;  %4662 = vmatpush.msrb.mxu2 %v14951_v42  ;;  %v14999_v51 = vld [vmem:[#allocation94_spill] sm:$0xff]  ;;  %v15000_v42 = vld [vmem:[#allocation84_spill] sm:$0xff] }
 0x718   : > { %4726 = vmatpush.msrb.mxu3 %v14952_v17  ;;  %4787 = vmatpush.msrb.mxu0 %v14953_v23  ;;  %v15002_v17 = vld [vmem:[#allocation91_spill] sm:$0xff]  ;;  %v15003_v23 = vld [vmem:[#allocation97_spill] sm:$0xff] }
 0x719   : > { %4597 = vmatpush.msrb.mxu1 %v14954_v19  ;;  %4571 = vmatmul.f32.gmra.mxu2 %v4471_v34  ;;  %v11833_v34 = vld [vmem:[#allocation3 + $0x2d0] sm:$0xff]  ;;  %v4401_v19 = vld [vmem:[#allocation3 + $0x8e0] sm:$0xff] }
 0x71a   : > { %4559 = vmatmul.f32.gmra.mxu1 %v4435_v15  ;;  %4663 = vmatpush.msrb.mxu2 %v14955_v29  ;;  %v15001_v15 = vld [vmem:[#allocation96_spill] sm:$0xff] }
 0x71b   : > { %4727 = vmatpush.msrb.mxu3 %v14956_v60  ;;  %4788 = vmatpush.msrb.mxu0 %v14957_v18  ;;  %v15005_v29 = vld [vmem:[#allocation100_spill] sm:$0xff]  ;;  %v15006_v60 = vld [vmem:[#allocation95_spill] sm:$0xff]  ;;  %v15007_v18 = vld [vmem:[#allocation101_spill] sm:$0xff] }
 0x71c   : > { %4598 = vmatpush.msrb.mxu1 %v14958_v27  ;;  %4544 = vmatmul.f32.gmra.mxu0 %v4390_v25  ;;  %v15004_v25 = vld [vmem:[#allocation98_spill] sm:$0xff] }
 0x71d   : > { %4583 = vmatmul.f32.gmra.mxu3 %v4507_v10  ;;  %4664 = vmatpush.msrb.mxu2 %v14959_v59  ;;  %v4400_v10 = vld [vmem:[#allocation3] sm:$0xff]  ;;  %v15008_v27 = vld [vmem:[#allocation102_spill] sm:$0xff] }
 0x71e   : > { %4728 = vmatpush.msrb.mxu3 %v14960_v58  ;;  %4789 = vmatpush.msrb.mxu0 %v14961_v40  ;;  %v15009_v59 = vld [vmem:[#allocation104_spill] sm:$0xff]  ;;  %v4402_v58 = vld [vmem:[#allocation3 + $0x270] sm:$0xff]  ;;  %v11847_v40 = vld [vmem:[#allocation3 + $0x468] sm:$0xff] }
 0x71f   : > { %4599 = vmatpush.msrb.mxu1 %v14962_v52  ;;  %4665 = vmatpush.msrb.mxu2 %v14963_v45  ;;  %v15010_v52 = vld [vmem:[#allocation99_spill] sm:$0xff]  ;;  %v15011_v45 = vld [vmem:[#allocation105_spill] sm:$0xff] }
 0x720   : > { %4729 = vmatpush.msrb.mxu3 %v14964_v2  ;;  %4790 = vmatpush.msrb.mxu0 %v14965_v24  ;;  %v15012_v2 = vld [vmem:[#allocation103_spill] sm:$0xff]  ;;  %v15013_v24 = vld [vmem:[#allocation106_spill] sm:$0xff] }
 0x721   : > { %4600 = vmatpush.msrb.mxu1 %v14966_v3  ;;  %4666 = vmatpush.msrb.mxu2 %v14967_v35  ;;  %v15015_v3 = vld [vmem:[#allocation108_spill] sm:$0xff]  ;;  %v4410_v35 = vld [vmem:[#allocation3 + $0x378] sm:$0xff] }
 0x722   : > { %4730 = vmatpush.msrb.mxu3 %v14968_v14  ;;  %4791 = vmatpush.msrb.mxu0 %v14969_v53  ;;  %v15017_v14 = vld [vmem:[#allocation110_spill] sm:$0xff]  ;;  %v4409_v53 = vld [vmem:[#allocation3 + $0x228] sm:$0xff] }
 0x723   : > { %4601 = vmatpush.msrb.mxu1 %v14970_v30  ;;  %4574 = vmatmul.f32.gmra.mxu2 %v4480_v1  ;;  %v15014_v1 = vld [vmem:[#allocation107_spill] sm:$0xff] }
 0x724   : > { %4562 = vmatmul.f32.gmra.mxu1 %v4444_v16  ;;  %4667 = vmatpush.msrb.mxu2 %v14971_v56  ;;  %v15016_v16 = vld [vmem:[#allocation109_spill] sm:$0xff]  ;;  %v15018_v30 = vld [vmem:[#allocation111_spill] sm:$0xff] }
 0x725   : > { %4731 = vmatpush.msrb.mxu3 %v14972_v37  ;;  %4792 = vmatpush.msrb.mxu0 %v14973_v61  ;;  %v15020_v56 = vld [vmem:[#allocation113_spill] sm:$0xff]  ;;  %v4411_v37 = vld [vmem:[#allocation3 + $0x4e0] sm:$0xff] }
 0x726   : > { %4602 = vmatpush.msrb.mxu1 %v14974_v44  ;;  %4547 = vmatmul.f32.gmra.mxu0 %v4399_v32  ;;  %v15019_v32 = vld [vmem:[#allocation112_spill] sm:$0xff]  ;;  %v15022_v44 = vld [vmem:[#allocation115_spill] sm:$0xff] }
 0x727   : > { %4586 = vmatmul.f32.gmra.mxu3 %v4516_v48  ;;  %4668 = vmatpush.msrb.mxu2 %v14975_v0  ;;  %v15021_v48 = vld [vmem:[#allocation114_spill] sm:$0xff]  ;;  %v11862_v61 = vld [vmem:[#allocation3 + $0xa0] sm:$0xff]  ;;  %v15023_v0 = vld [vmem:[#allocation117_spill] sm:$0xff] }
 0x728   : > { %4732 = vmatpush.msrb.mxu3 %v14976_v36  ;;  %4793 = vmatpush.msrb.mxu0 %v14977_v26  ;;  %v15024_v36 = vld [vmem:[#allocation116_spill] sm:$0xff]  ;;  %v15025_v26 = vld [vmem:[#allocation119_spill] sm:$0xff] }
 0x729   : > { %4603 = vmatpush.msrb.mxu1 %v14978_v38  ;;  %4669 = vmatpush.msrb.mxu2 %v14979_v21  ;;  %v15026_v38 = vld [vmem:[#allocation120_spill] sm:$0xff]  ;;  %v15027_v21 = vld [vmem:[#allocation118_spill] sm:$0xff] }
 0x72a   : > { %4733 = vmatpush.msrb.mxu3 %v14980_v62  ;;  %4794 = vmatpush.msrb.mxu0 %v14981_v63  ;;  %v4419_v62 = vld [vmem:[#allocation3 + $0x330] sm:$0xff]  ;;  %v15028_v63 = vld [vmem:[#allocation121_spill] sm:$0xff] }
 0x72b   : > { %4604 = vmatpush.msrb.mxu1 %v14982_v12  ;;  %4670 = vmatpush.msrb.mxu2 %v14983_v54  ;;  %v4418_v12 = vld [vmem:[#allocation3 + $0x158] sm:$0xff]  ;;  %v15030_v54 = vld [vmem:[#allocation125_spill] sm:$0xff] }
 0x72c   : > { %4734 = vmatpush.msrb.mxu3 %v14984_v9  ;;  %4795 = vmatpush.msrb.mxu0 %v14985_v11  ;;  %v15032_v9 = vld [vmem:[#allocation124_spill] sm:$0xff]  ;;  %v15033_v11 = vld [vmem:[#allocation127_spill] sm:$0xff] }
 0x72d   : > { %4605 = vmatpush.msrb.mxu1 %v14986_v7  ;;  %4671 = vmatmul.f32.vlgmr.msrb.gmra.mxu2 %v4383_v43  ;;  %v15029_v43 = vld [vmem:[#allocation123_spill] sm:$0xff]  ;;  %v4420_v7 = vld [vmem:[#allocation3 + $0x310] sm:$0xff] }
 0x72e   : > { %4606 = vmatmul.f32.vlgmr.msrb.gmra.mxu1 %v4382_v57  ;;  %4735 = vmatpush.msrb.mxu3 %v14987_v33  ;;  %v15031_v57 = vld [vmem:[#allocation122_spill] sm:$0xff]  ;;  %v15035_v33 = vld [vmem:[#allocation128_spill] sm:$0xff] }
 0x72f   : > { %4796 = vmatpush.msrb.mxu0 %v14988_v28  ;;  %4915 = vmatpush.msra.mxu2 %v14989_v5  ;;  %v15036_v28 = vld [vmem:[#allocation126_spill] sm:$0xff]  ;;  %v15037_v5 = vld [vmem:[#allocation131_spill] sm:$0xff] }
 0x730   : > { %4550 = vmatmul.f32.gmra.mxu0 %v4408_v4  ;;  %4736 = vmatmul.f32.vlgmr.msrb.gmra.mxu3 %v4384_v39  ;;  %v11877_v4 = vld [vmem:[#allocation3 + $0x1d8] sm:$0xff]  ;;  %v15034_v39 = vld [vmem:[#allocation130_spill] sm:$0xff] }
 0x731   : > { %4797 = vmatpush.msrb.mxu0 %v14990_v8  ;;  %4980 = vmatpush.msra.mxu3 %v14991_v55  ;;  %v15038_v8 = vld [vmem:[#allocation136_spill] sm:$0xff]  ;;  %v15039_v55 = vld [vmem:[#allocation129_spill] sm:$0xff] }
 0x732   : > { %4850 = vmatpush.msra.mxu1 %v14992_v49  ;;  %4916 = vmatpush.msra.mxu2 %v14993_v41  ;;  %v4428_v49 = vld [vmem:[#allocation3 + $0x288] sm:$0xff]  ;;  %v15041_v41 = vld [vmem:[#allocation134_spill] sm:$0xff] }
 0x733   : > { %4798 = vmatpush.msrb.mxu0 %v14994_v50  ;;  %4981 = vmatpush.msra.mxu3 %v14995_v22  ;;  %v4427_v50 = vld [vmem:[#allocation3 + $0xc0] sm:$0xff]  ;;  %v15043_v22 = vld [vmem:[#allocation133_spill] sm:$0xff] }
 0x734   : > { %4851 = vmatpush.msra.mxu1 %v14996_v46  ;;  %4917 = vmatpush.msra.mxu2 %v14997_v31  ;;  %v15044_v46 = vld [vmem:[#allocation135_spill] sm:$0xff]  ;;  %v15045_v31 = vld [vmem:[#allocation137_spill] sm:$0xff] }
 0x735   : > { %4799 = vmatpush.msrb.mxu0 %v14998_v47  ;;  %4674 = vmatmul.f32.gmra.mxu2 %v4392_v13  ;;  %v15040_v13 = vld [vmem:[#allocation132_spill] sm:$0xff]  ;;  %v4429_v47 = vld [vmem:[#allocation3 + $0x3c8] sm:$0xff] }
 0x736   : > { %4609 = vmatmul.f32.gmra.mxu1 %v4391_v20  ;;  %4982 = vmatpush.msra.mxu3 %v14999_v51  ;;  %v15042_v20 = vld [vmem:[#allocation143_spill] sm:$0xff]  ;;  %v15046_v51 = vld [vmem:[#allocation146_spill] sm:$0xff] }
 0x737   : > { %4800 = vmatpush.msrb.mxu0 %v15000_v42  ;;  %4852 = vmatpush.msra.mxu1 %v15001_v15  ;;  %v15047_v42 = vld [vmem:[#allocation139_spill] sm:$0xff]  ;;  %v15048_v15 = vld [vmem:[#allocation138_spill] sm:$0xff] }
 0x738   : > { %4739 = vmatmul.f32.gmra.mxu3 %v4393_v6  ;;  %4801 = vmatmul.f32.vlgmr.msrb.gmra.mxu0 %v11833_v34  ;;  %v11892_v6 = vld [vmem:[#allocation3 + $0x6d0] sm:$0xff] }
 0x739   : > { %5045 = vmatpush.msra.mxu0 %v15002_v17  ;;  %4918 = vmatpush.msra.mxu2 %v15003_v23  ;;  %v15049_v17 = vld [vmem:[#allocation140_spill] sm:$0xff]  ;;  %v15050_v23 = vld [vmem:[#allocation147_spill] sm:$0xff] }
 0x73a   : > { %4983 = vmatpush.msra.mxu3 %v15004_v25  ;;  %4853 = vmatpush.msra.mxu1 %v15005_v29  ;;  %v4437_v25 = vld [vmem:[#allocation3 + $0x40] sm:$0xff]  ;;  %v15052_v29 = vld [vmem:[#allocation142_spill] sm:$0xff] }
 0x73b   : > { %5046 = vmatpush.msra.mxu0 %v15006_v60  ;;  %4919 = vmatpush.msra.mxu2 %v15007_v18  ;;  %v4436_v60 = vld [vmem:[#allocation3 + $0x8d8] sm:$0xff]  ;;  %v15054_v18 = vld [vmem:[#allocation148_spill] sm:$0xff] }
 0x73c   : > { %4984 = vmatpush.msra.mxu3 %v15008_v27  ;;  %4854 = vmatpush.msra.mxu1 %v15009_v59  ;;  %v15055_v27 = vld [vmem:[#allocation145_spill] sm:$0xff]  ;;  %v4438_v59 = vld [vmem:[#allocation3 + $0x2e0] sm:$0xff] }
 0x73d   : > { %4677 = vmatmul.f32.gmra.mxu2 %v4401_v19  ;;  %5047 = vmatpush.msra.mxu0 %v15010_v52  ;;  %v15051_v19 = vld [vmem:[#allocation141_spill] sm:$0xff]  ;;  %v15056_v52 = vld [vmem:[#allocation66_spill] sm:$0xff] }
 0x73e   : > { %4612 = vmatmul.f32.gmra.mxu1 %v4400_v10  ;;  %4920 = vmatpush.msra.mxu2 %v15011_v45  ;;  %v15053_v10 = vld [vmem:[#allocation144_spill] sm:$0xff]  ;;  %v4446_v45 = vld [vmem:[#allocation3 + $0x2f0] sm:$0xff] }
 0x73f   : > { %5048 = vmatpush.msra.mxu0 %v15012_v2  ;;  %4985 = vmatpush.msra.mxu3 %v15013_v24  ;;  %v4445_v2 = vld [vmem:[#allocation3 + $0x248] sm:$0xff]  ;;  %v4447_v24 = vld [vmem:[#allocation3 + $0x7d0] sm:$0xff] }
 0x740   : > { %4742 = vmatmul.f32.gmra.mxu3 %v4402_v58  ;;  %4804 = vmatmul.f32.gmra.mxu0 %v11847_v40  ;;  %v11905_v58 = vld [vmem:[#allocation3 + $0x7d8] sm:$0xff] }
 0x741   : > { %5049 = vmatpush.msra.mxu0 %v15014_v1  ;;  %4855 = vmatpush.msra.mxu1 %v15015_v3  ;;  %v11909_v1 = vld [vmem:[#allocation3 + $0x68] sm:$0xff]  ;;  %v4455_v3 = vld [vmem:[#allocation3 + $0x30] sm:$0xff] }
 0x742   : > { %4921 = vmatpush.msra.mxu2 %v15016_v16  ;;  %4986 = vmatpush.msra.mxu3 %v15017_v14  ;;  %v4456_v16 = vld [vmem:[#allocation3 + $0x790] sm:$0xff]  ;;  %v11912_v14 = vld [vmem:[#allocation3 + $0x840] sm:$0xff] }
 0x743   : > { %5050 = vmatpush.msra.mxu0 %v15018_v30  ;;  %4856 = vmatpush.msra.mxu1 %v15019_v32  ;;  %v4463_v30 = vld [vmem:[#allocation3 + $0xa8] sm:$0xff] }
 0x744   : > { %4922 = vmatpush.msra.mxu2 %v15020_v56  ;;  %4987 = vmatpush.msra.mxu3 %v15021_v48  ;;  %v4465_v32 = vld [vmem:[#allocation3 + $0x8] sm:$0xff]  ;;  %v4473_v48 = vld [vmem:[#allocation3 + $0x590] sm:$0xff] }
 0x745   : > { %4680 = vmatmul.f32.gmra.mxu2 %v4410_v35  ;;  %5051 = vmatpush.msra.mxu0 %v15022_v44  ;;  %v4454_v35 = vld [vmem:[#allocation3 + $0x150] sm:$0xff]  ;;  %v11915_v56 = vld [vmem:[#allocation3 + $0x488] sm:$0xff] }
 0x746   : > { %4615 = vmatmul.f32.gmra.mxu1 %v4409_v53  ;;  %4923 = vmatpush.msra.mxu2 %v15023_v0  ;;  %v4464_v53 = vld [vmem:[#allocation3 + $0x450] sm:$0xff]  ;;  %v11918_v0 = vld [vmem:[#allocation3 + $0x5d8] sm:$0xff] }
 0x747   : > { %4857 = vmatpush.msra.mxu1 %v15024_v36  ;;  %4988 = vmatpush.msra.mxu3 %v15025_v26  ;;  %v4474_v44 = vld [vmem:[#allocation3 + $0x850] sm:$0xff]  ;;  %v4482_v36 = vld [vmem:[#allocation3 + $0x888] sm:$0xff]  ;;  %v4481_v26 = vld [vmem:[#allocation3 + $0x4d8] sm:$0xff] }
 0x748   : > { %4745 = vmatmul.f32.gmra.mxu3 %v4411_v37  ;;  %4807 = vmatmul.f32.gmra.mxu0 %v11862_v61  ;;  %v4472_v37 = vld [vmem:[#allocation3 + $0x4b0] sm:$0xff] }
 0x749   : > { %5052 = vmatpush.msra.mxu0 %v15026_v38  ;;  %4858 = vmatpush.msra.mxu1 %v15027_v21  ;;  %v4483_v38 = vld [vmem:[#allocation3 + $0x60] sm:$0xff]  ;;  %v11921_v21 = vld [vmem:[#allocation3 + $0x478] sm:$0xff] }
 0x74a   : > { %4924 = vmatpush.msra.mxu2 %v15028_v63  ;;  %4989 = vmatpush.msra.mxu3 %v15029_v43  ;;  %v4491_v63 = vld [vmem:[#allocation3 + $0x10] sm:$0xff]  ;;  %v4490_v43 = vld [vmem:[#allocation3 + $0x240] sm:$0xff] }
 0x74b   : > { %5053 = vmatpush.msra.mxu0 %v15030_v54  ;;  %4859 = vmatpush.msra.mxu1 %v15031_v57  ;;  %v4492_v54 = vld [vmem:[#allocation3 + $0x720] sm:$0xff]  ;;  %v11928_v57 = vld [vmem:[#allocation3 + $0x578] sm:$0xff] }
 0x74c   : > { %4925 = vmatpush.msra.mxu2 %v15032_v9  ;;  %4990 = vmatpush.msra.mxu3 %v15033_v11 }
 0x74d   : > { %4683 = vmatmul.f32.gmra.mxu2 %v4419_v62  ;;  %5054 = vmatpush.msra.mxu0 %v15034_v39  ;;  %v4500_v39 = vld [vmem:[#allocation3 + $0x4e8] sm:$0xff] }
 0x74e   : > { %4618 = vmatmul.f32.gmra.mxu1 %v4418_v12  ;;  %4926 = vmatpush.msra.mxu2 %v15035_v33  ;;  %v4499_v33 = vld [vmem:[#allocation3 + $0x3a8] sm:$0xff] }
 0x74f   : > { %4860 = vmatpush.msra.mxu1 %v15036_v28  ;;  %4991 = vmatpush.msra.mxu3 %v15037_v5  ;;  %v4501_v5 = vld [vmem:[#allocation3 + $0x168] sm:$0xff] }
 0x750   : > { %4748 = vmatmul.f32.gmra.mxu3 %v4420_v7  ;;  %4810 = vmatmul.f32.gmra.mxu0 %v11877_v4 }
 0x751   : > { %5055 = vmatpush.msra.mxu0 %v15038_v8  ;;  %4861 = vmatpush.msra.mxu1 %v15039_v55  ;;  %v11937_v8 = vld [vmem:[#allocation3 + $0x1b8] sm:$0xff] }
 0x752   : > { %4927 = vmatpush.msra.mxu2 %v15040_v13  ;;  %4992 = vmatpush.msra.mxu3 %v15041_v41  ;;  %v4509_v41 = vld [vmem:[#allocation3 + $0x880] sm:$0xff] }
 0x753   : > { %5056 = vmatpush.msra.mxu0 %v15042_v20  ;;  %4862 = vmatpush.msra.mxu1 %v15043_v22  ;;  %v4510_v22 = vld [vmem:[#allocation3 + $0x440] sm:$0xff] }
 0x754   : > { %4928 = vmatpush.msra.mxu2 %v15044_v46  ;;  %4993 = vmatpush.msra.mxu3 %v15045_v31  ;;  %v11946_v46 = vld [vmem:[#allocation3 + $0x520] sm:$0xff] }
 0x755   : > { %4686 = vmatmul.f32.gmra.mxu2 %v4428_v49  ;;  %5057 = vmatpush.msra.mxu0 %v15046_v51  ;;  %v4518_v51 = vld [vmem:[#allocation3 + $0x710] sm:$0xff] }
 0x756   : > { %4621 = vmatmul.f32.gmra.mxu1 %v4427_v50  ;;  %4929 = vmatpush.msra.mxu2 %v15047_v42  ;;  %v4508_v50 = vld [vmem:[#allocation3 + $0x538] sm:$0xff] }
 0x757   : > { %4863 = vmatpush.msra.mxu1 %v15048_v15  ;;  %4994 = vmatpush.msra.mxu3 %v15049_v17  ;;  %v4517_v15 = vld [vmem:[#allocation3 + $0x780] sm:$0xff]  ;;  %v4519_v17 = vld [vmem:[#allocation3 + $0x358] sm:$0xff] }
 0x758   : > { %4751 = vmatmul.f32.gmra.mxu3 %v4429_v47  ;;  %4813 = vmatmul.f32.gmra.mxu0 %v11892_v6 }
 0x759   : > { %5058 = vmatpush.msra.mxu0 %v15050_v23  ;;  %4864 = vmatpush.msra.mxu1 %v15051_v19  ;;  %v11953_v23 = vld [vmem:[#allocation3 + $0x6d8] sm:$0xff] }
 0x75a   : > { %4930 = vmatpush.msra.mxu2 %v15052_v29  ;;  %4995 = vmatpush.msra.mxu3 %v15053_v10  ;;  %v4387_v29 = vld [vmem:[#allocation3 + $0x7f0] sm:$0xff] }
 0x75b   : > { %5059 = vmatpush.msra.mxu0 %v15054_v18  ;;  %4865 = vmatpush.msra.mxu1 %v15055_v27  ;;  %v11960_v27 = vld [vmem:[#allocation3 + $0x878] sm:$0xff] }
 0x75d   : > { %4689 = vmatmul.f32.gmra.mxu2 %v4437_v25  ;;  %5060 = vmatpush.msra.mxu0 %v15056_v52 }
 0x75e   : > { %4624 = vmatmul.f32.gmra.mxu1 %v4436_v60  ;;  %v4386_v60 = vld [vmem:[#allocation3 + $0x6a0] sm:$0xff] }
 0x760   : > { %4754 = vmatmul.f32.gmra.mxu3 %v4438_v59  ;;  %4816 = vmatmul.f32.gmra.mxu0 %v11905_v58  ;;  %v4388_v59 = vld [vmem:[#allocation3 + $0x188] sm:$0xff] }
 0x765   : > { %4692 = vmatmul.f32.gmra.mxu2 %v4446_v45 }
 0x766   : > { %4627 = vmatmul.f32.gmra.mxu1 %v4445_v2 }
 0x768   : > { %4757 = vmatmul.f32.gmra.mxu3 %v4447_v24  ;;  %4819 = vmatmul.f32.gmra.mxu0 %v11909_v1  ;;  %v4396_v24 = vld [vmem:[#allocation3 + $0x70] sm:$0xff] }
 0x76d   : > { %4695 = vmatmul.f32.gmra.mxu2 %v4455_v3 }
 0x76e   : > { %4630 = vmatmul.f32.gmra.mxu1 %v4454_v35 }
 0x770   : > { %4760 = vmatmul.f32.gmra.mxu3 %v4456_v16  ;;  %4822 = vmatmul.f32.gmra.mxu0 %v11912_v14  ;;  %v4395_v16 = vld [vmem:[#allocation3 + $0x4b8] sm:$0xff] }
 0x775   : > { %4698 = vmatmul.f32.gmra.mxu2 %v4464_v53 }
 0x776   : > { %4633 = vmatmul.f32.gmra.mxu1 %v4463_v30 }
 0x778   : > { %4763 = vmatmul.f32.gmra.mxu3 %v4465_v32  ;;  %4825 = vmatmul.f32.gmra.mxu0 %v11915_v56  ;;  %v4397_v32 = vld [vmem:[#allocation3 + $0x630] sm:$0xff] }
 0x77d   : > { %4701 = vmatmul.f32.gmra.mxu2 %v4473_v48  ;;  %v4389_v48 = vld [vmem:[#allocation3 + $0x328] sm:$0xff] }
 0x77e   : > { %4636 = vmatmul.f32.gmra.mxu1 %v4472_v37 }
 0x780   : > { %4766 = vmatmul.f32.gmra.mxu3 %v4474_v44  ;;  %4828 = vmatmul.f32.gmra.mxu0 %v11918_v0 }
 0x785   : > { %4704 = vmatmul.f32.gmra.mxu2 %v4482_v36  ;;  %v11923_v62 = vpop.f32.mrf.mxu1 }
 0x786   : > { %4639 = vmatmul.f32.gmra.mxu1 %v4481_v26  ;;  %v4405_v26 = vld [vmem:[#allocation3 + $0x368] sm:$0xff] }
 0x788   : > { %4769 = vmatmul.f32.gmra.mxu3 %v4483_v38  ;;  %4831 = vmatmul.f32.gmra.mxu0 %v11921_v21 }
 0x78b   : > { %v11926_v12 = vpop.f32.mrf.mxu2  ;;  %v4542_v7 = vpop.f32.mrf.mxu0 }
 0x78d   : > { %4707 = vmatmul.f32.gmra.mxu2 %v4491_v63  ;;  %v11930_v9 = vpop.f32.mrf.mxu3 }
 0x78e   : > { %4642 = vmatmul.f32.gmra.mxu1 %v4490_v43  ;;  %v11932_v11 = vpop.f32.mrf.mxu1  ;;  %v4404_v43 = vld [vmem:[#allocation3 + $0x6e0] sm:$0xff] }
 0x790   : > { %4772 = vmatmul.f32.gmra.mxu3 %v4492_v54  ;;  %4834 = vmatmul.f32.gmra.mxu0 %v11928_v57 }
 0x793   : > { %v11935_v28 = vpop.f32.mrf.mxu2 }
 0x795   : > { %4710 = vmatmul.f32.gmra.mxu2 %v4500_v39  ;;  %v4406_v39 = vld [vmem:[#allocation3 + $0x558] sm:$0xff] }
 0x796   : > { %4645 = vmatmul.f32.gmra.mxu1 %v4499_v33  ;;  %v11939_v55 = vpop.f32.mrf.mxu3  ;;  %v4398_v33 = vld [vmem:[#allocation3 + $0x210] sm:$0xff] }
 0x797   : > { %v11941_v49 = vpop.f32.mrf.mxu1 }
 0x798   : > { %4775 = vmatmul.f32.gmra.mxu3 %v4501_v5  ;;  %4837 = vmatmul.f32.gmra.mxu0 %v11937_v8 }
 0x799   : > { %v4545_v13 = vpop.f32.mrf.mxu0 }
 0x79c   : > { %v11944_v20 = vpop.f32.mrf.mxu2 }
 0x79d   : > { %4713 = vmatmul.f32.gmra.mxu2 %v4509_v41 }
 0x79e   : > { %4648 = vmatmul.f32.gmra.mxu1 %v4508_v50  ;;  %v4414_v50 = vld [vmem:[#allocation3 + $0x38] sm:$0xff] }
 0x7a0   : > { %4778 = vmatmul.f32.gmra.mxu3 %v4510_v22  ;;  %4840 = vmatmul.f32.gmra.mxu0 %v11946_v46  ;;  %v11949_v31 = vpop.f32.mrf.mxu3 }
 0x7a1   : > { %v11951_v47 = vpop.f32.mrf.mxu1 }
 0x7a3   : > { %v4548_v42 = vpop.f32.mrf.mxu0 }
 0x7a5   : > { %4716 = vmatmul.f32.gmra.mxu2 %v4518_v51 }
 0x7a6   : > { %4651 = vmatmul.f32.gmra.mxu1 %v4517_v15  ;;  %v11955_v19 = vpop.f32.mrf.mxu2  ;;  %v4413_v15 = vld [vmem:[#allocation3 + $0x190] sm:$0xff] }
 0x7a8   : > { %4781 = vmatmul.f32.gmra.mxu3 %v4519_v17  ;;  %4843 = vmatmul.f32.gmra.mxu0 %v11953_v23 }
 0x7aa   : > { %v11958_v25 = vpop.f32.mrf.mxu3 }
 0x7ab   : > { %v4607_v10 = vpop.f32.mrf.mxu1 }
 0x7ac   : > { %v4608_v52 = vadd.f32 %v4607_v10, %v4542_v7  ;;  %v4415_v10 = vld [vmem:[#allocation3 + $0x628] sm:$0xff] }
 0x7ad   : > { %v4551_v18 = vpop.f32.mrf.mxu0  ;;  %4931 = vmatmul.f32.vlgmr.msra.gmra.mxu2 %v4387_v29 }
 0x7ae   : > { %4866 = vmatmul.f32.vlgmr.msra.gmra.mxu1 %v4386_v60  ;;  %v4407_v60 = vld [vmem:[#allocation3 + $0x2a0] sm:$0xff] }
 0x7b0   : > { %4846 = vmatmul.f32.gmra.mxu0 %v11960_v27  ;;  %4996 = vmatmul.f32.vlgmr.msra.gmra.mxu3 %v4388_v59  ;;  %v4672_v45 = vpop.f32.mrf.mxu2 }
 0x7b1   : > { %v4673_v2 = vadd.f32 %v4672_v45, %v4608_v52  ;;  %v4423_v45 = vld [vmem:[#allocation3 + $0x800] sm:$0xff] }
 0x7b3   : > { %v4610_v3 = vpop.f32.mrf.mxu1  ;;  %v4737_v35 = vpop.f32.mrf.mxu3 }
 0x7b4   : > { %v11963_v53 = vadd.f32 %v4737_v35, %v4673_v2  ;;  %v4611_v37 = vadd.f32 %v4610_v3, %v4545_v13  ;;  %v4422_v3 = vld [vmem:[#allocation3 + $0x2f8] sm:$0xff] }
 0x7b5   : > { %v11965_v30 = vpop.f32.mrf.mxu0  ;;  %4934 = vmatmul.f32.gmra.mxu2 %v4396_v24 }
 0x7b6   : > { %4869 = vmatmul.f32.gmra.mxu1 %v4395_v16 }
 0x7b8   : > { %4999 = vmatmul.f32.gmra.mxu3 %v4397_v32  ;;  %5061 = vmatmul.f32.vlgmr.msra.gmra.mxu0 %v4389_v48  ;;  %v4675_v44 = vpop.f32.mrf.mxu2  ;;  %v4424_v32 = vld [vmem:[#allocation3 + $0x700] sm:$0xff]  ;;  %v4416_v48 = vld [vmem:[#allocation3 + $0x298] sm:$0xff] }
 0x7b9   : > { %v4676_v36 = vadd.f32 %v4675_v44, %v4611_v37 }
 0x7bb   : > { %v4613_v38 = vpop.f32.mrf.mxu1  ;;  %v4740_v63 = vpop.f32.mrf.mxu3 }
 0x7bc   : > { %v11967_v54 = vadd.f32 %v4740_v63, %v4676_v36  ;;  %v4614_v5 = vadd.f32 %v4613_v38, %v4548_v42  ;;  %v4432_v36 = vld [vmem:[#allocation3 + $0x8d0] sm:$0xff]  ;;  %v4431_v63 = vld [vmem:[#allocation3 + $0x2a8] sm:$0xff] }
 0x7bd   : > { %v11969_v7 = vpop.f32.mrf.mxu0  ;;  %4937 = vmatmul.f32.gmra.mxu2 %v4405_v26 }
 0x7be   : > { %4872 = vmatmul.f32.gmra.mxu1 %v4404_v43 }
 0x7c0   : > { %5002 = vmatmul.f32.gmra.mxu3 %v4406_v39  ;;  %5064 = vmatmul.f32.gmra.mxu0 %v4398_v33  ;;  %v4678_v13 = vpop.f32.mrf.mxu2  ;;  %v4433_v33 = vld [vmem:[#allocation3 + $0x490] sm:$0xff] }
 0x7c1   : > { %v4679_v41 = vadd.f32 %v4678_v13, %v4614_v5  ;;  %v4425_v5 = vld [vmem:[#allocation3 + $0x5f8] sm:$0xff] }
 0x7c3   : > { %v4616_v22 = vpop.f32.mrf.mxu1  ;;  %v4743_v51 = vpop.f32.mrf.mxu3 }
 0x7c4   : > { %v11971_v17 = vadd.f32 %v4743_v51, %v4679_v41  ;;  %v4617_v59 = vadd.f32 %v4616_v22, %v4551_v18 }
 0x7c5   : > { %v11973_v29 = vpop.f32.mrf.mxu0  ;;  %4940 = vmatmul.f32.gmra.mxu2 %v4414_v50  ;;  %v4441_v50 = vld [vmem:[#allocation3 + $0x658] sm:$0xff] }
 0x7c6   : > { %4875 = vmatmul.f32.gmra.mxu1 %v4413_v15  ;;  %v4440_v15 = vld [vmem:[#allocation3 + $0x528] sm:$0xff] }
 0x7c8   : > { %5005 = vmatmul.f32.gmra.mxu3 %v4415_v10  ;;  %5067 = vmatmul.f32.gmra.mxu0 %v4407_v60  ;;  %v4681_v42 = vpop.f32.mrf.mxu2 }
 0x7c9   : > { %v4682_v52 = vadd.f32 %v4681_v42, %v4617_v59  ;;  %v4442_v59 = vld [vmem:[#allocation3 + $0x750] sm:$0xff]  ;;  %v4434_v42 = vld [vmem:[#allocation3 + $0xf8] sm:$0xff] }
 0x7cb   : > { %v4619_v2 = vpop.f32.mrf.mxu1  ;;  %v4746_v24 = vpop.f32.mrf.mxu3 }
 0x7cc   : > { %v11975_v35 = vadd.f32 %v4746_v24, %v4682_v52  ;;  %v4620_v37 = vadd.f32 %v4619_v2, %v11923_v62  ;;  %v4450_v2 = vld [vmem:[#allocation3 + $0x58] sm:$0xff] }
 0x7cd   : > { %v11977_v16 = vpop.f32.mrf.mxu0  ;;  %4943 = vmatmul.f32.gmra.mxu2 %v4423_v45 }
 0x7ce   : > { %4878 = vmatmul.f32.gmra.mxu1 %v4422_v3 }
 0x7d0   : > { %5008 = vmatmul.f32.gmra.mxu3 %v4424_v32  ;;  %5070 = vmatmul.f32.gmra.mxu0 %v4416_v48  ;;  %v4684_v18 = vpop.f32.mrf.mxu2  ;;  %v4449_v32 = vld [vmem:[#allocation3 + $0x1f8] sm:$0xff] }
 0x7d1   : > { %v4685_v44 = vadd.f32 %v4684_v18, %v4620_v37  ;;  %v4451_v18 = vld [vmem:[#allocation3 + $0x4d0] sm:$0xff] }
 0x7d3   : > { %v4622_v26 = vpop.f32.mrf.mxu1  ;;  %v4749_v38 = vpop.f32.mrf.mxu3 }
 0x7d4   : > { %v11980_v43 = vadd.f32 %v4749_v38, %v4685_v44  ;;  %v4623_v13 = vadd.f32 %v4622_v26, %v11932_v11  ;;  %v4443_v44 = vld [vmem:[#allocation3 + $0x5f0] sm:$0xff] }
 0x7d5   : > { %v11982_v39 = vpop.f32.mrf.mxu0  ;;  %4946 = vmatmul.f32.gmra.mxu2 %v4432_v36  ;;  %v4459_v38 = vld [vmem:[#allocation3 + $0x2b0] sm:$0xff] }
 0x7d6   : > { %4881 = vmatmul.f32.gmra.mxu1 %v4431_v63 }
 0x7d8   : > { %5011 = vmatmul.f32.gmra.mxu3 %v4433_v33  ;;  %5073 = vmatmul.f32.gmra.mxu0 %v4425_v5  ;;  %v4687_v62 = vpop.f32.mrf.mxu2  ;;  %v4458_v5 = vld [vmem:[#allocation3 + $0x7c8] sm:$0xff] }
 0x7d9   : > { %v4688_v41 = vadd.f32 %v4687_v62, %v4623_v13 }
 0x7db   : > { %v4625_v22 = vpop.f32.mrf.mxu1  ;;  %v4752_v51 = vpop.f32.mrf.mxu3 }
 0x7dc   : > { %v11985_v10 = vadd.f32 %v4752_v51, %v4688_v41  ;;  %v4626_v52 = vadd.f32 %v4625_v22, %v11941_v49  ;;  %v4460_v41 = vld [vmem:[#allocation3 + $0x2c0] sm:$0xff] }
 0x7dd   : > { %v11987_v60 = vpop.f32.mrf.mxu0  ;;  %4949 = vmatmul.f32.gmra.mxu2 %v4441_v50  ;;  %v4452_v50 = vld [vmem:[#allocation3 + $0x108] sm:$0xff] }
 0x7de   : > { %4884 = vmatmul.f32.gmra.mxu1 %v4440_v15  ;;  %v4468_v15 = vld [vmem:[#allocation3 + $0x370] sm:$0xff] }
 0x7e0   : > { %5014 = vmatmul.f32.gmra.mxu3 %v4442_v59  ;;  %5076 = vmatmul.f32.gmra.mxu0 %v4434_v42  ;;  %v4690_v11 = vpop.f32.mrf.mxu2 }
 0x7e1   : > { %v4691_v45 = vadd.f32 %v4690_v11, %v4626_v52  ;;  %v4467_v52 = vld [vmem:[#allocation3 + $0x738] sm:$0xff] }
 0x7e3   : > { %v4628_v24 = vpop.f32.mrf.mxu1  ;;  %v4755_v3 = vpop.f32.mrf.mxu3 }
 0x7e4   : > { %v11990_v48 = vadd.f32 %v4755_v3, %v4691_v45  ;;  %v4629_v36 = vadd.f32 %v4628_v24, %v11951_v47  ;;  %v4461_v24 = vld [vmem:[#allocation3 + $0x5e0] sm:$0xff] }
 0x7e5   : > { %v11992_v37 = vpop.f32.mrf.mxu0  ;;  %4952 = vmatmul.f32.gmra.mxu2 %v4450_v2  ;;  %v4469_v2 = vld [vmem:[#allocation3 + $0x890] sm:$0xff] }
 0x7e6   : > { %4887 = vmatmul.f32.gmra.mxu1 %v4449_v32 }
 0x7e8   : > { %5017 = vmatmul.f32.gmra.mxu3 %v4451_v18  ;;  %5079 = vmatmul.f32.gmra.mxu0 %v4443_v44  ;;  %v4693_v49 = vpop.f32.mrf.mxu2  ;;  %v4477_v44 = vld [vmem:[#allocation3 + $0x1c8] sm:$0xff] }
 0x7e9   : > { %v4694_v26 = vadd.f32 %v4693_v49, %v4629_v36 }
 0x7eb   : > { %v4631_v63 = vpop.f32.mrf.mxu1  ;;  %v4758_v33 = vpop.f32.mrf.mxu3 }
 0x7ec   : > { %v11995_v13 = vadd.f32 %v4758_v33, %v4694_v26  ;;  %v4632_v22 = vadd.f32 %v4631_v63, %v11926_v12  ;;  %v4476_v26 = vld [vmem:[#allocation3 + $0x3a0] sm:$0xff] }
 0x7ed   : > { %v11997_v62 = vpop.f32.mrf.mxu0  ;;  %4955 = vmatmul.f32.gmra.mxu2 %v4459_v38  ;;  %v4478_v33 = vld [vmem:[#allocation3 + $0x6c0] sm:$0xff] }
 0x7ee   : > { %4890 = vmatmul.f32.gmra.mxu1 %v4458_v5  ;;  %v4470_v5 = vld [vmem:[#allocation3 + $0x360] sm:$0xff] }
 0x7f0   : > { %5020 = vmatmul.f32.gmra.mxu3 %v4460_v41  ;;  %5082 = vmatmul.f32.gmra.mxu0 %v4452_v50  ;;  %v4696_v47 = vpop.f32.mrf.mxu2 }
 0x7f1   : > { %v4697_v51 = vadd.f32 %v4696_v47, %v4632_v22  ;;  %v4486_v47 = vld [vmem:[#allocation3 + $0x170] sm:$0xff] }
 0x7f3   : > { %v4634_v59 = vpop.f32.mrf.mxu1  ;;  %v4761_v42 = vpop.f32.mrf.mxu3 }
 0x7f4   : > { %v4762_v11 = vadd.f32 %v4761_v42, %v4697_v51  ;;  %v4635_v32 = vadd.f32 %v4634_v59, %v11935_v28  ;;  %v4485_v59 = vld [vmem:[#allocation3 + $0x690] sm:$0xff] }
 0x7f5   : > { %v4826_v45 = vpop.f32.mrf.mxu0  ;;  %4958 = vmatmul.f32.gmra.mxu2 %v4468_v15 }
 0x7f6   : > { %v12000_v3 = vadd.f32 %v4826_v45, %v4762_v11  ;;  %4893 = vmatmul.f32.gmra.mxu1 %v4467_v52  ;;  %v4487_v11 = vld [vmem:[#allocation3 + $0x540] sm:$0xff] }
 0x7f7   : > { %v4479_v45 = vld [vmem:[#allocation3 + $0x680] sm:$0xff] }
 0x7f8   : > { %5023 = vmatmul.f32.gmra.mxu3 %v4469_v2  ;;  %5085 = vmatmul.f32.gmra.mxu0 %v4461_v24  ;;  %v4699_v12 = vpop.f32.mrf.mxu2 }
 0x7f9   : > { %v4700_v18 = vadd.f32 %v4699_v12, %v4635_v32  ;;  %v4495_v12 = vld [vmem:[#allocation3 + $0x668] sm:$0xff] }
 0x7fb   : > { %v4637_v36 = vpop.f32.mrf.mxu1  ;;  %v4764_v49 = vpop.f32.mrf.mxu3 }
 0x7fc   : > { %v4765_v38 = vadd.f32 %v4764_v49, %v4700_v18  ;;  %v4638_v50 = vadd.f32 %v4637_v36, %v11944_v20  ;;  %v4494_v36 = vld [vmem:[#allocation3 + $0x508] sm:$0xff] }
 0x7fd   : > { %v4829_v63 = vpop.f32.mrf.mxu0  ;;  %4961 = vmatmul.f32.gmra.mxu2 %v4477_v44 }
 0x7fe   : > { %v12003_v41 = vadd.f32 %v4829_v63, %v4765_v38  ;;  %4896 = vmatmul.f32.gmra.mxu1 %v4476_v26  ;;  %v4496_v38 = vld [vmem:[#allocation3 + $0x348] sm:$0xff] }
 0x7ff   : > { %v4488_v63 = vld [vmem:[#allocation3 + $0x148] sm:$0xff] }
 0x800   : > { %5026 = vmatmul.f32.gmra.mxu3 %v4478_v33  ;;  %5088 = vmatmul.f32.gmra.mxu0 %v4470_v5  ;;  %v4702_v28 = vpop.f32.mrf.mxu2 }
 0x801   : > { %v4703_v22 = vadd.f32 %v4702_v28, %v4638_v50  ;;  %v4504_v28 = vld [vmem:[#allocation3 + $0x518] sm:$0xff] }
 0x803   : > { %v4640_v51 = vpop.f32.mrf.mxu1  ;;  %v4767_v15 = vpop.f32.mrf.mxu3 }
 0x804   : > { %v4768_v42 = vadd.f32 %v4767_v15, %v4703_v22  ;;  %v4641_v24 = vadd.f32 %v4640_v51, %v11955_v19  ;;  %v4503_v51 = vld [vmem:[#allocation3 + $0x598] sm:$0xff] }
 0x805   : > { %v4832_v52 = vpop.f32.mrf.mxu0  ;;  %4964 = vmatmul.f32.gmra.mxu2 %v4486_v47 }
 0x806   : > { %v12006_v2 = vadd.f32 %v4832_v52, %v4768_v42  ;;  %4899 = vmatmul.f32.gmra.mxu1 %v4485_v59  ;;  %v4505_v42 = vld [vmem:[#allocation3 + $0x570] sm:$0xff] }
 0x807   : > { %v4497_v52 = vld [vmem:[#allocation3 + $0x430] sm:$0xff] }
 0x808   : > { %5029 = vmatmul.f32.gmra.mxu3 %v4487_v11  ;;  %5091 = vmatmul.f32.gmra.mxu0 %v4479_v45  ;;  %v4705_v20 = vpop.f32.mrf.mxu2 }
 0x809   : > { %v4706_v32 = vadd.f32 %v4705_v20, %v4641_v24  ;;  %v4513_v20 = vld [vmem:[#allocation3 + $0x7e8] sm:$0xff] }
 0x80b   : > { %v4643_v18 = vpop.f32.mrf.mxu1  ;;  %v4770_v44 = vpop.f32.mrf.mxu3 }
 0x80c   : > { %v4771_v49 = vadd.f32 %v4770_v44, %v4706_v32  ;;  %v4644_v5 = vadd.f32 %v4643_v18, %v11930_v9  ;;  %v4512_v18 = vld [vmem:[#allocation3 + $0x1a0] sm:$0xff] }
 0x80d   : > { %v4835_v26 = vpop.f32.mrf.mxu0  ;;  %4967 = vmatmul.f32.gmra.mxu2 %v4495_v12 }
 0x80e   : > { %v12009_v33 = vadd.f32 %v4835_v26, %v4771_v49  ;;  %4902 = vmatmul.f32.gmra.mxu1 %v4494_v36  ;;  %v4514_v49 = vld [vmem:[#allocation3 + $0x1d0] sm:$0xff]  ;;  %v4506_v26 = vld [vmem:[#allocation3 + $0x258] sm:$0xff] }
 0x810   : > { %5032 = vmatmul.f32.gmra.mxu3 %v4496_v38  ;;  %5094 = vmatmul.f32.gmra.mxu0 %v4488_v63  ;;  %v4708_v19 = vpop.f32.mrf.mxu2 }
 0x811   : > { %v4709_v50 = vadd.f32 %v4708_v19, %v4644_v5  ;;  %v4522_v19 = vld [vmem:[#allocation3 + $0x898] sm:$0xff] }
 0x813   : > { %v4646_v22 = vpop.f32.mrf.mxu1  ;;  %v4773_v47 = vpop.f32.mrf.mxu3 }
 0x814   : > { %v4774_v15 = vadd.f32 %v4773_v47, %v4709_v50  ;;  %v4647_v45 = vadd.f32 %v4646_v22, %v11939_v55  ;;  %v4521_v22 = vld [vmem:[#allocation3 + $0x6f8] sm:$0xff] }
 0x815   : > { %v4838_v59 = vpop.f32.mrf.mxu0  ;;  %4970 = vmatmul.f32.gmra.mxu2 %v4504_v28 }
 0x816   : > { %v12012_v11 = vadd.f32 %v4838_v59, %v4774_v15  ;;  %4905 = vmatmul.f32.gmra.mxu1 %v4503_v51  ;;  %v4523_v15 = vld [vmem:[#allocation3 + $0x5a8] sm:$0xff] }
 0x817   : > { %v4515_v59 = vld [vmem:[#allocation3 + $0x3e8] sm:$0xff] }
 0x818   : > { %5035 = vmatmul.f32.gmra.mxu3 %v4505_v42  ;;  %5097 = vmatmul.f32.gmra.mxu0 %v4497_v52  ;;  %v4711_v9 = vpop.f32.mrf.mxu2 }
 0x819   : > { %v4712_v24 = vadd.f32 %v4711_v9, %v4647_v45 }
 0x81b   : > { %v4649_v32 = vpop.f32.mrf.mxu1  ;;  %v4776_v12 = vpop.f32.mrf.mxu3 }
 0x81c   : > { %v4777_v44 = vadd.f32 %v4776_v12, %v4712_v24  ;;  %v4650_v63 = vadd.f32 %v4649_v32, %v11949_v31  ;;  %v4803_v32 = vadd.f32 %v11965_v30, %v11963_v53 }
 0x81d   : > { %v4841_v36 = vpop.f32.mrf.mxu0  ;;  %4973 = vmatmul.f32.gmra.mxu2 %v4513_v20 }
 0x81e   : > { %v12015_v38 = vadd.f32 %v4841_v36, %v4777_v44  ;;  %4908 = vmatmul.f32.gmra.mxu1 %v4512_v18  ;;  %v4524_v18 = vld [vmem:[#allocation3 + $0x808] sm:$0xff] }
 0x820   : > { %5038 = vmatmul.f32.gmra.mxu3 %v4514_v49  ;;  %5100 = vmatmul.f32.gmra.mxu0 %v4506_v26  ;;  %v4714_v55 = vpop.f32.mrf.mxu2 }
 0x821   : > { %v4715_v5 = vadd.f32 %v4714_v55, %v4650_v63 }
 0x823   : > { %v4652_v50 = vpop.f32.mrf.mxu1  ;;  %v4779_v28 = vpop.f32.mrf.mxu3 }
 0x824   : > { %v4780_v47 = vadd.f32 %v4779_v28, %v4715_v5  ;;  %v4653_v52 = vadd.f32 %v4652_v50, %v11958_v25  ;;  %v4806_v5 = vadd.f32 %v11969_v7, %v11967_v54 }
 0x825   : > { %v4844_v51 = vpop.f32.mrf.mxu0  ;;  %4976 = vmatmul.f32.gmra.mxu2 %v4522_v19 }
 0x826   : > { %v12018_v42 = vadd.f32 %v4844_v51, %v4780_v47  ;;  %4911 = vmatmul.f32.gmra.mxu1 %v4521_v22 }
 0x828   : > { %5041 = vmatmul.f32.gmra.mxu3 %v4523_v15  ;;  %5103 = vmatmul.f32.gmra.mxu0 %v4515_v59  ;;  %v4717_v31 = vpop.f32.mrf.mxu2 }
 0x829   : > { %v4718_v45 = vadd.f32 %v4717_v31, %v4653_v52 }
 0x82b   : > { %v4782_v9 = vpop.f32.mrf.mxu3  ;;  %v4867_v24 = vpop.f32.mrf.mxu1 }
 0x82c   : > { %v4783_v20 = vadd.f32 %v4782_v9, %v4718_v45  ;;  %v4868_v36 = vadd.f32 %v4867_v24, %v4803_v32  ;;  %v4809_v45 = vadd.f32 %v11973_v29, %v11971_v17  ;;  %v4812_v29 = vadd.f32 %v11977_v16, %v11975_v35 }
 0x82d   : > { %v4847_v12 = vpop.f32.mrf.mxu0  ;;  %v4815_v16 = vadd.f32 %v11982_v39, %v11980_v43  ;;  %v4818_v39 = vadd.f32 %v11987_v60, %v11985_v10  ;;  %v4821_v60 = vadd.f32 %v11992_v37, %v11990_v48  ;;  %v4824_v37 = vadd.f32 %v11997_v62, %v11995_v13 }
 0x82e   : > { %v12023_v44 = vadd.f32 %v4847_v12, %v4783_v20 }
 0x830   : > { %5106 = vmatmul.f32.gmra.mxu0 %v4524_v18  ;;  %v4932_v49 = vpop.f32.mrf.mxu2 }
 0x831   : > { %v4933_v26 = vadd.f32 %v4932_v49, %v4868_v36 }
 0x833   : > { %v4870_v63 = vpop.f32.mrf.mxu1  ;;  %v4997_v25 = vpop.f32.mrf.mxu3 }
 0x834   : > { %v4998_v55 = vadd.f32 %v4997_v25, %v4933_v26  ;;  %v4871_v28 = vadd.f32 %v4870_v63, %v4806_v5 }
 0x835   : > { %v5062_v19 = vpop.f32.mrf.mxu0 }
 0x836   : > { %v5063_v50 = vadd.f32 %v5062_v19, %v4998_v55 }
 0x838   : > { %v5126_v22 = vadd.f32 %v5063_v50, %v11833_v34  ;;  %v4935_v53 = vpop.f32.mrf.mxu2 }
 0x839   : > { %v4936_v30 = vadd.f32 %v4935_v53, %v4871_v28 }
 0x83a   : > { %v5142_v51 = vsel %vm9540_vm1, %v5126_v22, %v5063_v50 }
 0x83b   : > { %v5158_v15 = vmax.f32 %v5142_v51, 0.0  ;;  %v4873_v59 = vpop.f32.mrf.mxu1  ;;  %v5000_v52 = vpop.f32.mrf.mxu3 }
 0x83c   : > { %v5001_v31 = vadd.f32 %v5000_v52, %v4936_v30  ;;  %v4874_v24 = vadd.f32 %v4873_v59, %v4809_v45 }
 0x83d   : > { %v12034_v54 = vsel %vm9546_vm2, %v5158_v15, %v5142_v51  ;;  %v5065_v7 = vpop.f32.mrf.mxu0 }
 0x83e   : > { %5191 = vst [vmem:[#allocation2 + $0xd9] sm:$0xff] %v12034_v54  ;;  %v5066_v34 = vadd.f32 %v5065_v7, %v5001_v31 }
 0x840   : > { %v5127_v20 = vadd.f32 %v5066_v34, %v11847_v40  ;;  %v4938_v32 = vpop.f32.mrf.mxu2 }
 0x841   : > { %v4939_v12 = vadd.f32 %v4938_v32, %v4874_v24 }
 0x842   : > { %v5143_v18 = vsel %vm9540_vm1, %v5127_v20, %v5066_v34 }
 0x843   : > { %v5159_v36 = vmax.f32 %v5143_v18, 0.0  ;;  %v4876_v49 = vpop.f32.mrf.mxu1  ;;  %v5003_v26 = vpop.f32.mrf.mxu3 }
 0x844   : > { %v5004_v17 = vadd.f32 %v5003_v26, %v4939_v12  ;;  %v4877_v55 = vadd.f32 %v4876_v49, %v4812_v29 }
 0x845   : > { %v12044_v63 = vsel %vm9546_vm2, %v5159_v36, %v5143_v18  ;;  %v5068_v25 = vpop.f32.mrf.mxu0 }
 0x846   : > { %5192 = vst [vmem:[#allocation2 + $0xe1] sm:$0xff] %v12044_v63  ;;  %v5069_v40 = vadd.f32 %v5068_v25, %v5004_v17 }
 0x848   : > { %v5128_v5 = vadd.f32 %v5069_v40, %v11862_v61  ;;  %v4941_v19 = vpop.f32.mrf.mxu2 }
 0x849   : > { %v4942_v50 = vadd.f32 %v4941_v19, %v4877_v55 }
 0x84a   : > { %v5144_v28 = vsel %vm9540_vm1, %v5128_v5, %v5069_v40 }
 0x84b   : > { %v5160_v22 = vmax.f32 %v5144_v28, 0.0  ;;  %v4879_v53 = vpop.f32.mrf.mxu1  ;;  %v5006_v30 = vpop.f32.mrf.mxu3 }
 0x84c   : > { %v5007_v35 = vadd.f32 %v5006_v30, %v4942_v50  ;;  %v4880_v59 = vadd.f32 %v4879_v53, %v4815_v16 }
 0x84d   : > { %v12054_v51 = vsel %vm9546_vm2, %v5160_v22, %v5144_v28  ;;  %v5071_v15 = vpop.f32.mrf.mxu0 }
 0x84e   : > { %5193 = vst [vmem:[#allocation2 + $0xf1] sm:$0xff] %v12054_v51  ;;  %v5072_v61 = vadd.f32 %v5071_v15, %v5007_v35 }
 0x850   : > { %v5129_v52 = vadd.f32 %v5072_v61, %v11877_v4  ;;  %v4944_v31 = vpop.f32.mrf.mxu2 }
 0x851   : > { %v4945_v45 = vadd.f32 %v4944_v31, %v4880_v59 }
 0x852   : > { %v5145_v7 = vsel %vm9540_vm1, %v5129_v52, %v5072_v61 }
 0x853   : > { %v5161_v34 = vmax.f32 %v5145_v7, 0.0  ;;  %v4882_v24 = vpop.f32.mrf.mxu1  ;;  %v5009_v20 = vpop.f32.mrf.mxu3 }
 0x854   : > { %v5010_v43 = vadd.f32 %v5009_v20, %v4945_v45  ;;  %v4883_v18 = vadd.f32 %v4882_v24, %v4818_v39 }
 0x855   : > { %v12064_v32 = vsel %vm9546_vm2, %v5161_v34, %v5145_v7  ;;  %v5074_v12 = vpop.f32.mrf.mxu0 }
 0x856   : > { %5194 = vst [vmem:[#allocation2 + $0xf9] sm:$0xff] %v12064_v32  ;;  %v5075_v4 = vadd.f32 %v5074_v12, %v5010_v43 }
 0x858   : > { %v5130_v36 = vadd.f32 %v5075_v4, %v11892_v6  ;;  %v4947_v49 = vpop.f32.mrf.mxu2 }
 0x859   : > { %v4948_v26 = vadd.f32 %v4947_v49, %v4883_v18 }
 0x85a   : > { %v5146_v17 = vsel %vm9540_vm1, %v5130_v36, %v5075_v4 }
 0x85b   : > { %v5162_v29 = vmax.f32 %v5146_v17, 0.0  ;;  %v4885_v25 = vpop.f32.mrf.mxu1  ;;  %v5012_v40 = vpop.f32.mrf.mxu3 }
 0x85c   : > { %v5013_v10 = vadd.f32 %v5012_v40, %v4948_v26  ;;  %v4886_v19 = vadd.f32 %v4885_v25, %v4821_v60 }
 0x85d   : > { %v12074_v55 = vsel %vm9546_vm2, %v5162_v29, %v5146_v17  ;;  %v5077_v5 = vpop.f32.mrf.mxu0 }
 0x85e   : > { %5195 = vst [vmem:[#allocation2 + $0x109] sm:$0xff] %v12074_v55  ;;  %v5078_v6 = vadd.f32 %v5077_v5, %v5013_v10 }
 0x860   : > { %v5131_v50 = vadd.f32 %v5078_v6, %v11905_v58  ;;  %v4950_v28 = vpop.f32.mrf.mxu2 }
 0x861   : > { %v4951_v22 = vadd.f32 %v4950_v28, %v4886_v19 }
 0x862   : > { %v5147_v53 = vsel %vm9540_vm1, %v5131_v50, %v5078_v6 }
 0x863   : > { %v5163_v30 = vmax.f32 %v5147_v53, 0.0  ;;  %v4888_v35 = vpop.f32.mrf.mxu1  ;;  %v5015_v16 = vpop.f32.mrf.mxu3 }
 0x864   : > { %v5016_v48 = vadd.f32 %v5015_v16, %v4951_v22  ;;  %v4889_v59 = vadd.f32 %v4888_v35, %v4824_v37 }
 0x865   : > { %v12084_v15 = vsel %vm9546_vm2, %v5163_v30, %v5147_v53  ;;  %v5080_v61 = vpop.f32.mrf.mxu0 }
 0x866   : > { %5196 = vst [vmem:[#allocation2 + $0x111] sm:$0xff] %v12084_v15  ;;  %v5081_v58 = vadd.f32 %v5080_v61, %v5016_v48 }
 0x868   : > { %v5132_v52 = vadd.f32 %v5081_v58, %v11909_v1  ;;  %v4953_v31 = vpop.f32.mrf.mxu2 }
 0x869   : > { %v4954_v45 = vadd.f32 %v4953_v31, %v4889_v59 }
 0x86a   : > { %v5148_v7 = vsel %vm9540_vm1, %v5132_v52, %v5081_v58 }
 0x86b   : > { %v5164_v34 = vmax.f32 %v5148_v7, 0.0  ;;  %v4891_v24 = vpop.f32.mrf.mxu1  ;;  %v5018_v20 = vpop.f32.mrf.mxu3 }
 0x86c   : > { %v5019_v13 = vadd.f32 %v5018_v20, %v4954_v45  ;;  %v4892_v12 = vadd.f32 %v4891_v24, %v12000_v3 }
 0x86d   : > { %v12092_v62 = vsel %vm9546_vm2, %v5164_v34, %v5148_v7  ;;  %v5083_v43 = vpop.f32.mrf.mxu0 }
 0x86e   : > { %5197 = vst [vmem:[#allocation2 + $0x121] sm:$0xff] %v12092_v62  ;;  %v5084_v39 = vadd.f32 %v5083_v43, %v5019_v13 }
 0x870   : > { %v5133_v1 = vadd.f32 %v5084_v39, %v11912_v14  ;;  %v4956_v4 = vpop.f32.mrf.mxu2 }
 0x871   : > { %v4957_v18 = vadd.f32 %v4956_v4, %v4892_v12 }
 0x872   : > { %v5149_v36 = vsel %vm9540_vm1, %v5133_v1, %v5084_v39 }
 0x873   : > { %v5165_v49 = vmax.f32 %v5149_v36, 0.0  ;;  %v4894_v26 = vpop.f32.mrf.mxu1  ;;  %v5021_v17 = vpop.f32.mrf.mxu3 }
 0x874   : > { %v5022_v29 = vadd.f32 %v5021_v17, %v4957_v18  ;;  %v4895_v3 = vadd.f32 %v4894_v26, %v12003_v41 }
 0x875   : > { %v12101_v25 = vsel %vm9546_vm2, %v5165_v49, %v5149_v36  ;;  %v5086_v40 = vpop.f32.mrf.mxu0 }
 0x876   : > { %5198 = vst [vmem:[#allocation2 + $0x129] sm:$0xff] %v12101_v25  ;;  %v5087_v10 = vadd.f32 %v5086_v40, %v5022_v29 }
 0x878   : > { %v5134_v14 = vadd.f32 %v5087_v10, %v11915_v56  ;;  %v4959_v60 = vpop.f32.mrf.mxu2 }
 0x879   : > { %v4960_v5 = vadd.f32 %v4959_v60, %v4895_v3 }
 0x87a   : > { %v5150_v6 = vsel %vm9540_vm1, %v5134_v14, %v5087_v10 }
 0x87b   : > { %v5166_v19 = vmax.f32 %v5150_v6, 0.0  ;;  %v4897_v50 = vpop.f32.mrf.mxu1  ;;  %v5024_v28 = vpop.f32.mrf.mxu3 }
 0x87c   : > { %v5025_v22 = vadd.f32 %v5024_v28, %v4960_v5  ;;  %v4898_v41 = vadd.f32 %v4897_v50, %v12006_v2 }
 0x87d   : > { %v12110_v53 = vsel %vm9546_vm2, %v5166_v19, %v5150_v6  ;;  %v5089_v30 = vpop.f32.mrf.mxu0 }
 0x87e   : > { %5199 = vst [vmem:[#allocation2 + $0x139] sm:$0xff] %v12110_v53  ;;  %v5090_v35 = vadd.f32 %v5089_v30, %v5025_v22 }
 0x880   : > { %v5135_v56 = vadd.f32 %v5090_v35, %v11918_v0  ;;  %v4962_v16 = vpop.f32.mrf.mxu2 }
 0x881   : > { %v4963_v48 = vadd.f32 %v4962_v16, %v4898_v41 }
 0x882   : > { %v5151_v37 = vsel %vm9540_vm1, %v5135_v56, %v5090_v35 }
 0x883   : > { %v5167_v61 = vmax.f32 %v5151_v37, 0.0  ;;  %v4900_v58 = vpop.f32.mrf.mxu1  ;;  %v5027_v59 = vpop.f32.mrf.mxu3 }
 0x884   : > { %v5028_v52 = vadd.f32 %v5027_v59, %v4963_v48  ;;  %v4901_v2 = vadd.f32 %v4900_v58, %v12009_v33 }
 0x885   : > { %v12119_v31 = vsel %vm9546_vm2, %v5167_v61, %v5151_v37  ;;  %v5092_v45 = vpop.f32.mrf.mxu0 }
 0x886   : > { %5200 = vst [vmem:[#allocation2 + $0x141] sm:$0xff] %v12119_v31  ;;  %v5093_v7 = vadd.f32 %v5092_v45, %v5028_v52 }
 0x888   : > { %v5136_v0 = vadd.f32 %v5093_v7, %v11921_v21  ;;  %v4965_v34 = vpop.f32.mrf.mxu2 }
 0x889   : > { %v4966_v24 = vadd.f32 %v4965_v34, %v4901_v2 }
 0x88a   : > { %v5152_v20 = vsel %vm9540_vm1, %v5136_v0, %v5093_v7 }
 0x88b   : > { %v5168_v13 = vmax.f32 %v5152_v20, 0.0  ;;  %v4903_v43 = vpop.f32.mrf.mxu1  ;;  %v5030_v39 = vpop.f32.mrf.mxu3 }
 0x88c   : > { %v5031_v12 = vadd.f32 %v5030_v39, %v4966_v24  ;;  %v4904_v33 = vadd.f32 %v4903_v43, %v12012_v11 }
 0x88d   : > { %v12128_v1 = vsel %vm9546_vm2, %v5168_v13, %v5152_v20  ;;  %v5095_v4 = vpop.f32.mrf.mxu0 }
 0x88e   : > { %5201 = vst [vmem:[#allocation2 + $0x151] sm:$0xff] %v12128_v1  ;;  %v5096_v18 = vadd.f32 %v5095_v4, %v5031_v12 }
 0x890   : > { %v5137_v21 = vadd.f32 %v5096_v18, %v11928_v57  ;;  %v4968_v36 = vpop.f32.mrf.mxu2 }
 0x891   : > { %v4969_v49 = vadd.f32 %v4968_v36, %v4904_v33 }
 0x892   : > { %v5153_v26 = vsel %vm9540_vm1, %v5137_v21, %v5096_v18 }
 0x893   : > { %v5169_v17 = vmax.f32 %v5153_v26, 0.0  ;;  %v4906_v29 = vpop.f32.mrf.mxu1  ;;  %v5033_v40 = vpop.f32.mrf.mxu3 }
 0x894   : > { %v5034_v10 = vadd.f32 %v5033_v40, %v4969_v49  ;;  %v4907_v11 = vadd.f32 %v4906_v29, %v12015_v38 }
 0x895   : > { %v12137_v3 = vsel %vm9546_vm2, %v5169_v17, %v5153_v26  ;;  %v5098_v14 = vpop.f32.mrf.mxu0 }
 0x896   : > { %5202 = vst [vmem:[#allocation2 + $0x159] sm:$0xff] %v12137_v3  ;;  %v5099_v60 = vadd.f32 %v5098_v14, %v5034_v10 }
 0x898   : > { %v5138_v57 = vadd.f32 %v5099_v60, %v11937_v8  ;;  %v4971_v5 = vpop.f32.mrf.mxu2 }
 0x899   : > { %v4972_v6 = vadd.f32 %v4971_v5, %v4907_v11 }
 0x89a   : > { %v5154_v19 = vsel %vm9540_vm1, %v5138_v57, %v5099_v60 }
 0x89b   : > { %v5170_v50 = vmax.f32 %v5154_v19, 0.0  ;;  %v4909_v28 = vpop.f32.mrf.mxu1  ;;  %v5036_v22 = vpop.f32.mrf.mxu3 }
 0x89c   : > { %v5037_v30 = vadd.f32 %v5036_v22, %v4972_v6  ;;  %v4910_v38 = vadd.f32 %v4909_v28, %v12018_v42 }
 0x89d   : > { %v12146_v35 = vsel %vm9546_vm2, %v5170_v50, %v5154_v19  ;;  %v5101_v41 = vpop.f32.mrf.mxu0 }
 0x89e   : > { %5203 = vst [vmem:[#allocation2 + $0x169] sm:$0xff] %v12146_v35  ;;  %v5102_v56 = vadd.f32 %v5101_v41, %v5037_v30 }
 0x8a0   : > { %v5139_v8 = vadd.f32 %v5102_v56, %v11946_v46  ;;  %v4974_v16 = vpop.f32.mrf.mxu2 }
 0x8a1   : > { %v4975_v48 = vadd.f32 %v4974_v16, %v4910_v38 }
 0x8a2   : > { %v5155_v37 = vsel %vm9540_vm1, %v5139_v8, %v5102_v56 }
 0x8a3   : > { %v5171_v61 = vmax.f32 %v5155_v37, 0.0  ;;  %v5039_v58 = vpop.f32.mrf.mxu3  ;;  %v4912_v59 = vpop.f32.mrf.mxu1 }
 0x8a4   : > { %v5040_v52 = vadd.f32 %v5039_v58, %v4975_v48  ;;  %v4913_v42 = vadd.f32 %v4912_v59, %v12023_v44 }
 0x8a5   : > { %v12155_v45 = vsel %vm9546_vm2, %v5171_v61, %v5155_v37  ;;  %v5104_v7 = vpop.f32.mrf.mxu0 }
 0x8a6   : > { %5204 = vst [vmem:[#allocation2 + $0x171] sm:$0xff] %v12155_v45  ;;  %v5105_v2 = vadd.f32 %v5104_v7, %v5040_v52 }
 0x8a8   : > { %v5140_v46 = vadd.f32 %v5105_v2, %v11953_v23  ;;  %v4977_v0 = vpop.f32.mrf.mxu2 }
 0x8a9   : > { %v4978_v34 = vadd.f32 %v4977_v0, %v4913_v42 }
 0x8aa   : > { %v5156_v24 = vsel %vm9540_vm1, %v5140_v46, %v5105_v2 }
 0x8ab   : > { %v5172_v20 = vmax.f32 %v5156_v24, 0.0  ;;  %v5042_v13 = vpop.f32.mrf.mxu3 }
 0x8ac   : > { %v5043_v43 = vadd.f32 %v5042_v13, %v4978_v34 }
 0x8ad   : > { %v12164_v39 = vsel %vm9546_vm2, %v5172_v20, %v5156_v24  ;;  %v5107_v12 = vpop.f32.mrf.mxu0 }
 0x8ae   : > { %5205 = vst [vmem:[#allocation2 + $0x181] sm:$0xff] %v12164_v39  ;;  %v5108_v4 = vadd.f32 %v5107_v12, %v5043_v43 }
 0x8b0   : > { %v5141_v44 = vadd.f32 %v5108_v4, %v11960_v27 }
 0x8b2   : > { %v5157_v23 = vsel %vm9540_vm1, %v5141_v44, %v5108_v4  ;;  %5209 = sbr.rel (%p7759_p10) target bundleno = 3315 (0xcf3), region = 48 }
 0x8b3   : > { %v5173_v18 = vmax.f32 %v5157_v23, 0.0 }
 0x8b5   : > { %v12172_v33 = vsel %vm9546_vm2, %v5173_v18, %v5157_v23 }
 0x8b6   : > { %5206 = vst [vmem:[#allocation2 + $0x189] sm:$0xff] %v12172_v33 }
 0x8b7   : > { %v5270_v21 = vld [vmem:[%s14210_s2 + $0x1e0] sm:$0xff]  ;;  %v5271_v27 = vld [vmem:[%s14210_s2 + $0x1e8] sm:$0xff]  ;;  %v5272_v47 = vld [vmem:[%s14210_s2 + $0x1f0] sm:$0xff] }
 0x8b8   : > { %5274 = vmatpush.msra.mxu0 %v5270_v21  ;;  %5339 = vmatpush.msra.mxu1 %v5271_v27  ;;  %v5273_v9 = vld [vmem:[%s14210_s2 + $0x1f8] sm:$0xff]  ;;  %v5266_v36 = vld [vmem:[%s14210_s2 + $0x1c0] sm:$0xff]  ;;  %v5267_v49 = vld [vmem:[%s14210_s2 + $0x1c8] sm:$0xff] }
 0x8b9   : > { %5404 = vmatpush.msra.mxu2 %v5272_v47  ;;  %5469 = vmatpush.msra.mxu3 %v5273_v9  ;;  %v5268_v26 = vld [vmem:[%s14210_s2 + $0x1d0] sm:$0xff]  ;;  %v5269_v17 = vld [vmem:[%s14210_s2 + $0x1d8] sm:$0xff]  ;;  %v5262_v29 = vld [vmem:[%s14210_s2 + $0x1a0] sm:$0xff] }
 0x8ba   : > { %5275 = vmatpush.msra.mxu0 %v5266_v36  ;;  %5340 = vmatpush.msra.mxu1 %v5267_v49  ;;  %v5263_v40 = vld [vmem:[%s14210_s2 + $0x1a8] sm:$0xff]  ;;  %v5264_v10 = vld [vmem:[%s14210_s2 + $0x1b0] sm:$0xff]  ;;  %v5265_v14 = vld [vmem:[%s14210_s2 + $0x1b8] sm:$0xff] }
 0x8bb   : > { %5405 = vmatpush.msra.mxu2 %v5268_v26  ;;  %5470 = vmatpush.msra.mxu3 %v5269_v17  ;;  %v5258_v60 = vld [vmem:[%s14210_s2 + $0x180] sm:$0xff]  ;;  %v5259_v11 = vld [vmem:[%s14210_s2 + $0x188] sm:$0xff]  ;;  %v5260_v57 = vld [vmem:[%s14210_s2 + $0x190] sm:$0xff] }
 0x8bc   : > { %5276 = vmatpush.msra.mxu0 %v5262_v29  ;;  %5341 = vmatpush.msra.mxu1 %v5263_v40  ;;  %v5261_v5 = vld [vmem:[%s14210_s2 + $0x198] sm:$0xff]  ;;  %v5254_v6 = vld [vmem:[%s14210_s2 + $0x160] sm:$0xff]  ;;  %v5255_v19 = vld [vmem:[%s14210_s2 + $0x168] sm:$0xff] }
 0x8bd   : > { %5406 = vmatpush.msra.mxu2 %v5264_v10  ;;  %5471 = vmatpush.msra.mxu3 %v5265_v14  ;;  %v5256_v50 = vld [vmem:[%s14210_s2 + $0x170] sm:$0xff]  ;;  %v5257_v28 = vld [vmem:[%s14210_s2 + $0x178] sm:$0xff]  ;;  %v5250_v22 = vld [vmem:[%s14210_s2 + $0x140] sm:$0xff] }
 0x8be   : > { %5277 = vmatpush.msra.mxu0 %v5258_v60  ;;  %5342 = vmatpush.msra.mxu1 %v5259_v11  ;;  %v5251_v30 = vld [vmem:[%s14210_s2 + $0x148] sm:$0xff]  ;;  %v5252_v41 = vld [vmem:[%s14210_s2 + $0x150] sm:$0xff]  ;;  %v5253_v56 = vld [vmem:[%s14210_s2 + $0x158] sm:$0xff] }
 0x8bf   : > { %5407 = vmatpush.msra.mxu2 %v5260_v57  ;;  %5472 = vmatpush.msra.mxu3 %v5261_v5  ;;  %v5246_v38 = vld [vmem:[%s14210_s2 + $0x120] sm:$0xff]  ;;  %v5247_v8 = vld [vmem:[%s14210_s2 + $0x128] sm:$0xff]  ;;  %v5248_v16 = vld [vmem:[%s14210_s2 + $0x130] sm:$0xff] }
 0x8c0   : > { %5278 = vmatpush.msra.mxu0 %v5254_v6  ;;  %5343 = vmatpush.msra.mxu1 %v5255_v19  ;;  %v5249_v48 = vld [vmem:[%s14210_s2 + $0x138] sm:$0xff]  ;;  %v5242_v37 = vld [vmem:[%s14210_s2 + $0x100] sm:$0xff]  ;;  %v5243_v61 = vld [vmem:[%s14210_s2 + $0x108] sm:$0xff] }
 0x8c1   : > { %5408 = vmatpush.msra.mxu2 %v5256_v50  ;;  %5473 = vmatpush.msra.mxu3 %v5257_v28  ;;  %v5244_v58 = vld [vmem:[%s14210_s2 + $0x110] sm:$0xff]  ;;  %v5245_v59 = vld [vmem:[%s14210_s2 + $0x118] sm:$0xff]  ;;  %v5238_v52 = vld [vmem:[%s14210_s2 + $0xe0] sm:$0xff] }
 0x8c2   : > { %5279 = vmatpush.msra.mxu0 %v5250_v22  ;;  %5344 = vmatpush.msra.mxu1 %v5251_v30  ;;  %v5239_v7 = vld [vmem:[%s14210_s2 + $0xe8] sm:$0xff]  ;;  %v5240_v2 = vld [vmem:[%s14210_s2 + $0xf0] sm:$0xff]  ;;  %v5241_v42 = vld [vmem:[%s14210_s2 + $0xf8] sm:$0xff] }
 0x8c3   : > { %5409 = vmatpush.msra.mxu2 %v5252_v41  ;;  %5474 = vmatpush.msra.mxu3 %v5253_v56  ;;  %v5234_v46 = vld [vmem:[%s14210_s2 + $0xc0] sm:$0xff]  ;;  %v5235_v0 = vld [vmem:[%s14210_s2 + $0xc8] sm:$0xff]  ;;  %v5236_v34 = vld [vmem:[%s14210_s2 + $0xd0] sm:$0xff] }
 0x8c4   : > { %5280 = vmatpush.msra.mxu0 %v5246_v38  ;;  %5345 = vmatpush.msra.mxu1 %v5247_v8  ;;  %v5237_v24 = vld [vmem:[%s14210_s2 + $0xd8] sm:$0xff]  ;;  %v5230_v20 = vld [vmem:[%s14210_s2 + $0xa0] sm:$0xff]  ;;  %v5231_v13 = vld [vmem:[%s14210_s2 + $0xa8] sm:$0xff] }
 0x8c5   : > { %5410 = vmatpush.msra.mxu2 %v5248_v16  ;;  %5475 = vmatpush.msra.mxu3 %v5249_v48  ;;  %v5232_v43 = vld [vmem:[%s14210_s2 + $0xb0] sm:$0xff]  ;;  %v5233_v12 = vld [vmem:[%s14210_s2 + $0xb8] sm:$0xff]  ;;  %v5226_v4 = vld [vmem:[%s14210_s2 + $0x80] sm:$0xff] }
 0x8c6   : > { %5281 = vmatpush.msra.mxu0 %v5242_v37  ;;  %5346 = vmatpush.msra.mxu1 %v5243_v61  ;;  %v5227_v44 = vld [vmem:[%s14210_s2 + $0x88] sm:$0xff]  ;;  %v5228_v23 = vld [vmem:[%s14210_s2 + $0x90] sm:$0xff]  ;;  %v5229_v18 = vld [vmem:[%s14210_s2 + $0x98] sm:$0xff] }
 0x8c7   : > { %5411 = vmatpush.msra.mxu2 %v5244_v58  ;;  %5476 = vmatpush.msra.mxu3 %v5245_v59  ;;  %v5222_v21 = vld [vmem:[%s14210_s2 + $0x60] sm:$0xff]  ;;  %v5223_v27 = vld [vmem:[%s14210_s2 + $0x68] sm:$0xff]  ;;  %v5224_v47 = vld [vmem:[%s14210_s2 + $0x70] sm:$0xff] }
 0x8c8   : > { %5282 = vmatpush.msra.mxu0 %v5238_v52  ;;  %5347 = vmatpush.msra.mxu1 %v5239_v7  ;;  %v5225_v9 = vld [vmem:[%s14210_s2 + $0x78] sm:$0xff]  ;;  %v5218_v36 = vld [vmem:[%s14210_s2 + $0x40] sm:$0xff]  ;;  %v5219_v49 = vld [vmem:[%s14210_s2 + $0x48] sm:$0xff] }
 0x8c9   : > { %5412 = vmatpush.msra.mxu2 %v5240_v2  ;;  %5477 = vmatpush.msra.mxu3 %v5241_v42  ;;  %v5220_v26 = vld [vmem:[%s14210_s2 + $0x50] sm:$0xff]  ;;  %v5221_v17 = vld [vmem:[%s14210_s2 + $0x58] sm:$0xff]  ;;  %v5214_v29 = vld [vmem:[%s14210_s2 + $0x20] sm:$0xff] }
 0x8ca   : > { %5283 = vmatpush.msra.mxu0 %v5234_v46  ;;  %5348 = vmatpush.msra.mxu1 %v5235_v0  ;;  %v5215_v40 = vld [vmem:[%s14210_s2 + $0x28] sm:$0xff]  ;;  %v5216_v10 = vld [vmem:[%s14210_s2 + $0x30] sm:$0xff]  ;;  %v5217_v14 = vld [vmem:[%s14210_s2 + $0x38] sm:$0xff] }
 0x8cb   : > { %5413 = vmatpush.msra.mxu2 %v5236_v34  ;;  %5478 = vmatpush.msra.mxu3 %v5237_v24  ;;  %v5210_v60 = vld [vmem:[%s14210_s2] sm:$0xff]  ;;  %v5211_v11 = vld [vmem:[%s14210_s2 + $0x8] sm:$0xff]  ;;  %v5212_v57 = vld [vmem:[%s14210_s2 + $0x10] sm:$0xff] }
 0x8cc   : > { %5284 = vmatpush.msra.mxu0 %v5230_v20  ;;  %5349 = vmatpush.msra.mxu1 %v5231_v13  ;;  %v5213_v5 = vld [vmem:[%s14210_s2 + $0x18] sm:$0xff]  ;;  %v5786_v6 = vld [vmem:[%s14211_s3 + $0x5e0] sm:$0xff] }
 0x8cd   : > { %5414 = vmatpush.msra.mxu2 %v5232_v43  ;;  %5479 = vmatpush.msra.mxu3 %v5233_v12  ;;  %v5850_v19 = vld [vmem:[%s14211_s3 + $0x7e0] sm:$0xff] }
 0x8ce   : > { %5285 = vmatpush.msra.mxu0 %v5226_v4  ;;  %5350 = vmatpush.msra.mxu1 %v5227_v44  ;;  %v5658_v50 = vld [vmem:[%s14211_s3 + $0x1e0] sm:$0xff] }
 0x8cf   : > { %5415 = vmatpush.msra.mxu2 %v5228_v23  ;;  %5480 = vmatpush.msra.mxu3 %v5229_v18  ;;  %v5722_v28 = vld [vmem:[%s14211_s3 + $0x3e0] sm:$0xff] }
 0x8d0   : > { %5286 = vmatpush.msra.mxu0 %v5222_v21  ;;  %5351 = vmatpush.msra.mxu1 %v5223_v27  ;;  %v5782_v22 = vld [vmem:[%s14211_s3 + $0x5c0] sm:$0xff] }
 0x8d1   : > { %5416 = vmatpush.msra.mxu2 %v5224_v47  ;;  %5481 = vmatpush.msra.mxu3 %v5225_v9  ;;  %v5846_v30 = vld [vmem:[%s14211_s3 + $0x7c0] sm:$0xff] }
 0x8d2   : > { %5287 = vmatpush.msra.mxu0 %v5218_v36  ;;  %5352 = vmatpush.msra.mxu1 %v5219_v49  ;;  %v5654_v41 = vld [vmem:[%s14211_s3 + $0x1c0] sm:$0xff] }
 0x8d3   : > { %5417 = vmatpush.msra.mxu2 %v5220_v26  ;;  %5482 = vmatpush.msra.mxu3 %v5221_v17  ;;  %v5718_v56 = vld [vmem:[%s14211_s3 + $0x3c0] sm:$0xff] }
 0x8d4   : > { %5288 = vmatpush.msra.mxu0 %v5214_v29  ;;  %5353 = vmatpush.msra.mxu1 %v5215_v40  ;;  %v5842_v38 = vld [vmem:[%s14211_s3 + $0x7a0] sm:$0xff] }
 0x8d5   : > { %5418 = vmatpush.msra.mxu2 %v5216_v10  ;;  %5483 = vmatpush.msra.mxu3 %v5217_v14  ;;  %v5650_v8 = vld [vmem:[%s14211_s3 + $0x1a0] sm:$0xff] }
 0x8d6   : > { %5289 = vmatpush.msra.mxu0 %v5210_v60  ;;  %5354 = vmatpush.msra.mxu1 %v5211_v11  ;;  %v5714_v16 = vld [vmem:[%s14211_s3 + $0x3a0] sm:$0xff] }
 0x8d7   : > { %5419 = vmatpush.msra.mxu2 %v5212_v57  ;;  %5484 = vmatpush.msra.mxu3 %v5213_v5  ;;  %v5774_v48 = vld [vmem:[%s14211_s3 + $0x580] sm:$0xff] }
 0x8d8   : > { %5290 = vmatmul.f32.vlgmr.msra.gmra.mxu0 %v12034_v54  ;;  %5355 = vmatmul.f32.vlgmr.msra.gmra.mxu1 %v12034_v54  ;;  %v5838_v37 = vld [vmem:[%s14211_s3 + $0x780] sm:$0xff] }
 0x8d9   : > { %5420 = vmatmul.f32.vlgmr.msra.gmra.mxu2 %v12034_v54  ;;  %5485 = vmatmul.f32.vlgmr.msra.gmra.mxu3 %v12034_v54  ;;  %v5778_v54 = vld [vmem:[%s14211_s3 + $0x5a0] sm:$0xff] }
 0x8da   : > { %5984 = vmatpush.msrb.mxu2 %v5786_v6  ;;  %6049 = vmatpush.msrb.mxu3 %v5850_v19  ;;  %v5646_v61 = vld [vmem:[%s14211_s3 + $0x180] sm:$0xff] }
 0x8db   : > { %5854 = vmatpush.msrb.mxu0 %v5658_v50  ;;  %5919 = vmatpush.msrb.mxu1 %v5722_v28  ;;  %v5710_v58 = vld [vmem:[%s14211_s3 + $0x380] sm:$0xff] }
 0x8dc   : > { %5985 = vmatpush.msrb.mxu2 %v5782_v22  ;;  %6050 = vmatpush.msrb.mxu3 %v5846_v30  ;;  %v5770_v59 = vld [vmem:[%s14211_s3 + $0x560] sm:$0xff]  ;;  %v5787_v22 = vld [vmem:[%s14211_s3 + $0x5e8] sm:$0xff] }
 0x8dd   : > { %5855 = vmatpush.msrb.mxu0 %v5654_v41  ;;  %5920 = vmatpush.msrb.mxu1 %v5718_v56  ;;  %v5834_v52 = vld [vmem:[%s14211_s3 + $0x760] sm:$0xff]  ;;  %v5851_v30 = vld [vmem:[%s14211_s3 + $0x7e8] sm:$0xff] }
 0x8de   : > { %5986 = vmatpush.msrb.mxu2 %v5778_v54  ;;  %6051 = vmatpush.msrb.mxu3 %v5842_v38  ;;  %v5642_v7 = vld [vmem:[%s14211_s3 + $0x160] sm:$0xff]  ;;  %v5659_v41 = vld [vmem:[%s14211_s3 + $0x1e8] sm:$0xff] }
 0x8df   : > { %5856 = vmatpush.msrb.mxu0 %v5650_v8  ;;  %5921 = vmatpush.msrb.mxu1 %v5714_v16  ;;  %v5706_v2 = vld [vmem:[%s14211_s3 + $0x360] sm:$0xff]  ;;  %v5783_v56 = vld [vmem:[%s14211_s3 + $0x5c8] sm:$0xff] }
 0x8e0   : > { %5293 = vmatmul.f32.gmra.mxu0 %v12044_v63  ;;  %5358 = vmatmul.f32.gmra.mxu1 %v12044_v63  ;;  %v5830_v42 = vld [vmem:[%s14211_s3 + $0x740] sm:$0xff]  ;;  %v5847_v54 = vld [vmem:[%s14211_s3 + $0x7c8] sm:$0xff] }
 0x8e1   : > { %5423 = vmatmul.f32.gmra.mxu2 %v12044_v63  ;;  %5488 = vmatmul.f32.gmra.mxu3 %v12044_v63  ;;  %v5766_v63 = vld [vmem:[%s14211_s3 + $0x540] sm:$0xff]  ;;  %v5719_v38 = vld [vmem:[%s14211_s3 + $0x3c8] sm:$0xff] }
 0x8e2   : > { %5987 = vmatpush.msrb.mxu2 %v5774_v48  ;;  %6052 = vmatpush.msrb.mxu3 %v5838_v37  ;;  %v5638_v46 = vld [vmem:[%s14211_s3 + $0x140] sm:$0xff]  ;;  %v5779_v8 = vld [vmem:[%s14211_s3 + $0x5a8] sm:$0xff] }
 0x8e3   : > { %5857 = vmatpush.msrb.mxu0 %v5646_v61  ;;  %5922 = vmatpush.msrb.mxu1 %v5710_v58  ;;  %v5702_v0 = vld [vmem:[%s14211_s3 + $0x340] sm:$0xff]  ;;  %v5843_v16 = vld [vmem:[%s14211_s3 + $0x7a8] sm:$0xff] }
 0x8e4   : > { %5988 = vmatpush.msrb.mxu2 %v5770_v59  ;;  %6053 = vmatpush.msrb.mxu3 %v5834_v52  ;;  %v5762_v34 = vld [vmem:[%s14211_s3 + $0x520] sm:$0xff]  ;;  %v5715_v48 = vld [vmem:[%s14211_s3 + $0x3a8] sm:$0xff] }
 0x8e5   : > { %5858 = vmatpush.msrb.mxu0 %v5642_v7  ;;  %5923 = vmatpush.msrb.mxu1 %v5706_v2  ;;  %v5634_v24 = vld [vmem:[%s14211_s3 + $0x120] sm:$0xff]  ;;  %v5775_v52 = vld [vmem:[%s14211_s3 + $0x588] sm:$0xff] }
 0x8e6   : > { %5989 = vmatpush.msrb.mxu2 %v5766_v63  ;;  %6054 = vmatpush.msrb.mxu3 %v5830_v42  ;;  %v5698_v20 = vld [vmem:[%s14211_s3 + $0x320] sm:$0xff]  ;;  %v5647_v7 = vld [vmem:[%s14211_s3 + $0x188] sm:$0xff] }
 0x8e7   : > { %5859 = vmatpush.msrb.mxu0 %v5638_v46  ;;  %5924 = vmatpush.msrb.mxu1 %v5702_v0  ;;  %v5758_v13 = vld [vmem:[%s14211_s3 + $0x500] sm:$0xff]  ;;  %v5711_v2 = vld [vmem:[%s14211_s3 + $0x388] sm:$0xff] }
 0x8e8   : > { %5296 = vmatmul.f32.gmra.mxu0 %v12054_v51  ;;  %5361 = vmatmul.f32.gmra.mxu1 %v12054_v51  ;;  %v5630_v43 = vld [vmem:[%s14211_s3 + $0x100] sm:$0xff] }
 0x8e9   : > { %5426 = vmatmul.f32.gmra.mxu2 %v12054_v51  ;;  %5491 = vmatmul.f32.gmra.mxu3 %v12054_v51  ;;  %v5826_v51 = vld [vmem:[%s14211_s3 + $0x720] sm:$0xff] }
 0x8ea   : > { %5990 = vmatpush.msrb.mxu2 %v5762_v34  ;;  %6055 = vmatpush.msrb.mxu3 %v5826_v51  ;;  %v5694_v12 = vld [vmem:[%s14211_s3 + $0x300] sm:$0xff] }
 0x8eb   : > { %5860 = vmatpush.msrb.mxu0 %v5634_v24  ;;  %5925 = vmatpush.msrb.mxu1 %v5698_v20  ;;  %v5754_v4 = vld [vmem:[%s14211_s3 + $0x4e0] sm:$0xff] }
 0x8ec   : > { %5991 = vmatpush.msrb.mxu2 %v5758_v13  ;;  %v5626_v44 = vld [vmem:[%s14211_s3 + $0xe0] sm:$0xff]  ;;  %v5771_v13 = vld [vmem:[%s14211_s3 + $0x568] sm:$0xff] }
 0x8ed   : > { %5861 = vmatpush.msrb.mxu0 %v5630_v43  ;;  %5926 = vmatpush.msrb.mxu1 %v5694_v12  ;;  %v5690_v23 = vld [vmem:[%s14211_s3 + $0x2e0] sm:$0xff]  ;;  %v5643_v43 = vld [vmem:[%s14211_s3 + $0x168] sm:$0xff] }
 0x8ee   : > { %5992 = vmatpush.msrb.mxu2 %v5754_v4  ;;  %v5750_v18 = vld [vmem:[%s14211_s3 + $0x4c0] sm:$0xff]  ;;  %v5707_v12 = vld [vmem:[%s14211_s3 + $0x368] sm:$0xff] }
 0x8ef   : > { %5862 = vmatpush.msrb.mxu0 %v5626_v44  ;;  %5927 = vmatpush.msrb.mxu1 %v5690_v23  ;;  %v5622_v21 = vld [vmem:[%s14211_s3 + $0xc0] sm:$0xff] }
 0x8f0   : > { %5299 = vmatmul.f32.gmra.mxu0 %v12064_v32  ;;  %5364 = vmatmul.f32.gmra.mxu1 %v12064_v32  ;;  %v5686_v27 = vld [vmem:[%s14211_s3 + $0x2c0] sm:$0xff] }
 0x8f1   : > { %5429 = vmatmul.f32.gmra.mxu2 %v12064_v32  ;;  %5494 = vmatmul.f32.gmra.mxu3 %v12064_v32  ;;  %v5822_v32 = vld [vmem:[%s14211_s3 + $0x700] sm:$0xff] }
 0x8f2   : > { %6056 = vmatpush.msrb.mxu3 %v5822_v32  ;;  %5993 = vmatpush.msrb.mxu2 %v5750_v18  ;;  %v5746_v47 = vld [vmem:[%s14211_s3 + $0x4a0] sm:$0xff]  ;;  %v5835_v32 = vld [vmem:[%s14211_s3 + $0x768] sm:$0xff] }
 0x8f3   : > { %5863 = vmatpush.msrb.mxu0 %v5622_v21  ;;  %5928 = vmatpush.msrb.mxu1 %v5686_v27  ;;  %v5618_v9 = vld [vmem:[%s14211_s3 + $0xa0] sm:$0xff] }
 0x8f4   : > { %5994 = vmatpush.msrb.mxu2 %v5746_v47  ;;  %v5682_v36 = vld [vmem:[%s14211_s3 + $0x2a0] sm:$0xff]  ;;  %v5767_v47 = vld [vmem:[%s14211_s3 + $0x548] sm:$0xff] }
 0x8f5   : > { %5864 = vmatpush.msrb.mxu0 %v5618_v9  ;;  %v5742_v49 = vld [vmem:[%s14211_s3 + $0x480] sm:$0xff]  ;;  %5929 = vmatpush.msrb.mxu1 %v5682_v36  ;;  %v5639_v9 = vld [vmem:[%s14211_s3 + $0x148] sm:$0xff] }
 0x8f6   : > { %5995 = vmatpush.msrb.mxu2 %v5742_v49  ;;  %v5614_v26 = vld [vmem:[%s14211_s3 + $0x80] sm:$0xff]  ;;  %v5703_v36 = vld [vmem:[%s14211_s3 + $0x348] sm:$0xff] }
 0x8f7   : > { %v5678_v17 = vld [vmem:[%s14211_s3 + $0x280] sm:$0xff]  ;;  %5865 = vmatpush.msrb.mxu0 %v5614_v26 }
 0x8f8   : > { %5302 = vmatmul.f32.gmra.mxu0 %v12074_v55  ;;  %5367 = vmatmul.f32.gmra.mxu1 %v12074_v55  ;;  %v5738_v29 = vld [vmem:[%s14211_s3 + $0x460] sm:$0xff] }
 0x8f9   : > { %5432 = vmatmul.f32.gmra.mxu2 %v12074_v55  ;;  %5497 = vmatmul.f32.gmra.mxu3 %v12074_v55  ;;  %v5818_v55 = vld [vmem:[%s14211_s3 + $0x6e0] sm:$0xff] }
 0x8fa   : > { %6057 = vmatpush.msrb.mxu3 %v5818_v55  ;;  %5930 = vmatpush.msrb.mxu1 %v5678_v17  ;;  %v5610_v40 = vld [vmem:[%s14211_s3 + $0x60] sm:$0xff] }
 0x8fb   : > { %5996 = vmatpush.msrb.mxu2 %v5738_v29  ;;  %v5674_v10 = vld [vmem:[%s14211_s3 + $0x260] sm:$0xff]  ;;  %5866 = vmatpush.msrb.mxu0 %v5610_v40 }
 0x8fc   : > { %v5734_v14 = vld [vmem:[%s14211_s3 + $0x440] sm:$0xff]  ;;  %5931 = vmatpush.msrb.mxu1 %v5674_v10 }
 0x8fd   : > { %5997 = vmatpush.msrb.mxu2 %v5734_v14  ;;  %v5606_v60 = vld [vmem:[%s14211_s3 + $0x40] sm:$0xff]  ;;  %v5763_v14 = vld [vmem:[%s14211_s3 + $0x528] sm:$0xff] }
 0x8fe   : > { %v5670_v11 = vld [vmem:[%s14211_s3 + $0x240] sm:$0xff]  ;;  %5867 = vmatpush.msrb.mxu0 %v5606_v60  ;;  %v5635_v60 = vld [vmem:[%s14211_s3 + $0x128] sm:$0xff] }
 0x8ff   : > { %v5730_v57 = vld [vmem:[%s14211_s3 + $0x420] sm:$0xff]  ;;  %5932 = vmatpush.msrb.mxu1 %v5670_v11  ;;  %v5699_v11 = vld [vmem:[%s14211_s3 + $0x328] sm:$0xff] }
 0x900   : > { %5305 = vmatmul.f32.gmra.mxu0 %v12084_v15  ;;  %5370 = vmatmul.f32.gmra.mxu1 %v12084_v15  ;;  %v5602_v5 = vld [vmem:[%s14211_s3 + $0x20] sm:$0xff] }
 0x901   : > { %5435 = vmatmul.f32.gmra.mxu2 %v12084_v15  ;;  %5500 = vmatmul.f32.gmra.mxu3 %v12084_v15  ;;  %v5814_v15 = vld [vmem:[%s14211_s3 + $0x6c0] sm:$0xff] }
 0x902   : > { %6058 = vmatpush.msrb.mxu3 %v5814_v15  ;;  %5998 = vmatpush.msrb.mxu2 %v5730_v57  ;;  %v5666_v6 = vld [vmem:[%s14211_s3 + $0x220] sm:$0xff] }
 0x903   : > { %5868 = vmatpush.msrb.mxu0 %v5602_v5  ;;  %5933 = vmatpush.msrb.mxu1 %v5666_v6  ;;  %v5726_v19 = vld [vmem:[%s14211_s3 + $0x400] sm:$0xff] }
 0x904   : > { %5999 = vmatpush.msrb.mxu2 %v5726_v19  ;;  %v5662_v50 = vld [vmem:[%s14211_s3 + $0x200] sm:$0xff] }
 0x905   : > { %v5790_v28 = vld [vmem:[%s14211_s3 + $0x600] sm:$0xff]  ;;  %5934 = vmatpush.msrb.mxu1 %v5662_v50 }
 0x906   : > { %6244 = vmatpush.msra.mxu2 %v5787_v22  ;;  %v5759_v22 = vld [vmem:[%s14211_s3 + $0x508] sm:$0xff] }
 0x908   : > { %5308 = vmatmul.f32.gmra.mxu0 %v12092_v62  ;;  %5373 = vmatmul.f32.gmra.mxu1 %v12092_v62 }
 0x909   : > { %5438 = vmatmul.f32.gmra.mxu2 %v12092_v62  ;;  %5503 = vmatmul.f32.gmra.mxu3 %v12092_v62  ;;  %v5810_v62 = vld [vmem:[%s14211_s3 + $0x6a0] sm:$0xff] }
 0x90a   : > { %6059 = vmatpush.msrb.mxu3 %v5810_v62  ;;  %6245 = vmatpush.msra.mxu2 %v5783_v56  ;;  %v5831_v62 = vld [vmem:[%s14211_s3 + $0x748] sm:$0xff] }
 0x90c   : > { %6246 = vmatpush.msra.mxu2 %v5779_v8 }
 0x90e   : > { %6247 = vmatpush.msra.mxu2 %v5775_v52  ;;  %v5627_v52 = vld [vmem:[%s14211_s3 + $0xe8] sm:$0xff] }
 0x910   : > { %5311 = vmatmul.f32.gmra.mxu0 %v12101_v25  ;;  %5376 = vmatmul.f32.gmra.mxu1 %v12101_v25 }
 0x911   : > { %5441 = vmatmul.f32.gmra.mxu2 %v12101_v25  ;;  %5506 = vmatmul.f32.gmra.mxu3 %v12101_v25  ;;  %v5806_v25 = vld [vmem:[%s14211_s3 + $0x680] sm:$0xff] }
 0x912   : > { %6060 = vmatpush.msrb.mxu3 %v5806_v25  ;;  %6248 = vmatpush.msra.mxu2 %v5771_v13 }
 0x914   : > { %6249 = vmatpush.msra.mxu2 %v5767_v47 }
 0x916   : > { %6250 = vmatpush.msra.mxu2 %v5763_v14  ;;  %v5619_v14 = vld [vmem:[%s14211_s3 + $0xa8] sm:$0xff] }
 0x918   : > { %5314 = vmatmul.f32.gmra.mxu0 %v12110_v53  ;;  %5379 = vmatmul.f32.gmra.mxu1 %v12110_v53 }
 0x919   : > { %5444 = vmatmul.f32.gmra.mxu2 %v12110_v53  ;;  %5509 = vmatmul.f32.gmra.mxu3 %v12110_v53  ;;  %v5802_v53 = vld [vmem:[%s14211_s3 + $0x660] sm:$0xff] }
 0x91a   : > { %6061 = vmatpush.msrb.mxu3 %v5802_v53  ;;  %6251 = vmatpush.msra.mxu2 %v5759_v22 }
 0x920   : > { %5317 = vmatmul.f32.gmra.mxu0 %v12119_v31  ;;  %5382 = vmatmul.f32.gmra.mxu1 %v12119_v31 }
 0x921   : > { %5447 = vmatmul.f32.gmra.mxu2 %v12119_v31  ;;  %5512 = vmatmul.f32.gmra.mxu3 %v12119_v31  ;;  %v5798_v31 = vld [vmem:[%s14211_s3 + $0x640] sm:$0xff] }
 0x922   : > { %6062 = vmatpush.msrb.mxu3 %v5798_v31  ;;  %v5827_v31 = vld [vmem:[%s14211_s3 + $0x728] sm:$0xff] }
 0x928   : > { %5320 = vmatmul.f32.gmra.mxu0 %v12128_v1  ;;  %5385 = vmatmul.f32.gmra.mxu1 %v12128_v1 }
 0x929   : > { %5450 = vmatmul.f32.gmra.mxu2 %v12128_v1  ;;  %5515 = vmatmul.f32.gmra.mxu3 %v12128_v1  ;;  %v5794_v1 = vld [vmem:[%s14211_s3 + $0x620] sm:$0xff] }
 0x92a   : > { %6063 = vmatpush.msrb.mxu3 %v5794_v1 }
 0x92c   : > { %6064 = vmatpush.msrb.mxu3 %v5790_v28 }
 0x92e   : > { %6309 = vmatpush.msra.mxu3 %v5851_v30  ;;  %v5823_v30 = vld [vmem:[%s14211_s3 + $0x708] sm:$0xff] }
 0x930   : > { %5323 = vmatmul.f32.gmra.mxu0 %v12137_v3  ;;  %5388 = vmatmul.f32.gmra.mxu1 %v12137_v3 }
 0x931   : > { %5453 = vmatmul.f32.gmra.mxu2 %v12137_v3  ;;  %5518 = vmatmul.f32.gmra.mxu3 %v12137_v3  ;;  %v5598_v3 = vld [vmem:[%s14211_s3] sm:$0xff] }
 0x932   : > { %5869 = vmatpush.msrb.mxu0 %v5598_v3  ;;  %6310 = vmatpush.msra.mxu3 %v5847_v54 }
 0x934   : > { %6114 = vmatpush.msra.mxu0 %v5659_v41  ;;  %6311 = vmatpush.msra.mxu3 %v5843_v16  ;;  %v5631_v41 = vld [vmem:[%s14211_s3 + $0x108] sm:$0xff] }
 0x938   : > { %5326 = vmatmul.f32.gmra.mxu0 %v12146_v35  ;;  %5391 = vmatmul.f32.gmra.mxu1 %v12146_v35 }
 0x939   : > { %5456 = vmatmul.f32.gmra.mxu2 %v12146_v35  ;;  %5521 = vmatmul.f32.gmra.mxu3 %v12146_v35  ;;  %v5723_v35 = vld [vmem:[%s14211_s3 + $0x3e8] sm:$0xff] }
 0x93a   : > { %6179 = vmatpush.msra.mxu1 %v5723_v35  ;;  %v5695_v35 = vld [vmem:[%s14211_s3 + $0x308] sm:$0xff] }
 0x93c   : > { %6180 = vmatpush.msra.mxu1 %v5719_v38 }
 0x93e   : > { %6181 = vmatpush.msra.mxu1 %v5715_v48 }
 0x940   : > { %5329 = vmatmul.f32.gmra.mxu0 %v12155_v45  ;;  %5394 = vmatmul.f32.gmra.mxu1 %v12155_v45 }
 0x941   : > { %5459 = vmatmul.f32.gmra.mxu2 %v12155_v45  ;;  %5524 = vmatmul.f32.gmra.mxu3 %v12155_v45  ;;  %v5655_v45 = vld [vmem:[%s14211_s3 + $0x1c8] sm:$0xff] }
 0x942   : > { %6115 = vmatpush.msra.mxu0 %v5655_v45  ;;  %6182 = vmatpush.msra.mxu1 %v5711_v2 }
 0x944   : > { %6183 = vmatpush.msra.mxu1 %v5707_v12  ;;  %v5815_v12 = vld [vmem:[%s14211_s3 + $0x6c8] sm:$0xff] }
 0x946   : > { %6184 = vmatpush.msra.mxu1 %v5703_v36 }
 0x948   : > { %5332 = vmatmul.f32.gmra.mxu0 %v12164_v39  ;;  %5397 = vmatmul.f32.gmra.mxu1 %v12164_v39 }
 0x949   : > { %5462 = vmatmul.f32.gmra.mxu2 %v12164_v39  ;;  %5527 = vmatmul.f32.gmra.mxu3 %v12164_v39  ;;  %v5651_v39 = vld [vmem:[%s14211_s3 + $0x1a8] sm:$0xff] }
 0x94a   : > { %6116 = vmatpush.msra.mxu0 %v5651_v39  ;;  %6185 = vmatpush.msra.mxu1 %v5699_v11 }
 0x94c   : > { %6117 = vmatpush.msra.mxu0 %v5647_v7  ;;  %6186 = vmatpush.msra.mxu1 %v5695_v35  ;;  %v5807_v35 = vld [vmem:[%s14211_s3 + $0x688] sm:$0xff] }
 0x94e   : > { %6118 = vmatpush.msra.mxu0 %v5643_v43  ;;  %v5751_v43 = vld [vmem:[%s14211_s3 + $0x4c8] sm:$0xff] }
 0x950   : > { %5335 = vmatmul.f32.gmra.mxu0 %v12172_v33  ;;  %5400 = vmatmul.f32.gmra.mxu1 %v12172_v33 }
 0x951   : > { %5465 = vmatmul.f32.gmra.mxu2 %v12172_v33  ;;  %5530 = vmatmul.f32.gmra.mxu3 %v12172_v33  ;;  %v5839_v33 = vld [vmem:[%s14211_s3 + $0x788] sm:$0xff] }
 0x952   : > { %6312 = vmatpush.msra.mxu3 %v5839_v33  ;;  %6119 = vmatpush.msra.mxu0 %v5639_v9  ;;  %v5691_v33 = vld [vmem:[%s14211_s3 + $0x2e8] sm:$0xff] }
 0x953   : > { %6187 = vmatpush.msra.mxu1 %v5691_v33 }
 0x954   : > { %6313 = vmatpush.msra.mxu3 %v5835_v32  ;;  %6120 = vmatpush.msra.mxu0 %v5635_v60 }
 0x955   : > { %v5291_v37 = vpop.f32.mrf.mxu0  ;;  %v5356_v61 = vpop.f32.mrf.mxu1 }
 0x956   : > { %v12661_v58 = vmax.f32 %v5291_v37, 0.0  ;;  %v12663_v59 = vmax.f32 %v5356_v61, 0.0  ;;  %6314 = vmatpush.msra.mxu3 %v5831_v62  ;;  %6121 = vmatpush.msra.mxu0 %v5631_v41  ;;  %v5755_v37 = vld [vmem:[%s14211_s3 + $0x4e8] sm:$0xff] }
 0x957   : > { %v5819_v61 = vld [vmem:[%s14211_s3 + $0x6e8] sm:$0xff]  ;;  %6252 = vmatpush.msra.mxu2 %v5755_v37 }
 0x958   : > { %15059 = vst [vmem:[#allocation201_spill] sm:$0xff] %v12661_v58  ;;  %5870 = vmatmul.f32.vlgmr.msrb.gmra.mxu0 %v12661_v58  ;;  %5935 = vmatmul.f32.vlgmr.msrb.gmra.mxu1 %v12663_v59  ;;  %v5743_v41 = vld [vmem:[%s14211_s3 + $0x488] sm:$0xff] }
 0x959   : > { %15060 = vst [vmem:[#allocation202_spill] sm:$0xff] %v12663_v59  ;;  %6315 = vmatpush.msra.mxu3 %v5827_v31  ;;  %6122 = vmatpush.msra.mxu0 %v5627_v52  ;;  %v5683_v31 = vld [vmem:[%s14211_s3 + $0x2a8] sm:$0xff] }
 0x95a   : > { %6253 = vmatpush.msra.mxu2 %v5751_v43  ;;  %v5611_v43 = vld [vmem:[%s14211_s3 + $0x68] sm:$0xff] }
 0x95b   : > { %6316 = vmatpush.msra.mxu3 %v5823_v30 }
 0x95c   : > { %v5421_v63 = vpop.f32.mrf.mxu2  ;;  %v5486_v42 = vpop.f32.mrf.mxu3 }
 0x95d   : > { %v12679_v46 = vmax.f32 %v5421_v63, 0.0  ;;  %v12681_v0 = vmax.f32 %v5486_v42, 0.0  ;;  %v5294_v34 = vpop.f32.mrf.mxu0  ;;  %v5359_v51 = vpop.f32.mrf.mxu1  ;;  %6317 = vmatpush.msra.mxu3 %v5819_v61 }
 0x95e   : > { %v12683_v24 = vmax.f32 %v5294_v34, 0.0  ;;  %v12685_v20 = vmax.f32 %v5359_v51, 0.0 }
 0x95f   : > { %15061 = vst [vmem:[#allocation203_spill] sm:$0xff] %v12679_v46  ;;  %6000 = vmatmul.f32.vlgmr.msrb.gmra.mxu2 %v12679_v46  ;;  %6065 = vmatmul.f32.vlgmr.msrb.gmra.mxu3 %v12681_v0 }
 0x960   : > { %15062 = vst [vmem:[#allocation204_spill] sm:$0xff] %v12681_v0  ;;  %5873 = vmatmul.f32.gmra.mxu0 %v12683_v24  ;;  %5938 = vmatmul.f32.gmra.mxu1 %v12685_v20 }
 0x961   : > { %15063 = vst [vmem:[#allocation205_spill] sm:$0xff] %v12683_v24  ;;  %6318 = vmatpush.msra.mxu3 %v5815_v12  ;;  %v5675_v12 = vld [vmem:[%s14211_s3 + $0x268] sm:$0xff] }
 0x962   : > { %15064 = vst [vmem:[#allocation206_spill] sm:$0xff] %v12685_v20 }
 0x964   : > { %v5424_v4 = vpop.f32.mrf.mxu2  ;;  %v5489_v55 = vpop.f32.mrf.mxu3 }
 0x965   : > { %v12703_v44 = vmax.f32 %v5424_v4, 0.0  ;;  %v12705_v23 = vmax.f32 %v5489_v55, 0.0  ;;  %v5297_v18 = vpop.f32.mrf.mxu0  ;;  %v5362_v15 = vpop.f32.mrf.mxu1  ;;  %v5623_v4 = vld [vmem:[%s14211_s3 + $0xc8] sm:$0xff] }
 0x966   : > { %v12707_v21 = vmax.f32 %v5297_v18, 0.0  ;;  %v12709_v27 = vmax.f32 %v5362_v15, 0.0  ;;  %v5687_v55 = vld [vmem:[%s14211_s3 + $0x2c8] sm:$0xff]  ;;  %6123 = vmatpush.msra.mxu0 %v5623_v4 }
 0x967   : > { %6003 = vmatmul.f32.gmra.mxu2 %v12703_v44  ;;  %6068 = vmatmul.f32.gmra.mxu3 %v12705_v23 }
 0x968   : > { %5876 = vmatmul.f32.gmra.mxu0 %v12707_v21  ;;  %5941 = vmatmul.f32.gmra.mxu1 %v12709_v27 }
 0x969   : > { %6188 = vmatpush.msra.mxu1 %v5687_v55  ;;  %6124 = vmatpush.msra.mxu0 %v5619_v14  ;;  %v5735_v14 = vld [vmem:[%s14211_s3 + $0x448] sm:$0xff] }
 0x96b   : > { %6189 = vmatpush.msra.mxu1 %v5683_v31  ;;  %v5799_v31 = vld [vmem:[%s14211_s3 + $0x648] sm:$0xff] }
 0x96c   : > { %v5427_v49 = vpop.f32.mrf.mxu2  ;;  %v5492_v25 = vpop.f32.mrf.mxu3 }
 0x96d   : > { %v12727_v26 = vmax.f32 %v5427_v49, 0.0  ;;  %v12729_v17 = vmax.f32 %v5492_v25, 0.0  ;;  %v5300_v29 = vpop.f32.mrf.mxu0  ;;  %v5365_v53 = vpop.f32.mrf.mxu1 }
 0x96e   : > { %v12731_v40 = vmax.f32 %v5300_v29, 0.0  ;;  %v12733_v10 = vmax.f32 %v5365_v53, 0.0  ;;  %v5747_v29 = vld [vmem:[%s14211_s3 + $0x4a8] sm:$0xff] }
 0x96f   : > { %6006 = vmatmul.f32.gmra.mxu2 %v12727_v26  ;;  %6071 = vmatmul.f32.gmra.mxu3 %v12729_v17  ;;  %v5811_v53 = vld [vmem:[%s14211_s3 + $0x6a8] sm:$0xff] }
 0x970   : > { %5879 = vmatmul.f32.gmra.mxu0 %v12731_v40  ;;  %5944 = vmatmul.f32.gmra.mxu1 %v12733_v10 }
 0x971   : > { %6254 = vmatpush.msra.mxu2 %v5747_v29  ;;  %6319 = vmatpush.msra.mxu3 %v5811_v53 }
 0x973   : > { %6255 = vmatpush.msra.mxu2 %v5743_v41  ;;  %6320 = vmatpush.msra.mxu3 %v5807_v35 }
 0x974   : > { %v5430_v57 = vpop.f32.mrf.mxu2  ;;  %v5495_v1 = vpop.f32.mrf.mxu3 }
 0x975   : > { %v12751_v5 = vmax.f32 %v5430_v57, 0.0  ;;  %v12753_v6 = vmax.f32 %v5495_v1, 0.0  ;;  %v5303_v19 = vpop.f32.mrf.mxu0  ;;  %v5368_v3 = vpop.f32.mrf.mxu1 }
 0x976   : > { %v12755_v50 = vmax.f32 %v5303_v19, 0.0  ;;  %v12757_v28 = vmax.f32 %v5368_v3, 0.0 }
 0x977   : > { %6009 = vmatmul.f32.gmra.mxu2 %v12751_v5  ;;  %6074 = vmatmul.f32.gmra.mxu3 %v12753_v6 }
 0x978   : > { %5882 = vmatmul.f32.gmra.mxu0 %v12755_v50  ;;  %5947 = vmatmul.f32.gmra.mxu1 %v12757_v28 }
 0x97c   : > { %v5433_v56 = vpop.f32.mrf.mxu2  ;;  %v5498_v54 = vpop.f32.mrf.mxu3 }
 0x97d   : > { %v12775_v45 = vmax.f32 %v5433_v56, 0.0  ;;  %v12777_v38 = vmax.f32 %v5498_v54, 0.0  ;;  %v5306_v8 = vpop.f32.mrf.mxu0  ;;  %v5371_v16 = vpop.f32.mrf.mxu1  ;;  %v5615_v56 = vld [vmem:[%s14211_s3 + $0x88] sm:$0xff] }
 0x97e   : > { %v12779_v39 = vmax.f32 %v5306_v8, 0.0  ;;  %v12781_v48 = vmax.f32 %v5371_v16, 0.0  ;;  %v5679_v54 = vld [vmem:[%s14211_s3 + $0x288] sm:$0xff]  ;;  %6125 = vmatpush.msra.mxu0 %v5615_v56 }
 0x97f   : > { %6012 = vmatmul.f32.gmra.mxu2 %v12775_v45  ;;  %6077 = vmatmul.f32.gmra.mxu3 %v12777_v38 }
 0x980   : > { %5885 = vmatmul.f32.gmra.mxu0 %v12779_v39  ;;  %5950 = vmatmul.f32.gmra.mxu1 %v12781_v48 }
 0x981   : > { %6190 = vmatpush.msra.mxu1 %v5679_v54  ;;  %6126 = vmatpush.msra.mxu0 %v5611_v43 }
 0x983   : > { %6191 = vmatpush.msra.mxu1 %v5675_v12 }
 0x984   : > { %v5436_v7 = vpop.f32.mrf.mxu2  ;;  %v5501_v2 = vpop.f32.mrf.mxu3 }
 0x985   : > { %v12799_v63 = vmax.f32 %v5436_v7, 0.0  ;;  %v12801_v42 = vmax.f32 %v5501_v2, 0.0  ;;  %v5309_v34 = vpop.f32.mrf.mxu0  ;;  %v5374_v51 = vpop.f32.mrf.mxu1 }
 0x986   : > { %v12803_v13 = vmax.f32 %v5309_v34, 0.0  ;;  %v12805_v32 = vmax.f32 %v5374_v51, 0.0  ;;  %v5739_v34 = vld [vmem:[%s14211_s3 + $0x468] sm:$0xff] }
 0x987   : > { %6015 = vmatmul.f32.gmra.mxu2 %v12799_v63  ;;  %6080 = vmatmul.f32.gmra.mxu3 %v12801_v42  ;;  %v5803_v51 = vld [vmem:[%s14211_s3 + $0x668] sm:$0xff] }
 0x988   : > { %5888 = vmatmul.f32.gmra.mxu0 %v12803_v13  ;;  %5953 = vmatmul.f32.gmra.mxu1 %v12805_v32 }
 0x989   : > { %6256 = vmatpush.msra.mxu2 %v5739_v34  ;;  %6321 = vmatpush.msra.mxu3 %v5803_v51  ;;  %v5603_v34 = vld [vmem:[%s14211_s3 + $0x28] sm:$0xff] }
 0x98a   : > { %v5667_v51 = vld [vmem:[%s14211_s3 + $0x228] sm:$0xff] }
 0x98b   : > { %6257 = vmatpush.msra.mxu2 %v5735_v14  ;;  %6322 = vmatpush.msra.mxu3 %v5799_v31 }
 0x98c   : > { %v5439_v18 = vpop.f32.mrf.mxu2  ;;  %v5504_v15 = vpop.f32.mrf.mxu3 }
 0x98d   : > { %v12823_v47 = vmax.f32 %v5439_v18, 0.0  ;;  %v12825_v62 = vmax.f32 %v5504_v15, 0.0  ;;  %v5312_v9 = vpop.f32.mrf.mxu0  ;;  %v5377_v36 = vpop.f32.mrf.mxu1 }
 0x98e   : > { %v12827_v49 = vmax.f32 %v5312_v9, 0.0  ;;  %v12829_v25 = vmax.f32 %v5377_v36, 0.0 }
 0x98f   : > { %6018 = vmatmul.f32.gmra.mxu2 %v12823_v47  ;;  %6083 = vmatmul.f32.gmra.mxu3 %v12825_v62 }
 0x990   : > { %5891 = vmatmul.f32.gmra.mxu0 %v12827_v49  ;;  %5956 = vmatmul.f32.gmra.mxu1 %v12829_v25 }
 0x994   : > { %v5442_v60 = vpop.f32.mrf.mxu2  ;;  %v5507_v11 = vpop.f32.mrf.mxu3 }
 0x995   : > { %v12847_v57 = vmax.f32 %v5442_v60, 0.0  ;;  %v12849_v1 = vmax.f32 %v5507_v11, 0.0  ;;  %v5315_v19 = vpop.f32.mrf.mxu0  ;;  %v5380_v3 = vpop.f32.mrf.mxu1  ;;  %v5607_v60 = vld [vmem:[%s14211_s3 + $0x48] sm:$0xff] }
 0x996   : > { %v12851_v22 = vmax.f32 %v5315_v19, 0.0  ;;  %v12853_v30 = vmax.f32 %v5380_v3, 0.0  ;;  %v5671_v11 = vld [vmem:[%s14211_s3 + $0x248] sm:$0xff]  ;;  %6127 = vmatpush.msra.mxu0 %v5607_v60 }
 0x997   : > { %6021 = vmatmul.f32.gmra.mxu2 %v12847_v57  ;;  %6086 = vmatmul.f32.gmra.mxu3 %v12849_v1  ;;  %v5727_v60 = vld [vmem:[%s14211_s3 + $0x408] sm:$0xff] }
 0x998   : > { %5894 = vmatmul.f32.gmra.mxu0 %v12851_v22  ;;  %5959 = vmatmul.f32.gmra.mxu1 %v12853_v30 }
 0x999   : > { %6192 = vmatpush.msra.mxu1 %v5671_v11  ;;  %6128 = vmatpush.msra.mxu0 %v5603_v34  ;;  %v5599_v11 = vld [vmem:[%s14211_s3 + $0x8] sm:$0xff] }
 0x99b   : > { %6193 = vmatpush.msra.mxu1 %v5667_v51  ;;  %6129 = vmatpush.msra.mxu0 %v5599_v11 }
 0x99c   : > { %v5445_v8 = vpop.f32.mrf.mxu2  ;;  %v5510_v16 = vpop.f32.mrf.mxu3 }
 0x99d   : > { %v12871_v37 = vmax.f32 %v5445_v8, 0.0  ;;  %v12873_v61 = vmax.f32 %v5510_v16, 0.0  ;;  %v5318_v52 = vpop.f32.mrf.mxu0  ;;  %v5383_v33 = vpop.f32.mrf.mxu1 }
 0x99e   : > { %v12875_v7 = vmax.f32 %v5318_v52, 0.0  ;;  %v12877_v2 = vmax.f32 %v5383_v33, 0.0  ;;  %v5731_v52 = vld [vmem:[%s14211_s3 + $0x428] sm:$0xff] }
 0x99f   : > { %6024 = vmatmul.f32.gmra.mxu2 %v12871_v37  ;;  %6089 = vmatmul.f32.gmra.mxu3 %v12873_v61  ;;  %v5795_v33 = vld [vmem:[%s14211_s3 + $0x628] sm:$0xff] }
 0x9a0   : > { %5897 = vmatmul.f32.gmra.mxu0 %v12875_v7  ;;  %5962 = vmatmul.f32.gmra.mxu1 %v12877_v2 }
 0x9a1   : > { %6258 = vmatpush.msra.mxu2 %v5731_v52  ;;  %6323 = vmatpush.msra.mxu3 %v5795_v33 }
 0x9a3   : > { %6259 = vmatpush.msra.mxu2 %v5727_v60 }
 0x9a4   : > { %v5448_v4 = vpop.f32.mrf.mxu2  ;;  %v5513_v55 = vpop.f32.mrf.mxu3 }
 0x9a5   : > { %v12895_v18 = vmax.f32 %v5448_v4, 0.0  ;;  %v12897_v15 = vmax.f32 %v5513_v55, 0.0  ;;  %v5321_v9 = vpop.f32.mrf.mxu0  ;;  %v5386_v36 = vpop.f32.mrf.mxu1 }
 0x9a6   : > { %v12899_v29 = vmax.f32 %v5321_v9, 0.0  ;;  %v12901_v53 = vmax.f32 %v5386_v36, 0.0 }
 0x9a7   : > { %6027 = vmatmul.f32.gmra.mxu2 %v12895_v18  ;;  %6092 = vmatmul.f32.gmra.mxu3 %v12897_v15 }
 0x9a8   : > { %5900 = vmatmul.f32.gmra.mxu0 %v12899_v29  ;;  %5965 = vmatmul.f32.gmra.mxu1 %v12901_v53 }
 0x9ac   : > { %v5451_v19 = vpop.f32.mrf.mxu2  ;;  %v5516_v3 = vpop.f32.mrf.mxu3 }
 0x9ad   : > { %v12919_v41 = vmax.f32 %v5451_v19, 0.0  ;;  %v12921_v35 = vmax.f32 %v5516_v3, 0.0  ;;  %v5324_v56 = vpop.f32.mrf.mxu0  ;;  %v5389_v54 = vpop.f32.mrf.mxu1  ;;  %v5663_v19 = vld [vmem:[%s14211_s3 + $0x208] sm:$0xff] }
 0x9ae   : > { %v12923_v8 = vmax.f32 %v5324_v56, 0.0  ;;  %v12925_v16 = vmax.f32 %v5389_v54, 0.0  ;;  %v5791_v3 = vld [vmem:[%s14211_s3 + $0x608] sm:$0xff]  ;;  %6194 = vmatpush.msra.mxu1 %v5663_v19 }
 0x9af   : > { %6030 = vmatmul.f32.gmra.mxu2 %v12919_v41  ;;  %6095 = vmatmul.f32.gmra.mxu3 %v12921_v35 }
 0x9b0   : > { %15065 = vst [vmem:[#allocation207_spill] sm:$0xff] %v12925_v16  ;;  %5903 = vmatmul.f32.gmra.mxu0 %v12923_v8  ;;  %5968 = vmatmul.f32.gmra.mxu1 %v12925_v16 }
 0x9b1   : > { %6324 = vmatpush.msra.mxu3 %v5791_v3 }
 0x9b4   : > { %v5454_v43 = vpop.f32.mrf.mxu2  ;;  %v5519_v12 = vpop.f32.mrf.mxu3 }
 0x9b5   : > { %v12943_v4 = vmax.f32 %v5454_v43, 0.0  ;;  %v12945_v55 = vmax.f32 %v5519_v12, 0.0  ;;  %v5327_v9 = vpop.f32.mrf.mxu0  ;;  %v5392_v36 = vpop.f32.mrf.mxu1 }
 0x9b6   : > { %v12947_v14 = vmax.f32 %v5327_v9, 0.0  ;;  %v12949_v31 = vmax.f32 %v5392_v36, 0.0  ;;  %v5788_v9 = vld [vmem:[%s14211_s3 + $0x5f0] sm:$0xff] }
 0x9b7   : > { %6033 = vmatmul.f32.gmra.mxu2 %v12943_v4  ;;  %6098 = vmatmul.f32.gmra.mxu3 %v12945_v55  ;;  %v5852_v36 = vld [vmem:[%s14211_s3 + $0x7f0] sm:$0xff] }
 0x9b8   : > { %15066 = vst [vmem:[#allocation208_spill] sm:$0xff] %v12947_v14  ;;  %5906 = vmatmul.f32.gmra.mxu0 %v12947_v14  ;;  %5971 = vmatmul.f32.gmra.mxu1 %v12949_v31 }
 0x9b9   : > { %15067 = vst [vmem:[#allocation209_spill] sm:$0xff] %v12949_v31  ;;  %6504 = vmatpush.msrb.mxu2 %v5788_v9  ;;  %6569 = vmatpush.msrb.mxu3 %v5852_v36  ;;  %v5784_v36 = vld [vmem:[%s14211_s3 + $0x5d0] sm:$0xff] }
 0x9bb   : > { %6505 = vmatpush.msrb.mxu2 %v5784_v36 }
 0x9bc   : > { %v5457_v56 = vpop.f32.mrf.mxu2  ;;  %v5522_v54 = vpop.f32.mrf.mxu3 }
 0x9bd   : > { %v12967_v52 = vmax.f32 %v5457_v56, 0.0  ;;  %v12969_v33 = vmax.f32 %v5522_v54, 0.0  ;;  %v5330_v34 = vpop.f32.mrf.mxu0  ;;  %v5395_v51 = vpop.f32.mrf.mxu1 }
 0x9be   : > { %v12971_v43 = vmax.f32 %v5330_v34, 0.0  ;;  %v12973_v12 = vmax.f32 %v5395_v51, 0.0  ;;  %v5660_v34 = vld [vmem:[%s14211_s3 + $0x1f0] sm:$0xff] }
 0x9bf   : > { %15068 = vst [vmem:[#allocation210_spill] sm:$0xff] %v12969_v33  ;;  %6036 = vmatmul.f32.gmra.mxu2 %v12967_v52  ;;  %6101 = vmatmul.f32.gmra.mxu3 %v12969_v33  ;;  %v5724_v51 = vld [vmem:[%s14211_s3 + $0x3f0] sm:$0xff] }
 0x9c0   : > { %15069 = vst [vmem:[#allocation211_spill] sm:$0xff] %v12971_v43  ;;  %5909 = vmatmul.f32.gmra.mxu0 %v12971_v43  ;;  %5974 = vmatmul.f32.gmra.mxu1 %v12973_v12 }
 0x9c1   : > { %15070 = vst [vmem:[#allocation212_spill] sm:$0xff] %v12973_v12  ;;  %6374 = vmatpush.msrb.mxu0 %v5660_v34  ;;  %6439 = vmatpush.msrb.mxu1 %v5724_v51 }
 0x9c4   : > { %v5460_v60 = vpop.f32.mrf.mxu2  ;;  %v5525_v11 = vpop.f32.mrf.mxu3 }
 0x9c5   : > { %v12985_v19 = vmax.f32 %v5460_v60, 0.0  ;;  %v12987_v3 = vmax.f32 %v5525_v11, 0.0  ;;  %v5333_v56 = vpop.f32.mrf.mxu0  ;;  %v5398_v54 = vpop.f32.mrf.mxu1  ;;  %v5848_v60 = vld [vmem:[%s14211_s3 + $0x7d0] sm:$0xff] }
 0x9c6   : > { %v12995_v12 = vmax.f32 %v5333_v56, 0.0  ;;  %v12997_v9 = vmax.f32 %v5398_v54, 0.0  ;;  %6570 = vmatpush.msrb.mxu3 %v5848_v60  ;;  %v5780_v60 = vld [vmem:[%s14211_s3 + $0x5b0] sm:$0xff] }
 0x9c7   : > { %15071 = vst [vmem:[#allocation213_spill] sm:$0xff] %v12985_v19  ;;  %6039 = vmatmul.f32.gmra.mxu2 %v12985_v19  ;;  %6104 = vmatmul.f32.gmra.mxu3 %v12987_v3 }
 0x9c8   : > { %15072 = vst [vmem:[#allocation214_spill] sm:$0xff] %v12987_v3  ;;  %5912 = vmatmul.f32.gmra.mxu0 %v12995_v12  ;;  %5977 = vmatmul.f32.gmra.mxu1 %v12997_v9 }
 0x9c9   : > { %15073 = vst [vmem:[#allocation215_spill] sm:$0xff] %v12995_v12  ;;  %v5656_v12 = vld [vmem:[%s14211_s3 + $0x1d0] sm:$0xff]  ;;  %6506 = vmatpush.msrb.mxu2 %v5780_v60 }
 0x9ca   : > { %15074 = vst [vmem:[#allocation216_spill] sm:$0xff] %v12997_v9  ;;  %v5720_v9 = vld [vmem:[%s14211_s3 + $0x3d0] sm:$0xff]  ;;  %6375 = vmatpush.msrb.mxu0 %v5656_v12 }
 0x9cb   : > { %6440 = vmatpush.msrb.mxu1 %v5720_v9  ;;  %v5776_v60 = vld [vmem:[%s14211_s3 + $0x590] sm:$0xff] }
 0x9cc   : > { %v5463_v11 = vpop.f32.mrf.mxu2  ;;  %v5528_v56 = vpop.f32.mrf.mxu3  ;;  %6507 = vmatpush.msrb.mxu2 %v5776_v60  ;;  %v5772_v60 = vld [vmem:[%s14211_s3 + $0x570] sm:$0xff] }
 0x9cd   : > { %v13009_v54 = vmax.f32 %v5463_v11, 0.0  ;;  %v13011_v34 = vmax.f32 %v5528_v56, 0.0  ;;  %v5336_v51 = vpop.f32.mrf.mxu0  ;;  %v5401_v3 = vpop.f32.mrf.mxu1  ;;  %v5844_v11 = vld [vmem:[%s14211_s3 + $0x7b0] sm:$0xff] }
 0x9ce   : > { %v13019_v19 = vmax.f32 %v5336_v51, 0.0  ;;  %v13021_v36 = vmax.f32 %v5401_v3, 0.0  ;;  %6571 = vmatpush.msrb.mxu3 %v5844_v11  ;;  %v5840_v11 = vld [vmem:[%s14211_s3 + $0x790] sm:$0xff]  ;;  %6508 = vmatpush.msrb.mxu2 %v5772_v60 }
 0x9cf   : > { %15075 = vst [vmem:[#allocation217_spill] sm:$0xff] %v13009_v54  ;;  %6042 = vmatmul.f32.gmra.mxu2 %v13009_v54  ;;  %6107 = vmatmul.f32.gmra.mxu3 %v13011_v34  ;;  %v5832_v60 = vld [vmem:[%s14211_s3 + $0x750] sm:$0xff] }
 0x9d0   : > { %15076 = vst [vmem:[#allocation218_spill] sm:$0xff] %v13011_v34  ;;  %5915 = vmatmul.f32.gmra.mxu0 %v13019_v19  ;;  %5980 = vmatmul.f32.gmra.mxu1 %v13021_v36 }
 0x9d1   : > { %15077 = vst [vmem:[#allocation219_spill] sm:$0xff] %v13019_v19  ;;  %v5652_v19 = vld [vmem:[%s14211_s3 + $0x1b0] sm:$0xff]  ;;  %6572 = vmatpush.msrb.mxu3 %v5840_v11 }
 0x9d2   : > { %15078 = vst [vmem:[#allocation220_spill] sm:$0xff] %v13021_v36  ;;  %v5716_v36 = vld [vmem:[%s14211_s3 + $0x3b0] sm:$0xff]  ;;  %6376 = vmatpush.msrb.mxu0 %v5652_v19 }
 0x9d3   : > { %6441 = vmatpush.msrb.mxu1 %v5716_v36  ;;  %v5836_v11 = vld [vmem:[%s14211_s3 + $0x770] sm:$0xff] }
 0x9d4   : > { %v5466_v12 = vpop.f32.mrf.mxu2  ;;  %v5531_v3 = vpop.f32.mrf.mxu3  ;;  %6573 = vmatpush.msrb.mxu3 %v5836_v11 }
 0x9d5   : > { %v13033_v9 = vmax.f32 %v5466_v12, 0.0  ;;  %v13035_v56 = vmax.f32 %v5531_v3, 0.0  ;;  %v5871_v51 = vpop.f32.mrf.mxu0  ;;  %v5936_v34 = vpop.f32.mrf.mxu1  ;;  %v5648_v12 = vld [vmem:[%s14211_s3 + $0x190] sm:$0xff] }
 0x9d6   : > { %v5712_v3 = vld [vmem:[%s14211_s3 + $0x390] sm:$0xff]  ;;  %6377 = vmatpush.msrb.mxu0 %v5648_v12  ;;  %6574 = vmatpush.msrb.mxu3 %v5832_v60 }
 0x9d7   : > { %15079 = vst [vmem:[#allocation221_spill] sm:$0xff] %v13033_v9  ;;  %6045 = vmatmul.f32.gmra.mxu2 %v13033_v9  ;;  %6110 = vmatmul.f32.gmra.mxu3 %v13035_v56 }
 0x9d8   : > { %15080 = vst [vmem:[#allocation222_spill] sm:$0xff] %v13035_v56  ;;  %6130 = vmatmul.f32.vlgmr.msra.gmra.mxu0 %v12661_v58  ;;  %6195 = vmatmul.f32.vlgmr.msra.gmra.mxu1 %v12663_v59  ;;  %v5937_v58 = vadd.f32 %v5936_v34, %v5871_v51  ;;  %v5644_v59 = vld [vmem:[%s14211_s3 + $0x170] sm:$0xff] }
 0x9d9   : > { %6442 = vmatpush.msrb.mxu1 %v5712_v3  ;;  %6378 = vmatpush.msrb.mxu0 %v5644_v59 }
 0x9dd   : > { %v5874_v19 = vpop.f32.mrf.mxu0  ;;  %v5939_v36 = vpop.f32.mrf.mxu1 }
 0x9df   : > { %6260 = vmatmul.f32.vlgmr.msra.gmra.mxu2 %v12679_v46  ;;  %6325 = vmatmul.f32.vlgmr.msra.gmra.mxu3 %v12681_v0 }
 0x9e0   : > { %6133 = vmatmul.f32.gmra.mxu0 %v12683_v24  ;;  %6198 = vmatmul.f32.gmra.mxu1 %v12685_v20  ;;  %v5708_v20 = vld [vmem:[%s14211_s3 + $0x370] sm:$0xff]  ;;  %v5940_v24 = vadd.f32 %v5939_v36, %v5874_v19 }
 0x9e1   : > { %6443 = vmatpush.msrb.mxu1 %v5708_v20 }
 0x9e2   : > { %v6001_v12 = vpop.f32.mrf.mxu2  ;;  %v6066_v34 = vpop.f32.mrf.mxu3 }
 0x9e3   : > { %v6002_v51 = vadd.f32 %v6001_v12, %v5937_v58  ;;  %v5768_v58 = vld [vmem:[%s14211_s3 + $0x550] sm:$0xff] }
 0x9e4   : > { %6509 = vmatpush.msrb.mxu2 %v5768_v58  ;;  %v5828_v58 = vld [vmem:[%s14211_s3 + $0x730] sm:$0xff] }
 0x9e5   : > { %v13069_v3 = vadd.f32 %v6066_v34, %v6002_v51  ;;  %v5877_v0 = vpop.f32.mrf.mxu0  ;;  %v5942_v46 = vpop.f32.mrf.mxu1  ;;  %v5640_v34 = vld [vmem:[%s14211_s3 + $0x150] sm:$0xff]  ;;  %6575 = vmatpush.msrb.mxu3 %v5828_v58 }
 0x9e6   : > { %v5704_v51 = vld [vmem:[%s14211_s3 + $0x350] sm:$0xff]  ;;  %6379 = vmatpush.msrb.mxu0 %v5640_v34 }
 0x9e7   : > { %15081 = vst [vmem:[#allocation223_spill] sm:$0xff] %v13069_v3  ;;  %6263 = vmatmul.f32.gmra.mxu2 %v12703_v44  ;;  %6328 = vmatmul.f32.gmra.mxu3 %v12705_v23  ;;  %v5943_v3 = vadd.f32 %v5942_v46, %v5877_v0  ;;  %v5636_v34 = vld [vmem:[%s14211_s3 + $0x130] sm:$0xff] }
 0x9e8   : > { %6136 = vmatmul.f32.gmra.mxu0 %v12707_v21  ;;  %6201 = vmatmul.f32.gmra.mxu1 %v12709_v27 }
 0x9e9   : > { %6444 = vmatpush.msrb.mxu1 %v5704_v51  ;;  %v5700_v51 = vld [vmem:[%s14211_s3 + $0x330] sm:$0xff]  ;;  %6380 = vmatpush.msrb.mxu0 %v5636_v34 }
 0x9ea   : > { %v6004_v59 = vpop.f32.mrf.mxu2  ;;  %v6069_v20 = vpop.f32.mrf.mxu3  ;;  %v5632_v34 = vld [vmem:[%s14211_s3 + $0x110] sm:$0xff] }
 0x9eb   : > { %v6005_v19 = vadd.f32 %v6004_v59, %v5940_v24  ;;  %v5764_v24 = vld [vmem:[%s14211_s3 + $0x530] sm:$0xff]  ;;  %6445 = vmatpush.msrb.mxu1 %v5700_v51  ;;  %6381 = vmatpush.msrb.mxu0 %v5632_v34 }
 0x9ec   : > { %6510 = vmatpush.msrb.mxu2 %v5764_v24  ;;  %v5824_v24 = vld [vmem:[%s14211_s3 + $0x710] sm:$0xff] }
 0x9ed   : > { %v13087_v36 = vadd.f32 %v6069_v20, %v6005_v19  ;;  %v5880_v11 = vpop.f32.mrf.mxu0  ;;  %v5945_v12 = vpop.f32.mrf.mxu1  ;;  %6576 = vmatpush.msrb.mxu3 %v5824_v24  ;;  %v5696_v51 = vld [vmem:[%s14211_s3 + $0x310] sm:$0xff] }
 0x9ee   : > { %6446 = vmatpush.msrb.mxu1 %v5696_v51  ;;  %v5628_v34 = vld [vmem:[%s14211_s3 + $0xf0] sm:$0xff] }
 0x9ef   : > { %15082 = vst [vmem:[#allocation224_spill] sm:$0xff] %v13087_v36  ;;  %6266 = vmatmul.f32.gmra.mxu2 %v12727_v26  ;;  %6331 = vmatmul.f32.gmra.mxu3 %v12729_v17  ;;  %v5946_v36 = vadd.f32 %v5945_v12, %v5880_v11  ;;  %v5692_v51 = vld [vmem:[%s14211_s3 + $0x2f0] sm:$0xff] }
 0x9f0   : > { %6139 = vmatmul.f32.gmra.mxu0 %v12731_v40  ;;  %6204 = vmatmul.f32.gmra.mxu1 %v12733_v10 }
 0x9f1   : > { %6382 = vmatpush.msrb.mxu0 %v5628_v34  ;;  %6447 = vmatpush.msrb.mxu1 %v5692_v51  ;;  %v5624_v34 = vld [vmem:[%s14211_s3 + $0xd0] sm:$0xff] }
 0x9f2   : > { %v6007_v60 = vpop.f32.mrf.mxu2  ;;  %v6072_v46 = vpop.f32.mrf.mxu3  ;;  %v5688_v51 = vld [vmem:[%s14211_s3 + $0x2d0] sm:$0xff] }
 0x9f3   : > { %v6008_v0 = vadd.f32 %v6007_v60, %v5943_v3  ;;  %v5760_v3 = vld [vmem:[%s14211_s3 + $0x510] sm:$0xff]  ;;  %6383 = vmatpush.msrb.mxu0 %v5624_v34  ;;  %6448 = vmatpush.msrb.mxu1 %v5688_v51 }
 0x9f4   : > { %6511 = vmatpush.msrb.mxu2 %v5760_v3  ;;  %v5820_v3 = vld [vmem:[%s14211_s3 + $0x6f0] sm:$0xff] }
 0x9f5   : > { %v13105_v59 = vadd.f32 %v6072_v46, %v6008_v0  ;;  %v5883_v20 = vpop.f32.mrf.mxu0  ;;  %v5948_v19 = vpop.f32.mrf.mxu1  ;;  %6577 = vmatpush.msrb.mxu3 %v5820_v3  ;;  %v5620_v34 = vld [vmem:[%s14211_s3 + $0xb0] sm:$0xff] }
 0x9f6   : > { %v5684_v51 = vld [vmem:[%s14211_s3 + $0x2b0] sm:$0xff]  ;;  %6384 = vmatpush.msrb.mxu0 %v5620_v34 }
 0x9f7   : > { %15083 = vst [vmem:[#allocation225_spill] sm:$0xff] %v13105_v59  ;;  %6269 = vmatmul.f32.gmra.mxu2 %v12751_v5  ;;  %6334 = vmatmul.f32.gmra.mxu3 %v12753_v6  ;;  %v5949_v59 = vadd.f32 %v5948_v19, %v5883_v20  ;;  %v5616_v34 = vld [vmem:[%s14211_s3 + $0x90] sm:$0xff] }
 0x9f8   : > { %6142 = vmatmul.f32.gmra.mxu0 %v12755_v50  ;;  %6207 = vmatmul.f32.gmra.mxu1 %v12757_v28 }
 0x9f9   : > { %6449 = vmatpush.msrb.mxu1 %v5684_v51  ;;  %v5680_v51 = vld [vmem:[%s14211_s3 + $0x290] sm:$0xff]  ;;  %6385 = vmatpush.msrb.mxu0 %v5616_v34 }
 0x9fa   : > { %v6010_v58 = vpop.f32.mrf.mxu2  ;;  %v6075_v11 = vpop.f32.mrf.mxu3  ;;  %v5612_v34 = vld [vmem:[%s14211_s3 + $0x70] sm:$0xff] }
 0x9fb   : > { %v6011_v12 = vadd.f32 %v6010_v58, %v5946_v36  ;;  %v5756_v36 = vld [vmem:[%s14211_s3 + $0x4f0] sm:$0xff]  ;;  %6450 = vmatpush.msrb.mxu1 %v5680_v51  ;;  %6386 = vmatpush.msrb.mxu0 %v5612_v34 }
 0x9fc   : > { %6512 = vmatpush.msrb.mxu2 %v5756_v36  ;;  %v5816_v36 = vld [vmem:[%s14211_s3 + $0x6d0] sm:$0xff] }
 0x9fd   : > { %v13123_v60 = vadd.f32 %v6075_v11, %v6011_v12  ;;  %v5886_v46 = vpop.f32.mrf.mxu0  ;;  %v5951_v0 = vpop.f32.mrf.mxu1  ;;  %6578 = vmatpush.msrb.mxu3 %v5816_v36  ;;  %v5676_v51 = vld [vmem:[%s14211_s3 + $0x270] sm:$0xff] }
 0x9fe   : > { %6451 = vmatpush.msrb.mxu1 %v5676_v51  ;;  %v5608_v34 = vld [vmem:[%s14211_s3 + $0x50] sm:$0xff] }
 0x9ff   : > { %15084 = vst [vmem:[#allocation226_spill] sm:$0xff] %v13123_v60  ;;  %6272 = vmatmul.f32.gmra.mxu2 %v12775_v45  ;;  %6337 = vmatmul.f32.gmra.mxu3 %v12777_v38  ;;  %v5952_v60 = vadd.f32 %v5951_v0, %v5886_v46  ;;  %v5672_v51 = vld [vmem:[%s14211_s3 + $0x250] sm:$0xff] }
 0xa00   : > { %6145 = vmatmul.f32.gmra.mxu0 %v12779_v39  ;;  %6210 = vmatmul.f32.gmra.mxu1 %v12781_v48 }
 0xa01   : > { %6387 = vmatpush.msrb.mxu0 %v5608_v34  ;;  %6452 = vmatpush.msrb.mxu1 %v5672_v51  ;;  %v5604_v34 = vld [vmem:[%s14211_s3 + $0x30] sm:$0xff] }
 0xa02   : > { %v6013_v24 = vpop.f32.mrf.mxu2  ;;  %v6078_v20 = vpop.f32.mrf.mxu3  ;;  %v5668_v51 = vld [vmem:[%s14211_s3 + $0x230] sm:$0xff] }
 0xa03   : > { %v6014_v19 = vadd.f32 %v6013_v24, %v5949_v59  ;;  %v5752_v59 = vld [vmem:[%s14211_s3 + $0x4d0] sm:$0xff]  ;;  %6388 = vmatpush.msrb.mxu0 %v5604_v34  ;;  %6453 = vmatpush.msrb.mxu1 %v5668_v51 }
 0xa04   : > { %6513 = vmatpush.msrb.mxu2 %v5752_v59  ;;  %v5812_v59 = vld [vmem:[%s14211_s3 + $0x6b0] sm:$0xff] }
 0xa05   : > { %v13141_v58 = vadd.f32 %v6078_v20, %v6014_v19  ;;  %v5889_v11 = vpop.f32.mrf.mxu0  ;;  %v5954_v12 = vpop.f32.mrf.mxu1  ;;  %6579 = vmatpush.msrb.mxu3 %v5812_v59 }
 0xa07   : > { %15085 = vst [vmem:[#allocation227_spill] sm:$0xff] %v13141_v58  ;;  %6275 = vmatmul.f32.gmra.mxu2 %v12799_v63  ;;  %6340 = vmatmul.f32.gmra.mxu3 %v12801_v42  ;;  %v5955_v58 = vadd.f32 %v5954_v12, %v5889_v11 }
 0xa08   : > { %6148 = vmatmul.f32.gmra.mxu0 %v12803_v13  ;;  %6213 = vmatmul.f32.gmra.mxu1 %v12805_v32 }
 0xa0a   : > { %v6016_v3 = vpop.f32.mrf.mxu2  ;;  %v6081_v46 = vpop.f32.mrf.mxu3 }
 0xa0b   : > { %v6017_v0 = vadd.f32 %v6016_v3, %v5952_v60  ;;  %v5748_v60 = vld [vmem:[%s14211_s3 + $0x4b0] sm:$0xff] }
 0xa0c   : > { %6514 = vmatpush.msrb.mxu2 %v5748_v60  ;;  %v5808_v60 = vld [vmem:[%s14211_s3 + $0x690] sm:$0xff] }
 0xa0d   : > { %v13159_v24 = vadd.f32 %v6081_v46, %v6017_v0  ;;  %v5892_v20 = vpop.f32.mrf.mxu0  ;;  %v5957_v19 = vpop.f32.mrf.mxu1  ;;  %6580 = vmatpush.msrb.mxu3 %v5808_v60 }
 0xa0f   : > { %15086 = vst [vmem:[#allocation228_spill] sm:$0xff] %v13159_v24  ;;  %6278 = vmatmul.f32.gmra.mxu2 %v12823_v47  ;;  %6343 = vmatmul.f32.gmra.mxu3 %v12825_v62  ;;  %v5958_v24 = vadd.f32 %v5957_v19, %v5892_v20 }
 0xa10   : > { %6151 = vmatmul.f32.gmra.mxu0 %v12827_v49  ;;  %6216 = vmatmul.f32.gmra.mxu1 %v12829_v25 }
 0xa12   : > { %v6019_v36 = vpop.f32.mrf.mxu2  ;;  %v6084_v11 = vpop.f32.mrf.mxu3 }
 0xa13   : > { %v6020_v12 = vadd.f32 %v6019_v36, %v5955_v58  ;;  %v5744_v58 = vld [vmem:[%s14211_s3 + $0x490] sm:$0xff] }
 0xa14   : > { %6515 = vmatpush.msrb.mxu2 %v5744_v58  ;;  %v5804_v58 = vld [vmem:[%s14211_s3 + $0x670] sm:$0xff] }
 0xa15   : > { %v13177_v3 = vadd.f32 %v6084_v11, %v6020_v12  ;;  %v5895_v46 = vpop.f32.mrf.mxu0  ;;  %v5960_v0 = vpop.f32.mrf.mxu1  ;;  %6581 = vmatpush.msrb.mxu3 %v5804_v58 }
 0xa17   : > { %15087 = vst [vmem:[#allocation229_spill] sm:$0xff] %v13177_v3  ;;  %6281 = vmatmul.f32.gmra.mxu2 %v12847_v57  ;;  %6346 = vmatmul.f32.gmra.mxu3 %v12849_v1  ;;  %v5961_v3 = vadd.f32 %v5960_v0, %v5895_v46 }
 0xa18   : > { %6154 = vmatmul.f32.gmra.mxu0 %v12851_v22  ;;  %6219 = vmatmul.f32.gmra.mxu1 %v12853_v30 }
 0xa1a   : > { %v6022_v59 = vpop.f32.mrf.mxu2  ;;  %v6087_v20 = vpop.f32.mrf.mxu3 }
 0xa1b   : > { %v6023_v19 = vadd.f32 %v6022_v59, %v5958_v24  ;;  %v5740_v24 = vld [vmem:[%s14211_s3 + $0x470] sm:$0xff] }
 0xa1c   : > { %6516 = vmatpush.msrb.mxu2 %v5740_v24  ;;  %v5800_v24 = vld [vmem:[%s14211_s3 + $0x650] sm:$0xff] }
 0xa1d   : > { %v13195_v36 = vadd.f32 %v6087_v20, %v6023_v19  ;;  %v5898_v11 = vpop.f32.mrf.mxu0  ;;  %v5963_v12 = vpop.f32.mrf.mxu1  ;;  %6582 = vmatpush.msrb.mxu3 %v5800_v24 }
 0xa1f   : > { %15088 = vst [vmem:[#allocation230_spill] sm:$0xff] %v13195_v36  ;;  %6284 = vmatmul.f32.gmra.mxu2 %v12871_v37  ;;  %6349 = vmatmul.f32.gmra.mxu3 %v12873_v61  ;;  %v5964_v36 = vadd.f32 %v5963_v12, %v5898_v11 }
 0xa20   : > { %6157 = vmatmul.f32.gmra.mxu0 %v12875_v7  ;;  %6222 = vmatmul.f32.gmra.mxu1 %v12877_v2 }
 0xa22   : > { %v6025_v60 = vpop.f32.mrf.mxu2  ;;  %v6090_v46 = vpop.f32.mrf.mxu3 }
 0xa23   : > { %v6026_v0 = vadd.f32 %v6025_v60, %v5961_v3  ;;  %v5736_v3 = vld [vmem:[%s14211_s3 + $0x450] sm:$0xff] }
 0xa24   : > { %6517 = vmatpush.msrb.mxu2 %v5736_v3  ;;  %v5796_v3 = vld [vmem:[%s14211_s3 + $0x630] sm:$0xff] }
 0xa25   : > { %v13213_v59 = vadd.f32 %v6090_v46, %v6026_v0  ;;  %v5901_v20 = vpop.f32.mrf.mxu0  ;;  %v5966_v19 = vpop.f32.mrf.mxu1  ;;  %6583 = vmatpush.msrb.mxu3 %v5796_v3  ;;  %v5664_v3 = vld [vmem:[%s14211_s3 + $0x210] sm:$0xff] }
 0xa26   : > { %6454 = vmatpush.msrb.mxu1 %v5664_v3 }
 0xa27   : > { %15089 = vst [vmem:[#allocation231_spill] sm:$0xff] %v13213_v59  ;;  %6287 = vmatmul.f32.gmra.mxu2 %v12895_v18  ;;  %6352 = vmatmul.f32.gmra.mxu3 %v12897_v15  ;;  %v5967_v59 = vadd.f32 %v5966_v19, %v5901_v20 }
 0xa28   : > { %6160 = vmatmul.f32.gmra.mxu0 %v12899_v29  ;;  %6225 = vmatmul.f32.gmra.mxu1 %v12901_v53 }
 0xa2a   : > { %v6028_v58 = vpop.f32.mrf.mxu2  ;;  %v6093_v11 = vpop.f32.mrf.mxu3 }
 0xa2b   : > { %v6029_v12 = vadd.f32 %v6028_v58, %v5964_v36  ;;  %v5732_v36 = vld [vmem:[%s14211_s3 + $0x430] sm:$0xff] }
 0xa2c   : > { %6518 = vmatpush.msrb.mxu2 %v5732_v36  ;;  %v5600_v36 = vld [vmem:[%s14211_s3 + $0x10] sm:$0xff] }
 0xa2d   : > { %v13231_v60 = vadd.f32 %v6093_v11, %v6029_v12  ;;  %v5904_v46 = vpop.f32.mrf.mxu0  ;;  %v5969_v0 = vpop.f32.mrf.mxu1  ;;  %6389 = vmatpush.msrb.mxu0 %v5600_v36 }
 0xa2f   : > { %15090 = vst [vmem:[#allocation232_spill] sm:$0xff] %v13231_v60  ;;  %6290 = vmatmul.f32.gmra.mxu2 %v12919_v41  ;;  %6355 = vmatmul.f32.gmra.mxu3 %v12921_v35  ;;  %v5970_v60 = vadd.f32 %v5969_v0, %v5904_v46  ;;  %v5792_v46 = vld [vmem:[%s14211_s3 + $0x610] sm:$0xff] }
 0xa30   : > { %6163 = vmatmul.f32.gmra.mxu0 %v12923_v8  ;;  %6228 = vmatmul.f32.gmra.mxu1 %v12925_v16 }
 0xa31   : > { %6584 = vmatpush.msrb.mxu3 %v5792_v46 }
 0xa32   : > { %v6031_v24 = vpop.f32.mrf.mxu2  ;;  %v6096_v20 = vpop.f32.mrf.mxu3 }
 0xa33   : > { %v6032_v19 = vadd.f32 %v6031_v24, %v5967_v59  ;;  %v5728_v59 = vld [vmem:[%s14211_s3 + $0x410] sm:$0xff] }
 0xa34   : > { %6519 = vmatpush.msrb.mxu2 %v5728_v59  ;;  %v15093_v59 = vld [vmem:[#allocation212_spill] sm:$0xff] }
 0xa35   : > { %v13249_v58 = vadd.f32 %v6096_v20, %v6032_v19  ;;  %v5907_v11 = vpop.f32.mrf.mxu0  ;;  %v5972_v12 = vpop.f32.mrf.mxu1 }
 0xa37   : > { %15091 = vst [vmem:[#allocation233_spill] sm:$0xff] %v13249_v58  ;;  %6293 = vmatmul.f32.gmra.mxu2 %v12943_v4  ;;  %6358 = vmatmul.f32.gmra.mxu3 %v12945_v55  ;;  %v5973_v58 = vadd.f32 %v5972_v12, %v5907_v11 }
 0xa38   : > { %6166 = vmatmul.f32.gmra.mxu0 %v12947_v14  ;;  %6231 = vmatmul.f32.gmra.mxu1 %v12949_v31  ;;  %v5789_v31 = vld [vmem:[%s14211_s3 + $0x5f8] sm:$0xff] }
 0xa39   : > { %6764 = vmatpush.msra.mxu2 %v5789_v31  ;;  %v5725_v31 = vld [vmem:[%s14211_s3 + $0x3f8] sm:$0xff] }
 0xa3a   : > { %v6034_v0 = vpop.f32.mrf.mxu2  ;;  %v6099_v24 = vpop.f32.mrf.mxu3  ;;  %6699 = vmatpush.msra.mxu1 %v5725_v31  ;;  %v15101_v31 = vld [vmem:[#allocation219_spill] sm:$0xff] }
 0xa3b   : > { %v6035_v20 = vadd.f32 %v6034_v0, %v5970_v60  ;;  %v5853_v60 = vld [vmem:[%s14211_s3 + $0x7f8] sm:$0xff] }
 0xa3c   : > { %6829 = vmatpush.msra.mxu3 %v5853_v60  ;;  %v15097_v60 = vld [vmem:[#allocation215_spill] sm:$0xff] }
 0xa3d   : > { %v13273_v19 = vadd.f32 %v6099_v24, %v6035_v20  ;;  %v5910_v34 = vpop.f32.mrf.mxu0  ;;  %v5975_v51 = vpop.f32.mrf.mxu1  ;;  %v15095_v20 = vld [vmem:[#allocation213_spill] sm:$0xff] }
 0xa3e   : > { %v5976_v24 = vadd.f32 %v5975_v51, %v5910_v34  ;;  %v5849_v34 = vld [vmem:[%s14211_s3 + $0x7d8] sm:$0xff] }
 0xa3f   : > { %15092 = vst [vmem:[#allocation234_spill] sm:$0xff] %v13273_v19  ;;  %6296 = vmatmul.f32.gmra.mxu2 %v12967_v52  ;;  %6361 = vmatmul.f32.gmra.mxu3 %v12969_v33  ;;  %v15096_v19 = vld [vmem:[#allocation214_spill] sm:$0xff] }
 0xa40   : > { %6169 = vmatmul.f32.gmra.mxu0 %v12971_v43  ;;  %6234 = vmatmul.f32.gmra.mxu1 %v15093_v59  ;;  %v5661_v59 = vld [vmem:[%s14211_s3 + $0x1f8] sm:$0xff] }
 0xa41   : > { %6634 = vmatpush.msra.mxu0 %v5661_v59  ;;  %6830 = vmatpush.msra.mxu3 %v5849_v34  ;;  %v5721_v59 = vld [vmem:[%s14211_s3 + $0x3d8] sm:$0xff] }
 0xa42   : > { %v6037_v36 = vpop.f32.mrf.mxu2  ;;  %v6102_v11 = vpop.f32.mrf.mxu3  ;;  %6700 = vmatpush.msra.mxu1 %v5721_v59  ;;  %v15104_v59 = vld [vmem:[#allocation201_spill] sm:$0xff] }
 0xa43   : > { %v6038_v12 = vadd.f32 %v6037_v36, %v5973_v58  ;;  %v5785_v58 = vld [vmem:[%s14211_s3 + $0x5d8] sm:$0xff]  ;;  %v15098_v36 = vld [vmem:[#allocation216_spill] sm:$0xff] }
 0xa44   : > { %6765 = vmatpush.msra.mxu2 %v5785_v58  ;;  %v15102_v58 = vld [vmem:[#allocation220_spill] sm:$0xff] }
 0xa45   : > { %v13285_v3 = vadd.f32 %v6102_v11, %v6038_v12  ;;  %v5913_v46 = vpop.f32.mrf.mxu0  ;;  %v5978_v0 = vpop.f32.mrf.mxu1 }
 0xa46   : > { %v5979_v43 = vadd.f32 %v5978_v0, %v5913_v46  ;;  %v5845_v46 = vld [vmem:[%s14211_s3 + $0x7b8] sm:$0xff] }
 0xa47   : > { %15094 = vst [vmem:[#allocation235_spill] sm:$0xff] %v13285_v3  ;;  %6299 = vmatmul.f32.gmra.mxu2 %v15095_v20  ;;  %6364 = vmatmul.f32.gmra.mxu3 %v15096_v19 }
 0xa48   : > { %6172 = vmatmul.f32.gmra.mxu0 %v15097_v60  ;;  %6237 = vmatmul.f32.gmra.mxu1 %v15098_v36  ;;  %v15100_v60 = vld [vmem:[#allocation218_spill] sm:$0xff]  ;;  %v5657_v36 = vld [vmem:[%s14211_s3 + $0x1d8] sm:$0xff] }
 0xa49   : > { %6635 = vmatpush.msra.mxu0 %v5657_v36  ;;  %6831 = vmatpush.msra.mxu3 %v5845_v46  ;;  %v5717_v36 = vld [vmem:[%s14211_s3 + $0x3b8] sm:$0xff] }
 0xa4a   : > { %v6040_v51 = vpop.f32.mrf.mxu2  ;;  %v6105_v11 = vpop.f32.mrf.mxu3  ;;  %6701 = vmatpush.msra.mxu1 %v5717_v36  ;;  %v15109_v36 = vld [vmem:[#allocation205_spill] sm:$0xff] }
 0xa4b   : > { %v6041_v12 = vadd.f32 %v6040_v51, %v5976_v24  ;;  %v5781_v24 = vld [vmem:[%s14211_s3 + $0x5b8] sm:$0xff] }
 0xa4c   : > { %6766 = vmatpush.msra.mxu2 %v5781_v24  ;;  %v15105_v24 = vld [vmem:[#allocation202_spill] sm:$0xff] }
 0xa4d   : > { %v13303_v3 = vadd.f32 %v6105_v11, %v6041_v12  ;;  %v5916_v19 = vpop.f32.mrf.mxu0  ;;  %v5981_v20 = vpop.f32.mrf.mxu1 }
 0xa4f   : > { %15099 = vst [vmem:[#allocation236_spill] sm:$0xff] %v13303_v3  ;;  %6302 = vmatmul.f32.gmra.mxu2 %v13009_v54  ;;  %6367 = vmatmul.f32.gmra.mxu3 %v15100_v60  ;;  %v5982_v60 = vadd.f32 %v5981_v20, %v5916_v19  ;;  %v5841_v19 = vld [vmem:[%s14211_s3 + $0x798] sm:$0xff] }
 0xa50   : > { %6175 = vmatmul.f32.gmra.mxu0 %v15101_v31  ;;  %6240 = vmatmul.f32.gmra.mxu1 %v15102_v58  ;;  %v5653_v58 = vld [vmem:[%s14211_s3 + $0x1b8] sm:$0xff] }
 0xa51   : > { %6636 = vmatpush.msra.mxu0 %v5653_v58  ;;  %6832 = vmatpush.msra.mxu3 %v5841_v19  ;;  %v5713_v58 = vld [vmem:[%s14211_s3 + $0x398] sm:$0xff] }
 0xa52   : > { %v6043_v0 = vpop.f32.mrf.mxu2  ;;  %v6108_v34 = vpop.f32.mrf.mxu3  ;;  %v5837_v19 = vld [vmem:[%s14211_s3 + $0x778] sm:$0xff]  ;;  %6702 = vmatpush.msra.mxu1 %v5713_v58 }
 0xa53   : > { %v6044_v51 = vadd.f32 %v6043_v0, %v5979_v43  ;;  %v5777_v43 = vld [vmem:[%s14211_s3 + $0x598] sm:$0xff]  ;;  %6833 = vmatpush.msra.mxu3 %v5837_v19 }
 0xa54   : > { %6767 = vmatpush.msra.mxu2 %v5777_v43  ;;  %v15110_v43 = vld [vmem:[#allocation206_spill] sm:$0xff] }
 0xa55   : > { %v13321_v11 = vadd.f32 %v6108_v34, %v6044_v51  ;;  %v6131_v12 = vpop.f32.mrf.mxu0  ;;  %v6196_v3 = vpop.f32.mrf.mxu1 }
 0xa57   : > { %15103 = vst [vmem:[#allocation237_spill] sm:$0xff] %v13321_v11  ;;  %6305 = vmatmul.f32.gmra.mxu2 %v13033_v9  ;;  %6370 = vmatmul.f32.gmra.mxu3 %v13035_v56  ;;  %v15107_v56 = vld [vmem:[#allocation203_spill] sm:$0xff] }
 0xa58   : > { %6390 = vmatmul.f32.vlgmr.msrb.gmra.mxu0 %v15104_v59  ;;  %6455 = vmatmul.f32.vlgmr.msrb.gmra.mxu1 %v15105_v24  ;;  %v15108_v59 = vld [vmem:[#allocation204_spill] sm:$0xff]  ;;  %v5649_v24 = vld [vmem:[%s14211_s3 + $0x198] sm:$0xff] }
 0xa59   : > { %6637 = vmatpush.msra.mxu0 %v5649_v24  ;;  %v5833_v24 = vld [vmem:[%s14211_s3 + $0x758] sm:$0xff] }
 0xa5a   : > { %v6046_v20 = vpop.f32.mrf.mxu2  ;;  %v6111_v46 = vpop.f32.mrf.mxu3  ;;  %6834 = vmatpush.msra.mxu3 %v5833_v24 }
 0xa5b   : > { %v6047_v0 = vadd.f32 %v6046_v20, %v5982_v60  ;;  %v5773_v60 = vld [vmem:[%s14211_s3 + $0x578] sm:$0xff]  ;;  %v6197_v20 = vadd.f32 %v6196_v3, %v6131_v12 }
 0xa5c   : > { %6768 = vmatpush.msra.mxu2 %v5773_v60  ;;  %v5709_v3 = vld [vmem:[%s14211_s3 + $0x378] sm:$0xff] }
 0xa5d   : > { %v13339_v34 = vadd.f32 %v6111_v46, %v6047_v0  ;;  %v6134_v51 = vpop.f32.mrf.mxu0  ;;  %v6199_v11 = vpop.f32.mrf.mxu1  ;;  %v5769_v12 = vld [vmem:[%s14211_s3 + $0x558] sm:$0xff]  ;;  %6703 = vmatpush.msra.mxu1 %v5709_v3 }
 0xa5e   : > { %6769 = vmatpush.msra.mxu2 %v5769_v12 }
 0xa5f   : > { %15106 = vst [vmem:[#allocation238_spill] sm:$0xff] %v13339_v34  ;;  %6520 = vmatmul.f32.vlgmr.msrb.gmra.mxu2 %v15107_v56  ;;  %6585 = vmatmul.f32.vlgmr.msrb.gmra.mxu3 %v15108_v59 }
 0xa60   : > { %6393 = vmatmul.f32.gmra.mxu0 %v15109_v36  ;;  %6458 = vmatmul.f32.gmra.mxu1 %v15110_v43  ;;  %v5645_v43 = vld [vmem:[%s14211_s3 + $0x178] sm:$0xff] }
 0xa61   : > { %6638 = vmatpush.msra.mxu0 %v5645_v43  ;;  %v5829_v43 = vld [vmem:[%s14211_s3 + $0x738] sm:$0xff] }
 0xa62   : > { %v6261_v46 = vpop.f32.mrf.mxu2  ;;  %v6326_v0 = vpop.f32.mrf.mxu3  ;;  %6835 = vmatpush.msra.mxu3 %v5829_v43 }
 0xa63   : > { %v6262_v34 = vadd.f32 %v6261_v46, %v6197_v20 }
 0xa65   : > { %v13357_v59 = vadd.f32 %v6326_v0, %v6262_v34  ;;  %v6137_v56 = vpop.f32.mrf.mxu0  ;;  %v6202_v9 = vpop.f32.mrf.mxu1  ;;  %v6200_v34 = vadd.f32 %v6199_v11, %v6134_v51  ;;  %v5705_v11 = vld [vmem:[%s14211_s3 + $0x358] sm:$0xff] }
 0xa66   : > { %v5765_v51 = vld [vmem:[%s14211_s3 + $0x538] sm:$0xff]  ;;  %v6203_v3 = vadd.f32 %v6202_v9, %v6137_v56  ;;  %6704 = vmatpush.msra.mxu1 %v5705_v11 }
 0xa67   : > { %15111 = vst [vmem:[#allocation205_spill] sm:$0xff] %v13357_v59  ;;  %6523 = vmatmul.f32.gmra.mxu2 %v12703_v44  ;;  %6588 = vmatmul.f32.gmra.mxu3 %v12705_v23  ;;  %v5641_v59 = vld [vmem:[%s14211_s3 + $0x158] sm:$0xff] }
 0xa68   : > { %6396 = vmatmul.f32.gmra.mxu0 %v12707_v21  ;;  %6461 = vmatmul.f32.gmra.mxu1 %v12709_v27  ;;  %v5701_v9 = vld [vmem:[%s14211_s3 + $0x338] sm:$0xff] }
 0xa69   : > { %6639 = vmatpush.msra.mxu0 %v5641_v59  ;;  %6770 = vmatpush.msra.mxu2 %v5765_v51  ;;  %v5761_v56 = vld [vmem:[%s14211_s3 + $0x518] sm:$0xff] }
 0xa6a   : > { %v6264_v58 = vpop.f32.mrf.mxu2  ;;  %v6329_v60 = vpop.f32.mrf.mxu3  ;;  %v5825_v59 = vld [vmem:[%s14211_s3 + $0x718] sm:$0xff]  ;;  %6705 = vmatpush.msra.mxu1 %v5701_v9 }
 0xa6b   : > { %v6265_v19 = vadd.f32 %v6264_v58, %v6200_v34  ;;  %6771 = vmatpush.msra.mxu2 %v5761_v56  ;;  %6836 = vmatpush.msra.mxu3 %v5825_v59 }
 0xa6d   : > { %v13375_v20 = vadd.f32 %v6329_v60, %v6265_v19  ;;  %v6140_v46 = vpop.f32.mrf.mxu0  ;;  %v6205_v0 = vpop.f32.mrf.mxu1 }
 0xa6e   : > { %v6206_v11 = vadd.f32 %v6205_v0, %v6140_v46  ;;  %v5757_v46 = vld [vmem:[%s14211_s3 + $0x4f8] sm:$0xff] }
 0xa6f   : > { %15112 = vst [vmem:[#allocation239_spill] sm:$0xff] %v13375_v20  ;;  %6526 = vmatmul.f32.gmra.mxu2 %v12727_v26  ;;  %6591 = vmatmul.f32.gmra.mxu3 %v12729_v17  ;;  %v5637_v20 = vld [vmem:[%s14211_s3 + $0x138] sm:$0xff] }
 0xa70   : > { %6399 = vmatmul.f32.gmra.mxu0 %v12731_v40  ;;  %6464 = vmatmul.f32.gmra.mxu1 %v12733_v10  ;;  %v5821_v0 = vld [vmem:[%s14211_s3 + $0x6f8] sm:$0xff] }
 0xa71   : > { %6640 = vmatpush.msra.mxu0 %v5637_v20  ;;  %v5697_v20 = vld [vmem:[%s14211_s3 + $0x318] sm:$0xff]  ;;  %6772 = vmatpush.msra.mxu2 %v5757_v46 }
 0xa72   : > { %v6267_v12 = vpop.f32.mrf.mxu2  ;;  %v6332_v24 = vpop.f32.mrf.mxu3  ;;  %6706 = vmatpush.msra.mxu1 %v5697_v20  ;;  %6837 = vmatpush.msra.mxu3 %v5821_v0 }
 0xa73   : > { %v6268_v34 = vadd.f32 %v6267_v12, %v6203_v3 }
 0xa75   : > { %v13393_v58 = vadd.f32 %v6332_v24, %v6268_v34  ;;  %v6143_v60 = vpop.f32.mrf.mxu0  ;;  %v6208_v19 = vpop.f32.mrf.mxu1 }
 0xa76   : > { %v6209_v9 = vadd.f32 %v6208_v19, %v6143_v60  ;;  %v5753_v60 = vld [vmem:[%s14211_s3 + $0x4d8] sm:$0xff] }
 0xa77   : > { %15113 = vst [vmem:[#allocation240_spill] sm:$0xff] %v13393_v58  ;;  %6529 = vmatmul.f32.gmra.mxu2 %v12751_v5  ;;  %6594 = vmatmul.f32.gmra.mxu3 %v12753_v6  ;;  %v5633_v58 = vld [vmem:[%s14211_s3 + $0x118] sm:$0xff] }
 0xa78   : > { %6402 = vmatmul.f32.gmra.mxu0 %v12755_v50  ;;  %6467 = vmatmul.f32.gmra.mxu1 %v12757_v28  ;;  %v5817_v19 = vld [vmem:[%s14211_s3 + $0x6d8] sm:$0xff] }
 0xa79   : > { %6641 = vmatpush.msra.mxu0 %v5633_v58  ;;  %v5693_v58 = vld [vmem:[%s14211_s3 + $0x2f8] sm:$0xff]  ;;  %6773 = vmatpush.msra.mxu2 %v5753_v60 }
 0xa7a   : > { %v6270_v51 = vpop.f32.mrf.mxu2  ;;  %v6335_v43 = vpop.f32.mrf.mxu3  ;;  %6707 = vmatpush.msra.mxu1 %v5693_v58  ;;  %6838 = vmatpush.msra.mxu3 %v5817_v19 }
 0xa7b   : > { %v6271_v3 = vadd.f32 %v6270_v51, %v6206_v11 }
 0xa7d   : > { %v13411_v12 = vadd.f32 %v6335_v43, %v6271_v3  ;;  %v6146_v24 = vpop.f32.mrf.mxu0  ;;  %v6211_v34 = vpop.f32.mrf.mxu1 }
 0xa7e   : > { %v6212_v20 = vadd.f32 %v6211_v34, %v6146_v24  ;;  %v5749_v24 = vld [vmem:[%s14211_s3 + $0x4b8] sm:$0xff] }
 0xa7f   : > { %15114 = vst [vmem:[#allocation241_spill] sm:$0xff] %v13411_v12  ;;  %6532 = vmatmul.f32.gmra.mxu2 %v12775_v45  ;;  %6597 = vmatmul.f32.gmra.mxu3 %v12777_v38  ;;  %v5629_v12 = vld [vmem:[%s14211_s3 + $0xf8] sm:$0xff] }
 0xa80   : > { %6405 = vmatmul.f32.gmra.mxu0 %v12779_v39  ;;  %6470 = vmatmul.f32.gmra.mxu1 %v12781_v48  ;;  %v5813_v34 = vld [vmem:[%s14211_s3 + $0x6b8] sm:$0xff] }
 0xa81   : > { %6642 = vmatpush.msra.mxu0 %v5629_v12  ;;  %v5689_v12 = vld [vmem:[%s14211_s3 + $0x2d8] sm:$0xff]  ;;  %6774 = vmatpush.msra.mxu2 %v5749_v24 }
 0xa82   : > { %v6273_v56 = vpop.f32.mrf.mxu2  ;;  %v6338_v59 = vpop.f32.mrf.mxu3  ;;  %6708 = vmatpush.msra.mxu1 %v5689_v12  ;;  %6839 = vmatpush.msra.mxu3 %v5813_v34 }
 0xa83   : > { %v6274_v11 = vadd.f32 %v6273_v56, %v6209_v9 }
 0xa85   : > { %v13429_v51 = vadd.f32 %v6338_v59, %v6274_v11  ;;  %v6149_v43 = vpop.f32.mrf.mxu0  ;;  %v6214_v3 = vpop.f32.mrf.mxu1 }
 0xa86   : > { %v6215_v58 = vadd.f32 %v6214_v3, %v6149_v43  ;;  %v5745_v43 = vld [vmem:[%s14211_s3 + $0x498] sm:$0xff] }
 0xa87   : > { %15115 = vst [vmem:[#allocation242_spill] sm:$0xff] %v13429_v51  ;;  %6535 = vmatmul.f32.gmra.mxu2 %v12799_v63  ;;  %6600 = vmatmul.f32.gmra.mxu3 %v12801_v42  ;;  %v5625_v51 = vld [vmem:[%s14211_s3 + $0xd8] sm:$0xff] }
 0xa88   : > { %6408 = vmatmul.f32.gmra.mxu0 %v12803_v13  ;;  %6473 = vmatmul.f32.gmra.mxu1 %v12805_v32  ;;  %v5809_v3 = vld [vmem:[%s14211_s3 + $0x698] sm:$0xff] }
 0xa89   : > { %6643 = vmatpush.msra.mxu0 %v5625_v51  ;;  %v5685_v51 = vld [vmem:[%s14211_s3 + $0x2b8] sm:$0xff]  ;;  %6775 = vmatpush.msra.mxu2 %v5745_v43 }
 0xa8a   : > { %v6276_v46 = vpop.f32.mrf.mxu2  ;;  %v6341_v0 = vpop.f32.mrf.mxu3  ;;  %6709 = vmatpush.msra.mxu1 %v5685_v51  ;;  %6840 = vmatpush.msra.mxu3 %v5809_v3 }
 0xa8b   : > { %v6277_v9 = vadd.f32 %v6276_v46, %v6212_v20 }
 0xa8d   : > { %v13447_v56 = vadd.f32 %v6341_v0, %v6277_v9  ;;  %v6152_v59 = vpop.f32.mrf.mxu0  ;;  %v6217_v11 = vpop.f32.mrf.mxu1 }
 0xa8e   : > { %v6218_v12 = vadd.f32 %v6217_v11, %v6152_v59  ;;  %v5741_v59 = vld [vmem:[%s14211_s3 + $0x478] sm:$0xff] }
 0xa8f   : > { %15116 = vst [vmem:[#allocation243_spill] sm:$0xff] %v13447_v56  ;;  %6538 = vmatmul.f32.gmra.mxu2 %v12823_v47  ;;  %6603 = vmatmul.f32.gmra.mxu3 %v12825_v62  ;;  %v5621_v56 = vld [vmem:[%s14211_s3 + $0xb8] sm:$0xff] }
 0xa90   : > { %6411 = vmatmul.f32.gmra.mxu0 %v12827_v49  ;;  %6476 = vmatmul.f32.gmra.mxu1 %v12829_v25  ;;  %v5805_v11 = vld [vmem:[%s14211_s3 + $0x678] sm:$0xff] }
 0xa91   : > { %6644 = vmatpush.msra.mxu0 %v5621_v56  ;;  %v5681_v56 = vld [vmem:[%s14211_s3 + $0x298] sm:$0xff]  ;;  %6776 = vmatpush.msra.mxu2 %v5741_v59 }
 0xa92   : > { %v6279_v60 = vpop.f32.mrf.mxu2  ;;  %v6344_v19 = vpop.f32.mrf.mxu3  ;;  %6710 = vmatpush.msra.mxu1 %v5681_v56  ;;  %6841 = vmatpush.msra.mxu3 %v5805_v11 }
 0xa93   : > { %v6280_v20 = vadd.f32 %v6279_v60, %v6215_v58 }
 0xa95   : > { %v13465_v46 = vadd.f32 %v6344_v19, %v6280_v20  ;;  %v6155_v0 = vpop.f32.mrf.mxu0  ;;  %v6220_v9 = vpop.f32.mrf.mxu1 }
 0xa96   : > { %v6221_v51 = vadd.f32 %v6220_v9, %v6155_v0  ;;  %v5737_v0 = vld [vmem:[%s14211_s3 + $0x458] sm:$0xff] }
 0xa97   : > { %15117 = vst [vmem:[#allocation244_spill] sm:$0xff] %v13465_v46  ;;  %6541 = vmatmul.f32.gmra.mxu2 %v12847_v57  ;;  %6606 = vmatmul.f32.gmra.mxu3 %v12849_v1  ;;  %v5617_v46 = vld [vmem:[%s14211_s3 + $0x98] sm:$0xff] }
 0xa98   : > { %6414 = vmatmul.f32.gmra.mxu0 %v12851_v22  ;;  %6479 = vmatmul.f32.gmra.mxu1 %v12853_v30  ;;  %v5801_v9 = vld [vmem:[%s14211_s3 + $0x658] sm:$0xff] }
 0xa99   : > { %6645 = vmatpush.msra.mxu0 %v5617_v46  ;;  %v5677_v46 = vld [vmem:[%s14211_s3 + $0x278] sm:$0xff]  ;;  %6777 = vmatpush.msra.mxu2 %v5737_v0 }
 0xa9a   : > { %v6282_v24 = vpop.f32.mrf.mxu2  ;;  %v6347_v34 = vpop.f32.mrf.mxu3  ;;  %6711 = vmatpush.msra.mxu1 %v5677_v46  ;;  %6842 = vmatpush.msra.mxu3 %v5801_v9 }
 0xa9b   : > { %v6283_v58 = vadd.f32 %v6282_v24, %v6218_v12 }
 0xa9d   : > { %v13483_v60 = vadd.f32 %v6347_v34, %v6283_v58  ;;  %v6158_v19 = vpop.f32.mrf.mxu0  ;;  %v6223_v20 = vpop.f32.mrf.mxu1 }
 0xa9e   : > { %v6224_v56 = vadd.f32 %v6223_v20, %v6158_v19  ;;  %v5733_v19 = vld [vmem:[%s14211_s3 + $0x438] sm:$0xff] }
 0xa9f   : > { %15118 = vst [vmem:[#allocation245_spill] sm:$0xff] %v13483_v60  ;;  %6544 = vmatmul.f32.gmra.mxu2 %v12871_v37  ;;  %6609 = vmatmul.f32.gmra.mxu3 %v12873_v61  ;;  %v5613_v60 = vld [vmem:[%s14211_s3 + $0x78] sm:$0xff] }
 0xaa0   : > { %6417 = vmatmul.f32.gmra.mxu0 %v12875_v7  ;;  %6482 = vmatmul.f32.gmra.mxu1 %v12877_v2  ;;  %v5797_v20 = vld [vmem:[%s14211_s3 + $0x638] sm:$0xff] }
 0xaa1   : > { %6646 = vmatpush.msra.mxu0 %v5613_v60  ;;  %v5673_v60 = vld [vmem:[%s14211_s3 + $0x258] sm:$0xff]  ;;  %6778 = vmatpush.msra.mxu2 %v5733_v19 }
 0xaa2   : > { %v6285_v43 = vpop.f32.mrf.mxu2  ;;  %v6350_v3 = vpop.f32.mrf.mxu3  ;;  %6712 = vmatpush.msra.mxu1 %v5673_v60  ;;  %6843 = vmatpush.msra.mxu3 %v5797_v20 }
 0xaa3   : > { %v6286_v12 = vadd.f32 %v6285_v43, %v6221_v51 }
 0xaa5   : > { %v13501_v24 = vadd.f32 %v6350_v3, %v6286_v12  ;;  %v6161_v34 = vpop.f32.mrf.mxu0  ;;  %v6226_v58 = vpop.f32.mrf.mxu1 }
 0xaa6   : > { %v6227_v46 = vadd.f32 %v6226_v58, %v6161_v34  ;;  %v5601_v34 = vld [vmem:[%s14211_s3 + $0x18] sm:$0xff] }
 0xaa7   : > { %15119 = vst [vmem:[#allocation246_spill] sm:$0xff] %v13501_v24  ;;  %6547 = vmatmul.f32.gmra.mxu2 %v12895_v18  ;;  %6612 = vmatmul.f32.gmra.mxu3 %v12897_v15  ;;  %v5609_v24 = vld [vmem:[%s14211_s3 + $0x58] sm:$0xff] }
 0xaa8   : > { %6420 = vmatmul.f32.gmra.mxu0 %v12899_v29  ;;  %6485 = vmatmul.f32.gmra.mxu1 %v12901_v53  ;;  %v5665_v58 = vld [vmem:[%s14211_s3 + $0x218] sm:$0xff] }
 0xaa9   : > { %6647 = vmatpush.msra.mxu0 %v5609_v24  ;;  %v5729_v24 = vld [vmem:[%s14211_s3 + $0x418] sm:$0xff] }
 0xaaa   : > { %v6288_v59 = vpop.f32.mrf.mxu2  ;;  %v6353_v11 = vpop.f32.mrf.mxu3  ;;  %6779 = vmatpush.msra.mxu2 %v5729_v24 }
 0xaab   : > { %v6289_v51 = vadd.f32 %v6288_v59, %v6224_v56 }
 0xaad   : > { %v13519_v43 = vadd.f32 %v6353_v11, %v6289_v51  ;;  %v6164_v3 = vpop.f32.mrf.mxu0  ;;  %v6229_v12 = vpop.f32.mrf.mxu1 }
 0xaae   : > { %v6230_v60 = vadd.f32 %v6229_v12, %v6164_v3 }
 0xaaf   : > { %15120 = vst [vmem:[#allocation247_spill] sm:$0xff] %v13519_v43  ;;  %6550 = vmatmul.f32.gmra.mxu2 %v12919_v41  ;;  %6615 = vmatmul.f32.gmra.mxu3 %v12921_v35  ;;  %v5605_v43 = vld [vmem:[%s14211_s3 + $0x38] sm:$0xff] }
 0xab0   : > { %6423 = vmatmul.f32.gmra.mxu0 %v12923_v8  ;;  %6488 = vmatmul.f32.gmra.mxu1 %v12925_v16  ;;  %v5669_v16 = vld [vmem:[%s14211_s3 + $0x238] sm:$0xff] }
 0xab1   : > { %6648 = vmatpush.msra.mxu0 %v5605_v43  ;;  %6713 = vmatpush.msra.mxu1 %v5669_v16  ;;  %v15122_v43 = vld [vmem:[#allocation209_spill] sm:$0xff]  ;;  %v5793_v16 = vld [vmem:[%s14211_s3 + $0x618] sm:$0xff] }
 0xab2   : > { %v6291_v0 = vpop.f32.mrf.mxu2  ;;  %v6356_v9 = vpop.f32.mrf.mxu3  ;;  %6844 = vmatpush.msra.mxu3 %v5793_v16 }
 0xab3   : > { %v6292_v56 = vadd.f32 %v6291_v0, %v6227_v46  ;;  %6649 = vmatpush.msra.mxu0 %v5601_v34  ;;  %6714 = vmatpush.msra.mxu1 %v5665_v58 }
 0xab5   : > { %v13537_v59 = vadd.f32 %v6356_v9, %v6292_v56  ;;  %v6167_v11 = vpop.f32.mrf.mxu0  ;;  %v6232_v51 = vpop.f32.mrf.mxu1 }
 0xab6   : > { %v6233_v3 = vadd.f32 %v6232_v51, %v6167_v11 }
 0xab7   : > { %15121 = vst [vmem:[#allocation248_spill] sm:$0xff] %v13537_v59  ;;  %6553 = vmatmul.f32.gmra.mxu2 %v12943_v4  ;;  %6618 = vmatmul.f32.gmra.mxu3 %v12945_v55  ;;  %v15124_v59 = vld [vmem:[#allocation211_spill] sm:$0xff] }
 0xab8   : > { %6426 = vmatmul.f32.gmra.mxu0 %v12947_v14  ;;  %6491 = vmatmul.f32.gmra.mxu1 %v15122_v43  ;;  %v15125_v43 = vld [vmem:[#allocation212_spill] sm:$0xff] }
 0xaba   : > { %v6294_v19 = vpop.f32.mrf.mxu2  ;;  %v6359_v20 = vpop.f32.mrf.mxu3 }
 0xabb   : > { %v6295_v46 = vadd.f32 %v6294_v19, %v6230_v60  ;;  %v15127_v60 = vld [vmem:[#allocation213_spill] sm:$0xff]  ;;  %v15128_v19 = vld [vmem:[#allocation214_spill] sm:$0xff] }
 0xabd   : > { %v13561_v0 = vadd.f32 %v6359_v20, %v6295_v46  ;;  %v6170_v9 = vpop.f32.mrf.mxu0  ;;  %v6235_v56 = vpop.f32.mrf.mxu1  ;;  %v15129_v20 = vld [vmem:[#allocation215_spill] sm:$0xff]  ;;  %v15130_v46 = vld [vmem:[#allocation216_spill] sm:$0xff] }
 0xabf   : > { %15123 = vst [vmem:[#allocation249_spill] sm:$0xff] %v13561_v0  ;;  %6556 = vmatmul.f32.gmra.mxu2 %v12967_v52  ;;  %6621 = vmatmul.f32.gmra.mxu3 %v12969_v33  ;;  %v6236_v0 = vadd.f32 %v6235_v56, %v6170_v9 }
 0xac0   : > { %6429 = vmatmul.f32.gmra.mxu0 %v15124_v59  ;;  %6494 = vmatmul.f32.gmra.mxu1 %v15125_v43 }
 0xac2   : > { %v6297_v12 = vpop.f32.mrf.mxu2  ;;  %v6362_v24 = vpop.f32.mrf.mxu3 }
 0xac3   : > { %v6298_v34 = vadd.f32 %v6297_v12, %v6233_v3  ;;  %v15132_v12 = vld [vmem:[#allocation218_spill] sm:$0xff] }
 0xac5   : > { %v13567_v14 = vadd.f32 %v6362_v24, %v6298_v34  ;;  %v6173_v58 = vpop.f32.mrf.mxu0  ;;  %v6238_v16 = vpop.f32.mrf.mxu1  ;;  %v15133_v24 = vld [vmem:[#allocation220_spill] sm:$0xff] }
 0xac6   : > { %v6239_v34 = vadd.f32 %v6238_v16, %v6173_v58 }
 0xac7   : > { %15126 = vst [vmem:[#allocation250_spill] sm:$0xff] %v13567_v14  ;;  %6559 = vmatmul.f32.gmra.mxu2 %v15127_v60  ;;  %6624 = vmatmul.f32.gmra.mxu3 %v15128_v19 }
 0xac8   : > { %6432 = vmatmul.f32.gmra.mxu0 %v15129_v20  ;;  %6497 = vmatmul.f32.gmra.mxu1 %v15130_v46 }
 0xaca   : > { %v6300_v59 = vpop.f32.mrf.mxu2  ;;  %v6365_v33 = vpop.f32.mrf.mxu3 }
 0xacb   : > { %v6301_v43 = vadd.f32 %v6300_v59, %v6236_v0  ;;  %v15137_v0 = vld [vmem:[#allocation201_spill] sm:$0xff] }
 0xacd   : > { %v13573_v11 = vadd.f32 %v6365_v33, %v6301_v43  ;;  %v6176_v51 = vpop.f32.mrf.mxu0  ;;  %v6241_v3 = vpop.f32.mrf.mxu1  ;;  %v15135_v33 = vld [vmem:[#allocation221_spill] sm:$0xff]  ;;  %v15136_v43 = vld [vmem:[#allocation222_spill] sm:$0xff] }
 0xacf   : > { %15131 = vst [vmem:[#allocation213_spill] sm:$0xff] %v13573_v11  ;;  %6562 = vmatmul.f32.gmra.mxu2 %v13009_v54  ;;  %6627 = vmatmul.f32.gmra.mxu3 %v15132_v12  ;;  %v15138_v11 = vld [vmem:[#allocation202_spill] sm:$0xff]  ;;  %v6242_v12 = vadd.f32 %v6241_v3, %v6176_v51 }
 0xad0   : > { %6435 = vmatmul.f32.gmra.mxu0 %v15101_v31  ;;  %6500 = vmatmul.f32.gmra.mxu1 %v15133_v24 }
 0xad2   : > { %v6303_v14 = vpop.f32.mrf.mxu2  ;;  %v6368_v20 = vpop.f32.mrf.mxu3 }
 0xad3   : > { %v6304_v46 = vadd.f32 %v6303_v14, %v6239_v34  ;;  %v15141_v34 = vld [vmem:[#allocation206_spill] sm:$0xff] }
 0xad5   : > { %v13579_v9 = vadd.f32 %v6368_v20, %v6304_v46  ;;  %v6391_v56 = vpop.f32.mrf.mxu0  ;;  %v6456_v59 = vpop.f32.mrf.mxu1  ;;  %v15139_v20 = vld [vmem:[#allocation203_spill] sm:$0xff]  ;;  %v15140_v46 = vld [vmem:[#allocation204_spill] sm:$0xff] }
 0xad7   : > { %15134 = vst [vmem:[#allocation214_spill] sm:$0xff] %v13579_v9  ;;  %6565 = vmatmul.f32.gmra.mxu2 %v15135_v33  ;;  %6630 = vmatmul.f32.gmra.mxu3 %v15136_v43  ;;  %v6457_v9 = vadd.f32 %v6456_v59, %v6391_v56 }
 0xad8   : > { %6650 = vmatmul.f32.vlgmr.msra.gmra.mxu0 %v15137_v0  ;;  %6715 = vmatmul.f32.vlgmr.msra.gmra.mxu1 %v15138_v11 }
 0xada   : > { %v6306_v31 = vpop.f32.mrf.mxu2  ;;  %v6371_v54 = vpop.f32.mrf.mxu3 }
 0xadb   : > { %v6307_v24 = vadd.f32 %v6306_v31, %v6242_v12 }
 0xadd   : > { %v13585_v58 = vadd.f32 %v6371_v54, %v6307_v24  ;;  %v6394_v16 = vpop.f32.mrf.mxu0  ;;  %v6459_v14 = vpop.f32.mrf.mxu1 }
 0xade   : > { %v6460_v54 = vadd.f32 %v6459_v14, %v6394_v16 }
 0xadf   : > { %6780 = vmatmul.f32.vlgmr.msra.gmra.mxu2 %v15139_v20  ;;  %6845 = vmatmul.f32.vlgmr.msra.gmra.mxu3 %v15140_v46 }
 0xae0   : > { %6653 = vmatmul.f32.gmra.mxu0 %v15109_v36  ;;  %6718 = vmatmul.f32.gmra.mxu1 %v15141_v34 }
 0xae2   : > { %v6521_v0 = vpop.f32.mrf.mxu2  ;;  %v6586_v43 = vpop.f32.mrf.mxu3 }
 0xae3   : > { %v6522_v11 = vadd.f32 %v6521_v0, %v6457_v9 }
 0xae5   : > { %v13591_v51 = vadd.f32 %v6586_v43, %v6522_v11  ;;  %v6397_v3 = vpop.f32.mrf.mxu0  ;;  %v6462_v31 = vpop.f32.mrf.mxu1 }
 0xae7   : > { %6783 = vmatmul.f32.gmra.mxu2 %v12703_v44  ;;  %6848 = vmatmul.f32.gmra.mxu3 %v12705_v23  ;;  %v6463_v44 = vadd.f32 %v6462_v31, %v6397_v3 }
 0xae8   : > { %6656 = vmatmul.f32.gmra.mxu0 %v12707_v21  ;;  %6721 = vmatmul.f32.gmra.mxu1 %v12709_v27 }
 0xaea   : > { %v6524_v36 = vpop.f32.mrf.mxu2  ;;  %v6589_v12 = vpop.f32.mrf.mxu3 }
 0xaeb   : > { %v6525_v24 = vadd.f32 %v6524_v36, %v6460_v54 }
 0xaed   : > { %v13597_v56 = vadd.f32 %v6589_v12, %v6525_v24  ;;  %v6400_v59 = vpop.f32.mrf.mxu0  ;;  %v6465_v9 = vpop.f32.mrf.mxu1 }
 0xaef   : > { %6786 = vmatmul.f32.gmra.mxu2 %v12727_v26  ;;  %6851 = vmatmul.f32.gmra.mxu3 %v12729_v17  ;;  %v6466_v26 = vadd.f32 %v6465_v9, %v6400_v59 }
 0xaf0   : > { %6659 = vmatmul.f32.gmra.mxu0 %v12731_v40  ;;  %6724 = vmatmul.f32.gmra.mxu1 %v12733_v10 }
 0xaf2   : > { %v6527_v23 = vpop.f32.mrf.mxu2  ;;  %v6592_v21 = vpop.f32.mrf.mxu3 }
 0xaf3   : > { %v6528_v27 = vadd.f32 %v6527_v23, %v6463_v44 }
 0xaf5   : > { %v13603_v43 = vadd.f32 %v6592_v21, %v6528_v27  ;;  %v6403_v16 = vpop.f32.mrf.mxu0  ;;  %v6468_v14 = vpop.f32.mrf.mxu1 }
 0xaf7   : > { %6789 = vmatmul.f32.gmra.mxu2 %v12751_v5  ;;  %6854 = vmatmul.f32.gmra.mxu3 %v12753_v6  ;;  %v6469_v5 = vadd.f32 %v6468_v14, %v6403_v16 }
 0xaf8   : > { %6662 = vmatmul.f32.gmra.mxu0 %v12755_v50  ;;  %6727 = vmatmul.f32.gmra.mxu1 %v12757_v28 }
 0xafa   : > { %v6530_v17 = vpop.f32.mrf.mxu2  ;;  %v6595_v40 = vpop.f32.mrf.mxu3 }
 0xafb   : > { %v6531_v10 = vadd.f32 %v6530_v17, %v6466_v26 }
 0xafd   : > { %v13609_v20 = vadd.f32 %v6595_v40, %v6531_v10  ;;  %v6406_v46 = vpop.f32.mrf.mxu0  ;;  %v6471_v34 = vpop.f32.mrf.mxu1 }
 0xaff   : > { %6792 = vmatmul.f32.gmra.mxu2 %v12775_v45  ;;  %6857 = vmatmul.f32.gmra.mxu3 %v12777_v38  ;;  %v6472_v45 = vadd.f32 %v6471_v34, %v6406_v46 }
 0xb00   : > { %6665 = vmatmul.f32.gmra.mxu0 %v12779_v39  ;;  %6730 = vmatmul.f32.gmra.mxu1 %v12781_v48 }
 0xb02   : > { %v6533_v6 = vpop.f32.mrf.mxu2  ;;  %v6598_v50 = vpop.f32.mrf.mxu3 }
 0xb03   : > { %v6534_v28 = vadd.f32 %v6533_v6, %v6469_v5 }
 0xb05   : > { %v13615_v0 = vadd.f32 %v6598_v50, %v6534_v28  ;;  %v6409_v11 = vpop.f32.mrf.mxu0  ;;  %v6474_v3 = vpop.f32.mrf.mxu1  ;;  %v15145_v50 = vld [vmem:[#allocation208_spill] sm:$0xff] }
 0xb07   : > { %6795 = vmatmul.f32.gmra.mxu2 %v12799_v63  ;;  %6860 = vmatmul.f32.gmra.mxu3 %v12801_v42  ;;  %v6475_v63 = vadd.f32 %v6474_v3, %v6409_v11 }
 0xb08   : > { %6668 = vmatmul.f32.gmra.mxu0 %v12803_v13  ;;  %6733 = vmatmul.f32.gmra.mxu1 %v12805_v32 }
 0xb0a   : > { %v6536_v38 = vpop.f32.mrf.mxu2  ;;  %v6601_v39 = vpop.f32.mrf.mxu3 }
 0xb0b   : > { %v6537_v48 = vadd.f32 %v6536_v38, %v6472_v45 }
 0xb0d   : > { %v13621_v31 = vadd.f32 %v6601_v39, %v6537_v48  ;;  %v6412_v54 = vpop.f32.mrf.mxu0  ;;  %v6477_v36 = vpop.f32.mrf.mxu1  ;;  %v15148_v39 = vld [vmem:[#allocation210_spill] sm:$0xff]  ;;  %v15149_v48 = vld [vmem:[#allocation211_spill] sm:$0xff] }
 0xb0f   : > { %6798 = vmatmul.f32.gmra.mxu2 %v12823_v47  ;;  %6863 = vmatmul.f32.gmra.mxu3 %v12825_v62  ;;  %v6478_v47 = vadd.f32 %v6477_v36, %v6412_v54 }
 0xb10   : > { %6671 = vmatmul.f32.gmra.mxu0 %v12827_v49  ;;  %6736 = vmatmul.f32.gmra.mxu1 %v12829_v25 }
 0xb12   : > { %v6539_v42 = vpop.f32.mrf.mxu2  ;;  %v6604_v13 = vpop.f32.mrf.mxu3 }
 0xb13   : > { %v6540_v32 = vadd.f32 %v6539_v42, %v6475_v63 }
 0xb15   : > { %v13627_v12 = vadd.f32 %v6604_v13, %v6540_v32  ;;  %v6415_v24 = vpop.f32.mrf.mxu0  ;;  %v6480_v59 = vpop.f32.mrf.mxu1 }
 0xb16   : > { %v6481_v9 = vadd.f32 %v6480_v59, %v6415_v24  ;;  %v15151_v24 = vld [vmem:[#allocation215_spill] sm:$0xff] }
 0xb17   : > { %6801 = vmatmul.f32.gmra.mxu2 %v12847_v57  ;;  %6866 = vmatmul.f32.gmra.mxu3 %v12849_v1 }
 0xb18   : > { %6674 = vmatmul.f32.gmra.mxu0 %v12851_v22  ;;  %6739 = vmatmul.f32.gmra.mxu1 %v12853_v30 }
 0xb1a   : > { %v6542_v62 = vpop.f32.mrf.mxu2  ;;  %v6607_v49 = vpop.f32.mrf.mxu3 }
 0xb1b   : > { %v6543_v25 = vadd.f32 %v6542_v62, %v6478_v47 }
 0xb1d   : > { %v13633_v44 = vadd.f32 %v6607_v49, %v6543_v25  ;;  %v6418_v23 = vpop.f32.mrf.mxu0  ;;  %v6483_v21 = vpop.f32.mrf.mxu1 }
 0xb1e   : > { %v6484_v27 = vadd.f32 %v6483_v21, %v6418_v23  ;;  %v15153_v21 = vld [vmem:[#allocation217_spill] sm:$0xff] }
 0xb1f   : > { %6804 = vmatmul.f32.gmra.mxu2 %v12871_v37  ;;  %6869 = vmatmul.f32.gmra.mxu3 %v12873_v61 }
 0xb20   : > { %6677 = vmatmul.f32.gmra.mxu0 %v12875_v7  ;;  %6742 = vmatmul.f32.gmra.mxu1 %v12877_v2 }
 0xb22   : > { %v6545_v57 = vpop.f32.mrf.mxu2  ;;  %v6610_v1 = vpop.f32.mrf.mxu3 }
 0xb23   : > { %v6546_v22 = vadd.f32 %v6545_v57, %v6481_v9  ;;  %v15155_v57 = vld [vmem:[#allocation219_spill] sm:$0xff] }
 0xb25   : > { %v13639_v30 = vadd.f32 %v6610_v1, %v6546_v22  ;;  %v6421_v16 = vpop.f32.mrf.mxu0  ;;  %v6486_v14 = vpop.f32.mrf.mxu1 }
 0xb26   : > { %v6487_v26 = vadd.f32 %v6486_v14, %v6421_v16 }
 0xb27   : > { %6807 = vmatmul.f32.gmra.mxu2 %v12895_v18  ;;  %6872 = vmatmul.f32.gmra.mxu3 %v12897_v15  ;;  %v15143_v18 = vld [vmem:[#allocation207_spill] sm:$0xff] }
 0xb28   : > { %6680 = vmatmul.f32.gmra.mxu0 %v12899_v29  ;;  %6745 = vmatmul.f32.gmra.mxu1 %v12901_v53 }
 0xb2a   : > { %v6548_v37 = vpop.f32.mrf.mxu2  ;;  %v6613_v61 = vpop.f32.mrf.mxu3 }
 0xb2b   : > { %v6549_v7 = vadd.f32 %v6548_v37, %v6484_v27  ;;  %v15154_v27 = vld [vmem:[#allocation218_spill] sm:$0xff] }
 0xb2c   : > { %v15158_v37 = vld [vmem:[#allocation222_spill] sm:$0xff] }
 0xb2d   : > { %v13645_v2 = vadd.f32 %v6613_v61, %v6549_v7  ;;  %v6424_v17 = vpop.f32.mrf.mxu0  ;;  %v6489_v40 = vpop.f32.mrf.mxu1 }
 0xb2e   : > { %v6490_v10 = vadd.f32 %v6489_v40, %v6424_v17 }
 0xb2f   : > { %15142 = vst [vmem:[#allocation221_spill] sm:$0xff] %v13645_v2  ;;  %6810 = vmatmul.f32.gmra.mxu2 %v12919_v41  ;;  %6875 = vmatmul.f32.gmra.mxu3 %v12921_v35  ;;  %v15146_v41 = vld [vmem:[#allocation209_spill] sm:$0xff] }
 0xb30   : > { %6683 = vmatmul.f32.gmra.mxu0 %v12923_v8  ;;  %6748 = vmatmul.f32.gmra.mxu1 %v15143_v18 }
 0xb32   : > { %v6551_v15 = vpop.f32.mrf.mxu2  ;;  %v6616_v29 = vpop.f32.mrf.mxu3 }
 0xb33   : > { %v6552_v46 = vadd.f32 %v6551_v15, %v6487_v26 }
 0xb35   : > { %v13651_v53 = vadd.f32 %v6616_v29, %v6552_v46  ;;  %v6427_v34 = vpop.f32.mrf.mxu0  ;;  %v6492_v5 = vpop.f32.mrf.mxu1 }
 0xb36   : > { %v6493_v6 = vadd.f32 %v6492_v5, %v6427_v34  ;;  %v15159_v5 = vld [vmem:[#allocation205_spill] sm:$0xff] }
 0xb37   : > { %15144 = vst [vmem:[#allocation201_spill] sm:$0xff] %v13651_v53  ;;  %6813 = vmatmul.f32.gmra.mxu2 %v12943_v4  ;;  %6878 = vmatmul.f32.gmra.mxu3 %v12945_v55  ;;  %v15150_v4 = vld [vmem:[#allocation212_spill] sm:$0xff] }
 0xb38   : > { %6686 = vmatmul.f32.gmra.mxu0 %v15145_v50  ;;  %6751 = vmatmul.f32.gmra.mxu1 %v15146_v41 }
 0xb3a   : > { %v6554_v35 = vpop.f32.mrf.mxu2  ;;  %v6619_v8 = vpop.f32.mrf.mxu3 }
 0xb3b   : > { %v6555_v28 = vadd.f32 %v6554_v35, %v6490_v10 }
 0xb3d   : > { %v13657_v11 = vadd.f32 %v6619_v8, %v6555_v28  ;;  %v6430_v3 = vpop.f32.mrf.mxu0  ;;  %v6495_v45 = vpop.f32.mrf.mxu1 }
 0xb3e   : > { %v6496_v38 = vadd.f32 %v6495_v45, %v6430_v3 }
 0xb3f   : > { %15147 = vst [vmem:[#allocation202_spill] sm:$0xff] %v13657_v11  ;;  %6816 = vmatmul.f32.gmra.mxu2 %v12967_v52  ;;  %6881 = vmatmul.f32.gmra.mxu3 %v15148_v39  ;;  %v15152_v52 = vld [vmem:[#allocation216_spill] sm:$0xff] }
 0xb40   : > { %6689 = vmatmul.f32.gmra.mxu0 %v15149_v48  ;;  %6754 = vmatmul.f32.gmra.mxu1 %v15150_v4 }
 0xb42   : > { %v6557_v55 = vpop.f32.mrf.mxu2  ;;  %v6622_v54 = vpop.f32.mrf.mxu3 }
 0xb43   : > { %v6558_v36 = vadd.f32 %v6557_v55, %v6493_v6  ;;  %v15160_v6 = vld [vmem:[#allocation223_spill] sm:$0xff] }
 0xb44   : > { %v6966_v50 = vmax.f32 %v15160_v6, %v15159_v5  ;;  %v15162_v55 = vld [vmem:[#allocation239_spill] sm:$0xff] }
 0xb45   : > { %v13663_v63 = vadd.f32 %v6622_v54, %v6558_v36  ;;  %v6433_v42 = vpop.f32.mrf.mxu0  ;;  %v6498_v13 = vpop.f32.mrf.mxu1  ;;  %v15163_v54 = vld [vmem:[#allocation224_spill] sm:$0xff] }
 0xb46   : > { %v6499_v32 = vadd.f32 %v6498_v13, %v6433_v42  ;;  %v6971_v36 = vmax.f32 %v15163_v54, %v15162_v55 }
 0xb47   : > { %6819 = vmatmul.f32.gmra.mxu2 %v15127_v60  ;;  %6884 = vmatmul.f32.gmra.mxu3 %v15128_v19  ;;  %v15156_v60 = vld [vmem:[#allocation220_spill] sm:$0xff] }
 0xb48   : > { %6692 = vmatmul.f32.gmra.mxu0 %v15151_v24  ;;  %6757 = vmatmul.f32.gmra.mxu1 %v15152_v52  ;;  %v6972_v24 = vmax.f32 %v6971_v36, %v13597_v56 }
 0xb4a   : > { %v6560_v59 = vpop.f32.mrf.mxu2  ;;  %v6625_v9 = vpop.f32.mrf.mxu3 }
 0xb4b   : > { %v6561_v47 = vadd.f32 %v6560_v59, %v6496_v38 }
 0xb4d   : > { %v13669_v62 = vadd.f32 %v6625_v9, %v6561_v47  ;;  %v6436_v49 = vpop.f32.mrf.mxu0  ;;  %v6501_v25 = vpop.f32.mrf.mxu1 }
 0xb4e   : > { %v6502_v23 = vadd.f32 %v6501_v25, %v6436_v49 }
 0xb4f   : > { %6822 = vmatmul.f32.gmra.mxu2 %v15153_v21  ;;  %6887 = vmatmul.f32.gmra.mxu3 %v15154_v27  ;;  %v15165_v21 = vld [vmem:[#allocation225_spill] sm:$0xff] }
 0xb50   : > { %6695 = vmatmul.f32.gmra.mxu0 %v15155_v57  ;;  %6760 = vmatmul.f32.gmra.mxu1 %v15156_v60 }
 0xb52   : > { %v6563_v19 = vpop.f32.mrf.mxu2  ;;  %v6628_v1 = vpop.f32.mrf.mxu3 }
 0xb53   : > { %v6564_v22 = vadd.f32 %v6563_v19, %v6499_v32 }
 0xb55   : > { %v13675_v16 = vadd.f32 %v6628_v1, %v6564_v22  ;;  %v6651_v14 = vpop.f32.mrf.mxu0  ;;  %v6716_v26 = vpop.f32.mrf.mxu1 }
 0xb56   : > { %v6717_v15 = vadd.f32 %v6716_v26, %v6651_v14 }
 0xb57   : > { %15157 = vst [vmem:[#allocation203_spill] sm:$0xff] %v13675_v16  ;;  %6825 = vmatmul.f32.gmra.mxu2 %v15135_v33  ;;  %6890 = vmatmul.f32.gmra.mxu3 %v15158_v37  ;;  %v6967_v33 = vmax.f32 %v6966_v50, %v13591_v51 }
 0xb5a   : > { %v6566_v61 = vpop.f32.mrf.mxu2  ;;  %v6631_v7 = vpop.f32.mrf.mxu3 }
 0xb5b   : > { %v6567_v17 = vadd.f32 %v6566_v61, %v6502_v23  ;;  %v15164_v23 = vld [vmem:[#allocation240_spill] sm:$0xff] }
 0xb5c   : > { %v6976_v27 = vmax.f32 %v15165_v21, %v15164_v23 }
 0xb5d   : > { %v13679_v40 = vadd.f32 %v6631_v7, %v6567_v17  ;;  %v6654_v10 = vpop.f32.mrf.mxu0  ;;  %v6719_v18 = vpop.f32.mrf.mxu1  ;;  %v15166_v17 = vld [vmem:[#allocation241_spill] sm:$0xff] }
 0xb5e   : > { %v6720_v38 = vadd.f32 %v6719_v18, %v6654_v10  ;;  %v6977_v1 = vmax.f32 %v6976_v27, %v13603_v43  ;;  %v15167_v10 = vld [vmem:[#allocation226_spill] sm:$0xff]  ;;  %v15171_v27 = vld [vmem:[#allocation228_spill] sm:$0xff] }
 0xb5f   : > { %v6981_v18 = vmax.f32 %v15167_v10, %v15166_v17 }
 0xb62   : > { %v6781_v29 = vpop.f32.mrf.mxu2  ;;  %v6846_v46 = vpop.f32.mrf.mxu3 }
 0xb63   : > { %v6782_v34 = vadd.f32 %v6781_v29, %v6717_v15 }
 0xb65   : > { %v6847_v41 = vadd.f32 %v6846_v46, %v6782_v34  ;;  %v6657_v35 = vpop.f32.mrf.mxu0  ;;  %v6722_v8 = vpop.f32.mrf.mxu1  ;;  %v6982_v34 = vmax.f32 %v6981_v18, %v13609_v20 }
 0xb66   : > { %v6723_v9 = vadd.f32 %v6722_v8, %v6657_v35 }
 0xb67   : > { %v13686_v3 = vsel %vm1085_vm0, %v6847_v41, -1e+30 }
 0xb68   : > { %v6968_v45 = vmax.f32 %v6967_v33, %v13686_v3 }
 0xb6a   : > { %v6784_v39 = vpop.f32.mrf.mxu2  ;;  %v6849_v48 = vpop.f32.mrf.mxu3  ;;  %6969 = vmax.xlane.f32.xlu0 %v6968_v45 }
 0xb6b   : > { %v6785_v4 = vadd.f32 %v6784_v39, %v6720_v38  ;;  %v15168_v38 = vld [vmem:[#allocation242_spill] sm:$0xff]  ;;  %v15169_v39 = vld [vmem:[#allocation227_spill] sm:$0xff] }
 0xb6d   : > { %v6850_v42 = vadd.f32 %v6849_v48, %v6785_v4  ;;  %v6660_v13 = vpop.f32.mrf.mxu0  ;;  %v6725_v32 = vpop.f32.mrf.mxu1  ;;  %v6986_v48 = vmax.f32 %v15169_v39, %v15168_v38 }
 0xb6e   : > { %v6726_v26 = vadd.f32 %v6725_v32, %v6660_v13 }
 0xb6f   : > { %v13694_v52 = vsel %vm1085_vm0, %v6850_v42, -1e+30  ;;  %v6987_v13 = vmax.f32 %v6986_v48, %v13615_v0 }
 0xb70   : > { %v6973_v59 = vmax.f32 %v6972_v24, %v13694_v52 }
 0xb72   : > { %v6787_v47 = vpop.f32.mrf.mxu2  ;;  %v6852_v49 = vpop.f32.mrf.mxu3  ;;  %6974 = vmax.xlane.f32.xlu0 %v6973_v59 }
 0xb73   : > { %v6788_v25 = vadd.f32 %v6787_v47, %v6723_v9 }
 0xb75   : > { %v6853_v57 = vadd.f32 %v6852_v49, %v6788_v25  ;;  %v6663_v60 = vpop.f32.mrf.mxu0  ;;  %v6728_v19 = vpop.f32.mrf.mxu1  ;;  %v15170_v25 = vld [vmem:[#allocation243_spill] sm:$0xff] }
 0xb76   : > { %v6729_v35 = vadd.f32 %v6728_v19, %v6663_v60 }
 0xb77   : > { %v13702_v22 = vsel %vm1085_vm0, %v6853_v57, -1e+30  ;;  %v6991_v57 = vmax.f32 %v15171_v27, %v15170_v25 }
 0xb78   : > { %v6978_v14 = vmax.f32 %v6977_v1, %v13702_v22 }
 0xb7a   : > { %v6790_v37 = vpop.f32.mrf.mxu2  ;;  %v6855_v61 = vpop.f32.mrf.mxu3  ;;  %6979 = vmax.xlane.f32.xlu1 %v6978_v14  ;;  %v6992_v14 = vmax.f32 %v6991_v57, %v13621_v31 }
 0xb7b   : > { %v6791_v7 = vadd.f32 %v6790_v37, %v6726_v26 }
 0xb7d   : > { %v6856_v15 = vadd.f32 %v6855_v61, %v6791_v7  ;;  %v6666_v29 = vpop.f32.mrf.mxu0  ;;  %v6731_v46 = vpop.f32.mrf.mxu1 }
 0xb7e   : > { %v6732_v59 = vadd.f32 %v6731_v46, %v6666_v29  ;;  %v15172_v29 = vld [vmem:[#allocation244_spill] sm:$0xff]  ;;  %v15173_v46 = vld [vmem:[#allocation229_spill] sm:$0xff] }
 0xb7f   : > { %v13710_v50 = vsel %vm1085_vm0, %v6856_v15, -1e+30 }
 0xb80   : > { %v6983_v41 = vmax.f32 %v6982_v34, %v13710_v50  ;;  %v6996_v34 = vmax.f32 %v15173_v46, %v15172_v29 }
 0xb82   : > { %v6793_v8 = vpop.f32.mrf.mxu2  ;;  %v6858_v33 = vpop.f32.mrf.mxu3  ;;  %6984 = vmax.xlane.f32.xlu1 %v6983_v41 }
 0xb83   : > { %v6794_v45 = vadd.f32 %v6793_v8, %v6729_v35 }
 0xb85   : > { %v6859_v4 = vadd.f32 %v6858_v33, %v6794_v45  ;;  %v6669_v36 = vpop.f32.mrf.mxu0  ;;  %v6734_v42 = vpop.f32.mrf.mxu1  ;;  %v6997_v33 = vmax.f32 %v6996_v34, %v13627_v12 }
 0xb86   : > { %v6735_v61 = vadd.f32 %v6734_v42, %v6669_v36 }
 0xb87   : > { %v13718_v32 = vsel %vm1085_vm0, %v6859_v4, -1e+30 }
 0xb88   : > { %v6988_v24 = vmax.f32 %v6987_v13, %v13718_v32 }
 0xb8a   : > { %v6796_v9 = vpop.f32.mrf.mxu2  ;;  %v6861_v47 = vpop.f32.mrf.mxu3  ;;  %6989 = vmax.xlane.f32.xlu2 %v6988_v24  ;;  %v15174_v24 = vld [vmem:[#allocation245_spill] sm:$0xff] }
 0xb8b   : > { %v6797_v49 = vadd.f32 %v6796_v9, %v6732_v59  ;;  %v15175_v59 = vld [vmem:[#allocation230_spill] sm:$0xff] }
 0xb8c   : > { %v7001_v9 = vmax.f32 %v15175_v59, %v15174_v24 }
 0xb8d   : > { %v6862_v60 = vadd.f32 %v6861_v47, %v6797_v49  ;;  %v6672_v19 = vpop.f32.mrf.mxu0  ;;  %v6737_v1 = vpop.f32.mrf.mxu1 }
 0xb8e   : > { %v6738_v4 = vadd.f32 %v6737_v1, %v6672_v19 }
 0xb8f   : > { %v13726_v26 = vsel %vm1085_vm0, %v6862_v60, -1e+30  ;;  %v7002_v60 = vmax.f32 %v7001_v9, %v13633_v44 }
 0xb90   : > { %v6993_v37 = vmax.f32 %v6992_v14, %v13726_v26 }
 0xb92   : > { %v6799_v7 = vpop.f32.mrf.mxu2  ;;  %v6864_v18 = vpop.f32.mrf.mxu3  ;;  %6994 = vmax.xlane.f32.xlu2 %v6993_v37 }
 0xb93   : > { %v6800_v15 = vadd.f32 %v6799_v7, %v6735_v61 }
 0xb95   : > { %v6865_v41 = vadd.f32 %v6864_v18, %v6800_v15  ;;  %v6675_v35 = vpop.f32.mrf.mxu0  ;;  %v6740_v8 = vpop.f32.mrf.mxu1  ;;  %v15176_v18 = vld [vmem:[#allocation246_spill] sm:$0xff]  ;;  %v15177_v15 = vld [vmem:[#allocation231_spill] sm:$0xff] }
 0xb96   : > { %v6741_v61 = vadd.f32 %v6740_v8, %v6675_v35  ;;  %v7006_v34 = vmax.f32 %v15177_v15, %v15176_v18 }
 0xb97   : > { %v13734_v45 = vsel %vm1085_vm0, %v6865_v41, -1e+30 }
 0xb98   : > { %v6998_v48 = vmax.f32 %v6997_v33, %v13734_v45 }
 0xb9a   : > { %v6802_v36 = vpop.f32.mrf.mxu2  ;;  %v6867_v42 = vpop.f32.mrf.mxu3  ;;  %6999 = vmax.xlane.f32.xlu0 %v6998_v48 }
 0xb9b   : > { %v6803_v13 = vadd.f32 %v6802_v36, %v6738_v4  ;;  %v7007_v4 = vmax.f32 %v7006_v34, %v13639_v30 }
 0xb9d   : > { %v6868_v47 = vadd.f32 %v6867_v42, %v6803_v13  ;;  %v6678_v49 = vpop.f32.mrf.mxu0  ;;  %v6743_v57 = vpop.f32.mrf.mxu1 }
 0xb9e   : > { %v6744_v13 = vadd.f32 %v6743_v57, %v6678_v49 }
 0xb9f   : > { %v13742_v14 = vsel %vm1085_vm0, %v6868_v47, -1e+30  ;;  %v15179_v47 = vld [vmem:[#allocation247_spill] sm:$0xff] }
 0xba0   : > { %v7003_v37 = vmax.f32 %v7002_v60, %v13742_v14  ;;  %v15180_v60 = vld [vmem:[#allocation232_spill] sm:$0xff] }
 0xba2   : > { %v6805_v19 = vpop.f32.mrf.mxu2  ;;  %v6870_v1 = vpop.f32.mrf.mxu3  ;;  %7004 = vmax.xlane.f32.xlu1 %v7003_v37  ;;  %v7011_v37 = vmax.f32 %v15180_v60, %v15179_v47 }
 0xba3   : > { %v6806_v7 = vadd.f32 %v6805_v19, %v6741_v61 }
 0xba5   : > { %v6871_v41 = vadd.f32 %v6870_v1, %v6806_v7  ;;  %v6681_v33 = vpop.f32.mrf.mxu0  ;;  %v6746_v48 = vpop.f32.mrf.mxu1  ;;  %v7012_v7 = vmax.f32 %v7011_v37, %v13645_v2 }
 0xba7   : > { %v13750_v36 = vsel %vm1085_vm0, %v6871_v41, -1e+30 }
 0xba8   : > { %15178 = vst [vmem:[#allocation204_spill] sm:$0xff] %v13750_v36  ;;  %v7008_v42 = vmax.f32 %v7007_v4, %v13750_v36  ;;  %v6747_v4 = vadd.f32 %v6746_v48, %v6681_v33 }
 0xbaa   : > { %v6808_v35 = vpop.f32.mrf.mxu2  ;;  %v6873_v8 = vpop.f32.mrf.mxu3  ;;  %7009 = vmax.xlane.f32.xlu2 %v7008_v42 }
 0xbab   : > { %v6809_v9 = vadd.f32 %v6808_v35, %v6744_v13  ;;  %v15182_v13 = vld [vmem:[#allocation248_spill] sm:$0xff]  ;;  %v15183_v35 = vld [vmem:[#allocation233_spill] sm:$0xff] }
 0xbac   : > { %v7016_v36 = vmax.f32 %v15183_v35, %v15182_v13 }
 0xbad   : > { %v6874_v61 = vadd.f32 %v6873_v8, %v6809_v9  ;;  %v6684_v19 = vpop.f32.mrf.mxu0  ;;  %v6749_v1 = vpop.f32.mrf.mxu1 }
 0xbae   : > { %v7017_v8 = vmax.f32 %v7016_v36, %v13651_v53 }
 0xbaf   : > { %v13758_v34 = vsel %vm1085_vm0, %v6874_v61, -1e+30 }
 0xbb0   : > { %15181 = vst [vmem:[#allocation206_spill] sm:$0xff] %v13758_v34  ;;  %v7013_v41 = vmax.f32 %v7012_v7, %v13758_v34  ;;  %v6750_v7 = vadd.f32 %v6749_v1, %v6684_v19 }
 0xbb2   : > { %v6811_v49 = vpop.f32.mrf.mxu2  ;;  %v6876_v57 = vpop.f32.mrf.mxu3  ;;  %7014 = vmax.xlane.f32.xlu0 %v7013_v41 }
 0xbb3   : > { %v6812_v42 = vadd.f32 %v6811_v49, %v6747_v4  ;;  %v15185_v4 = vld [vmem:[#allocation249_spill] sm:$0xff]  ;;  %v15186_v49 = vld [vmem:[#allocation234_spill] sm:$0xff] }
 0xbb4   : > { %v7021_v34 = vmax.f32 %v15186_v49, %v15185_v4 }
 0xbb5   : > { %v6877_v47 = vadd.f32 %v6876_v57, %v6812_v42  ;;  %v6687_v37 = vpop.f32.mrf.mxu0  ;;  %v6752_v61 = vpop.f32.mrf.mxu1 }
 0xbb6   : > { %v7022_v57 = vmax.f32 %v7021_v34, %v13657_v11  ;;  %v6753_v42 = vadd.f32 %v6752_v61, %v6687_v37 }
 0xbb7   : > { %v13766_v9 = vsel %vm1085_vm0, %v6877_v47, -1e+30 }
 0xbb8   : > { %15184 = vst [vmem:[#allocation207_spill] sm:$0xff] %v13766_v9  ;;  %v7018_v2 = vmax.f32 %v7017_v8, %v13766_v9 }
 0xbba   : > { %v6814_v33 = vpop.f32.mrf.mxu2  ;;  %v6879_v48 = vpop.f32.mrf.mxu3  ;;  %7019 = vmax.xlane.f32.xlu1 %v7018_v2 }
 0xbbb   : > { %v6815_v41 = vadd.f32 %v6814_v33, %v6750_v7  ;;  %v15188_v7 = vld [vmem:[#allocation250_spill] sm:$0xff]  ;;  %v15189_v33 = vld [vmem:[#allocation235_spill] sm:$0xff] }
 0xbbc   : > { %v7026_v9 = vmax.f32 %v15189_v33, %v15188_v7 }
 0xbbd   : > { %v6880_v13 = vadd.f32 %v6879_v48, %v6815_v41  ;;  %v6690_v53 = vpop.f32.mrf.mxu0  ;;  %v6755_v8 = vpop.f32.mrf.mxu1 }
 0xbbe   : > { %v7027_v48 = vmax.f32 %v7026_v9, %v13663_v63  ;;  %v6756_v41 = vadd.f32 %v6755_v8, %v6690_v53 }
 0xbbf   : > { %v13774_v36 = vsel %vm1085_vm0, %v6880_v13, -1e+30 }
 0xbc0   : > { %15187 = vst [vmem:[#allocation208_spill] sm:$0xff] %v13774_v36  ;;  %v7023_v47 = vmax.f32 %v7022_v57, %v13774_v36  ;;  %v15190_v36 = vld [vmem:[#allocation213_spill] sm:$0xff] }
 0xbc2   : > { %v6817_v19 = vpop.f32.mrf.mxu2  ;;  %v6882_v1 = vpop.f32.mrf.mxu3  ;;  %7024 = vmax.xlane.f32.xlu2 %v7023_v47  ;;  %v15191_v47 = vld [vmem:[#allocation236_spill] sm:$0xff] }
 0xbc3   : > { %v6818_v2 = vadd.f32 %v6817_v19, %v6753_v42  ;;  %v7031_v42 = vmax.f32 %v15191_v47, %v15190_v36 }
 0xbc5   : > { %v6883_v4 = vadd.f32 %v6882_v1, %v6818_v2  ;;  %v6693_v19 = vpop.f32.mrf.mxu0  ;;  %v6758_v11 = vpop.f32.mrf.mxu1  ;;  %v7032_v1 = vmax.f32 %v7031_v42, %v13669_v62 }
 0xbc6   : > { %v6759_v2 = vadd.f32 %v6758_v11, %v6693_v19 }
 0xbc7   : > { %v13782_v34 = vsel %vm1085_vm0, %v6883_v4, -1e+30 }
 0xbc8   : > { %v7028_v13 = vmax.f32 %v7027_v48, %v13782_v34 }
 0xbca   : > { %v6820_v37 = vpop.f32.mrf.mxu2  ;;  %v6885_v61 = vpop.f32.mrf.mxu3  ;;  %7029 = vmax.xlane.f32.xlu0 %v7028_v13  ;;  %v15192_v13 = vld [vmem:[#allocation214_spill] sm:$0xff] }
 0xbcb   : > { %v6821_v57 = vadd.f32 %v6820_v37, %v6756_v41  ;;  %v15193_v41 = vld [vmem:[#allocation237_spill] sm:$0xff] }
 0xbcc   : > { %v7036_v37 = vmax.f32 %v15193_v41, %v15192_v13 }
 0xbcd   : > { %v6886_v7 = vadd.f32 %v6885_v61, %v6821_v57  ;;  %v6696_v61 = vpop.f32.mrf.mxu0  ;;  %v6761_v57 = vpop.f32.mrf.mxu1 }
 0xbce   : > { %v7037_v47 = vmax.f32 %v7036_v37, %v13675_v16 }
 0xbcf   : > { %v13790_v9 = vsel %vm1085_vm0, %v6886_v7, -1e+30 }
 0xbd0   : > { %v7033_v4 = vmax.f32 %v7032_v1, %v13790_v9  ;;  %v6762_v1 = vadd.f32 %v6761_v57, %v6696_v61 }
 0xbd2   : > { %v6823_v53 = vpop.f32.mrf.mxu2  ;;  %v6888_v8 = vpop.f32.mrf.mxu3  ;;  %7034 = vmax.xlane.f32.xlu1 %v7033_v4  ;;  %v15194_v4 = vld [vmem:[#allocation238_spill] sm:$0xff] }
 0xbd3   : > { %v6824_v48 = vadd.f32 %v6823_v53, %v6759_v2  ;;  %v7041_v2 = vmax.f32 %v15194_v4, %v13585_v58 }
 0xbd5   : > { %v6889_v36 = vadd.f32 %v6888_v8, %v6824_v48  ;;  %v7042_v48 = vmax.f32 %v7041_v2, %v13679_v40 }
 0xbd7   : > { %v13798_v42 = vsel %vm1085_vm0, %v6889_v36, -1e+30 }
 0xbd8   : > { %v7038_v7 = vmax.f32 %v7037_v47, %v13798_v42 }
 0xbda   : > { %v6826_v11 = vpop.f32.mrf.mxu2  ;;  %7039 = vmax.xlane.f32.xlu2 %v7038_v7  ;;  %v6891_v53 = vpop.f32.mrf.mxu3 }
 0xbdb   : > { %v6827_v19 = vadd.f32 %v6826_v11, %v6762_v1 }
 0xbdd   : > { %v6892_v13 = vadd.f32 %v6891_v53, %v6827_v19  ;;  %v6970_v8 = vpop.xlane.xlu0 %6969 }
 0xbde   : > { %v7046_v37 = vsub.f32 %v15160_v6, %v6970_v8  ;;  %v7047_v16 = vsub.f32 %v15159_v5, %v6970_v8  ;;  %v7048_v36 = vsub.f32 %v13591_v51, %v6970_v8  ;;  %v7049_v61 = vsub.f32 %v13686_v3, %v6970_v8 }
 0xbdf   : > { %v13809_v47 = vsel %vm1085_vm0, %v6892_v13, -1e+30 }
 0xbe0   : > { %v7110_v57 = vmul.f32 1.442695, %v7046_v37  ;;  %v7112_v7 = vmul.f32 1.442695, %v7047_v16  ;;  %v7043_v1 = vmax.f32 %v7042_v48, %v13809_v47  ;;  %v7114_v11 = vmul.f32 1.442695, %v7048_v36 }
 0xbe1   : > { %v7116_v19 = vmul.f32 1.442695, %v7049_v61 }
 0xbe2   : > { %8063 = vpow2.f32 %v7110_v57  ;;  %7044 = vmax.xlane.f32.xlu0 %v7043_v1 }
 0xbe3   : > { %8065 = vpow2.f32 %v7112_v7 }
 0xbe4   : > { %8067 = vpow2.f32 %v7114_v11 }
 0xbe5   : > { %v6975_v6 = vpop.xlane.xlu0 %6974  ;;  %8069 = vpow2.f32 %v7116_v19 }
 0xbe6   : > { %v7050_v5 = vsub.f32 %v15163_v54, %v6975_v6  ;;  %v7051_v51 = vsub.f32 %v15162_v55, %v6975_v6  ;;  %v7052_v28 = vsub.f32 %v13597_v56, %v6975_v6  ;;  %v7053_v16 = vsub.f32 %v13694_v52, %v6975_v6 }
 0xbe8   : > { %v13816_v13 = vpop.eup %8063  ;;  %v7118_v3 = vmul.f32 1.442695, %v7050_v5  ;;  %v7120_v2 = vmul.f32 1.442695, %v7051_v51  ;;  %v7122_v8 = vmul.f32 1.442695, %v7052_v28 }
 0xbe9   : > { %v13819_v53 = vpop.eup %8065  ;;  %v7124_v55 = vmul.f32 1.442695, %v7053_v16 }
 0xbea   : > { %8071 = vpow2.f32 %v7118_v3  ;;  %v7238_v48 = vadd.f32 %v13819_v53, %v13816_v13  ;;  %v13823_v37 = vpop.eup %8067 }
 0xbeb   : > { %8073 = vpow2.f32 %v7120_v2  ;;  %v13826_v36 = vpop.eup %8069 }
 0xbec   : > { %v7239_v56 = vadd.f32 %v13823_v37, %v7238_v48  ;;  %8075 = vpow2.f32 %v7122_v8 }
 0xbed   : > { %v6980_v54 = vpop.xlane.xlu1 %6979  ;;  %8077 = vpow2.f32 %v7124_v55 }
 0xbee   : > { %v7054_v52 = vsub.f32 %v15165_v21, %v6980_v54  ;;  %v7055_v61 = vsub.f32 %v15164_v23, %v6980_v54  ;;  %v7056_v57 = vsub.f32 %v13603_v43, %v6980_v54  ;;  %v7240_v7 = vadd.f32 %v13826_v36, %v7239_v56 }
 0xbef   : > { %v7057_v11 = vsub.f32 %v13702_v22, %v6980_v54 }
 0xbf0   : > { %v13832_v1 = vpop.eup %8071  ;;  %v7126_v19 = vmul.f32 1.442695, %v7054_v52  ;;  %v7128_v6 = vmul.f32 1.442695, %v7055_v61  ;;  %v7130_v51 = vmul.f32 1.442695, %v7056_v57  ;;  %7241 = vadd.xlane.f32.xlu1 %v7240_v7 }
 0xbf1   : > { %v13835_v5 = vpop.eup %8073  ;;  %v7132_v43 = vmul.f32 1.442695, %v7057_v11 }
 0xbf2   : > { %8079 = vpow2.f32 %v7126_v19  ;;  %v7243_v21 = vadd.f32 %v13835_v5, %v13832_v1  ;;  %v13839_v23 = vpop.eup %8075 }
 0xbf3   : > { %8081 = vpow2.f32 %v7128_v6  ;;  %v13842_v3 = vpop.eup %8077 }
 0xbf4   : > { %v7244_v28 = vadd.f32 %v13839_v23, %v7243_v21  ;;  %8083 = vpow2.f32 %v7130_v51 }
 0xbf5   : > { %v6985_v16 = vpop.xlane.xlu1 %6984  ;;  %8085 = vpow2.f32 %v7132_v43 }
 0xbf6   : > { %v7058_v22 = vsub.f32 %v15167_v10, %v6985_v16  ;;  %v7059_v2 = vsub.f32 %v15166_v17, %v6985_v16  ;;  %v7060_v8 = vsub.f32 %v13609_v20, %v6985_v16  ;;  %v7245_v48 = vadd.f32 %v13842_v3, %v7244_v28 }
 0xbf7   : > { %v7061_v56 = vsub.f32 %v13710_v50, %v6985_v16 }
 0xbf8   : > { %v13848_v55 = vpop.eup %8079  ;;  %v7134_v54 = vmul.f32 1.442695, %v7058_v22  ;;  %v7136_v52 = vmul.f32 1.442695, %v7059_v2  ;;  %v7138_v57 = vmul.f32 1.442695, %v7060_v8  ;;  %7246 = vadd.xlane.f32.xlu2 %v7245_v48 }
 0xbf9   : > { %v13851_v61 = vpop.eup %8081  ;;  %v7140_v20 = vmul.f32 1.442695, %v7061_v56 }
 0xbfa   : > { %8087 = vpow2.f32 %v7134_v54  ;;  %v7248_v10 = vadd.f32 %v13851_v61, %v13848_v55  ;;  %v13855_v17 = vpop.eup %8083 }
 0xbfb   : > { %8089 = vpow2.f32 %v7136_v52  ;;  %v13858_v19 = vpop.eup %8085 }
 0xbfc   : > { %v7249_v7 = vadd.f32 %v13855_v17, %v7248_v10  ;;  %8091 = vpow2.f32 %v7138_v57 }
 0xbfd   : > { %v6990_v11 = vpop.xlane.xlu2 %6989  ;;  %8093 = vpow2.f32 %v7140_v20 }
 0xbfe   : > { %v7062_v50 = vsub.f32 %v15169_v39, %v6990_v11  ;;  %v7063_v6 = vsub.f32 %v15168_v38, %v6990_v11  ;;  %v7064_v51 = vsub.f32 %v13615_v0, %v6990_v11  ;;  %v7250_v21 = vadd.f32 %v13858_v19, %v7249_v7 }
 0xbff   : > { %v7065_v28 = vsub.f32 %v13718_v32, %v6990_v11 }
 0xc00   : > { %v13864_v43 = vpop.eup %8087  ;;  %v7142_v16 = vmul.f32 1.442695, %v7062_v50  ;;  %v7144_v22 = vmul.f32 1.442695, %v7063_v6  ;;  %v7146_v8 = vmul.f32 1.442695, %v7064_v51  ;;  %7251 = vadd.xlane.f32.xlu0 %v7250_v21 }
 0xc01   : > { %v13867_v2 = vpop.eup %8089  ;;  %v7148_v0 = vmul.f32 1.442695, %v7065_v28 }
 0xc02   : > { %8095 = vpow2.f32 %v7142_v16  ;;  %v7253_v39 = vadd.f32 %v13867_v2, %v13864_v43  ;;  %v13871_v38 = vpop.eup %8091 }
 0xc03   : > { %8097 = vpow2.f32 %v7144_v22  ;;  %v13874_v54 = vpop.eup %8093 }
 0xc04   : > { %v7254_v48 = vadd.f32 %v13871_v38, %v7253_v39  ;;  %8099 = vpow2.f32 %v7146_v8 }
 0xc05   : > { %v6995_v56 = vpop.xlane.xlu2 %6994  ;;  %8101 = vpow2.f32 %v7148_v0 }
 0xc06   : > { %v7066_v32 = vsub.f32 %v15171_v27, %v6995_v56  ;;  %v7067_v52 = vsub.f32 %v15170_v25, %v6995_v56  ;;  %v7068_v57 = vsub.f32 %v13621_v31, %v6995_v56  ;;  %v7255_v10 = vadd.f32 %v13874_v54, %v7254_v48 }
 0xc07   : > { %v7069_v7 = vsub.f32 %v13726_v26, %v6995_v56 }
 0xc08   : > { %v13880_v20 = vpop.eup %8095  ;;  %v7150_v11 = vmul.f32 1.442695, %v7066_v32  ;;  %v7152_v50 = vmul.f32 1.442695, %v7067_v52  ;;  %v7154_v51 = vmul.f32 1.442695, %v7068_v57  ;;  %7256 = vadd.xlane.f32.xlu1 %v7255_v10 }
 0xc09   : > { %v13883_v6 = vpop.eup %8097  ;;  %v7156_v31 = vmul.f32 1.442695, %v7069_v7 }
 0xc0a   : > { %8103 = vpow2.f32 %v7150_v11  ;;  %v7258_v27 = vadd.f32 %v13883_v6, %v13880_v20  ;;  %v13887_v25 = vpop.eup %8099 }
 0xc0b   : > { %8105 = vpow2.f32 %v7152_v50  ;;  %v13890_v16 = vpop.eup %8101 }
 0xc0c   : > { %v7259_v21 = vadd.f32 %v13887_v25, %v7258_v27  ;;  %8107 = vpow2.f32 %v7154_v51 }
 0xc0d   : > { %v7000_v28 = vpop.xlane.xlu0 %6999  ;;  %8109 = vpow2.f32 %v7156_v31 }
 0xc0e   : > { %v7070_v26 = vsub.f32 %v15173_v46, %v7000_v28  ;;  %v7071_v22 = vsub.f32 %v15172_v29, %v7000_v28  ;;  %v7072_v8 = vsub.f32 %v13627_v12, %v7000_v28  ;;  %v7260_v39 = vadd.f32 %v13890_v16, %v7259_v21 }
 0xc0f   : > { %v7073_v48 = vsub.f32 %v13734_v45, %v7000_v28 }
 0xc10   : > { %v13896_v0 = vpop.eup %8103  ;;  %v7158_v56 = vmul.f32 1.442695, %v7070_v26  ;;  %v7160_v32 = vmul.f32 1.442695, %v7071_v22  ;;  %v7162_v57 = vmul.f32 1.442695, %v7072_v8  ;;  %7261 = vadd.xlane.f32.xlu2 %v7260_v39 }
 0xc11   : > { %v13899_v52 = vpop.eup %8105  ;;  %v7164_v12 = vmul.f32 1.442695, %v7073_v48 }
 0xc12   : > { %8111 = vpow2.f32 %v7158_v56  ;;  %v7263_v46 = vadd.f32 %v13899_v52, %v13896_v0  ;;  %v13903_v29 = vpop.eup %8107 }
 0xc13   : > { %8113 = vpow2.f32 %v7160_v32  ;;  %v13906_v11 = vpop.eup %8109 }
 0xc14   : > { %v7264_v10 = vadd.f32 %v13903_v29, %v7263_v46  ;;  %8115 = vpow2.f32 %v7162_v57 }
 0xc15   : > { %v7005_v7 = vpop.xlane.xlu1 %7004  ;;  %8117 = vpow2.f32 %v7164_v12 }
 0xc16   : > { %v7074_v45 = vsub.f32 %v15175_v59, %v7005_v7  ;;  %v7075_v50 = vsub.f32 %v15174_v24, %v7005_v7  ;;  %v7076_v51 = vsub.f32 %v13633_v44, %v7005_v7  ;;  %v7265_v27 = vadd.f32 %v13906_v11, %v7264_v10  ;;  %v15195_v10 = vld [vmem:[#allocation204_spill] sm:$0xff] }
 0xc17   : > { %v7077_v21 = vsub.f32 %v13742_v14, %v7005_v7 }
 0xc18   : > { %v13912_v31 = vpop.eup %8111  ;;  %v7166_v28 = vmul.f32 1.442695, %v7074_v45  ;;  %v7168_v26 = vmul.f32 1.442695, %v7075_v50  ;;  %v7170_v8 = vmul.f32 1.442695, %v7076_v51  ;;  %7266 = vadd.xlane.f32.xlu0 %v7265_v27 }
 0xc19   : > { %v13915_v22 = vpop.eup %8113  ;;  %v7172_v44 = vmul.f32 1.442695, %v7077_v21 }
 0xc1a   : > { %8119 = vpow2.f32 %v7166_v28  ;;  %v7268_v59 = vadd.f32 %v13915_v22, %v13912_v31  ;;  %v13919_v24 = vpop.eup %8115 }
 0xc1b   : > { %8121 = vpow2.f32 %v7168_v26  ;;  %v13922_v56 = vpop.eup %8117 }
 0xc1c   : > { %v7269_v39 = vadd.f32 %v13919_v24, %v7268_v59  ;;  %8123 = vpow2.f32 %v7170_v8  ;;  %v15196_v59 = vld [vmem:[#allocation247_spill] sm:$0xff] }
 0xc1d   : > { %v7010_v48 = vpop.xlane.xlu2 %7009  ;;  %8125 = vpow2.f32 %v7172_v44 }
 0xc1e   : > { %v7078_v14 = vsub.f32 %v15177_v15, %v7010_v48  ;;  %v7079_v32 = vsub.f32 %v15176_v18, %v7010_v48  ;;  %v7080_v57 = vsub.f32 %v13639_v30, %v7010_v48  ;;  %v7270_v46 = vadd.f32 %v13922_v56, %v7269_v39  ;;  %v15197_v39 = vld [vmem:[#allocation221_spill] sm:$0xff] }
 0xc1f   : > { %v7081_v7 = vsub.f32 %v15195_v10, %v7010_v48 }
 0xc20   : > { %v13928_v12 = vpop.eup %8119  ;;  %v7174_v45 = vmul.f32 1.442695, %v7078_v14  ;;  %v7176_v50 = vmul.f32 1.442695, %v7079_v32  ;;  %v7178_v27 = vmul.f32 1.442695, %v7080_v57  ;;  %7271 = vadd.xlane.f32.xlu1 %v7270_v46 }
 0xc21   : > { %v13931_v51 = vpop.eup %8121  ;;  %v7180_v30 = vmul.f32 1.442695, %v7081_v7  ;;  %v15198_v57 = vld [vmem:[#allocation206_spill] sm:$0xff] }
 0xc22   : > { %8127 = vpow2.f32 %v7174_v45  ;;  %v7273_v15 = vadd.f32 %v13931_v51, %v13928_v12  ;;  %v13935_v18 = vpop.eup %8123 }
 0xc23   : > { %8129 = vpow2.f32 %v7176_v50  ;;  %v13938_v26 = vpop.eup %8125 }
 0xc24   : > { %v7274_v21 = vadd.f32 %v13935_v18, %v7273_v15  ;;  %8131 = vpow2.f32 %v7178_v27 }
 0xc25   : > { %v7015_v28 = vpop.xlane.xlu0 %7014  ;;  %8133 = vpow2.f32 %v7180_v30 }
 0xc26   : > { %v7082_v8 = vsub.f32 %v15180_v60, %v7015_v28  ;;  %v7083_v44 = vsub.f32 %v15196_v59, %v7015_v28  ;;  %v7084_v48 = vsub.f32 %v15197_v39, %v7015_v28  ;;  %v7275_v14 = vadd.f32 %v13938_v26, %v7274_v21  ;;  %v15202_v39 = vld [vmem:[#allocation201_spill] sm:$0xff] }
 0xc27   : > { %v7085_v46 = vsub.f32 %v15198_v57, %v7015_v28 }
 0xc28   : > { %v13944_v32 = vpop.eup %8127  ;;  %v7182_v10 = vmul.f32 1.442695, %v7082_v8  ;;  %v7184_v7 = vmul.f32 1.442695, %v7083_v44  ;;  %v7186_v50 = vmul.f32 1.442695, %v7084_v48  ;;  %7276 = vadd.xlane.f32.xlu2 %v7275_v14 }
 0xc29   : > { %v13947_v45 = vpop.eup %8129  ;;  %v7188_v15 = vmul.f32 1.442695, %v7085_v46  ;;  %v15201_v8 = vld [vmem:[#allocation248_spill] sm:$0xff] }
 0xc2a   : > { %15199 = vst [vmem:[#allocation209_spill] sm:$0xff] %v13947_v45  ;;  %8135 = vpow2.f32 %v7182_v10  ;;  %v7278_v60 = vadd.f32 %v13947_v45, %v13944_v32  ;;  %v13951_v27 = vpop.eup %8131  ;;  %v15204_v10 = vld [vmem:[#allocation207_spill] sm:$0xff] }
 0xc2b   : > { %8137 = vpow2.f32 %v7184_v7  ;;  %v13954_v59 = vpop.eup %8133 }
 0xc2c   : > { %v7279_v21 = vadd.f32 %v13951_v27, %v7278_v60  ;;  %8139 = vpow2.f32 %v7186_v50  ;;  %15200 = vst [vmem:[#allocation210_spill] sm:$0xff] %v13954_v59 }
 0xc2d   : > { %v7020_v30 = vpop.xlane.xlu1 %7019  ;;  %8141 = vpow2.f32 %v7188_v15 }
 0xc2e   : > { %v7086_v28 = vsub.f32 %v15183_v35, %v7020_v30  ;;  %v7087_v44 = vsub.f32 %v15201_v8, %v7020_v30  ;;  %v7088_v48 = vsub.f32 %v15202_v39, %v7020_v30  ;;  %v7280_v14 = vadd.f32 %v13954_v59, %v7279_v21 }
 0xc2f   : > { %v7089_v7 = vsub.f32 %v15204_v10, %v7020_v30 }
 0xc30   : > { %v13960_v57 = vpop.eup %8135  ;;  %v7190_v46 = vmul.f32 1.442695, %v7086_v28  ;;  %v7192_v45 = vmul.f32 1.442695, %v7087_v44  ;;  %v7194_v50 = vmul.f32 1.442695, %v7088_v48  ;;  %7281 = vadd.xlane.f32.xlu0 %v7280_v14 }
 0xc31   : > { %15203 = vst [vmem:[#allocation211_spill] sm:$0xff] %v13960_v57  ;;  %v13963_v60 = vpop.eup %8137  ;;  %v7196_v39 = vmul.f32 1.442695, %v7089_v7  ;;  %v15207_v28 = vld [vmem:[#allocation249_spill] sm:$0xff]  ;;  %v15208_v48 = vld [vmem:[#allocation202_spill] sm:$0xff] }
 0xc32   : > { %15205 = vst [vmem:[#allocation212_spill] sm:$0xff] %v13963_v60  ;;  %8143 = vpow2.f32 %v7190_v46  ;;  %v7283_v35 = vadd.f32 %v13963_v60, %v13960_v57  ;;  %v13967_v8 = vpop.eup %8139  ;;  %v15209_v60 = vld [vmem:[#allocation208_spill] sm:$0xff] }
 0xc33   : > { %8145 = vpow2.f32 %v7192_v45  ;;  %v13970_v59 = vpop.eup %8141 }
 0xc34   : > { %v7284_v21 = vadd.f32 %v13967_v8, %v7283_v35  ;;  %8147 = vpow2.f32 %v7194_v50  ;;  %15206 = vst [vmem:[#allocation215_spill] sm:$0xff] %v13970_v59 }
 0xc35   : > { %v7025_v15 = vpop.xlane.xlu2 %7024  ;;  %8149 = vpow2.f32 %v7196_v39 }
 0xc36   : > { %v7090_v30 = vsub.f32 %v15186_v49, %v7025_v15  ;;  %v7091_v44 = vsub.f32 %v15207_v28, %v7025_v15  ;;  %v7092_v14 = vsub.f32 %v15208_v48, %v7025_v15  ;;  %v7285_v10 = vadd.f32 %v13970_v59, %v7284_v21 }
 0xc37   : > { %v7093_v45 = vsub.f32 %v15209_v60, %v7025_v15  ;;  %v15211_v15 = vld [vmem:[#allocation250_spill] sm:$0xff] }
 0xc38   : > { %v13976_v46 = vpop.eup %8143  ;;  %v7198_v7 = vmul.f32 1.442695, %v7090_v30  ;;  %v7200_v57 = vmul.f32 1.442695, %v7091_v44  ;;  %v7202_v50 = vmul.f32 1.442695, %v7092_v14  ;;  %7286 = vadd.xlane.f32.xlu1 %v7285_v10 }
 0xc39   : > { %v13979_v35 = vpop.eup %8145  ;;  %v7204_v48 = vmul.f32 1.442695, %v7093_v45 }
 0xc3a   : > { %8151 = vpow2.f32 %v7198_v7  ;;  %v7288_v49 = vadd.f32 %v13979_v35, %v13976_v46  ;;  %v13983_v28 = vpop.eup %8147 }
 0xc3b   : > { %8153 = vpow2.f32 %v7200_v57  ;;  %v13986_v59 = vpop.eup %8149 }
 0xc3c   : > { %v7289_v21 = vadd.f32 %v13983_v28, %v7288_v49  ;;  %8155 = vpow2.f32 %v7202_v50  ;;  %15210 = vst [vmem:[#allocation216_spill] sm:$0xff] %v13986_v59 }
 0xc3d   : > { %v7030_v39 = vpop.xlane.xlu0 %7029  ;;  %8157 = vpow2.f32 %v7204_v48 }
 0xc3e   : > { %v7094_v60 = vsub.f32 %v15189_v33, %v7030_v39  ;;  %v7095_v30 = vsub.f32 %v15211_v15, %v7030_v39  ;;  %v7096_v44 = vsub.f32 %v13663_v63, %v7030_v39  ;;  %v7290_v14 = vadd.f32 %v13986_v59, %v7289_v21 }
 0xc3f   : > { %v7097_v57 = vsub.f32 %v13782_v34, %v7030_v39  ;;  %v15214_v34 = vld [vmem:[#allocation236_spill] sm:$0xff] }
 0xc40   : > { %v13992_v10 = vpop.eup %8151  ;;  %v7206_v45 = vmul.f32 1.442695, %v7094_v60  ;;  %v7208_v7 = vmul.f32 1.442695, %v7095_v30  ;;  %v7210_v50 = vmul.f32 1.442695, %v7096_v44  ;;  %7291 = vadd.xlane.f32.xlu2 %v7290_v14 }
 0xc41   : > { %v13995_v49 = vpop.eup %8153  ;;  %v7212_v63 = vmul.f32 1.442695, %v7097_v57  ;;  %v15215_v60 = vld [vmem:[#allocation213_spill] sm:$0xff] }
 0xc42   : > { %15212 = vst [vmem:[#allocation217_spill] sm:$0xff] %v13995_v49  ;;  %8159 = vpow2.f32 %v7206_v45  ;;  %v7293_v33 = vadd.f32 %v13995_v49, %v13992_v10  ;;  %v13999_v15 = vpop.eup %8155 }
 0xc43   : > { %8161 = vpow2.f32 %v7208_v7  ;;  %v14002_v59 = vpop.eup %8157 }
 0xc44   : > { %v7294_v21 = vadd.f32 %v13999_v15, %v7293_v33  ;;  %8163 = vpow2.f32 %v7210_v50  ;;  %15213 = vst [vmem:[#allocation218_spill] sm:$0xff] %v14002_v59 }
 0xc45   : > { %v7035_v48 = vpop.xlane.xlu1 %7034  ;;  %8165 = vpow2.f32 %v7212_v63 }
 0xc46   : > { %v7098_v39 = vsub.f32 %v15214_v34, %v7035_v48  ;;  %v7099_v30 = vsub.f32 %v15215_v60, %v7035_v48  ;;  %v7100_v44 = vsub.f32 %v13669_v62, %v7035_v48  ;;  %v7295_v14 = vadd.f32 %v14002_v59, %v7294_v21 }
 0xc47   : > { %v7101_v7 = vsub.f32 %v13790_v9, %v7035_v48  ;;  %v15217_v48 = vld [vmem:[#allocation214_spill] sm:$0xff] }
 0xc48   : > { %v14008_v45 = vpop.eup %8159  ;;  %v7214_v57 = vmul.f32 1.442695, %v7098_v39  ;;  %v7216_v49 = vmul.f32 1.442695, %v7099_v30  ;;  %v7218_v50 = vmul.f32 1.442695, %v7100_v44  ;;  %7296 = vadd.xlane.f32.xlu0 %v7295_v14 }
 0xc49   : > { %v14011_v33 = vpop.eup %8161  ;;  %v7220_v62 = vmul.f32 1.442695, %v7101_v7  ;;  %v15218_v30 = vld [vmem:[#allocation203_spill] sm:$0xff] }
 0xc4a   : > { %15216 = vst [vmem:[#allocation219_spill] sm:$0xff] %v14011_v33  ;;  %8167 = vpow2.f32 %v7214_v57  ;;  %v7298_v34 = vadd.f32 %v14011_v33, %v14008_v45  ;;  %v14015_v60 = vpop.eup %8163 }
 0xc4b   : > { %8169 = vpow2.f32 %v7216_v49  ;;  %v14018_v59 = vpop.eup %8165 }
 0xc4c   : > { %v7299_v21 = vadd.f32 %v14015_v60, %v7298_v34  ;;  %8171 = vpow2.f32 %v7218_v50 }
 0xc4d   : > { %v7040_v63 = vpop.xlane.xlu2 %7039  ;;  %8173 = vpow2.f32 %v7220_v62 }
 0xc4e   : > { %v7102_v9 = vsub.f32 %v15193_v41, %v7040_v63  ;;  %v7103_v39 = vsub.f32 %v15217_v48, %v7040_v63  ;;  %v7104_v44 = vsub.f32 %v15218_v30, %v7040_v63  ;;  %v7105_v14 = vsub.f32 %v13798_v42, %v7040_v63 }
 0xc4f   : > { %v7300_v57 = vadd.f32 %v14018_v59, %v7299_v21 }
 0xc50   : > { %v14025_v33 = vpop.eup %8167  ;;  %v7222_v49 = vmul.f32 1.442695, %v7102_v9  ;;  %v7224_v7 = vmul.f32 1.442695, %v7103_v39  ;;  %v7226_v50 = vmul.f32 1.442695, %v7104_v44 }
 0xc51   : > { %v14027_v34 = vpop.eup %8169  ;;  %7301 = vadd.xlane.f32.xlu1 %v7300_v57  ;;  %v7228_v30 = vmul.f32 1.442695, %v7105_v14 }
 0xc52   : > { %8175 = vpow2.f32 %v7222_v49  ;;  %v7303_v41 = vadd.f32 %v14027_v34, %v14025_v33  ;;  %v14031_v48 = vpop.eup %8171 }
 0xc53   : > { %8177 = vpow2.f32 %v7224_v7  ;;  %v14034_v63 = vpop.eup %8173 }
 0xc54   : > { %v7304_v42 = vadd.f32 %v14031_v48, %v7303_v41  ;;  %8179 = vpow2.f32 %v7226_v50 }
 0xc55   : > { %v7045_v21 = vpop.xlane.xlu0 %7044  ;;  %8181 = vpow2.f32 %v7228_v30 }
 0xc56   : > { %v7106_v62 = vsub.f32 %v15194_v4, %v7045_v21  ;;  %v7107_v9 = vsub.f32 %v13585_v58, %v7045_v21  ;;  %v7108_v39 = vsub.f32 %v13679_v40, %v7045_v21  ;;  %v7109_v44 = vsub.f32 %v13809_v47, %v7045_v21 }
 0xc57   : > { %v7305_v57 = vadd.f32 %v14034_v63, %v7304_v42 }
 0xc58   : > { %v14041_v49 = vpop.eup %8175  ;;  %v7230_v14 = vmul.f32 1.442695, %v7106_v62  ;;  %v7232_v7 = vmul.f32 1.442695, %v7107_v9  ;;  %v7234_v50 = vmul.f32 1.442695, %v7108_v39 }
 0xc59   : > { %15219 = vst [vmem:[#allocation220_spill] sm:$0xff] %v14041_v49  ;;  %v14043_v41 = vpop.eup %8177  ;;  %7306 = vadd.xlane.f32.xlu2 %v7305_v57  ;;  %v7236_v40 = vmul.f32 1.442695, %v7109_v44 }
 0xc5a   : > { %15220 = vst [vmem:[#allocation222_spill] sm:$0xff] %v14043_v41  ;;  %8183 = vpow2.f32 %v7230_v14  ;;  %v7308_v4 = vadd.f32 %v14043_v41, %v14041_v49  ;;  %v14047_v58 = vpop.eup %8179 }
 0xc5b   : > { %15221 = vst [vmem:[#allocation205_spill] sm:$0xff] %v14047_v58  ;;  %8185 = vpow2.f32 %v7232_v7  ;;  %v14050_v30 = vpop.eup %8181 }
 0xc5c   : > { %v7309_v47 = vadd.f32 %v14047_v58, %v7308_v4  ;;  %15222 = vst [vmem:[#allocation223_spill] sm:$0xff] %v14050_v30  ;;  %8187 = vpow2.f32 %v7234_v50 }
 0xc5d   : > { %8189 = vpow2.f32 %v7236_v40 }
 0xc5e   : > { %v7310_v42 = vadd.f32 %v14050_v30, %v7309_v47 }
 0xc60   : > { %v14053_v21 = vpop.eup %8183  ;;  %7311 = vadd.xlane.f32.xlu0 %v7310_v42 }
 0xc61   : > { %15223 = vst [vmem:[#allocation239_spill] sm:$0xff] %v14053_v21  ;;  %v14055_v62 = vpop.eup %8185 }
 0xc62   : > { %15224 = vst [vmem:[#allocation224_spill] sm:$0xff] %v14055_v62  ;;  %v7313_v9 = vadd.f32 %v14055_v62, %v14053_v21  ;;  %v14059_v39 = vpop.eup %8187 }
 0xc63   : > { %15225 = vst [vmem:[#allocation240_spill] sm:$0xff] %v14059_v39  ;;  %v7242_v57 = vpop.xlane.xlu1 %7241  ;;  %v14062_v14 = vpop.eup %8189 }
 0xc64   : > { %v7314_v44 = vadd.f32 %v14059_v39, %v7313_v9  ;;  %15226 = vst [vmem:[#allocation225_spill] sm:$0xff] %v14062_v14  ;;  %8191 = vrcp.f32 %v7242_v57  ;;  %v7329_v42 = vand.u32 2147483648, %v7242_v57  ;;  %v7327_v62 = vand.u32 2147483647, %v7242_v57 }
 0xc65   : > { %vm7323_vm1 = vweird.f32 %v7242_v57 }
 0xc66   : > { %v7315_v7 = vadd.f32 %v14062_v14, %v7314_v44  ;;  %v7330_v9 = vor.u32 1.1754944e-38, %v7329_v42  ;;  %vm7328_vm15 = vcmp.eq.f32.partialorder %v7327_v62, 8.507059e+37 }
 0xc68   : > { %7316 = vadd.xlane.f32.xlu1 %v7315_v7 }
 0xc6a   : > { %v8192_v50 = vpop.eup %8191 }
 0xc6b   : > { %v7319_v4 = vmul.f32 %v8192_v50, %v7242_v57  ;;  %v7247_v40 = vpop.xlane.xlu2 %7246  ;;  %vm7324_vm0 = vweird.f32 %v8192_v50 }
 0xc6c   : > { %8193 = vrcp.f32 %v7247_v40  ;;  %vm7325_vm2 = vmor %vm7323_vm1, %vm7324_vm0  ;;  %v7347_v49 = vand.u32 2147483648, %v7247_v40  ;;  %v7345_v62 = vand.u32 2147483647, %v7247_v40  ;;  %vm7341_vm4 = vweird.f32 %v7247_v40 }
 0xc6d   : > { %v7320_v47 = vsub.f32 1.0, %v7319_v4 }
 0xc6e   : > { %vm7346_vm6 = vcmp.eq.f32.partialorder %v7345_v62, 8.507059e+37 }
 0xc6f   : > { %v7321_v30 = vmul.f32 %v8192_v50, %v7320_v47 }
 0xc71   : > { %v7322_v21 = vadd.f32 %v8192_v50, %v7321_v30 }
 0xc72   : > { %v8194_v58 = vpop.eup %8193 }
 0xc73   : > { %v7326_v39 = vsel %vm7325_vm2, %v8192_v50, %v7322_v21  ;;  %v7337_v44 = vmul.f32 %v8194_v58, %v7247_v40  ;;  %v7252_v7 = vpop.xlane.xlu0 %7251  ;;  %vm7342_vm3 = vweird.f32 %v8194_v58 }
 0xc74   : > { %v7331_v14 = vsel %vm7328_vm15, %v7330_v9, %v7326_v39  ;;  %8195 = vrcp.f32 %v7252_v7  ;;  %vm7343_vm5 = vmor %vm7341_vm4, %vm7342_vm3  ;;  %v7365_v40 = vand.u32 2147483648, %v7252_v7  ;;  %vm7359_vm8 = vweird.f32 %v7252_v7 }
 0xc75   : > { %v7332_v4 = vmul.f32 %v13816_v13, %v7331_v14  ;;  %v7333_v47 = vmul.f32 %v13819_v53, %v7331_v14  ;;  %v7334_v30 = vmul.f32 %v13823_v37, %v7331_v14  ;;  %v7335_v57 = vmul.f32 %v13826_v36, %v7331_v14 }
 0xc76   : > { %v7338_v41 = vsub.f32 1.0, %v7337_v44  ;;  %v7348_v13 = vor.u32 1.1754944e-38, %v7347_v49 }
 0xc77   : > { %7606 = vst [vmem:[%s8331_s5 + $0x200] sm:$0xff] %v7332_v4 }
 0xc78   : > { %7607 = vst [vmem:[%s8331_s5 + $0x208] sm:$0xff] %v7333_v47  ;;  %v7339_v21 = vmul.f32 %v8194_v58, %v7338_v41  ;;  %v7363_v47 = vand.u32 2147483647, %v7252_v7 }
 0xc79   : > { %7608 = vst [vmem:[%s8331_s5 + $0x210] sm:$0xff] %v7334_v30 }
 0xc7a   : > { %v8196_v50 = vpop.eup %8195  ;;  %7609 = vst [vmem:[%s8331_s5 + $0x218] sm:$0xff] %v7335_v57  ;;  %v7340_v39 = vadd.f32 %v8194_v58, %v7339_v21  ;;  %vm7364_vm10 = vcmp.eq.f32.partialorder %v7363_v47, 8.507059e+37 }
 0xc7b   : > { %v7355_v53 = vmul.f32 %v8196_v50, %v7252_v7  ;;  %v7257_v37 = vpop.xlane.xlu1 %7256  ;;  %vm7360_vm7 = vweird.f32 %v8196_v50 }
 0xc7c   : > { %v7344_v42 = vsel %vm7343_vm5, %v8194_v58, %v7340_v39  ;;  %8197 = vrcp.f32 %v7257_v37  ;;  %vm7361_vm9 = vmor %vm7359_vm8, %vm7360_vm7  ;;  %vm7377_vm12 = vweird.f32 %v7257_v37 }
 0xc7d   : > { %v7349_v36 = vsel %vm7346_vm6, %v7348_v13, %v7344_v42  ;;  %v7356_v14 = vsub.f32 1.0, %v7355_v53  ;;  %v7383_v53 = vand.u32 2147483648, %v7257_v37  ;;  %v7381_v42 = vand.u32 2147483647, %v7257_v37 }
 0xc7e   : > { %v7350_v41 = vmul.f32 %v13832_v1, %v7349_v36  ;;  %v7351_v9 = vmul.f32 %v13835_v5, %v7349_v36  ;;  %v7352_v44 = vmul.f32 %v13839_v23, %v7349_v36  ;;  %v7353_v49 = vmul.f32 %v13842_v3, %v7349_v36 }
 0xc7f   : > { %v7357_v4 = vmul.f32 %v8196_v50, %v7356_v14  ;;  %v7366_v1 = vor.u32 1.1754944e-38, %v7365_v40  ;;  %vm7382_vm14 = vcmp.eq.f32.partialorder %v7381_v42, 8.507059e+37 }
 0xc80   : > { %7610 = vst [vmem:[%s8331_s5 + $0x220] sm:$0xff] %v7350_v41 }
 0xc81   : > { %7611 = vst [vmem:[%s8331_s5 + $0x228] sm:$0xff] %v7351_v9  ;;  %v7358_v58 = vadd.f32 %v8196_v50, %v7357_v4 }
 0xc82   : > { %v8198_v30 = vpop.eup %8197  ;;  %7612 = vst [vmem:[%s8331_s5 + $0x230] sm:$0xff] %v7352_v44 }
 0xc83   : > { %7613 = vst [vmem:[%s8331_s5 + $0x238] sm:$0xff] %v7353_v49  ;;  %v7362_v5 = vsel %vm7361_vm9, %v8196_v50, %v7358_v58  ;;  %v7373_v23 = vmul.f32 %v8198_v30, %v7257_v37  ;;  %v7262_v57 = vpop.xlane.xlu2 %7261  ;;  %vm7378_vm11 = vweird.f32 %v8198_v30 }
 0xc84   : > { %v7367_v3 = vsel %vm7364_vm10, %v7366_v1, %v7362_v5  ;;  %8199 = vrcp.f32 %v7262_v57  ;;  %vm7379_vm13 = vmor %vm7377_vm12, %vm7378_vm11  ;;  %v7401_v37 = vand.u32 2147483648, %v7262_v57  ;;  %v7399_v58 = vand.u32 2147483647, %v7262_v57 }
 0xc85   : > { %v7368_v21 = vmul.f32 %v13848_v55, %v7367_v3  ;;  %v7369_v62 = vmul.f32 %v13851_v61, %v7367_v3  ;;  %v7370_v7 = vmul.f32 %v13855_v17, %v7367_v3  ;;  %v7371_v39 = vmul.f32 %v13858_v19, %v7367_v3 }
 0xc86   : > { %v7374_v13 = vsub.f32 1.0, %v7373_v23  ;;  %v7384_v55 = vor.u32 1.1754944e-38, %v7383_v53  ;;  %vm7395_vm1 = vweird.f32 %v7262_v57  ;;  %vm7400_vm15 = vcmp.eq.f32.partialorder %v7399_v58, 8.507059e+37 }
 0xc87   : > { %7614 = vst [vmem:[%s8331_s5 + $0x240] sm:$0xff] %v7368_v21 }
 0xc88   : > { %7615 = vst [vmem:[%s8331_s5 + $0x248] sm:$0xff] %v7369_v62  ;;  %v7375_v50 = vmul.f32 %v8198_v30, %v7374_v13 }
 0xc89   : > { %7616 = vst [vmem:[%s8331_s5 + $0x250] sm:$0xff] %v7370_v7 }
 0xc8a   : > { %v8200_v36 = vpop.eup %8199  ;;  %7617 = vst [vmem:[%s8331_s5 + $0x258] sm:$0xff] %v7371_v39  ;;  %v7376_v14 = vadd.f32 %v8198_v30, %v7375_v50 }
 0xc8b   : > { %v7391_v61 = vmul.f32 %v8200_v36, %v7262_v57  ;;  %v7267_v17 = vpop.xlane.xlu0 %7266  ;;  %vm7396_vm0 = vweird.f32 %v8200_v36 }
 0xc8c   : > { %v7380_v41 = vsel %vm7379_vm13, %v8198_v30, %v7376_v14  ;;  %8201 = vrcp.f32 %v7267_v17  ;;  %vm7397_vm2 = vmor %vm7395_vm1, %vm7396_vm0  ;;  %v7419_v7 = vand.u32 2147483648, %v7267_v17  ;;  %v7417_v13 = vand.u32 2147483647, %v7267_v17 }
 0xc8d   : > { %v7385_v19 = vsel %vm7382_vm14, %v7384_v55, %v7380_v41  ;;  %v7392_v9 = vsub.f32 1.0, %v7391_v61  ;;  %vm7413_vm4 = vweird.f32 %v7267_v17 }
 0xc8e   : > { %v7386_v44 = vmul.f32 %v13864_v43, %v7385_v19  ;;  %v7387_v40 = vmul.f32 %v13867_v2, %v7385_v19  ;;  %v7388_v49 = vmul.f32 %v13871_v38, %v7385_v19  ;;  %v7389_v4 = vmul.f32 %v13874_v54, %v7385_v19 }
 0xc8f   : > { %v7393_v47 = vmul.f32 %v8200_v36, %v7392_v9  ;;  %v7402_v43 = vor.u32 1.1754944e-38, %v7401_v37  ;;  %vm7418_vm6 = vcmp.eq.f32.partialorder %v7417_v13, 8.507059e+37 }
 0xc90   : > { %7618 = vst [vmem:[%s8331_s5 + $0x260] sm:$0xff] %v7386_v44 }
 0xc91   : > { %7619 = vst [vmem:[%s8331_s5 + $0x268] sm:$0xff] %v7387_v40  ;;  %v7394_v30 = vadd.f32 %v8200_v36, %v7393_v47 }
 0xc92   : > { %v8202_v1 = vpop.eup %8201  ;;  %7620 = vst [vmem:[%s8331_s5 + $0x270] sm:$0xff] %v7388_v49 }
 0xc93   : > { %7621 = vst [vmem:[%s8331_s5 + $0x278] sm:$0xff] %v7389_v4  ;;  %v7398_v2 = vsel %vm7397_vm2, %v8200_v36, %v7394_v30  ;;  %v7409_v38 = vmul.f32 %v8202_v1, %v7267_v17  ;;  %v7272_v5 = vpop.xlane.xlu1 %7271  ;;  %vm7414_vm3 = vweird.f32 %v8202_v1 }
 0xc94   : > { %v7403_v54 = vsel %vm7400_vm15, %v7402_v43, %v7398_v2  ;;  %8203 = vrcp.f32 %v7272_v5  ;;  %vm7415_vm5 = vmor %vm7413_vm4, %vm7414_vm3  ;;  %v7437_v17 = vand.u32 2147483648, %v7272_v5  ;;  %v7435_v9 = vand.u32 2147483647, %v7272_v5 }
 0xc95   : > { %v7404_v23 = vmul.f32 %v13880_v20, %v7403_v54  ;;  %v7405_v3 = vmul.f32 %v13883_v6, %v7403_v54  ;;  %v7406_v57 = vmul.f32 %v13887_v25, %v7403_v54  ;;  %v7407_v21 = vmul.f32 %v13890_v16, %v7403_v54 }
 0xc96   : > { %v7410_v62 = vsub.f32 1.0, %v7409_v38  ;;  %v7420_v20 = vor.u32 1.1754944e-38, %v7419_v7  ;;  %vm7431_vm8 = vweird.f32 %v7272_v5  ;;  %vm7436_vm10 = vcmp.eq.f32.partialorder %v7435_v9, 8.507059e+37 }
 0xc97   : > { %7622 = vst [vmem:[%s8331_s5 + $0x280] sm:$0xff] %v7404_v23 }
 0xc98   : > { %7623 = vst [vmem:[%s8331_s5 + $0x288] sm:$0xff] %v7405_v3  ;;  %v7411_v39 = vmul.f32 %v8202_v1, %v7410_v62 }
 0xc99   : > { %7624 = vst [vmem:[%s8331_s5 + $0x290] sm:$0xff] %v7406_v57 }
 0xc9a   : > { %v8204_v53 = vpop.eup %8203  ;;  %7625 = vst [vmem:[%s8331_s5 + $0x298] sm:$0xff] %v7407_v21  ;;  %v7412_v50 = vadd.f32 %v8202_v1, %v7411_v39 }
 0xc9b   : > { %v7427_v6 = vmul.f32 %v8204_v53, %v7272_v5  ;;  %v7277_v25 = vpop.xlane.xlu2 %7276  ;;  %vm7432_vm7 = vweird.f32 %v8204_v53 }
 0xc9c   : > { %v7416_v42 = vsel %vm7415_vm5, %v8202_v1, %v7412_v50  ;;  %8205 = vrcp.f32 %v7277_v25  ;;  %vm7433_vm9 = vmor %vm7431_vm8, %vm7432_vm7  ;;  %v7455_v1 = vand.u32 2147483648, %v7277_v25  ;;  %v7453_v2 = vand.u32 2147483647, %v7277_v25 }
 0xc9d   : > { %v7421_v16 = vsel %vm7418_vm6, %v7420_v20, %v7416_v42  ;;  %v7428_v36 = vsub.f32 1.0, %v7427_v6  ;;  %vm7449_vm12 = vweird.f32 %v7277_v25 }
 0xc9e   : > { %v7422_v14 = vmul.f32 %v13896_v0, %v7421_v16  ;;  %v7423_v55 = vmul.f32 %v13899_v52, %v7421_v16  ;;  %v7424_v61 = vmul.f32 %v13903_v29, %v7421_v16  ;;  %v7425_v41 = vmul.f32 %v13906_v11, %v7421_v16 }
 0xc9f   : > { %v7429_v19 = vmul.f32 %v8204_v53, %v7428_v36  ;;  %v7438_v0 = vor.u32 1.1754944e-38, %v7437_v17  ;;  %vm7454_vm14 = vcmp.eq.f32.partialorder %v7453_v2, 8.507059e+37  ;;  %v15228_v36 = vld [vmem:[#allocation210_spill] sm:$0xff] }
 0xca0   : > { %7626 = vst [vmem:[%s8331_s5 + $0x2a0] sm:$0xff] %v7422_v14 }
 0xca1   : > { %7627 = vst [vmem:[%s8331_s5 + $0x2a8] sm:$0xff] %v7423_v55  ;;  %v7430_v44 = vadd.f32 %v8204_v53, %v7429_v19 }
 0xca2   : > { %v8206_v40 = vpop.eup %8205  ;;  %7628 = vst [vmem:[%s8331_s5 + $0x2b0] sm:$0xff] %v7424_v61 }
 0xca3   : > { %7629 = vst [vmem:[%s8331_s5 + $0x2b8] sm:$0xff] %v7425_v41  ;;  %v7434_v52 = vsel %vm7433_vm9, %v8204_v53, %v7430_v44  ;;  %v7445_v29 = vmul.f32 %v8206_v40, %v7277_v25  ;;  %v7282_v49 = vpop.xlane.xlu0 %7281  ;;  %vm7450_vm11 = vweird.f32 %v8206_v40  ;;  %v15227_v25 = vld [vmem:[#allocation209_spill] sm:$0xff] }
 0xca4   : > { %v7439_v11 = vsel %vm7436_vm10, %v7438_v0, %v7434_v52  ;;  %8207 = vrcp.f32 %v7282_v49  ;;  %vm7451_vm13 = vmor %vm7449_vm12, %vm7450_vm11  ;;  %v7473_v62 = vand.u32 2147483648, %v7282_v49  ;;  %v7471_v13 = vand.u32 2147483647, %v7282_v49 }
 0xca5   : > { %v7440_v37 = vmul.f32 %v13912_v31, %v7439_v11  ;;  %v7441_v4 = vmul.f32 %v13915_v22, %v7439_v11  ;;  %v7442_v47 = vmul.f32 %v13919_v24, %v7439_v11  ;;  %v7443_v58 = vmul.f32 %v13922_v56, %v7439_v11  ;;  %v15230_v11 = vld [vmem:[#allocation212_spill] sm:$0xff] }
 0xca6   : > { %v7446_v30 = vsub.f32 1.0, %v7445_v29  ;;  %v7456_v31 = vor.u32 1.1754944e-38, %v7455_v1  ;;  %vm7467_vm1 = vweird.f32 %v7282_v49  ;;  %vm7472_vm15 = vcmp.eq.f32.partialorder %v7471_v13, 8.507059e+37  ;;  %v15229_v29 = vld [vmem:[#allocation211_spill] sm:$0xff] }
 0xca7   : > { %7630 = vst [vmem:[%s8331_s5 + $0x2c0] sm:$0xff] %v7440_v37 }
 0xca8   : > { %7631 = vst [vmem:[%s8331_s5 + $0x2c8] sm:$0xff] %v7441_v4  ;;  %v7447_v43 = vmul.f32 %v8206_v40, %v7446_v30 }
 0xca9   : > { %7632 = vst [vmem:[%s8331_s5 + $0x2d0] sm:$0xff] %v7442_v47 }
 0xcaa   : > { %v8208_v38 = vpop.eup %8207  ;;  %7633 = vst [vmem:[%s8331_s5 + $0x2d8] sm:$0xff] %v7443_v58  ;;  %v7448_v5 = vadd.f32 %v8206_v40, %v7447_v43  ;;  %v15231_v58 = vld [vmem:[#allocation215_spill] sm:$0xff] }
 0xcab   : > { %v7463_v22 = vmul.f32 %v8208_v38, %v7282_v49  ;;  %v7287_v24 = vpop.xlane.xlu1 %7286  ;;  %vm7468_vm0 = vweird.f32 %v8208_v38 }
 0xcac   : > { %v7452_v54 = vsel %vm7451_vm13, %v8206_v40, %v7448_v5  ;;  %8209 = vrcp.f32 %v7287_v24  ;;  %vm7469_vm2 = vmor %vm7467_vm1, %vm7468_vm0  ;;  %v7491_v61 = vand.u32 2147483648, %v7287_v24  ;;  %v7489_v41 = vand.u32 2147483647, %v7287_v24 }
 0xcad   : > { %v7457_v56 = vsel %vm7454_vm14, %v7456_v31, %v7452_v54  ;;  %v7464_v23 = vsub.f32 1.0, %v7463_v22  ;;  %vm7485_vm4 = vweird.f32 %v7287_v24 }
 0xcae   : > { %v7458_v3 = vmul.f32 %v13928_v12, %v7457_v56  ;;  %v7459_v57 = vmul.f32 %v13931_v51, %v7457_v56  ;;  %v7460_v21 = vmul.f32 %v13935_v18, %v7457_v56  ;;  %v7461_v7 = vmul.f32 %v13938_v26, %v7457_v56 }
 0xcaf   : > { %v7465_v39 = vmul.f32 %v8208_v38, %v7464_v23  ;;  %v7474_v12 = vor.u32 1.1754944e-38, %v7473_v62  ;;  %vm7490_vm6 = vcmp.eq.f32.partialorder %v7489_v41, 8.507059e+37 }
 0xcb0   : > { %7634 = vst [vmem:[%s8331_s5 + $0x2e0] sm:$0xff] %v7458_v3  ;;  %v15232_v3 = vld [vmem:[#allocation216_spill] sm:$0xff] }
 0xcb1   : > { %7635 = vst [vmem:[%s8331_s5 + $0x2e8] sm:$0xff] %v7459_v57  ;;  %v7466_v53 = vadd.f32 %v8208_v38, %v7465_v39 }
 0xcb2   : > { %v8210_v50 = vpop.eup %8209  ;;  %7636 = vst [vmem:[%s8331_s5 + $0x2f0] sm:$0xff] %v7460_v21 }
 0xcb3   : > { %7637 = vst [vmem:[%s8331_s5 + $0x2f8] sm:$0xff] %v7461_v7  ;;  %v7470_v51 = vsel %vm7469_vm2, %v8208_v38, %v7466_v53  ;;  %v7481_v18 = vmul.f32 %v8210_v50, %v7287_v24  ;;  %v7292_v20 = vpop.xlane.xlu2 %7291  ;;  %vm7486_vm3 = vweird.f32 %v8210_v50 }
 0xcb4   : > { %v7475_v26 = vsel %vm7472_vm15, %v7474_v12, %v7470_v51  ;;  %8211 = vrcp.f32 %v7292_v20  ;;  %vm7487_vm5 = vmor %vm7485_vm4, %vm7486_vm3  ;;  %v7509_v47 = vand.u32 2147483648, %v7292_v20  ;;  %v7507_v43 = vand.u32 2147483647, %v7292_v20 }
 0xcb5   : > { %v7476_v6 = vmul.f32 %v13944_v32, %v7475_v26  ;;  %v7477_v42 = vmul.f32 %v15227_v25, %v7475_v26  ;;  %v7478_v16 = vmul.f32 %v13951_v27, %v7475_v26  ;;  %v7479_v14 = vmul.f32 %v15228_v36, %v7475_v26 }
 0xcb6   : > { %v7482_v55 = vsub.f32 1.0, %v7481_v18  ;;  %v7492_v32 = vor.u32 1.1754944e-38, %v7491_v61  ;;  %vm7503_vm8 = vweird.f32 %v7292_v20  ;;  %v7510_v5 = vor.u32 1.1754944e-38, %v7509_v47 }
 0xcb7   : > { %7638 = vst [vmem:[%s8331_s5 + $0x300] sm:$0xff] %v7476_v6  ;;  %vm7508_vm10 = vcmp.eq.f32.partialorder %v7507_v43, 8.507059e+37 }
 0xcb8   : > { %7639 = vst [vmem:[%s8331_s5 + $0x308] sm:$0xff] %v7477_v42  ;;  %v7483_v17 = vmul.f32 %v8210_v50, %v7482_v55  ;;  %v15234_v42 = vld [vmem:[#allocation218_spill] sm:$0xff] }
 0xcb9   : > { %7640 = vst [vmem:[%s8331_s5 + $0x310] sm:$0xff] %v7478_v16 }
 0xcba   : > { %v8212_v19 = vpop.eup %8211  ;;  %7641 = vst [vmem:[%s8331_s5 + $0x318] sm:$0xff] %v7479_v14  ;;  %v7484_v9 = vadd.f32 %v8210_v50, %v7483_v17 }
 0xcbb   : > { %v7499_v44 = vmul.f32 %v8212_v19, %v7292_v20  ;;  %v7297_v27 = vpop.xlane.xlu0 %7296  ;;  %vm7504_vm7 = vweird.f32 %v8212_v19  ;;  %v15233_v20 = vld [vmem:[#allocation217_spill] sm:$0xff] }
 0xcbc   : > { %v7488_v40 = vsel %vm7487_vm5, %v8210_v50, %v7484_v9  ;;  %8213 = vrcp.f32 %v7297_v27  ;;  %vm7505_vm9 = vmor %vm7503_vm8, %vm7504_vm7  ;;  %v7527_v62 = vand.u32 2147483648, %v7297_v27  ;;  %v7525_v39 = vand.u32 2147483647, %v7297_v27 }
 0xcbd   : > { %v7493_v0 = vsel %vm7490_vm6, %v7492_v32, %v7488_v40  ;;  %v7500_v52 = vsub.f32 1.0, %v7499_v44  ;;  %vm7521_vm12 = vweird.f32 %v7297_v27  ;;  %v15235_v32 = vld [vmem:[#allocation219_spill] sm:$0xff] }
 0xcbe   : > { %v7494_v49 = vmul.f32 %v15229_v29, %v7493_v0  ;;  %v7495_v37 = vmul.f32 %v15230_v11, %v7493_v0  ;;  %v7496_v4 = vmul.f32 %v13967_v8, %v7493_v0  ;;  %v7497_v30 = vmul.f32 %v15231_v58, %v7493_v0 }
 0xcbf   : > { %v7501_v1 = vmul.f32 %v8212_v19, %v7500_v52  ;;  %vm7526_vm14 = vcmp.eq.f32.partialorder %v7525_v39, 8.507059e+37 }
 0xcc0   : > { %7642 = vst [vmem:[%s8331_s5 + $0x320] sm:$0xff] %v7494_v49 }
 0xcc1   : > { %7643 = vst [vmem:[%s8331_s5 + $0x328] sm:$0xff] %v7495_v37  ;;  %v7502_v2 = vadd.f32 %v8212_v19, %v7501_v1 }
 0xcc2   : > { %v8214_v38 = vpop.eup %8213  ;;  %7644 = vst [vmem:[%s8331_s5 + $0x330] sm:$0xff] %v7496_v4 }
 0xcc3   : > { %7645 = vst [vmem:[%s8331_s5 + $0x338] sm:$0xff] %v7497_v30  ;;  %v7506_v31 = vsel %vm7505_vm9, %v8212_v19, %v7502_v2  ;;  %v7517_v8 = vmul.f32 %v8214_v38, %v7297_v27  ;;  %vm7522_vm11 = vweird.f32 %v8214_v38 }
 0xcc4   : > { %v7302_v22 = vpop.xlane.xlu1 %7301  ;;  %v7511_v24 = vsel %vm7508_vm10, %v7510_v5, %v7506_v31  ;;  %vm7523_vm13 = vmor %vm7521_vm12, %vm7522_vm11 }
 0xcc5   : > { %8215 = vrcp.f32 %v7302_v22  ;;  %v7512_v54 = vmul.f32 %v13976_v46, %v7511_v24  ;;  %v7513_v56 = vmul.f32 %v13979_v35, %v7511_v24  ;;  %v7514_v23 = vmul.f32 %v13983_v28, %v7511_v24 }
 0xcc6   : > { %v7515_v57 = vmul.f32 %v15232_v3, %v7511_v24  ;;  %v7518_v21 = vsub.f32 1.0, %v7517_v8  ;;  %v7528_v46 = vor.u32 1.1754944e-38, %v7527_v62  ;;  %v7545_v25 = vand.u32 2147483648, %v7302_v22 }
 0xcc7   : > { %7646 = vst [vmem:[%s8331_s5 + $0x340] sm:$0xff] %v7512_v54  ;;  %v7543_v14 = vand.u32 2147483647, %v7302_v22  ;;  %vm7539_vm1 = vweird.f32 %v7302_v22  ;;  %v15236_v54 = vld [vmem:[#allocation220_spill] sm:$0xff] }
 0xcc8   : > { %7647 = vst [vmem:[%s8331_s5 + $0x348] sm:$0xff] %v7513_v56  ;;  %v7519_v7 = vmul.f32 %v8214_v38, %v7518_v21 }
 0xcc9   : > { %7648 = vst [vmem:[%s8331_s5 + $0x350] sm:$0xff] %v7514_v23  ;;  %vm7544_vm15 = vcmp.eq.f32.partialorder %v7543_v14, 8.507059e+37  ;;  %v15237_v23 = vld [vmem:[#allocation222_spill] sm:$0xff] }
 0xcca   : > { %7649 = vst [vmem:[%s8331_s5 + $0x358] sm:$0xff] %v7515_v57  ;;  %v7520_v53 = vadd.f32 %v8214_v38, %v7519_v7  ;;  %v15238_v57 = vld [vmem:[#allocation205_spill] sm:$0xff]  ;;  %v15239_v7 = vld [vmem:[#allocation223_spill] sm:$0xff] }
 0xccb   : > { %v8216_v13 = vpop.eup %8215 }
 0xccc   : > { %v7535_v35 = vmul.f32 %v8216_v13, %v7302_v22  ;;  %v7307_v28 = vpop.xlane.xlu2 %7306  ;;  %v7524_v50 = vsel %vm7523_vm13, %v8214_v38, %v7520_v53  ;;  %vm7540_vm0 = vweird.f32 %v8216_v13 }
 0xccd   : > { %8217 = vrcp.f32 %v7307_v28  ;;  %v7529_v12 = vsel %vm7526_vm14, %v7528_v46, %v7524_v50  ;;  %vm7541_vm2 = vmor %vm7539_vm1, %vm7540_vm0  ;;  %v7563_v52 = vand.u32 2147483648, %v7307_v28  ;;  %v7561_v49 = vand.u32 2147483647, %v7307_v28 }
 0xcce   : > { %v7536_v51 = vsub.f32 1.0, %v7535_v35  ;;  %v7530_v18 = vmul.f32 %v13992_v10, %v7529_v12  ;;  %v7531_v26 = vmul.f32 %v15233_v20, %v7529_v12  ;;  %v7532_v6 = vmul.f32 %v13999_v15, %v7529_v12 }
 0xccf   : > { %v7533_v16 = vmul.f32 %v15234_v42, %v7529_v12  ;;  %v7546_v10 = vor.u32 1.1754944e-38, %v7545_v25  ;;  %vm7557_vm4 = vweird.f32 %v7307_v28  ;;  %v7564_v47 = vor.u32 1.1754944e-38, %v7563_v52  ;;  %v15240_v12 = vld [vmem:[#allocation239_spill] sm:$0xff]  ;;  %v15243_v25 = vld [vmem:[#allocation225_spill] sm:$0xff] }
 0xcd0   : > { %v7537_v36 = vmul.f32 %v8216_v13, %v7536_v51  ;;  %7650 = vst [vmem:[%s8331_s5 + $0x360] sm:$0xff] %v7530_v18  ;;  %vm7562_vm6 = vcmp.eq.f32.partialorder %v7561_v49, 8.507059e+37  ;;  %v15241_v18 = vld [vmem:[#allocation224_spill] sm:$0xff] }
 0xcd1   : > { %7651 = vst [vmem:[%s8331_s5 + $0x368] sm:$0xff] %v7531_v26  ;;  %v15242_v26 = vld [vmem:[#allocation240_spill] sm:$0xff] }
 0xcd2   : > { %v7538_v55 = vadd.f32 %v8216_v13, %v7537_v36  ;;  %7652 = vst [vmem:[%s8331_s5 + $0x370] sm:$0xff] %v7532_v6 }
 0xcd3   : > { %v8218_v61 = vpop.eup %8217  ;;  %v7312_v17 = vpop.xlane.xlu0 %7311  ;;  %7653 = vst [vmem:[%s8331_s5 + $0x378] sm:$0xff] %v7533_v16 }
 0xcd4   : > { %v7542_v41 = vsel %vm7541_vm2, %v8216_v13, %v7538_v55  ;;  %v7553_v15 = vmul.f32 %v8218_v61, %v7307_v28  ;;  %8219 = vrcp.f32 %v7312_v17  ;;  %vm7558_vm3 = vweird.f32 %v8218_v61 }
 0xcd5   : > { %v7547_v19 = vsel %vm7544_vm15, %v7546_v10, %v7542_v41  ;;  %vm7559_vm5 = vmor %vm7557_vm4, %vm7558_vm3  ;;  %v7581_v2 = vand.u32 2147483648, %v7312_v17  ;;  %v7579_v31 = vand.u32 2147483647, %v7312_v17  ;;  %vm7575_vm8 = vweird.f32 %v7312_v17 }
 0xcd6   : > { %v7548_v9 = vmul.f32 %v14008_v45, %v7547_v19  ;;  %v7549_v44 = vmul.f32 %v15235_v32, %v7547_v19  ;;  %v7550_v27 = vmul.f32 %v14015_v60, %v7547_v19  ;;  %v7551_v40 = vmul.f32 %v14018_v59, %v7547_v19 }
 0xcd7   : > { %v7554_v0 = vsub.f32 1.0, %v7553_v15  ;;  %vm7580_vm10 = vcmp.eq.f32.partialorder %v7579_v31, 8.507059e+37 }
 0xcd8   : > { %7654 = vst [vmem:[%s8331_s5 + $0x380] sm:$0xff] %v7548_v9 }
 0xcd9   : > { %7655 = vst [vmem:[%s8331_s5 + $0x388] sm:$0xff] %v7549_v44  ;;  %v7555_v29 = vmul.f32 %v8218_v61, %v7554_v0 }
 0xcda   : > { %v8220_v11 = vpop.eup %8219  ;;  %7656 = vst [vmem:[%s8331_s5 + $0x390] sm:$0xff] %v7550_v27 }
 0xcdb   : > { %7657 = vst [vmem:[%s8331_s5 + $0x398] sm:$0xff] %v7551_v40  ;;  %v7556_v37 = vadd.f32 %v8218_v61, %v7555_v29  ;;  %v7571_v4 = vmul.f32 %v8220_v11, %v7312_v17  ;;  %v7317_v45 = vpop.xlane.xlu1 %7316  ;;  %vm7576_vm7 = vweird.f32 %v8220_v11 }
 0xcdc   : > { %8221 = vrcp.f32 %v7317_v45  ;;  %vm7577_vm9 = vmor %vm7575_vm8, %vm7576_vm7  ;;  %v7599_v62 = vand.u32 2147483648, %v7317_v45  ;;  %v7597_v53 = vand.u32 2147483647, %v7317_v45  ;;  %vm7593_vm12 = vweird.f32 %v7317_v45 }
 0xcdd   : > { %v7560_v59 = vsel %vm7559_vm5, %v8218_v61, %v7556_v37  ;;  %v7572_v60 = vsub.f32 1.0, %v7571_v4 }
 0xcde   : > { %v7565_v58 = vsel %vm7562_vm6, %v7564_v47, %v7560_v59  ;;  %v7600_v35 = vor.u32 1.1754944e-38, %v7599_v62  ;;  %vm7598_vm14 = vcmp.eq.f32.partialorder %v7597_v53, 8.507059e+37 }
 0xcdf   : > { %v7566_v30 = vmul.f32 %v14025_v33, %v7565_v58  ;;  %v7567_v1 = vmul.f32 %v14027_v34, %v7565_v58  ;;  %v7568_v43 = vmul.f32 %v14031_v48, %v7565_v58  ;;  %v7569_v38 = vmul.f32 %v14034_v63, %v7565_v58 }
 0xce0   : > { %v7573_v5 = vmul.f32 %v8220_v11, %v7572_v60  ;;  %v7582_v33 = vor.u32 1.1754944e-38, %v7581_v2 }
 0xce1   : > { %7658 = vst [vmem:[%s8331_s5 + $0x3a0] sm:$0xff] %v7566_v30 }
 0xce2   : > { %v8222_v8 = vpop.eup %8221  ;;  %7659 = vst [vmem:[%s8331_s5 + $0x3a8] sm:$0xff] %v7567_v1  ;;  %v7574_v22 = vadd.f32 %v8220_v11, %v7573_v5 }
 0xce3   : > { %7660 = vst [vmem:[%s8331_s5 + $0x3b0] sm:$0xff] %v7568_v43  ;;  %v7589_v34 = vmul.f32 %v8222_v8, %v7317_v45  ;;  %vm7594_vm11 = vweird.f32 %v8222_v8 }
 0xce4   : > { %7661 = vst [vmem:[%s8331_s5 + $0x3b8] sm:$0xff] %v7569_v38  ;;  %v7578_v24 = vsel %vm7577_vm9, %v8220_v11, %v7574_v22  ;;  %vm7595_vm13 = vmor %vm7593_vm12, %vm7594_vm11 }
 0xce5   : > { %v7583_v48 = vsel %vm7580_vm10, %v7582_v33, %v7578_v24  ;;  %v7590_v63 = vsub.f32 1.0, %v7589_v34 }
 0xce6   : > { %v7584_v56 = vmul.f32 %v15236_v54, %v7583_v48  ;;  %v7585_v3 = vmul.f32 %v15237_v23, %v7583_v48  ;;  %v7586_v21 = vmul.f32 %v15238_v57, %v7583_v48  ;;  %v7587_v39 = vmul.f32 %v15239_v7, %v7583_v48 }
 0xce7   : > { %v7591_v13 = vmul.f32 %v8222_v8, %v7590_v63 }
 0xce8   : > { %7662 = vst [vmem:[%s8331_s5 + $0x3c0] sm:$0xff] %v7584_v56 }
 0xce9   : > { %7663 = vst [vmem:[%s8331_s5 + $0x3c8] sm:$0xff] %v7585_v3  ;;  %v7592_v46 = vadd.f32 %v8222_v8, %v7591_v13 }
 0xcea   : > { %7664 = vst [vmem:[%s8331_s5 + $0x3d0] sm:$0xff] %v7586_v21 }
 0xceb   : > { %7665 = vst [vmem:[%s8331_s5 + $0x3d8] sm:$0xff] %v7587_v39  ;;  %v7596_v28 = vsel %vm7595_vm13, %v8222_v8, %v7592_v46 }
 0xcec   : > { %v7601_v50 = vsel %vm7598_vm14, %v7600_v35, %v7596_v28 }
 0xced   : > { %v7602_v51 = vmul.f32 %v15240_v12, %v7601_v50  ;;  %v7603_v20 = vmul.f32 %v15241_v18, %v7601_v50  ;;  %v7604_v6 = vmul.f32 %v15242_v26, %v7601_v50  ;;  %v7605_v42 = vmul.f32 %v15243_v25, %v7601_v50 }
 0xcef   : > { %7666 = vst [vmem:[%s8331_s5 + $0x3e0] sm:$0xff] %v7602_v51 }
 0xcf0   : > { %7667 = vst [vmem:[%s8331_s5 + $0x3e8] sm:$0xff] %v7603_v20 }
 0xcf1   : > { %7668 = vst [vmem:[%s8331_s5 + $0x3f0] sm:$0xff] %v7604_v6 }
 0xcf2   : > { %7669 = vst [vmem:[%s8331_s5 + $0x3f8] sm:$0xff] %v7605_v42 }
 0xcf3 PF: > { %s14_s19 = sadd.s32 1, %s8261_s19   ;;  %s15244_s15 = smov %s8253_s17 }
 0xcf4   : > { %p11_p11 = scmp.ge.s32.totalorder %s14_s19, 54   ;;  %s15245_s16 = smov %s8257_s18 }
 0xcf5   : > { %s15246_s17 = smov %s15249_s20  ;;  %s15247_s18 = smov %s15253_s21 }
 0xcf6   :  { %13 = sbr.rel (!%p11_p11) target bundleno = 3 (0x3), region = 85 }

</bundles_post_ra>
